<compile_context>
chip_gen: v5e
topology: v5e:2x2
jax: 0.10.0
libtpu: 0.0.40
codegen_flags: <defaults>
</compile_context>

<pallas_src>
import functools
import math

import jax
import jax.numpy as jnp
from jax.experimental import pallas as pl
from jax.experimental.pallas import tpu as pltpu

_COMPUTE_DTYPE = jnp.bfloat16        # MXU-native; halves HBM/VMEM traffic
_MAX_ROW_TILE = 1024                 # upper bound on rows per 1x1 grid step


@functools.lru_cache(maxsize=None)
def _vmem_limit_bytes():
    """Generation-aware scoped-VMEM limit (~60% of physical, clipped)."""
    cap = 64 * 1024 * 1024           # conservative default (v7x physical)
    try:
        info = pltpu.get_tpu_info()
        cap = int(getattr(info, "vmem_capacity_bytes", cap) or cap)
    except Exception:
        pass
    return int(min(max(int(cap * 0.6), 32 * 1024 * 1024), 100 * 1024 * 1024))


def _cparams(dimension_semantics):
    return pltpu.CompilerParams(
        dimension_semantics=dimension_semantics,
        vmem_limit_bytes=_vmem_limit_bytes(),
    )


def _silu(y):
    # exp and the approximate reciprocal both run on the EUP slot (off VALU).
    return y * pl.reciprocal(1.0 + jnp.exp(-y), approx=True)


@functools.lru_cache(maxsize=None)
def _concat_ok(widths):
    """Probe: does Mosaic lower a minor-dim concat of these (unaligned) widths?

    Picks the single-matmul (K-merged) kernel bodies when True; otherwise we
    fall back to the previously validated per-chunk / per-tap partial matmuls.
    """
    rows = 8

    def k(*refs):
        refs[-1][...] = jnp.concatenate([r[...] for r in refs[:-1]], axis=-1)

    try:
        f = pl.pallas_call(
            k,
            out_shape=jax.ShapeDtypeStruct((rows, int(sum(widths))), _COMPUTE_DTYPE),
        )
        args = [jnp.zeros((rows, int(w)), _COMPUTE_DTYPE) for w in widths]
        jax.jit(f).lower(*args).compile()
        return True
    except Exception:
        return False


# ------------------------- fused 1x1 conv + BN + SiLU -----------------------

def _make_1x1_kernel(n_in, chunk_widths, prefix_width, merge_chunks):
    def kernel(*refs):
        x_refs = refs[:n_in]
        w_ref, b_ref = refs[n_in], refs[n_in + 1]
        o_ref = refs[n_in + 2]
        if n_in == 1:
            acc = jnp.dot(x_refs[0][...], w_ref[...],
                          preferred_element_type=jnp.float32)
        elif merge_chunks:
            # One matmul with K = sum(chunk_widths): fills the MXU K dim and
            # removes n_in-1 full-size f32 VPU accumulate adds (MRF chips).
            xk = jnp.concatenate([r[...] for r in x_refs], axis=-1)
            acc = jnp.dot(xk, w_ref[...], preferred_element_type=jnp.float32)
        else:
            acc = None
            off = 0
            for r, k_i in zip(x_refs, chunk_widths):
                d = jnp.dot(r[...], w_ref[off:off + k_i, :],
                            preferred_element_type=jnp.float32)
                acc = d if acc is None else acc + d
                off += k_i
        y = _silu(acc + b_ref[...])
        o_ref[...] = y.astype(o_ref.dtype)
        if prefix_width is not None:
            p_ref = refs[n_in + 3]
            p_ref[...] = y[:, :prefix_width].astype(p_ref.dtype)

    return kernel


def _pick_row_tile(M, K, Cout, vmem_limit):
    budget = max(vmem_limit // 3, 2 * 1024 * 1024)

    def need(t):
        return (2 * 2 * t * K          # input chunks (bf16, double-buffered)
                + 2 * 2 * t * Cout     # outputs (bf16, double-buffered)
                + 2 * K * Cout         # resident weights (bf16)
                + 8 * t * Cout)        # f32 accumulator / SiLU temporaries

    tm = _MAX_ROW_TILE
    while tm > 128 and need(tm) > budget:
        tm //= 2
    if M <= tm:
        # Small M: prefer one full tile (best HBM-roofline utilisation on the
        # single-TC chips).  Only carve a 2-step parallel axis (v7x megacore)
        # when each half still has >= 512 rows.
        if M >= 2 * 512 and M % 2 == 0 and (M // 2) % 8 == 0:
            return M // 2
        return M
    return tm


def fused_1x1_bn_silu(xs, w, bias, out_dtype=_COMPUTE_DTYPE, prefix_width=None):
    """SiLU(concat(xs, -1) @ w + bias) without materialising the concat in HBM.

    xs:   list of (M, k_i) compute-dtype row-major activations.
    w:    (sum_i k_i, Cout) compute-dtype weights (BN scale folded in).
    bias: (Cout,) f32 folded-BN bias.
    Returns (out, prefix): out is (M, Cout); prefix is out[:, :prefix_width]
    written by the same kernel (or None).
    """
    M = xs[0].shape[0]
    chunk_widths = tuple(int(x.shape[1]) for x in xs)
    K = sum(chunk_widths)
    Cout = w.shape[1]
    assert w.shape[0] == K
    n_in = len(xs)

    vmem_limit = _vmem_limit_bytes()
    tm = _pick_row_tile(M, K, Cout, vmem_limit)
    Mp = pl.cdiv(M, tm) * tm
    if Mp != M:
        xs = [jnp.pad(x, ((0, Mp - M), (0, 0))) for x in xs]

    merge = n_in > 1 and _concat_ok(chunk_widths)
    bias2 = bias.reshape(1, Cout).astype(jnp.float32)

    x_specs = [pl.BlockSpec((tm, kw), lambda i: (i, 0)) for kw in chunk_widths]
    in_specs = x_specs + [
        pl.BlockSpec((K, Cout), lambda i: (0, 0)),   # weights stay resident
        pl.BlockSpec((1, Cout), lambda i: (0, 0)),
    ]
    out_specs = [pl.BlockSpec((tm, Cout), lambda i: (i, 0))]
    out_shapes = [jax.ShapeDtypeStruct((Mp, Cout), out_dtype)]
    if prefix_width is not None:
        out_specs.append(pl.BlockSpec((tm, prefix_width), lambda i: (i, 0)))
        out_shapes.append(jax.ShapeDtypeStruct((Mp, prefix_width), out_dtype))

    outs = pl.pallas_call(
        _make_1x1_kernel(n_in, chunk_widths, prefix_width, merge),
        out_shape=out_shapes,
        grid_spec=pltpu.PrefetchScalarGridSpec(
            num_scalar_prefetch=0,
            grid=(Mp // tm,),
            in_specs=in_specs,
            out_specs=out_specs,
        ),
        compiler_params=_cparams(("parallel",)),
    )(*(list(xs) + [w, bias2]))

    if not isinstance(outs, (list, tuple)):
        outs = [outs]
    outs = [o[:M] if Mp != M else o for o in outs]
    main = outs[0]
    prefix = outs[1] if prefix_width is not None else None
    return main, prefix


# ------------------------- fused 3x3 conv + BN + SiLU -----------------------

def _make_conv3x3_kernel(th, W, Cin, with_residual, use_im2col):
    def kernel(*refs):
        if with_residual:
            x_ref, w_ref, b_ref, r_ref, o_ref = refs
        else:
            x_ref, w_ref, b_ref, o_ref = refs
        # x_ref: (1, 1, th+2, W+2, Cin) halo'd row tile resident in VMEM.
        taps = []
        for ky in range(3):
            for kx in range(3):
                taps.append(
                    x_ref[0, 0, pl.ds(ky, th), pl.ds(kx, W), :].reshape(th * W, Cin))
        if use_im2col:
            # Single MXU matmul with K = 9*Cin (VMEM-local im2col).
            col = jnp.concatenate(taps, axis=-1)
            acc = jnp.dot(col, w_ref[...], preferred_element_type=jnp.float32)
        else:
            acc = None
            for t, tap in enumerate(taps):
                d = jnp.dot(tap, w_ref[t * Cin:(t + 1) * Cin, :],
                            preferred_element_type=jnp.float32)
                acc = d if acc is None else acc + d
        y = _silu(acc + b_ref[...])
        if with_residual:
            y = y + r_ref[0].astype(jnp.float32)      # x + cv2(cv1(x))
        o_ref[0] = y.astype(o_ref.dtype)

    return kernel


def _pick_h_tile(N, H, W, Cin, Cout, vmem_limit):
    budget = max(vmem_limit // 4, 4 * 1024 * 1024)

    def need(th):
        rows = th * W
        return ((th + 2) * (W + 2) * Cin * 2 * 2     # halo'd input (bf16, dbuf)
                + rows * 9 * Cin * 2                 # im2col value (bf16)
                + rows * Cout * 4 * 2                # f32 acc + SiLU temporaries
                + rows * Cout * 2 * 2 * 2            # out (+residual) blocks
                + 9 * Cin * Cout * 2)                # weights

    cands = [t for t in range(H, 0, -1)
             if H % t == 0 and (t == H or (t * W) % 8 == 0)]
    th = cands[-1]
    for t in cands:
        if need(t) <= budget:
            th = t
            break
    if N * (H // th) < 2:                            # v7x: keep both TCs busy
        for t in cands:
            if t < th:
                th = t
                break
    return th


def conv3x3_bn_silu(x, w, bias, residual=None, out_dtype=_COMPUTE_DTYPE):
    """Fused 3x3 conv (stride 1, pad 1) + folded-BN bias + SiLU [+ residual].

    x:        (N, H, W, Cin) compute-dtype NHWC activation.
    w:        (9*Cin, Cout) compute-dtype weights, row = (ky*3+kx)*Cin + cin.
    bias:     (Cout,) f32.
    residual: optional (N, H*W, Cout), added after SiLU.
    Returns   (N, H*W, Cout).
    """
    N, H, W, Cin = x.shape
    Cout = w.shape[-1]
    assert w.shape[0] == 9 * Cin

    vmem_limit = _vmem_limit_bytes()
    th = _pick_h_tile(N, H, W, Cin, Cout, vmem_limit)
    n_h = H // th

    xp = jnp.pad(x, ((0, 0), (1, 1), (1, 1), (0, 0)))            # spatial halo
    if n_h == 1:
        xt = xp[:, None]
    else:
        # Overlapping halo'd row tiles duplicated once in HBM (~2/th extra
        # traffic) so they stay expressible with plain auto-pipelined BlockSpecs.
        xt = jnp.concatenate(
            [xp[:, None, i * th:i * th + th + 2] for i in range(n_h)], axis=1)

    bias2 = bias.reshape(1, Cout).astype(jnp.float32)
    use_im2col = _concat_ok(tuple([int(Cin)] * 9))

    in_specs = [
        pl.BlockSpec((1, 1, th + 2, W + 2, Cin), lambda n, h: (n, h, 0, 0, 0)),
        pl.BlockSpec((9 * Cin, Cout), lambda n, h: (0, 0)),      # resident
        pl.BlockSpec((1, Cout), lambda n, h: (0, 0)),
    ]
    args = [xt, w, bias2]
    if residual is not None:
        in_specs.append(pl.BlockSpec((1, th * W, Cout), lambda n, h: (n, h, 0)))
        args.append(residual)

    out = pl.pallas_call(
        _make_conv3x3_kernel(th, W, Cin, residual is not None, use_im2col),
        out_shape=jax.ShapeDtypeStruct((N, H * W, Cout), out_dtype),
        grid_spec=pltpu.PrefetchScalarGridSpec(
            num_scalar_prefetch=0,
            grid=(N, n_h),
            in_specs=in_specs,
            out_specs=pl.BlockSpec((1, th * W, Cout), lambda n, h: (n, h, 0)),
        ),
        compiler_params=_cparams(("parallel", "parallel")),
    )(*args)
    return out


# --------------------------------- C2f graph --------------------------------

def bottleneck(x4d, p, shortcut=True):
    N, H, W, c = x4d.shape
    y = conv3x3_bn_silu(x4d, p["conv1"]["w"], p["conv1"]["bias"])
    res = x4d.reshape(N, H * W, c) if shortcut else None
    y = conv3x3_bn_silu(y.reshape(N, H, W, c), p["conv2"]["w"], p["conv2"]["bias"],
                        residual=res)
    return y                                                     # (N, H*W, c)


def c2f_forward(x_nchw, params, shortcut=True):
    """Matches C2f.forward.  x_nchw: (N, Cin, H, W) -> (N, Cout, H, W)."""
    N, Cin, H, W = x_nchw.shape
    # Single NCHW -> NHWC transpose + bf16 cast at the module boundary.
    x = jnp.transpose(x_nchw, (0, 2, 3, 1)).astype(_COMPUTE_DTYPE)
    x2d = x.reshape(N * H * W, Cin)

    p1 = params["conv1"]
    cout1 = p1["w"].shape[1]
    c = cout1 // 2
    # conv1 (1x1) writes one lane-dense (M, 2c) array (covering torch's
    # chunk(2) halves for conv2) plus the x1 prefix the bottlenecks consume.
    y12, x1 = fused_1x1_bn_silu([x2d], p1["w"], p1["bias"],
                                out_dtype=_COMPUTE_DTYPE, prefix_width=c)

    chunks = [y12]                                   # covers [x1, x2]
    cur = x1.reshape(N, H, W, c)
    for bp in params["bottlenecks"]:
        cur2d = bottleneck(cur, bp, shortcut)        # (N, H*W, c)
        chunks.append(cur2d.reshape(N * H * W, c))
        cur = cur2d.reshape(N, H, W, c)

    # conv2 (1x1) consumes the chunk list (== torch.cat(y, dim=1)) via an
    # in-VMEM concat -> one matmul with K = (n+2)*c; no HBM concat pass.
    p2 = params["conv2"]
    out2d, _ = fused_1x1_bn_silu(chunks, p2["w"], p2["bias"],
                                 out_dtype=_COMPUTE_DTYPE)
    cout2 = p2["w"].shape[1]
    out = out2d.reshape(N, H, W, cout2)
    # Transpose reads bf16 and writes f32 (cheaper than an f32 transpose).
    return jnp.transpose(out, (0, 3, 1, 2)).astype(jnp.float32)


# --------------------------- deterministic params ---------------------------

def _init_convblock(key, cin, cout, k):
    kw, kg, kb, km, kv = jax.random.split(key, 5)
    fan_in = cin * k * k
    bound = 1.0 / math.sqrt(fan_in)
    w = jax.random.uniform(kw, (cout, cin, k, k), jnp.float32, -bound, bound)
    gamma = jax.random.uniform(kg, (cout,), jnp.float32, 0.5, 1.5)
    beta = jax.random.uniform(kb, (cout,), jnp.float32, -0.2, 0.2)
    r_mean = jax.random.uniform(km, (cout,), jnp.float32, -0.1, 0.1)
    r_var = jax.random.uniform(kv, (cout,), jnp.float32, 0.5, 1.5)
    eps = 1e-5
    scale = gamma / jnp.sqrt(r_var + eps)            # folded eval-mode BN
    bias = beta - r_mean * scale
    # Fold the BN scale into the conv weight and cast to the MXU compute dtype
    # once, here (bf16 inference tolerance).
    w_folded = w * scale[:, None, None, None]
    if k == 1:
        return {"w": w_folded.reshape(cout, cin).T.astype(_COMPUTE_DTYPE),
                "bias": bias}
    # torch (Cout, Cin, 3, 3) -> (ky, kx, Cin, Cout) -> (9*Cin, Cout): row
    # order matches the kernel's tap-major im2col.
    wk = jnp.transpose(w_folded, (2, 3, 1, 0)).reshape(k * k * cin, cout)
    return {"w": wk.astype(_COMPUTE_DTYPE), "bias": bias}


def init_c2f(key, in_channels, out_channels, n):
    keys = jax.random.split(key, 2 + 2 * n)
    c = out_channels // 2
    return {
        "conv1": _init_convblock(keys[0], in_channels, out_channels, 1),
        "conv2": _init_convblock(keys[1], n * c + out_channels, out_channels, 1),
        "bottlenecks": [
            {
                "conv1": _init_convblock(keys[2 + 2 * i], c, c, 3),
                "conv2": _init_convblock(keys[3 + 2 * i], c, c, 3),
            }
            for i in range(n)
        ],
    }


# ----------------------------------- main -----------------------------------

if __name__ == "__main__":
    key = jax.random.PRNGKey(0)
    kx, kp = jax.random.split(key)

    in_channels, out_channels, n, shortcut = 16, 32, 2, True
    N, H, W = 2, 16, 16

    x = jax.random.normal(kx, (N, in_channels, H, W), jnp.float32)
    params = init_c2f(kp, in_channels, out_channels, n)

    fwd = jax.jit(functools.partial(c2f_forward, shortcut=shortcut))
    out = fwd(x, params)
    out = jax.block_until_ready(out)

    assert out.shape == (N, out_channels, H, W), out.shape
    assert bool(jnp.all(jnp.isfinite(out)))
    print("KERNEL_OK")
</pallas_src>

<mosaic_0001>
module attributes {stable_mosaic.version = 11 : i64} {
  func.func @kernel(%arg0: i32, %arg1: memref<512x16xbf16, #tpu.memory_space<vmem>>, %arg2: memref<16x32xbf16, #tpu.memory_space<vmem>>, %arg3: memref<1x32xf32, #tpu.memory_space<vmem>>, %arg4: memref<512x32xbf16, #tpu.memory_space<vmem>>, %arg5: memref<512x16xbf16, #tpu.memory_space<vmem>>) attributes {dimension_semantics = [#tpu.dimension_semantics<parallel>], iteration_bounds = array<i64: 1>, scalar_prefetch = 0 : i64, scratch_operands = 0 : i64, tpu.core_type = #tpu.core_type<tc>, window_params = [{transform_indices = @transform_0, window_bounds = array<i64: 512, 16>}, {pipeline_mode = #tpu.pipeline_mode<synchronous>, transform_indices = @transform_1, window_bounds = array<i64: 16, 32>}, {pipeline_mode = #tpu.pipeline_mode<synchronous>, transform_indices = @transform_2, window_bounds = array<i64: 1, 32>}, {transform_indices = @transform_3, window_bounds = array<i64: 512, 32>}, {transform_indices = @transform_4, window_bounds = array<i64: 512, 16>}]} {
    %c0 = arith.constant 0 : index
    %c0_0 = arith.constant 0 : index
    %0 = vector.load %arg1[%c0, %c0_0] : memref<512x16xbf16, #tpu.memory_space<vmem>>, vector<512x16xbf16>
    %c0_1 = arith.constant 0 : index
    %c0_2 = arith.constant 0 : index
    %1 = vector.load %arg2[%c0_1, %c0_2] : memref<16x32xbf16, #tpu.memory_space<vmem>>, vector<16x32xbf16>
    %cst = arith.constant dense<0.000000e+00> : vector<512x32xf32>
    %2 = tpu.matmul %0, %1, %cst {dimension_numbers = #tpu.dot_dimension_numbers<[1], [0], [0], [1], [0, 0, 1, 1], [], []>} : vector<512x16xbf16>, vector<16x32xbf16>, vector<512x32xf32> -> vector<512x32xf32>
    %c0_3 = arith.constant 0 : index
    %c0_4 = arith.constant 0 : index
    %3 = vector.load %arg3[%c0_3, %c0_4] : memref<1x32xf32, #tpu.memory_space<vmem>>, vector<1x32xf32>
    %4 = vector.broadcast %3 : vector<1x32xf32> to vector<512x32xf32>
    %5 = arith.addf %2, %4 : vector<512x32xf32>
    %cst_5 = arith.constant 0.000000e+00 : f32
    %6 = vector.broadcast %cst_5 : f32 to vector<512x32xf32>
    %7 = arith.subf %6, %5 : vector<512x32xf32>
    %8 = math.exp %7 : vector<512x32xf32>
    %cst_6 = arith.constant 1.000000e+00 : f32
    %9 = vector.broadcast %cst_6 : f32 to vector<512x32xf32>
    %10 = arith.addf %9, %8 : vector<512x32xf32>
    %11 = tpu.reciprocal %10 {approx = true} : vector<512x32xf32> -> vector<512x32xf32>
    %12 = arith.mulf %5, %11 : vector<512x32xf32>
    %13 = arith.truncf %12 : vector<512x32xf32> to vector<512x32xbf16>
    %c0_7 = arith.constant 0 : index
    %c0_8 = arith.constant 0 : index
    %14 = vector.load %arg4[%c0_7, %c0_8] : memref<512x32xbf16, #tpu.memory_space<vmem>>, vector<512x32xbf16>
    tpu.vector_store %arg4[%c0_7, %c0_8], %13 {strides = array<i32>} : memref<512x32xbf16, #tpu.memory_space<vmem>>, vector<512x32xbf16>,
    %15 = vector.extract_strided_slice %12 {offsets = [0, 0], sizes = [512, 16], strides = [1, 1]} : vector<512x32xf32> to vector<512x16xf32>
    %16 = arith.truncf %15 : vector<512x16xf32> to vector<512x16xbf16>
    %c0_9 = arith.constant 0 : index
    %c0_10 = arith.constant 0 : index
    %17 = vector.load %arg5[%c0_9, %c0_10] : memref<512x16xbf16, #tpu.memory_space<vmem>>, vector<512x16xbf16>
    tpu.vector_store %arg5[%c0_9, %c0_10], %16 {strides = array<i32>} : memref<512x16xbf16, #tpu.memory_space<vmem>>, vector<512x16xbf16>,
    return
  }
  func.func @transform_0(%arg0: i32) -> (i32, i32) {
    %c0_i32 = arith.constant 0 : i32
    %c0_i32_0 = arith.constant 0 : i32
    return %arg0, %c0_i32 : i32, i32
  }
  func.func @transform_1(%arg0: i32) -> (i32, i32) {
    %c0_i32 = arith.constant 0 : i32
    %c0_i32_0 = arith.constant 0 : i32
    %c0_i32_1 = arith.constant 0 : i32
    return %c0_i32, %c0_i32_0 : i32, i32
  }
  func.func @transform_2(%arg0: i32) -> (i32, i32) {
    %c0_i32 = arith.constant 0 : i32
    %c0_i32_0 = arith.constant 0 : i32
    %c0_i32_1 = arith.constant 0 : i32
    return %c0_i32, %c0_i32_0 : i32, i32
  }
  func.func @transform_3(%arg0: i32) -> (i32, i32) {
    %c0_i32 = arith.constant 0 : i32
    %c0_i32_0 = arith.constant 0 : i32
    return %arg0, %c0_i32 : i32, i32
  }
  func.func @transform_4(%arg0: i32) -> (i32, i32) {
    %c0_i32 = arith.constant 0 : i32
    %c0_i32_0 = arith.constant 0 : i32
    return %arg0, %c0_i32 : i32, i32
  }
}

module attributes {stable_mosaic.version = 11 : i64} {
  func.func @kernel(%arg0: i32, %arg1: i32, %arg2: memref<1x1x18x18x16xbf16, #tpu.memory_space<vmem>>, %arg3: memref<144x16xbf16, #tpu.memory_space<vmem>>, %arg4: memref<1x16xf32, #tpu.memory_space<vmem>>, %arg5: memref<1x256x16xbf16, #tpu.memory_space<vmem>>, %arg6: memref<1x256x16xbf16, #tpu.memory_space<vmem>>) attributes {dimension_semantics = [#tpu.dimension_semantics<parallel>, #tpu.dimension_semantics<parallel>], iteration_bounds = array<i64: 2, 1>, scalar_prefetch = 0 : i64, scratch_operands = 0 : i64, tpu.core_type = #tpu.core_type<tc>, window_params = [{transform_indices = @transform_0, window_bounds = array<i64: 1, 1, 18, 18, 16>}, {pipeline_mode = #tpu.pipeline_mode<synchronous>, transform_indices = @transform_1, window_bounds = array<i64: 144, 16>}, {pipeline_mode = #tpu.pipeline_mode<synchronous>, transform_indices = @transform_2, window_bounds = array<i64: 1, 16>}, {transform_indices = @transform_3, window_bounds = array<i64: 1, 256, 16>}, {transform_indices = @transform_4, window_bounds = array<i64: 1, 256, 16>}]} {
    %c0 = arith.constant 0 : index
    %c0_0 = arith.constant 0 : index
    %c0_1 = arith.constant 0 : index
    %c0_2 = arith.constant 0 : index
    %c0_3 = arith.constant 0 : index
    %0 = vector.load %arg2[%c0, %c0_0, %c0_1, %c0_2, %c0_3] : memref<1x1x18x18x16xbf16, #tpu.memory_space<vmem>>, vector<1x1x16x16x16xbf16>
    %1 = vector.shape_cast %0 : vector<1x1x16x16x16xbf16> to vector<16x16x16xbf16>
    %2 = vector.shape_cast %1 : vector<16x16x16xbf16> to vector<256x16xbf16>
    %c0_4 = arith.constant 0 : index
    %c0_5 = arith.constant 0 : index
    %c0_6 = arith.constant 0 : index
    %c1 = arith.constant 1 : index
    %c0_7 = arith.constant 0 : index
    %3 = vector.load %arg2[%c0_4, %c0_5, %c0_6, %c1, %c0_7] : memref<1x1x18x18x16xbf16, #tpu.memory_space<vmem>>, vector<1x1x16x16x16xbf16>
    %4 = vector.shape_cast %3 : vector<1x1x16x16x16xbf16> to vector<16x16x16xbf16>
    %5 = vector.shape_cast %4 : vector<16x16x16xbf16> to vector<256x16xbf16>
    %c0_8 = arith.constant 0 : index
    %c0_9 = arith.constant 0 : index
    %c0_10 = arith.constant 0 : index
    %c2 = arith.constant 2 : index
    %c0_11 = arith.constant 0 : index
    %6 = vector.load %arg2[%c0_8, %c0_9, %c0_10, %c2, %c0_11] : memref<1x1x18x18x16xbf16, #tpu.memory_space<vmem>>, vector<1x1x16x16x16xbf16>
    %7 = vector.shape_cast %6 : vector<1x1x16x16x16xbf16> to vector<16x16x16xbf16>
    %8 = vector.shape_cast %7 : vector<16x16x16xbf16> to vector<256x16xbf16>
    %c0_12 = arith.constant 0 : index
    %c0_13 = arith.constant 0 : index
    %c1_14 = arith.constant 1 : index
    %c0_15 = arith.constant 0 : index
    %c0_16 = arith.constant 0 : index
    %9 = vector.load %arg2[%c0_12, %c0_13, %c1_14, %c0_15, %c0_16] : memref<1x1x18x18x16xbf16, #tpu.memory_space<vmem>>, vector<1x1x16x16x16xbf16>
    %10 = vector.shape_cast %9 : vector<1x1x16x16x16xbf16> to vector<16x16x16xbf16>
    %11 = vector.shape_cast %10 : vector<16x16x16xbf16> to vector<256x16xbf16>
    %c0_17 = arith.constant 0 : index
    %c0_18 = arith.constant 0 : index
    %c1_19 = arith.constant 1 : index
    %c1_20 = arith.constant 1 : index
    %c0_21 = arith.constant 0 : index
    %12 = vector.load %arg2[%c0_17, %c0_18, %c1_19, %c1_20, %c0_21] : memref<1x1x18x18x16xbf16, #tpu.memory_space<vmem>>, vector<1x1x16x16x16xbf16>
    %13 = vector.shape_cast %12 : vector<1x1x16x16x16xbf16> to vector<16x16x16xbf16>
    %14 = vector.shape_cast %13 : vector<16x16x16xbf16> to vector<256x16xbf16>
    %c0_22 = arith.constant 0 : index
    %c0_23 = arith.constant 0 : index
    %c1_24 = arith.constant 1 : index
    %c2_25 = arith.constant 2 : index
    %c0_26 = arith.constant 0 : index
    %15 = vector.load %arg2[%c0_22, %c0_23, %c1_24, %c2_25, %c0_26] : memref<1x1x18x18x16xbf16, #tpu.memory_space<vmem>>, vector<1x1x16x16x16xbf16>
    %16 = vector.shape_cast %15 : vector<1x1x16x16x16xbf16> to vector<16x16x16xbf16>
    %17 = vector.shape_cast %16 : vector<16x16x16xbf16> to vector<256x16xbf16>
    %c0_27 = arith.constant 0 : index
    %c0_28 = arith.constant 0 : index
    %c2_29 = arith.constant 2 : index
    %c0_30 = arith.constant 0 : index
    %c0_31 = arith.constant 0 : index
    %18 = vector.load %arg2[%c0_27, %c0_28, %c2_29, %c0_30, %c0_31] : memref<1x1x18x18x16xbf16, #tpu.memory_space<vmem>>, vector<1x1x16x16x16xbf16>
    %19 = vector.shape_cast %18 : vector<1x1x16x16x16xbf16> to vector<16x16x16xbf16>
    %20 = vector.shape_cast %19 : vector<16x16x16xbf16> to vector<256x16xbf16>
    %c0_32 = arith.constant 0 : index
    %c0_33 = arith.constant 0 : index
    %c2_34 = arith.constant 2 : index
    %c1_35 = arith.constant 1 : index
    %c0_36 = arith.constant 0 : index
    %21 = vector.load %arg2[%c0_32, %c0_33, %c2_34, %c1_35, %c0_36] : memref<1x1x18x18x16xbf16, #tpu.memory_space<vmem>>, vector<1x1x16x16x16xbf16>
    %22 = vector.shape_cast %21 : vector<1x1x16x16x16xbf16> to vector<16x16x16xbf16>
    %23 = vector.shape_cast %22 : vector<16x16x16xbf16> to vector<256x16xbf16>
    %c0_37 = arith.constant 0 : index
    %c0_38 = arith.constant 0 : index
    %c2_39 = arith.constant 2 : index
    %c2_40 = arith.constant 2 : index
    %c0_41 = arith.constant 0 : index
    %24 = vector.load %arg2[%c0_37, %c0_38, %c2_39, %c2_40, %c0_41] : memref<1x1x18x18x16xbf16, #tpu.memory_space<vmem>>, vector<1x1x16x16x16xbf16>
    %25 = vector.shape_cast %24 : vector<1x1x16x16x16xbf16> to vector<16x16x16xbf16>
    %26 = vector.shape_cast %25 : vector<16x16x16xbf16> to vector<256x16xbf16>
    %c0_42 = arith.constant 0 : index
    %c0_43 = arith.constant 0 : index
    %27 = vector.load %arg3[%c0_42, %c0_43] : memref<144x16xbf16, #tpu.memory_space<vmem>>, vector<16x16xbf16>
    %cst = arith.constant dense<0.000000e+00> : vector<256x16xf32>
    %28 = tpu.matmul %2, %27, %cst {dimension_numbers = #tpu.dot_dimension_numbers<[1], [0], [0], [1], [0, 0, 1, 1], [], []>} : vector<256x16xbf16>, vector<16x16xbf16>, vector<256x16xf32> -> vector<256x16xf32>
    %c16 = arith.constant 16 : index
    %c0_44 = arith.constant 0 : index
    %29 = vector.load %arg3[%c16, %c0_44] : memref<144x16xbf16, #tpu.memory_space<vmem>>, vector<16x16xbf16>
    %cst_45 = arith.constant dense<0.000000e+00> : vector<256x16xf32>
    %30 = tpu.matmul %5, %29, %cst_45 {dimension_numbers = #tpu.dot_dimension_numbers<[1], [0], [0], [1], [0, 0, 1, 1], [], []>} : vector<256x16xbf16>, vector<16x16xbf16>, vector<256x16xf32> -> vector<256x16xf32>
    %31 = arith.addf %28, %30 : vector<256x16xf32>
    %c32 = arith.constant 32 : index
    %c0_46 = arith.constant 0 : index
    %32 = vector.load %arg3[%c32, %c0_46] : memref<144x16xbf16, #tpu.memory_space<vmem>>, vector<16x16xbf16>
    %cst_47 = arith.constant dense<0.000000e+00> : vector<256x16xf32>
    %33 = tpu.matmul %8, %32, %cst_47 {dimension_numbers = #tpu.dot_dimension_numbers<[1], [0], [0], [1], [0, 0, 1, 1], [], []>} : vector<256x16xbf16>, vector<16x16xbf16>, vector<256x16xf32> -> vector<256x16xf32>
    %34 = arith.addf %31, %33 : vector<256x16xf32>
    %c48 = arith.constant 48 : index
    %c0_48 = arith.constant 0 : index
    %35 = vector.load %arg3[%c48, %c0_48] : memref<144x16xbf16, #tpu.memory_space<vmem>>, vector<16x16xbf16>
    %cst_49 = arith.constant dense<0.000000e+00> : vector<256x16xf32>
    %36 = tpu.matmul %11, %35, %cst_49 {dimension_numbers = #tpu.dot_dimension_numbers<[1], [0], [0], [1], [0, 0, 1, 1], [], []>} : vector<256x16xbf16>, vector<16x16xbf16>, vector<256x16xf32> -> vector<256x16xf32>
    %37 = arith.addf %34, %36 : vector<256x16xf32>
    %c64 = arith.constant 64 : index
    %c0_50 = arith.constant 0 : index
    %38 = vector.load %arg3[%c64, %c0_50] : memref<144x16xbf16, #tpu.memory_space<vmem>>, vector<16x16xbf16>
    %cst_51 = arith.constant dense<0.000000e+00> : vector<256x16xf32>
    %39 = tpu.matmul %14, %38, %cst_51 {dimension_numbers = #tpu.dot_dimension_numbers<[1], [0], [0], [1], [0, 0, 1, 1], [], []>} : vector<256x16xbf16>, vector<16x16xbf16>, vector<256x16xf32> -> vector<256x16xf32>
    %40 = arith.addf %37, %39 : vector<256x16xf32>
    %c80 = arith.constant 80 : index
    %c0_52 = arith.constant 0 : index
    %41 = vector.load %arg3[%c80, %c0_52] : memref<144x16xbf16, #tpu.memory_space<vmem>>, vector<16x16xbf16>
    %cst_53 = arith.constant dense<0.000000e+00> : vector<256x16xf32>
    %42 = tpu.matmul %17, %41, %cst_53 {dimension_numbers = #tpu.dot_dimension_numbers<[1], [0], [0], [1], [0, 0, 1, 1], [], []>} : vector<256x16xbf16>, vector<16x16xbf16>, vector<256x16xf32> -> vector<256x16xf32>
    %43 = arith.addf %40, %42 : vector<256x16xf32>
    %c96 = arith.constant 96 : index
    %c0_54 = arith.constant 0 : index
    %44 = vector.load %arg3[%c96, %c0_54] : memref<144x16xbf16, #tpu.memory_space<vmem>>, vector<16x16xbf16>
    %cst_55 = arith.constant dense<0.000000e+00> : vector<256x16xf32>
    %45 = tpu.matmul %20, %44, %cst_55 {dimension_numbers = #tpu.dot_dimension_numbers<[1], [0], [0], [1], [0, 0, 1, 1], [], []>} : vector<256x16xbf16>, vector<16x16xbf16>, vector<256x16xf32> -> vector<256x16xf32>
    %46 = arith.addf %43, %45 : vector<256x16xf32>
    %c112 = arith.constant 112 : index
    %c0_56 = arith.constant 0 : index
    %47 = vector.load %arg3[%c112, %c0_56] : memref<144x16xbf16, #tpu.memory_space<vmem>>, vector<16x16xbf16>
    %cst_57 = arith.constant dense<0.000000e+00> : vector<256x16xf32>
    %48 = tpu.matmul %23, %47, %cst_57 {dimension_numbers = #tpu.dot_dimension_numbers<[1], [0], [0], [1], [0, 0, 1, 1], [], []>} : vector<256x16xbf16>, vector<16x16xbf16>, vector<256x16xf32> -> vector<256x16xf32>
    %49 = arith.addf %46, %48 : vector<256x16xf32>
    %c128 = arith.constant 128 : index
    %c0_58 = arith.constant 0 : index
    %50 = vector.load %arg3[%c128, %c0_58] : memref<144x16xbf16, #tpu.memory_space<vmem>>, vector<16x16xbf16>
    %cst_59 = arith.constant dense<0.000000e+00> : vector<256x16xf32>
    %51 = tpu.matmul %26, %50, %cst_59 {dimension_numbers = #tpu.dot_dimension_numbers<[1], [0], [0], [1], [0, 0, 1, 1], [], []>} : vector<256x16xbf16>, vector<16x16xbf16>, vector<256x16xf32> -> vector<256x16xf32>
    %52 = arith.addf %49, %51 : vector<256x16xf32>
    %c0_60 = arith.constant 0 : index
    %c0_61 = arith.constant 0 : index
    %53 = vector.load %arg4[%c0_60, %c0_61] : memref<1x16xf32, #tpu.memory_space<vmem>>, vector<1x16xf32>
    %54 = vector.broadcast %53 : vector<1x16xf32> to vector<256x16xf32>
    %55 = arith.addf %52, %54 : vector<256x16xf32>
    %cst_62 = arith.constant 0.000000e+00 : f32
    %56 = vector.broadcast %cst_62 : f32 to vector<256x16xf32>
    %57 = arith.subf %56, %55 : vector<256x16xf32>
    %58 = math.exp %57 : vector<256x16xf32>
    %cst_63 = arith.constant 1.000000e+00 : f32
    %59 = vector.broadcast %cst_63 : f32 to vector<256x16xf32>
    %60 = arith.addf %59, %58 : vector<256x16xf32>
    %61 = tpu.reciprocal %60 {approx = true} : vector<256x16xf32> -> vector<256x16xf32>
    %62 = arith.mulf %55, %61 : vector<256x16xf32>
    %c0_64 = arith.constant 0 : index
    %c0_65 = arith.constant 0 : index
    %c0_66 = arith.constant 0 : index
    %63 = vector.load %arg5[%c0_64, %c0_65, %c0_66] : memref<1x256x16xbf16, #tpu.memory_space<vmem>>, vector<1x256x16xbf16>
    %64 = vector.shape_cast %63 : vector<1x256x16xbf16> to vector<256x16xbf16>
    %65 = arith.extf %64 : vector<256x16xbf16> to vector<256x16xf32>
    %66 = arith.addf %62, %65 : vector<256x16xf32>
    %67 = arith.truncf %66 : vector<256x16xf32> to vector<256x16xbf16>
    %c0_67 = arith.constant 0 : index
    %c0_68 = arith.constant 0 : index
    %c0_69 = arith.constant 0 : index
    %68 = vector.load %arg6[%c0_67, %c0_68, %c0_69] : memref<1x256x16xbf16, #tpu.memory_space<vmem>>, vector<1x256x16xbf16>
    %69 = vector.shape_cast %68 : vector<1x256x16xbf16> to vector<256x16xbf16>
    %70 = vector.shape_cast %67 : vector<256x16xbf16> to vector<1x256x16xbf16>
    tpu.vector_store %arg6[%c0_67, %c0_68, %c0_69], %70 {strides = array<i32>} : memref<1x256x16xbf16, #tpu.memory_space<vmem>>, vector<1x256x16xbf16>,
    return
  }
  func.func @transform_0(%arg0: i32, %arg1: i32) -> (i32, i32, i32, i32, i32) {
    %c0_i32 = arith.constant 0 : i32
    %c0_i32_0 = arith.constant 0 : i32
    %c0_i32_1 = arith.constant 0 : i32
    %c0_i32_2 = arith.constant 0 : i32
    return %arg0, %arg1, %c0_i32, %c0_i32_0, %c0_i32_1 : i32, i32, i32, i32, i32
  }
  func.func @transform_1(%arg0: i32, %arg1: i32) -> (i32, i32) {
    %c0_i32 = arith.constant 0 : i32
    %c0_i32_0 = arith.constant 0 : i32
    %c0_i32_1 = arith.constant 0 : i32
    return %c0_i32, %c0_i32_0 : i32, i32
  }
  func.func @transform_2(%arg0: i32, %arg1: i32) -> (i32, i32) {
    %c0_i32 = arith.constant 0 : i32
    %c0_i32_0 = arith.constant 0 : i32
    %c0_i32_1 = arith.constant 0 : i32
    return %c0_i32, %c0_i32_0 : i32, i32
  }
  func.func @transform_3(%arg0: i32, %arg1: i32) -> (i32, i32, i32) {
    %c0_i32 = arith.constant 0 : i32
    %c0_i32_0 = arith.constant 0 : i32
    return %arg0, %arg1, %c0_i32 : i32, i32, i32
  }
  func.func @transform_4(%arg0: i32, %arg1: i32) -> (i32, i32, i32) {
    %c0_i32 = arith.constant 0 : i32
    %c0_i32_0 = arith.constant 0 : i32
    return %arg0, %arg1, %c0_i32 : i32, i32, i32
  }
}

module attributes {stable_mosaic.version = 11 : i64} {
  func.func @kernel(%arg0: i32, %arg1: i32, %arg2: memref<1x1x18x18x16xbf16, #tpu.memory_space<vmem>>, %arg3: memref<144x16xbf16, #tpu.memory_space<vmem>>, %arg4: memref<1x16xf32, #tpu.memory_space<vmem>>, %arg5: memref<1x256x16xbf16, #tpu.memory_space<vmem>>) attributes {dimension_semantics = [#tpu.dimension_semantics<parallel>, #tpu.dimension_semantics<parallel>], iteration_bounds = array<i64: 2, 1>, scalar_prefetch = 0 : i64, scratch_operands = 0 : i64, tpu.core_type = #tpu.core_type<tc>, window_params = [{transform_indices = @transform_0, window_bounds = array<i64: 1, 1, 18, 18, 16>}, {pipeline_mode = #tpu.pipeline_mode<synchronous>, transform_indices = @transform_1, window_bounds = array<i64: 144, 16>}, {pipeline_mode = #tpu.pipeline_mode<synchronous>, transform_indices = @transform_2, window_bounds = array<i64: 1, 16>}, {transform_indices = @transform_3, window_bounds = array<i64: 1, 256, 16>}]} {
    %c0 = arith.constant 0 : index
    %c0_0 = arith.constant 0 : index
    %c0_1 = arith.constant 0 : index
    %c0_2 = arith.constant 0 : index
    %c0_3 = arith.constant 0 : index
    %0 = vector.load %arg2[%c0, %c0_0, %c0_1, %c0_2, %c0_3] : memref<1x1x18x18x16xbf16, #tpu.memory_space<vmem>>, vector<1x1x16x16x16xbf16>
    %1 = vector.shape_cast %0 : vector<1x1x16x16x16xbf16> to vector<16x16x16xbf16>
    %2 = vector.shape_cast %1 : vector<16x16x16xbf16> to vector<256x16xbf16>
    %c0_4 = arith.constant 0 : index
    %c0_5 = arith.constant 0 : index
    %c0_6 = arith.constant 0 : index
    %c1 = arith.constant 1 : index
    %c0_7 = arith.constant 0 : index
    %3 = vector.load %arg2[%c0_4, %c0_5, %c0_6, %c1, %c0_7] : memref<1x1x18x18x16xbf16, #tpu.memory_space<vmem>>, vector<1x1x16x16x16xbf16>
    %4 = vector.shape_cast %3 : vector<1x1x16x16x16xbf16> to vector<16x16x16xbf16>
    %5 = vector.shape_cast %4 : vector<16x16x16xbf16> to vector<256x16xbf16>
    %c0_8 = arith.constant 0 : index
    %c0_9 = arith.constant 0 : index
    %c0_10 = arith.constant 0 : index
    %c2 = arith.constant 2 : index
    %c0_11 = arith.constant 0 : index
    %6 = vector.load %arg2[%c0_8, %c0_9, %c0_10, %c2, %c0_11] : memref<1x1x18x18x16xbf16, #tpu.memory_space<vmem>>, vector<1x1x16x16x16xbf16>
    %7 = vector.shape_cast %6 : vector<1x1x16x16x16xbf16> to vector<16x16x16xbf16>
    %8 = vector.shape_cast %7 : vector<16x16x16xbf16> to vector<256x16xbf16>
    %c0_12 = arith.constant 0 : index
    %c0_13 = arith.constant 0 : index
    %c1_14 = arith.constant 1 : index
    %c0_15 = arith.constant 0 : index
    %c0_16 = arith.constant 0 : index
    %9 = vector.load %arg2[%c0_12, %c0_13, %c1_14, %c0_15, %c0_16] : memref<1x1x18x18x16xbf16, #tpu.memory_space<vmem>>, vector<1x1x16x16x16xbf16>
    %10 = vector.shape_cast %9 : vector<1x1x16x16x16xbf16> to vector<16x16x16xbf16>
    %11 = vector.shape_cast %10 : vector<16x16x16xbf16> to vector<256x16xbf16>
    %c0_17 = arith.constant 0 : index
    %c0_18 = arith.constant 0 : index
    %c1_19 = arith.constant 1 : index
    %c1_20 = arith.constant 1 : index
    %c0_21 = arith.constant 0 : index
    %12 = vector.load %arg2[%c0_17, %c0_18, %c1_19, %c1_20, %c0_21] : memref<1x1x18x18x16xbf16, #tpu.memory_space<vmem>>, vector<1x1x16x16x16xbf16>
    %13 = vector.shape_cast %12 : vector<1x1x16x16x16xbf16> to vector<16x16x16xbf16>
    %14 = vector.shape_cast %13 : vector<16x16x16xbf16> to vector<256x16xbf16>
    %c0_22 = arith.constant 0 : index
    %c0_23 = arith.constant 0 : index
    %c1_24 = arith.constant 1 : index
    %c2_25 = arith.constant 2 : index
    %c0_26 = arith.constant 0 : index
    %15 = vector.load %arg2[%c0_22, %c0_23, %c1_24, %c2_25, %c0_26] : memref<1x1x18x18x16xbf16, #tpu.memory_space<vmem>>, vector<1x1x16x16x16xbf16>
    %16 = vector.shape_cast %15 : vector<1x1x16x16x16xbf16> to vector<16x16x16xbf16>
    %17 = vector.shape_cast %16 : vector<16x16x16xbf16> to vector<256x16xbf16>
    %c0_27 = arith.constant 0 : index
    %c0_28 = arith.constant 0 : index
    %c2_29 = arith.constant 2 : index
    %c0_30 = arith.constant 0 : index
    %c0_31 = arith.constant 0 : index
    %18 = vector.load %arg2[%c0_27, %c0_28, %c2_29, %c0_30, %c0_31] : memref<1x1x18x18x16xbf16, #tpu.memory_space<vmem>>, vector<1x1x16x16x16xbf16>
    %19 = vector.shape_cast %18 : vector<1x1x16x16x16xbf16> to vector<16x16x16xbf16>
    %20 = vector.shape_cast %19 : vector<16x16x16xbf16> to vector<256x16xbf16>
    %c0_32 = arith.constant 0 : index
    %c0_33 = arith.constant 0 : index
    %c2_34 = arith.constant 2 : index
    %c1_35 = arith.constant 1 : index
    %c0_36 = arith.constant 0 : index
    %21 = vector.load %arg2[%c0_32, %c0_33, %c2_34, %c1_35, %c0_36] : memref<1x1x18x18x16xbf16, #tpu.memory_space<vmem>>, vector<1x1x16x16x16xbf16>
    %22 = vector.shape_cast %21 : vector<1x1x16x16x16xbf16> to vector<16x16x16xbf16>
    %23 = vector.shape_cast %22 : vector<16x16x16xbf16> to vector<256x16xbf16>
    %c0_37 = arith.constant 0 : index
    %c0_38 = arith.constant 0 : index
    %c2_39 = arith.constant 2 : index
    %c2_40 = arith.constant 2 : index
    %c0_41 = arith.constant 0 : index
    %24 = vector.load %arg2[%c0_37, %c0_38, %c2_39, %c2_40, %c0_41] : memref<1x1x18x18x16xbf16, #tpu.memory_space<vmem>>, vector<1x1x16x16x16xbf16>
    %25 = vector.shape_cast %24 : vector<1x1x16x16x16xbf16> to vector<16x16x16xbf16>
    %26 = vector.shape_cast %25 : vector<16x16x16xbf16> to vector<256x16xbf16>
    %c0_42 = arith.constant 0 : index
    %c0_43 = arith.constant 0 : index
    %27 = vector.load %arg3[%c0_42, %c0_43] : memref<144x16xbf16, #tpu.memory_space<vmem>>, vector<16x16xbf16>
    %cst = arith.constant dense<0.000000e+00> : vector<256x16xf32>
    %28 = tpu.matmul %2, %27, %cst {dimension_numbers = #tpu.dot_dimension_numbers<[1], [0], [0], [1], [0, 0, 1, 1], [], []>} : vector<256x16xbf16>, vector<16x16xbf16>, vector<256x16xf32> -> vector<256x16xf32>
    %c16 = arith.constant 16 : index
    %c0_44 = arith.constant 0 : index
    %29 = vector.load %arg3[%c16, %c0_44] : memref<144x16xbf16, #tpu.memory_space<vmem>>, vector<16x16xbf16>
    %cst_45 = arith.constant dense<0.000000e+00> : vector<256x16xf32>
    %30 = tpu.matmul %5, %29, %cst_45 {dimension_numbers = #tpu.dot_dimension_numbers<[1], [0], [0], [1], [0, 0, 1, 1], [], []>} : vector<256x16xbf16>, vector<16x16xbf16>, vector<256x16xf32> -> vector<256x16xf32>
    %31 = arith.addf %28, %30 : vector<256x16xf32>
    %c32 = arith.constant 32 : index
    %c0_46 = arith.constant 0 : index
    %32 = vector.load %arg3[%c32, %c0_46] : memref<144x16xbf16, #tpu.memory_space<vmem>>, vector<16x16xbf16>
    %cst_47 = arith.constant dense<0.000000e+00> : vector<256x16xf32>
    %33 = tpu.matmul %8, %32, %cst_47 {dimension_numbers = #tpu.dot_dimension_numbers<[1], [0], [0], [1], [0, 0, 1, 1], [], []>} : vector<256x16xbf16>, vector<16x16xbf16>, vector<256x16xf32> -> vector<256x16xf32>
    %34 = arith.addf %31, %33 : vector<256x16xf32>
    %c48 = arith.constant 48 : index
    %c0_48 = arith.constant 0 : index
    %35 = vector.load %arg3[%c48, %c0_48] : memref<144x16xbf16, #tpu.memory_space<vmem>>, vector<16x16xbf16>
    %cst_49 = arith.constant dense<0.000000e+00> : vector<256x16xf32>
    %36 = tpu.matmul %11, %35, %cst_49 {dimension_numbers = #tpu.dot_dimension_numbers<[1], [0], [0], [1], [0, 0, 1, 1], [], []>} : vector<256x16xbf16>, vector<16x16xbf16>, vector<256x16xf32> -> vector<256x16xf32>
    %37 = arith.addf %34, %36 : vector<256x16xf32>
    %c64 = arith.constant 64 : index
    %c0_50 = arith.constant 0 : index
    %38 = vector.load %arg3[%c64, %c0_50] : memref<144x16xbf16, #tpu.memory_space<vmem>>, vector<16x16xbf16>
    %cst_51 = arith.constant dense<0.000000e+00> : vector<256x16xf32>
    %39 = tpu.matmul %14, %38, %cst_51 {dimension_numbers = #tpu.dot_dimension_numbers<[1], [0], [0], [1], [0, 0, 1, 1], [], []>} : vector<256x16xbf16>, vector<16x16xbf16>, vector<256x16xf32> -> vector<256x16xf32>
    %40 = arith.addf %37, %39 : vector<256x16xf32>
    %c80 = arith.constant 80 : index
    %c0_52 = arith.constant 0 : index
    %41 = vector.load %arg3[%c80, %c0_52] : memref<144x16xbf16, #tpu.memory_space<vmem>>, vector<16x16xbf16>
    %cst_53 = arith.constant dense<0.000000e+00> : vector<256x16xf32>
    %42 = tpu.matmul %17, %41, %cst_53 {dimension_numbers = #tpu.dot_dimension_numbers<[1], [0], [0], [1], [0, 0, 1, 1], [], []>} : vector<256x16xbf16>, vector<16x16xbf16>, vector<256x16xf32> -> vector<256x16xf32>
    %43 = arith.addf %40, %42 : vector<256x16xf32>
    %c96 = arith.constant 96 : index
    %c0_54 = arith.constant 0 : index
    %44 = vector.load %arg3[%c96, %c0_54] : memref<144x16xbf16, #tpu.memory_space<vmem>>, vector<16x16xbf16>
    %cst_55 = arith.constant dense<0.000000e+00> : vector<256x16xf32>
    %45 = tpu.matmul %20, %44, %cst_55 {dimension_numbers = #tpu.dot_dimension_numbers<[1], [0], [0], [1], [0, 0, 1, 1], [], []>} : vector<256x16xbf16>, vector<16x16xbf16>, vector<256x16xf32> -> vector<256x16xf32>
    %46 = arith.addf %43, %45 : vector<256x16xf32>
    %c112 = arith.constant 112 : index
    %c0_56 = arith.constant 0 : index
    %47 = vector.load %arg3[%c112, %c0_56] : memref<144x16xbf16, #tpu.memory_space<vmem>>, vector<16x16xbf16>
    %cst_57 = arith.constant dense<0.000000e+00> : vector<256x16xf32>
    %48 = tpu.matmul %23, %47, %cst_57 {dimension_numbers = #tpu.dot_dimension_numbers<[1], [0], [0], [1], [0, 0, 1, 1], [], []>} : vector<256x16xbf16>, vector<16x16xbf16>, vector<256x16xf32> -> vector<256x16xf32>
    %49 = arith.addf %46, %48 : vector<256x16xf32>
    %c128 = arith.constant 128 : index
    %c0_58 = arith.constant 0 : index
    %50 = vector.load %arg3[%c128, %c0_58] : memref<144x16xbf16, #tpu.memory_space<vmem>>, vector<16x16xbf16>
    %cst_59 = arith.constant dense<0.000000e+00> : vector<256x16xf32>
    %51 = tpu.matmul %26, %50, %cst_59 {dimension_numbers = #tpu.dot_dimension_numbers<[1], [0], [0], [1], [0, 0, 1, 1], [], []>} : vector<256x16xbf16>, vector<16x16xbf16>, vector<256x16xf32> -> vector<256x16xf32>
    %52 = arith.addf %49, %51 : vector<256x16xf32>
    %c0_60 = arith.constant 0 : index
    %c0_61 = arith.constant 0 : index
    %53 = vector.load %arg4[%c0_60, %c0_61] : memref<1x16xf32, #tpu.memory_space<vmem>>, vector<1x16xf32>
    %54 = vector.broadcast %53 : vector<1x16xf32> to vector<256x16xf32>
    %55 = arith.addf %52, %54 : vector<256x16xf32>
    %cst_62 = arith.constant 0.000000e+00 : f32
    %56 = vector.broadcast %cst_62 : f32 to vector<256x16xf32>
    %57 = arith.subf %56, %55 : vector<256x16xf32>
    %58 = math.exp %57 : vector<256x16xf32>
    %cst_63 = arith.constant 1.000000e+00 : f32
    %59 = vector.broadcast %cst_63 : f32 to vector<256x16xf32>
    %60 = arith.addf %59, %58 : vector<256x16xf32>
    %61 = tpu.reciprocal %60 {approx = true} : vector<256x16xf32> -> vector<256x16xf32>
    %62 = arith.mulf %55, %61 : vector<256x16xf32>
    %63 = arith.truncf %62 : vector<256x16xf32> to vector<256x16xbf16>
    %c0_64 = arith.constant 0 : index
    %c0_65 = arith.constant 0 : index
    %c0_66 = arith.constant 0 : index
    %64 = vector.load %arg5[%c0_64, %c0_65, %c0_66] : memref<1x256x16xbf16, #tpu.memory_space<vmem>>, vector<1x256x16xbf16>
    %65 = vector.shape_cast %64 : vector<1x256x16xbf16> to vector<256x16xbf16>
    %66 = vector.shape_cast %63 : vector<256x16xbf16> to vector<1x256x16xbf16>
    tpu.vector_store %arg5[%c0_64, %c0_65, %c0_66], %66 {strides = array<i32>} : memref<1x256x16xbf16, #tpu.memory_space<vmem>>, vector<1x256x16xbf16>,
    return
  }
  func.func @transform_0(%arg0: i32, %arg1: i32) -> (i32, i32, i32, i32, i32) {
    %c0_i32 = arith.constant 0 : i32
    %c0_i32_0 = arith.constant 0 : i32
    %c0_i32_1 = arith.constant 0 : i32
    %c0_i32_2 = arith.constant 0 : i32
    return %arg0, %arg1, %c0_i32, %c0_i32_0, %c0_i32_1 : i32, i32, i32, i32, i32
  }
  func.func @transform_1(%arg0: i32, %arg1: i32) -> (i32, i32) {
    %c0_i32 = arith.constant 0 : i32
    %c0_i32_0 = arith.constant 0 : i32
    %c0_i32_1 = arith.constant 0 : i32
    return %c0_i32, %c0_i32_0 : i32, i32
  }
  func.func @transform_2(%arg0: i32, %arg1: i32) -> (i32, i32) {
    %c0_i32 = arith.constant 0 : i32
    %c0_i32_0 = arith.constant 0 : i32
    %c0_i32_1 = arith.constant 0 : i32
    return %c0_i32, %c0_i32_0 : i32, i32
  }
  func.func @transform_3(%arg0: i32, %arg1: i32) -> (i32, i32, i32) {
    %c0_i32 = arith.constant 0 : i32
    %c0_i32_0 = arith.constant 0 : i32
    return %arg0, %arg1, %c0_i32 : i32, i32, i32
  }
}

module attributes {stable_mosaic.version = 11 : i64} {
  func.func @kernel(%arg0: i32, %arg1: memref<512x32xbf16, #tpu.memory_space<vmem>>, %arg2: memref<512x16xbf16, #tpu.memory_space<vmem>>, %arg3: memref<512x16xbf16, #tpu.memory_space<vmem>>, %arg4: memref<64x32xbf16, #tpu.memory_space<vmem>>, %arg5: memref<1x32xf32, #tpu.memory_space<vmem>>, %arg6: memref<512x32xbf16, #tpu.memory_space<vmem>>) attributes {dimension_semantics = [#tpu.dimension_semantics<parallel>], iteration_bounds = array<i64: 1>, scalar_prefetch = 0 : i64, scratch_operands = 0 : i64, tpu.core_type = #tpu.core_type<tc>, window_params = [{transform_indices = @transform_0, window_bounds = array<i64: 512, 32>}, {transform_indices = @transform_1, window_bounds = array<i64: 512, 16>}, {transform_indices = @transform_2, window_bounds = array<i64: 512, 16>}, {pipeline_mode = #tpu.pipeline_mode<synchronous>, transform_indices = @transform_3, window_bounds = array<i64: 64, 32>}, {pipeline_mode = #tpu.pipeline_mode<synchronous>, transform_indices = @transform_4, window_bounds = array<i64: 1, 32>}, {transform_indices = @transform_5, window_bounds = array<i64: 512, 32>}]} {
    %c0 = arith.constant 0 : index
    %c0_0 = arith.constant 0 : index
    %0 = vector.load %arg1[%c0, %c0_0] : memref<512x32xbf16, #tpu.memory_space<vmem>>, vector<512x32xbf16>
    %c0_1 = arith.constant 0 : index
    %c0_2 = arith.constant 0 : index
    %1 = vector.load %arg4[%c0_1, %c0_2] : memref<64x32xbf16, #tpu.memory_space<vmem>>, vector<32x32xbf16>
    %cst = arith.constant dense<0.000000e+00> : vector<512x32xf32>
    %2 = tpu.matmul %0, %1, %cst {dimension_numbers = #tpu.dot_dimension_numbers<[1], [0], [0], [1], [0, 0, 1, 1], [], []>} : vector<512x32xbf16>, vector<32x32xbf16>, vector<512x32xf32> -> vector<512x32xf32>
    %c0_3 = arith.constant 0 : index
    %c0_4 = arith.constant 0 : index
    %3 = vector.load %arg2[%c0_3, %c0_4] : memref<512x16xbf16, #tpu.memory_space<vmem>>, vector<512x16xbf16>
    %c32 = arith.constant 32 : index
    %c0_5 = arith.constant 0 : index
    %4 = vector.load %arg4[%c32, %c0_5] : memref<64x32xbf16, #tpu.memory_space<vmem>>, vector<16x32xbf16>
    %cst_6 = arith.constant dense<0.000000e+00> : vector<512x32xf32>
    %5 = tpu.matmul %3, %4, %cst_6 {dimension_numbers = #tpu.dot_dimension_numbers<[1], [0], [0], [1], [0, 0, 1, 1], [], []>} : vector<512x16xbf16>, vector<16x32xbf16>, vector<512x32xf32> -> vector<512x32xf32>
    %6 = arith.addf %2, %5 : vector<512x32xf32>
    %c0_7 = arith.constant 0 : index
    %c0_8 = arith.constant 0 : index
    %7 = vector.load %arg3[%c0_7, %c0_8] : memref<512x16xbf16, #tpu.memory_space<vmem>>, vector<512x16xbf16>
    %c48 = arith.constant 48 : index
    %c0_9 = arith.constant 0 : index
    %8 = vector.load %arg4[%c48, %c0_9] : memref<64x32xbf16, #tpu.memory_space<vmem>>, vector<16x32xbf16>
    %cst_10 = arith.constant dense<0.000000e+00> : vector<512x32xf32>
    %9 = tpu.matmul %7, %8, %cst_10 {dimension_numbers = #tpu.dot_dimension_numbers<[1], [0], [0], [1], [0, 0, 1, 1], [], []>} : vector<512x16xbf16>, vector<16x32xbf16>, vector<512x32xf32> -> vector<512x32xf32>
    %10 = arith.addf %6, %9 : vector<512x32xf32>
    %c0_11 = arith.constant 0 : index
    %c0_12 = arith.constant 0 : index
    %11 = vector.load %arg5[%c0_11, %c0_12] : memref<1x32xf32, #tpu.memory_space<vmem>>, vector<1x32xf32>
    %12 = vector.broadcast %11 : vector<1x32xf32> to vector<512x32xf32>
    %13 = arith.addf %10, %12 : vector<512x32xf32>
    %cst_13 = arith.constant 0.000000e+00 : f32
    %14 = vector.broadcast %cst_13 : f32 to vector<512x32xf32>
    %15 = arith.subf %14, %13 : vector<512x32xf32>
    %16 = math.exp %15 : vector<512x32xf32>
    %cst_14 = arith.constant 1.000000e+00 : f32
    %17 = vector.broadcast %cst_14 : f32 to vector<512x32xf32>
    %18 = arith.addf %17, %16 : vector<512x32xf32>
    %19 = tpu.reciprocal %18 {approx = true} : vector<512x32xf32> -> vector<512x32xf32>
    %20 = arith.mulf %13, %19 : vector<512x32xf32>
    %21 = arith.truncf %20 : vector<512x32xf32> to vector<512x32xbf16>
    %c0_15 = arith.constant 0 : index
    %c0_16 = arith.constant 0 : index
    %22 = vector.load %arg6[%c0_15, %c0_16] : memref<512x32xbf16, #tpu.memory_space<vmem>>, vector<512x32xbf16>
    tpu.vector_store %arg6[%c0_15, %c0_16], %21 {strides = array<i32>} : memref<512x32xbf16, #tpu.memory_space<vmem>>, vector<512x32xbf16>,
    return
  }
  func.func @transform_0(%arg0: i32) -> (i32, i32) {
    %c0_i32 = arith.constant 0 : i32
    %c0_i32_0 = arith.constant 0 : i32
    return %arg0, %c0_i32 : i32, i32
  }
  func.func @transform_1(%arg0: i32) -> (i32, i32) {
    %c0_i32 = arith.constant 0 : i32
    %c0_i32_0 = arith.constant 0 : i32
    return %arg0, %c0_i32 : i32, i32
  }
  func.func @transform_2(%arg0: i32) -> (i32, i32) {
    %c0_i32 = arith.constant 0 : i32
    %c0_i32_0 = arith.constant 0 : i32
    return %arg0, %c0_i32 : i32, i32
  }
  func.func @transform_3(%arg0: i32) -> (i32, i32) {
    %c0_i32 = arith.constant 0 : i32
    %c0_i32_0 = arith.constant 0 : i32
    %c0_i32_1 = arith.constant 0 : i32
    return %c0_i32, %c0_i32_0 : i32, i32
  }
  func.func @transform_4(%arg0: i32) -> (i32, i32) {
    %c0_i32 = arith.constant 0 : i32
    %c0_i32_0 = arith.constant 0 : i32
    %c0_i32_1 = arith.constant 0 : i32
    return %c0_i32, %c0_i32_0 : i32, i32
  }
  func.func @transform_5(%arg0: i32) -> (i32, i32) {
    %c0_i32 = arith.constant 0 : i32
    %c0_i32_0 = arith.constant 0 : i32
    return %arg0, %c0_i32 : i32, i32
  }
}

</mosaic_0001>

<bundles_post_ra>
// kernel: c2f_forward.6
= control target key start
LH: loop header
LB: loop body
LE: loop exit
PB: predicated region body
PF: predicated region fallthrough
CT: control target
= control target key end

     0   :  { %vm253_vm0 = vcmask 130048   ;;  %vm967_vm1 = vcmask 257024   ;;  %vm1032_vm2 = vcmask 125952   ;;  %s2557_s1 = inlined_call_operand.vmem [shape: bf16[16,32], index: 1, kind: input, shape index: {}]   ;;  %s2558_s0 = inlined_call_operand.vmem [shape: bf16[512,16], index: 0, kind: input, shape index: {}]   ;;  %s2559_s2 = inlined_call_operand.vmem [shape: f32[1,32], index: 2, kind: input, shape index: {}]   ;;  %s2560_s3 = inlined_call_operand.vmem [shape: bf16[512,32], index: 3, kind: output, shape index: {0}]   ;;  %s2561_s4 = inlined_call_operand.vmem [shape: bf16[512,16], index: 4, kind: output, shape index: {1}]  }
   0x1   :  { %v1301_v0 = vld [vmem:[%s2557_s1] sm:$0xff]  ;;  %v1270_v5 = vld [vmem:[%s2558_s0 + $0x8] sm:$0xff]  ;;  %v1271_v9 = vld [vmem:[%s2558_s0 + $0x10] sm:$0xff] }
   0x2   :  { %v1269_v1 = vld [vmem:[%s2558_s0] sm:$0xff]  ;;  %357 = vmatpush.bf16.msra.mxu0 %v1301_v0  ;;  %1302 = vmatpush.bf16.msra.mxu1 %v1301_v0  ;;  %v1278_v6 = vld [vmem:[%s2558_s0 + $0x48] sm:$0xff]  ;;  %v1279_v10 = vld [vmem:[%s2558_s0 + $0x50] sm:$0xff] }
   0x3   :  { %v1277_v2 = vld [vmem:[%s2558_s0 + $0x40] sm:$0xff]  ;;  %1303 = vmatpush.bf16.msra.mxu2 %v1301_v0  ;;  %1304 = vmatpush.bf16.msra.mxu3 %v1301_v0  ;;  %v1286_v7 = vld [vmem:[%s2558_s0 + $0x88] sm:$0xff]  ;;  %v1287_v11 = vld [vmem:[%s2558_s0 + $0x90] sm:$0xff] }
   0x4   :  { %v1285_v3 = vld [vmem:[%s2558_s0 + $0x80] sm:$0xff]  ;;  %v1294_v8 = vld [vmem:[%s2558_s0 + $0xc8] sm:$0xff]  ;;  %v1295_v12 = vld [vmem:[%s2558_s0 + $0xd0] sm:$0xff] }
   0x5   :  { %v1293_v4 = vld [vmem:[%s2558_s0 + $0xc0] sm:$0xff]  ;;  %1237 = vmatmul.msk.bf16.vlgmr.msra.gmra.mxu0 %vm253_vm0, %v1269_v1  ;;  %1245 = vmatmul.msk.bf16.vlgmr.msra.gmra.mxu1 %vm253_vm0, %v1277_v2  ;;  %v1272_v13 = vld [vmem:[%s2558_s0 + $0x18] sm:$0xff]  ;;  %v1274_v21 = vld [vmem:[%s2558_s0 + $0x28] sm:$0xff] }
   0x6   :  { %1253 = vmatmul.msk.bf16.vlgmr.msra.gmra.mxu2 %vm253_vm0, %v1285_v3  ;;  %1261 = vmatmul.msk.bf16.vlgmr.msra.gmra.mxu3 %vm253_vm0, %v1293_v4  ;;  %v1280_v14 = vld [vmem:[%s2558_s0 + $0x58] sm:$0xff]  ;;  %v1273_v17 = vld [vmem:[%s2558_s0 + $0x20] sm:$0xff]  ;;  %v1282_v22 = vld [vmem:[%s2558_s0 + $0x68] sm:$0xff] }
   0x7   :  { %v1288_v15 = vld [vmem:[%s2558_s0 + $0x98] sm:$0xff]  ;;  %v1281_v18 = vld [vmem:[%s2558_s0 + $0x60] sm:$0xff]  ;;  %v1290_v23 = vld [vmem:[%s2558_s0 + $0xa8] sm:$0xff] }
   0x8   :  { %v1296_v16 = vld [vmem:[%s2558_s0 + $0xd8] sm:$0xff]  ;;  %v1289_v19 = vld [vmem:[%s2558_s0 + $0xa0] sm:$0xff]  ;;  %v1298_v24 = vld [vmem:[%s2558_s0 + $0xe8] sm:$0xff] }
   0x9   :  { %v1297_v20 = vld [vmem:[%s2558_s0 + $0xe0] sm:$0xff]  ;;  %v1275_v25 = vld [vmem:[%s2558_s0 + $0x30] sm:$0xff]  ;;  %v1276_v29 = vld [vmem:[%s2558_s0 + $0x38] sm:$0xff] }
   0xa   :  { %v1283_v26 = vld [vmem:[%s2558_s0 + $0x70] sm:$0xff]  ;;  %v1284_v30 = vld [vmem:[%s2558_s0 + $0x78] sm:$0xff]  ;;  %v1722_v33 = vld [vmem:[%s2559_s2] ss:$0 sm:$0xff] }
   0xb   :  { %v1291_v27 = vld [vmem:[%s2558_s0 + $0xb0] sm:$0xff]  ;;  %v1292_v31 = vld [vmem:[%s2558_s0 + $0xb8] sm:$0xff] }
   0xc   :  { %v1299_v28 = vld [vmem:[%s2558_s0 + $0xf0] sm:$0xff]  ;;  %v1300_v32 = vld [vmem:[%s2558_s0 + $0xf8] sm:$0xff] }
  0x15   :  { %1238 = vmatmul.msk.bf16.gmra.mxu0 %vm253_vm0, %v1270_v5  ;;  %1246 = vmatmul.msk.bf16.gmra.mxu1 %vm253_vm0, %v1278_v6 }
  0x16   :  { %1254 = vmatmul.msk.bf16.gmra.mxu2 %vm253_vm0, %v1286_v7  ;;  %1262 = vmatmul.msk.bf16.gmra.mxu3 %vm253_vm0, %v1294_v8 }
  0x25   :  { %1239 = vmatmul.msk.bf16.gmra.mxu0 %vm253_vm0, %v1271_v9  ;;  %1247 = vmatmul.msk.bf16.gmra.mxu1 %vm253_vm0, %v1279_v10 }
  0x26   :  { %1255 = vmatmul.msk.bf16.gmra.mxu2 %vm253_vm0, %v1287_v11  ;;  %1263 = vmatmul.msk.bf16.gmra.mxu3 %vm253_vm0, %v1295_v12 }
  0x35   :  { %1240 = vmatmul.msk.bf16.gmra.mxu0 %vm253_vm0, %v1272_v13  ;;  %1248 = vmatmul.msk.bf16.gmra.mxu1 %vm253_vm0, %v1280_v14 }
  0x36   :  { %1256 = vmatmul.msk.bf16.gmra.mxu2 %vm253_vm0, %v1288_v15  ;;  %1264 = vmatmul.msk.bf16.gmra.mxu3 %vm253_vm0, %v1296_v16 }
  0x45   :  { %1241 = vmatmul.msk.bf16.gmra.mxu0 %vm253_vm0, %v1273_v17  ;;  %1249 = vmatmul.msk.bf16.gmra.mxu1 %vm253_vm0, %v1281_v18 }
  0x46   :  { %1257 = vmatmul.msk.bf16.gmra.mxu2 %vm253_vm0, %v1289_v19  ;;  %1265 = vmatmul.msk.bf16.gmra.mxu3 %vm253_vm0, %v1297_v20 }
  0x55   :  { %1242 = vmatmul.msk.bf16.gmra.mxu0 %vm253_vm0, %v1274_v21  ;;  %1250 = vmatmul.msk.bf16.gmra.mxu1 %vm253_vm0, %v1282_v22 }
  0x56   :  { %1258 = vmatmul.msk.bf16.gmra.mxu2 %vm253_vm0, %v1290_v23  ;;  %1266 = vmatmul.msk.bf16.gmra.mxu3 %vm253_vm0, %v1298_v24 }
  0x65   :  { %1243 = vmatmul.msk.bf16.gmra.mxu0 %vm253_vm0, %v1275_v25  ;;  %1251 = vmatmul.msk.bf16.gmra.mxu1 %vm253_vm0, %v1283_v26 }
  0x66   :  { %1259 = vmatmul.msk.bf16.gmra.mxu2 %vm253_vm0, %v1291_v27  ;;  %1267 = vmatmul.msk.bf16.gmra.mxu3 %vm253_vm0, %v1299_v28 }
  0x75   :  { %1244 = vmatmul.msk.bf16.gmra.mxu0 %vm253_vm0, %v1276_v29  ;;  %1252 = vmatmul.msk.bf16.gmra.mxu1 %vm253_vm0, %v1284_v30 }
  0x76   :  { %1260 = vmatmul.msk.bf16.gmra.mxu2 %vm253_vm0, %v1292_v31  ;;  %1268 = vmatmul.msk.bf16.gmra.mxu3 %vm253_vm0, %v1300_v32 }
  0x82   :  { %v359_v34 = vpop.f32.mrf.mxu0  ;;  %v399_v35 = vpop.f32.mrf.mxu1 }
  0x83   :  { %v360_v36 = vadd.f32 %v1722_v33, %v359_v34  ;;  %v1726_v37 = vadd.f32 %v1722_v33, %v399_v35 }
  0x85   :  { %v519_v38 = vsub.f32 0.0, %v360_v36  ;;  %v535_v39 = vsub.f32 0.0, %v1726_v37 }
  0x87   :  { %v583_v40 = vmul.f32 1.442695, %v519_v38  ;;  %v615_v41 = vmul.f32 1.442695, %v535_v39 }
  0x89   :  { %1306 = vpow2.f32 %v583_v40  ;;  %v439_v42 = vpop.f32.mrf.mxu2  ;;  %v479_v43 = vpop.f32.mrf.mxu3 }
  0x8a   :  { %1308 = vpow2.f32 %v615_v41  ;;  %v1730_v44 = vadd.f32 %v1722_v33, %v439_v42  ;;  %v1733_v45 = vadd.f32 %v1722_v33, %v479_v43  ;;  %v361_v46 = vpop.f32.mrf.mxu0  ;;  %v401_v47 = vpop.f32.mrf.mxu1 }
  0x8b   :  { %v1736_v48 = vadd.f32 %v1722_v33, %v361_v46  ;;  %v1739_v49 = vadd.f32 %v1722_v33, %v401_v47 }
  0x8c   :  { %v551_v50 = vsub.f32 0.0, %v1730_v44  ;;  %v567_v51 = vsub.f32 0.0, %v1733_v45 }
  0x8d   :  { %v520_v52 = vsub.f32 0.0, %v1736_v48  ;;  %v536_v53 = vsub.f32 0.0, %v1739_v49 }
  0x8e   :  { %v647_v54 = vmul.f32 1.442695, %v551_v50  ;;  %v679_v55 = vmul.f32 1.442695, %v567_v51 }
  0x8f   :  { %v1307_v56 = vpop.eup %1306  ;;  %v585_v59 = vmul.f32 1.442695, %v520_v52  ;;  %v617_v61 = vmul.f32 1.442695, %v536_v53 }
  0x90   :  { %v1309_v57 = vpop.eup %1308  ;;  %v711_v58 = vadd.f32 1.0, %v1307_v56  ;;  %1310 = vpow2.f32 %v647_v54 }
  0x91   :  { %v727_v60 = vadd.f32 1.0, %v1309_v57  ;;  %1312 = vpow2.f32 %v679_v55  ;;  %v441_v62 = vpop.f32.mrf.mxu2  ;;  %v481_v63 = vpop.f32.mrf.mxu3 }
  0x92   :  { %1314 = vrcp.f32 %v711_v58  ;;  %v1746_v0 = vadd.f32 %v1722_v33, %v441_v62  ;;  %v1749_v1 = vadd.f32 %v1722_v33, %v481_v63  ;;  %v364_v2 = vpop.f32.mrf.mxu0  ;;  %v404_v3 = vpop.f32.mrf.mxu1 }
  0x93   :  { %1316 = vrcp.f32 %v727_v60  ;;  %v1752_v4 = vadd.f32 %v1722_v33, %v364_v2  ;;  %v1755_v5 = vadd.f32 %v1722_v33, %v404_v3 }
  0x94   :  { %1318 = vpow2.f32 %v585_v59  ;;  %v552_v6 = vsub.f32 0.0, %v1746_v0  ;;  %v568_v7 = vsub.f32 0.0, %v1749_v1 }
  0x95   :  { %1320 = vpow2.f32 %v617_v61  ;;  %v521_v8 = vsub.f32 0.0, %v1752_v4  ;;  %v537_v9 = vsub.f32 0.0, %v1755_v5 }
  0x96   :  { %v1311_v10 = vpop.eup %1310  ;;  %v649_v11 = vmul.f32 1.442695, %v552_v6  ;;  %v681_v14 = vmul.f32 1.442695, %v568_v7 }
  0x97   :  { %v1313_v12 = vpop.eup %1312  ;;  %v743_v13 = vadd.f32 1.0, %v1311_v10  ;;  %v587_v17 = vmul.f32 1.442695, %v521_v8  ;;  %v619_v20 = vmul.f32 1.442695, %v537_v9 }
  0x98   :  { %v1315_v15 = vpop.eup %1314  ;;  %v759_v16 = vadd.f32 1.0, %v1313_v12  ;;  %1322 = vpow2.f32 %v649_v11 }
  0x99   :  { %v1317_v18 = vpop.eup %1316  ;;  %v839_v19 = vmul.f32 %v1315_v15, %v360_v36  ;;  %1324 = vrcp.f32 %v743_v13  ;;  %v444_v21 = vpop.f32.mrf.mxu2 }
  0x9a   :  { %v484_v22 = vpop.f32.mrf.mxu3  ;;  %v1319_v23 = vpop.eup %1318  ;;  %v855_v24 = vmul.f32 %v1317_v18, %v1726_v37  ;;  %1326 = vrcp.f32 %v759_v16  ;;  %v1763_v25 = vadd.f32 %v1722_v33, %v444_v21 }
  0x9b   :  { %v1766_v26 = vadd.f32 %v1722_v33, %v484_v22  ;;  %v366_v27 = vpop.f32.mrf.mxu0  ;;  %v406_v28 = vpop.f32.mrf.mxu1  ;;  %v903_v30 = vpack.c.bf16 %v839_v19, %v839_v19  ;;  %v712_v31 = vadd.f32 1.0, %v1319_v23  ;;  %1328 = vpow2.f32 %v681_v14 }
  0x9c   :  { %v1321_v29 = vpop.eup %1320  ;;  %v1769_v32 = vadd.f32 %v1722_v33, %v366_v27  ;;  %v919_v34 = vpack.c.bf16 %v855_v24, %v855_v24  ;;  %1330 = vpow2.f32 %v587_v17  ;;  %v553_v36 = vsub.f32 0.0, %v1763_v25 }
  0x9d   :  { %v728_v35 = vadd.f32 1.0, %v1321_v29  ;;  %968 = vst.msk [vmem:[%s2560_s3] sm:$0xf] %vm967_vm1, %v903_v30  ;;  %1332 = vrcp.f32 %v712_v31  ;;  %v569_v37 = vsub.f32 0.0, %v1766_v26  ;;  %v1779_v39 = vadd.f32 %v1722_v33, %v406_v28 }
  0x9e   :  { %v522_v38 = vsub.f32 0.0, %v1769_v32  ;;  %v1323_v40 = vpop.eup %1322  ;;  %1033 = vst.msk [vmem:[%s2561_s4] sm:$0xf] %vm1032_vm2, %v903_v30  ;;  %v651_v41 = vmul.f32 1.442695, %v553_v36 }
  0x9f   :  { %1334 = vrcp.f32 %v728_v35  ;;  %v1325_v42 = vpop.eup %1324  ;;  %984 = vst.msk [vmem:[%s2560_s3 + $0x40] sm:$0xf] %vm967_vm1, %v919_v34  ;;  %v744_v43 = vadd.f32 1.0, %v1323_v40  ;;  %v683_v46 = vmul.f32 1.442695, %v569_v37  ;;  %v538_v47 = vsub.f32 0.0, %v1779_v39 }
  0xa0   :  { %1336 = vpow2.f32 %v619_v20  ;;  %v1327_v50 = vpop.eup %1326  ;;  %1049 = vst.msk [vmem:[%s2561_s4 + $0x40] sm:$0xf] %vm1032_vm2, %v919_v34  ;;  %v871_v51 = vmul.f32 %v1325_v42, %v1730_v44  ;;  %v589_v52 = vmul.f32 1.442695, %v522_v38 }
  0xa1   :  { %1338 = vpow2.f32 %v651_v41  ;;  %v1329_v53 = vpop.eup %1328  ;;  %v887_v54 = vmul.f32 %v1327_v50, %v1733_v45  ;;  %v621_v55 = vmul.f32 1.442695, %v538_v47  ;;  %v446_v56 = vpop.f32.mrf.mxu2 }
  0xa2   :  { %1340 = vrcp.f32 %v744_v43  ;;  %v486_v57 = vpop.f32.mrf.mxu3  ;;  %v1331_v58 = vpop.eup %1330  ;;  %v935_v59 = vpack.c.bf16 %v871_v51, %v871_v51  ;;  %v760_v60 = vadd.f32 1.0, %v1329_v53  ;;  %v1797_v61 = vadd.f32 %v1722_v33, %v446_v56 }
  0xa3   :  { %1342 = vpow2.f32 %v683_v46  ;;  %v369_v62 = vpop.f32.mrf.mxu0  ;;  %v409_v63 = vpop.f32.mrf.mxu1  ;;  %v951_v44 = vpack.c.bf16 %v887_v54, %v887_v54  ;;  %v713_v3 = vadd.f32 1.0, %v1331_v58  ;;  %v1800_v6 = vadd.f32 %v1722_v33, %v486_v57 }
  0xa4   :  { %v1333_v2 = vpop.eup %1332  ;;  %1344 = vpow2.f32 %v589_v52  ;;  %1000 = vst.msk [vmem:[%s2560_s3 + $0x80] sm:$0xf] %vm967_vm1, %v935_v59  ;;  %v554_v8 = vsub.f32 0.0, %v1797_v61  ;;  %v1809_v9 = vadd.f32 %v1722_v33, %v369_v62  ;;  %v1818_v13 = vadd.f32 %v1722_v33, %v409_v63 }
  0xa5   :  { %v1335_v45 = vpop.eup %1334  ;;  %v840_v7 = vmul.f32 %v1333_v2, %v1736_v48  ;;  %1346 = vrcp.f32 %v760_v60  ;;  %1065 = vst.msk [vmem:[%s2561_s4 + $0x80] sm:$0xf] %vm1032_vm2, %v935_v59  ;;  %v570_v12 = vsub.f32 0.0, %v1800_v6 }
  0xa6   :  { %v1337_v10 = vpop.eup %1336  ;;  %v856_v11 = vmul.f32 %v1335_v45, %v1739_v49  ;;  %1348 = vrcp.f32 %v713_v3  ;;  %1016 = vst.msk [vmem:[%s2560_s3 + $0xc0] sm:$0xf] %vm967_vm1, %v951_v44  ;;  %v653_v16 = vmul.f32 1.442695, %v554_v8  ;;  %v523_v19 = vsub.f32 0.0, %v1809_v9 }
  0xa7   :  { %v1339_v48 = vpop.eup %1338  ;;  %v904_v14 = vpack.c.bf16 %v840_v7, %v840_v7  ;;  %v729_v15 = vadd.f32 1.0, %v1337_v10  ;;  %1350 = vpow2.f32 %v621_v55  ;;  %1081 = vst.msk [vmem:[%s2561_s4 + $0xc0] sm:$0xf] %vm1032_vm2, %v951_v44  ;;  %v685_v22 = vmul.f32 1.442695, %v570_v12 }
  0xa8   :  { %v1341_v17 = vpop.eup %1340  ;;  %v920_v49 = vpack.c.bf16 %v856_v11, %v856_v11  ;;  %v745_v18 = vadd.f32 1.0, %v1339_v48  ;;  %v539_v23 = vsub.f32 0.0, %v1818_v13  ;;  %v591_v28 = vmul.f32 1.442695, %v523_v19 }
  0xa9   :  { %v1343_v20 = vpop.eup %1342  ;;  %969 = vst.msk [vmem:[%s2560_s3 + $0x4] sm:$0xf] %vm967_vm1, %v904_v14  ;;  %v872_v21 = vmul.f32 %v1341_v17, %v1746_v0  ;;  %1352 = vrcp.f32 %v729_v15  ;;  %v449_v29 = vpop.f32.mrf.mxu2 }
  0xaa   :  { %v1345_v24 = vpop.eup %1344  ;;  %1034 = vst.msk [vmem:[%s2561_s4 + $0x4] sm:$0xf] %vm1032_vm2, %v904_v14  ;;  %1354 = vrcp.f32 %v745_v18  ;;  %v761_v27 = vadd.f32 1.0, %v1343_v20  ;;  %v489_v30 = vpop.f32.mrf.mxu3  ;;  %v623_v35 = vmul.f32 1.442695, %v539_v23  ;;  %v1849_v41 = vadd.f32 %v1722_v33, %v449_v29 }
  0xab   :  { %v1347_v31 = vpop.eup %1346  ;;  %985 = vst.msk [vmem:[%s2560_s3 + $0x44] sm:$0xf] %vm967_vm1, %v920_v49  ;;  %v936_v0 = vpack.c.bf16 %v872_v21, %v872_v21  ;;  %v714_v34 = vadd.f32 1.0, %v1345_v24  ;;  %1356 = vpow2.f32 %v653_v16  ;;  %v371_v36 = vpop.f32.mrf.mxu0  ;;  %v1852_v42 = vadd.f32 %v1722_v33, %v489_v30 }
  0xac   :  { %v411_v37 = vpop.f32.mrf.mxu1  ;;  %v1349_v38 = vpop.eup %1348  ;;  %1050 = vst.msk [vmem:[%s2561_s4 + $0x44] sm:$0xf] %vm1032_vm2, %v920_v49  ;;  %v888_v40 = vmul.f32 %v1347_v31, %v1749_v1  ;;  %1358 = vrcp.f32 %v761_v27  ;;  %v1860_v47 = vadd.f32 %v1722_v33, %v371_v36  ;;  %v555_v52 = vsub.f32 0.0, %v1849_v41 }
  0xad   :  { %v1351_v43 = vpop.eup %1350  ;;  %1001 = vst.msk [vmem:[%s2560_s3 + $0x84] sm:$0xf] %vm967_vm1, %v936_v0  ;;  %v841_v46 = vmul.f32 %v1349_v38, %v1752_v4  ;;  %1360 = vrcp.f32 %v714_v34  ;;  %v1863_v1 = vadd.f32 %v1722_v33, %v411_v37  ;;  %v571_v4 = vsub.f32 0.0, %v1852_v42 }
  0xae   :  { %1066 = vst.msk [vmem:[%s2561_s4 + $0x84] sm:$0xf] %vm1032_vm2, %v936_v0  ;;  %v952_v50 = vpack.c.bf16 %v888_v40, %v888_v40  ;;  %v730_v51 = vadd.f32 1.0, %v1351_v43  ;;  %1362 = vpow2.f32 %v685_v22  ;;  %v524_v55 = vsub.f32 0.0, %v1860_v47 }
  0xaf   :  { %v1353_v53 = vpop.eup %1352  ;;  %v905_v54 = vpack.c.bf16 %v841_v46, %v841_v46  ;;  %1364 = vpow2.f32 %v591_v28  ;;  %v655_v58 = vmul.f32 1.442695, %v555_v52  ;;  %v540_v59 = vsub.f32 0.0, %v1863_v1 }
  0xb0   :  { %v1355_v56 = vpop.eup %1354  ;;  %1017 = vst.msk [vmem:[%s2560_s3 + $0xc4] sm:$0xf] %vm967_vm1, %v952_v50  ;;  %v857_v57 = vmul.f32 %v1353_v53, %v1755_v5  ;;  %1366 = vrcp.f32 %v730_v51  ;;  %v687_v63 = vmul.f32 1.442695, %v571_v4  ;;  %v593_v2 = vmul.f32 1.442695, %v524_v55 }
  0xb1   :  { %v1357_v60 = vpop.eup %1356  ;;  %1082 = vst.msk [vmem:[%s2561_s4 + $0xc4] sm:$0xf] %vm1032_vm2, %v952_v50  ;;  %v873_v62 = vmul.f32 %v1355_v56, %v1763_v25  ;;  %1368 = vpow2.f32 %v623_v35  ;;  %v625_v45 = vmul.f32 1.442695, %v540_v59  ;;  %v451_v7 = vpop.f32.mrf.mxu2 }
  0xb2   :  { %v1359_v44 = vpop.eup %1358  ;;  %970 = vst.msk [vmem:[%s2560_s3 + $0x8] sm:$0xf] %vm967_vm1, %v905_v54  ;;  %v921_v5 = vpack.c.bf16 %v857_v57, %v857_v57  ;;  %v746_v3 = vadd.f32 1.0, %v1357_v60  ;;  %1370 = vpow2.f32 %v655_v58  ;;  %v491_v8 = vpop.f32.mrf.mxu3  ;;  %v1893_v12 = vadd.f32 %v1722_v33, %v451_v7 }
  0xb3   :  { %v1361_v10 = vpop.eup %1360  ;;  %1035 = vst.msk [vmem:[%s2561_s4 + $0x8] sm:$0xf] %vm1032_vm2, %v905_v54  ;;  %v937_v25 = vpack.c.bf16 %v873_v62, %v873_v62  ;;  %v889_v11 = vmul.f32 %v1359_v44, %v1766_v26  ;;  %1372 = vpow2.f32 %v687_v63  ;;  %v374_v48 = vpop.f32.mrf.mxu0  ;;  %v1901_v17 = vadd.f32 %v1722_v33, %v491_v8 }
  0xb4   :  { %v414_v14 = vpop.f32.mrf.mxu1  ;;  %v1363_v15 = vpop.eup %1362  ;;  %986 = vst.msk [vmem:[%s2560_s3 + $0x48] sm:$0xf] %vm967_vm1, %v921_v5  ;;  %v842_v16 = vmul.f32 %v1361_v10, %v1769_v32  ;;  %1374 = vrcp.f32 %v746_v3  ;;  %v1904_v26 = vadd.f32 %v1722_v33, %v374_v48  ;;  %v556_v20 = vsub.f32 0.0, %v1893_v12 }
  0xb5   :  { %v1365_v49 = vpop.eup %1364  ;;  %1051 = vst.msk [vmem:[%s2561_s4 + $0x48] sm:$0xf] %vm1032_vm2, %v921_v5  ;;  %v953_v18 = vpack.c.bf16 %v889_v11, %v889_v11  ;;  %v762_v19 = vadd.f32 1.0, %v1363_v15  ;;  %1376 = vpow2.f32 %v593_v2  ;;  %v572_v23 = vsub.f32 0.0, %v1901_v17 }
  0xb6   :  { %v1367_v21 = vpop.eup %1366  ;;  %1002 = vst.msk [vmem:[%s2560_s3 + $0x88] sm:$0xf] %vm967_vm1, %v937_v25  ;;  %v906_v32 = vpack.c.bf16 %v842_v16, %v842_v16  ;;  %v715_v22 = vadd.f32 1.0, %v1365_v49  ;;  %1378 = vpow2.f32 %v625_v45  ;;  %v657_v28 = vmul.f32 1.442695, %v556_v20 }
  0xb7   :  { %v1369_v24 = vpop.eup %1368  ;;  %1067 = vst.msk [vmem:[%s2561_s4 + $0x88] sm:$0xf] %vm1032_vm2, %v937_v25  ;;  %v858_v27 = vmul.f32 %v1367_v21, %v1779_v39  ;;  %1380 = vrcp.f32 %v762_v19  ;;  %v525_v29 = vsub.f32 0.0, %v1904_v26  ;;  %v1927_v0 = vadd.f32 %v1722_v33, %v414_v14 }
  0xb8   :  { %v1371_v30 = vpop.eup %1370  ;;  %1018 = vst.msk [vmem:[%s2560_s3 + $0xc8] sm:$0xf] %vm967_vm1, %v953_v18  ;;  %1382 = vrcp.f32 %v715_v22  ;;  %v731_v31 = vadd.f32 1.0, %v1369_v24  ;;  %v689_v36 = vmul.f32 1.442695, %v572_v23 }
  0xb9   :  { %v1373_v34 = vpop.eup %1372  ;;  %1083 = vst.msk [vmem:[%s2561_s4 + $0xc8] sm:$0xf] %vm1032_vm2, %v953_v18  ;;  %v922_v39 = vpack.c.bf16 %v858_v27, %v858_v27  ;;  %v747_v35 = vadd.f32 1.0, %v1371_v30  ;;  %1384 = vpow2.f32 %v657_v28  ;;  %v595_v40 = vmul.f32 1.442695, %v525_v29  ;;  %v454_v46 = vpop.f32.mrf.mxu2 }
  0xba   :  { %v1375_v37 = vpop.eup %1374  ;;  %971 = vst.msk [vmem:[%s2560_s3 + $0xc] sm:$0xf] %vm967_vm1, %v906_v32  ;;  %1386 = vrcp.f32 %v731_v31  ;;  %v763_v38 = vadd.f32 1.0, %v1373_v34  ;;  %v541_v43 = vsub.f32 0.0, %v1927_v0  ;;  %v494_v50 = vpop.f32.mrf.mxu3  ;;  %v1944_v53 = vadd.f32 %v1722_v33, %v454_v46 }
  0xbb   :  { %v1377_v51 = vpop.eup %1376  ;;  %1036 = vst.msk [vmem:[%s2561_s4 + $0xc] sm:$0xf] %vm1032_vm2, %v906_v32  ;;  %v874_v52 = vmul.f32 %v1375_v37, %v1797_v61  ;;  %1388 = vrcp.f32 %v747_v35  ;;  %v1947_v54 = vadd.f32 %v1722_v33, %v494_v50  ;;  %v376_v4 = vpop.f32.mrf.mxu0 }
  0xbc   :  { %v416_v55 = vpop.f32.mrf.mxu1  ;;  %v1379_v56 = vpop.eup %1378  ;;  %987 = vst.msk [vmem:[%s2560_s3 + $0x4c] sm:$0xf] %vm967_vm1, %v922_v39  ;;  %1390 = vrcp.f32 %v763_v38  ;;  %v716_v57 = vadd.f32 1.0, %v1377_v51  ;;  %v627_v58 = vmul.f32 1.442695, %v541_v43  ;;  %v1954_v61 = vadd.f32 %v1722_v33, %v376_v4 }
  0xbd   :  { %v1381_v59 = vpop.eup %1380  ;;  %1052 = vst.msk [vmem:[%s2561_s4 + $0x4c] sm:$0xf] %vm1032_vm2, %v922_v39  ;;  %v938_v60 = vpack.c.bf16 %v874_v52, %v874_v52  ;;  %v732_v62 = vadd.f32 1.0, %v1379_v56  ;;  %1392 = vpow2.f32 %v689_v36  ;;  %v557_v63 = vsub.f32 0.0, %v1944_v53 }
  0xbe   :  { %v1383_v2 = vpop.eup %1382  ;;  %v890_v44 = vmul.f32 %v1381_v59, %v1800_v6  ;;  %1394 = vrcp.f32 %v716_v57  ;;  %v573_v5 = vsub.f32 0.0, %v1947_v54  ;;  %v526_v3 = vsub.f32 0.0, %v1954_v61 }
  0xbf   :  { %v1385_v45 = vpop.eup %1384  ;;  %1003 = vst.msk [vmem:[%s2560_s3 + $0x8c] sm:$0xf] %vm967_vm1, %v938_v60  ;;  %v843_v7 = vmul.f32 %v1383_v2, %v1809_v9  ;;  %1396 = vrcp.f32 %v732_v62  ;;  %v659_v8 = vmul.f32 1.442695, %v557_v63  ;;  %v1970_v10 = vadd.f32 %v1722_v33, %v416_v55 }
  0xc0   :  { %v1387_v25 = vpop.eup %1386  ;;  %1068 = vst.msk [vmem:[%s2561_s4 + $0x8c] sm:$0xf] %vm1032_vm2, %v938_v60  ;;  %v954_v6 = vpack.c.bf16 %v890_v44, %v890_v44  ;;  %v748_v11 = vadd.f32 1.0, %v1385_v45  ;;  %1398 = vpow2.f32 %v595_v40  ;;  %v691_v48 = vmul.f32 1.442695, %v573_v5 }
  0xc1   :  { %v1389_v14 = vpop.eup %1388  ;;  %v907_v15 = vpack.c.bf16 %v843_v7, %v843_v7  ;;  %v859_v16 = vmul.f32 %v1387_v25, %v1818_v13  ;;  %1400 = vpow2.f32 %v627_v58  ;;  %v597_v9 = vmul.f32 1.442695, %v526_v3  ;;  %v456_v20 = vpop.f32.mrf.mxu2 }
  0xc2   :  { %v1391_v49 = vpop.eup %1390  ;;  %1019 = vst.msk [vmem:[%s2560_s3 + $0xcc] sm:$0xf] %vm967_vm1, %v954_v6  ;;  %v875_v18 = vmul.f32 %v1389_v14, %v1849_v41  ;;  %1402 = vrcp.f32 %v748_v11  ;;  %v542_v19 = vsub.f32 0.0, %v1970_v10  ;;  %v496_v21 = vpop.f32.mrf.mxu3  ;;  %v1989_v23 = vadd.f32 %v1722_v33, %v456_v20 }
  0xc3   :  { %v1393_v32 = vpop.eup %1392  ;;  %1084 = vst.msk [vmem:[%s2561_s4 + $0xcc] sm:$0xf] %vm1032_vm2, %v954_v6  ;;  %v923_v13 = vpack.c.bf16 %v859_v16, %v859_v16  ;;  %v891_v22 = vmul.f32 %v1391_v49, %v1852_v42  ;;  %1404 = vpow2.f32 %v659_v8  ;;  %v379_v24 = vpop.f32.mrf.mxu0  ;;  %v2007_v37 = vadd.f32 %v1722_v33, %v496_v21 }
  0xc4   :  { %v419_v41 = vpop.f32.mrf.mxu1  ;;  %v1395_v27 = vpop.eup %1394  ;;  %972 = vst.msk [vmem:[%s2560_s3 + $0x10] sm:$0xf] %vm967_vm1, %v907_v15  ;;  %v939_v28 = vpack.c.bf16 %v875_v18, %v875_v18  ;;  %v764_v29 = vadd.f32 1.0, %v1393_v32  ;;  %1406 = vpow2.f32 %v691_v48  ;;  %v629_v30 = vmul.f32 1.442695, %v542_v19 }
  0xc5   :  { %v1397_v31 = vpop.eup %1396  ;;  %1037 = vst.msk [vmem:[%s2561_s4 + $0x10] sm:$0xf] %vm1032_vm2, %v907_v15  ;;  %v955_v42 = vpack.c.bf16 %v891_v22, %v891_v22  ;;  %v844_v34 = vmul.f32 %v1395_v27, %v1860_v47  ;;  %1408 = vpow2.f32 %v597_v9  ;;  %v558_v39 = vsub.f32 0.0, %v1989_v23 }
  0xc6   :  { %v1399_v35 = vpop.eup %1398  ;;  %988 = vst.msk [vmem:[%s2560_s3 + $0x50] sm:$0xf] %vm967_vm1, %v923_v13  ;;  %v860_v36 = vmul.f32 %v1397_v31, %v1863_v1  ;;  %1410 = vrcp.f32 %v764_v29  ;;  %v2010_v38 = vadd.f32 %v1722_v33, %v379_v24  ;;  %v574_v51 = vsub.f32 0.0, %v2007_v37 }
  0xc7   :  { %v1401_v40 = vpop.eup %1400  ;;  %1053 = vst.msk [vmem:[%s2561_s4 + $0x50] sm:$0xf] %vm1032_vm2, %v923_v13  ;;  %v717_v47 = vadd.f32 1.0, %v1399_v35  ;;  %1412 = vpow2.f32 %v629_v30  ;;  %v661_v43 = vmul.f32 1.442695, %v558_v39  ;;  %v908_v1 = vpack.c.bf16 %v844_v34, %v844_v34 }
  0xc8   :  { %v1403_v46 = vpop.eup %1402  ;;  %1004 = vst.msk [vmem:[%s2560_s3 + $0x90] sm:$0xf] %vm967_vm1, %v939_v28  ;;  %v733_v50 = vadd.f32 1.0, %v1401_v40  ;;  %v527_v52 = vsub.f32 0.0, %v2010_v38  ;;  %v2028_v56 = vadd.f32 %v1722_v33, %v419_v41  ;;  %v924_v58 = vpack.c.bf16 %v860_v36, %v860_v36 }
  0xc9   :  { %v1405_v4 = vpop.eup %1404  ;;  %1069 = vst.msk [vmem:[%s2561_s4 + $0x90] sm:$0xf] %vm1032_vm2, %v939_v28  ;;  %v876_v55 = vmul.f32 %v1403_v46, %v1893_v12  ;;  %1414 = vrcp.f32 %v717_v47  ;;  %v693_v60 = vmul.f32 1.442695, %v574_v51  ;;  %v459_v62 = vpop.f32.mrf.mxu2 }
  0xca   :  { %v1407_v57 = vpop.eup %1406  ;;  %1020 = vst.msk [vmem:[%s2560_s3 + $0xd0] sm:$0xf] %vm967_vm1, %v955_v42  ;;  %1416 = vrcp.f32 %v733_v50  ;;  %v749_v59 = vadd.f32 1.0, %v1405_v4  ;;  %v499_v63 = vpop.f32.mrf.mxu3  ;;  %v599_v5 = vmul.f32 1.442695, %v527_v52  ;;  %v543_v25 = vsub.f32 0.0, %v2028_v56 }
  0xcb   :  { %v1409_v2 = vpop.eup %1408  ;;  %1085 = vst.msk [vmem:[%s2561_s4 + $0xd0] sm:$0xf] %vm1032_vm2, %v955_v42  ;;  %v940_v12 = vpack.c.bf16 %v876_v55, %v876_v55  ;;  %v765_v44 = vadd.f32 1.0, %v1407_v57  ;;  %1418 = vpow2.f32 %v661_v43  ;;  %v381_v3 = vpop.f32.mrf.mxu0  ;;  %v2044_v6 = vadd.f32 %v1722_v33, %v459_v62 }
  0xcc   :  { %v421_v45 = vpop.f32.mrf.mxu1  ;;  %v1411_v7 = vpop.eup %1410  ;;  %973 = vst.msk [vmem:[%s2560_s3 + $0x14] sm:$0xf] %vm967_vm1, %v908_v1  ;;  %1420 = vrcp.f32 %v749_v59  ;;  %v718_v8 = vadd.f32 1.0, %v1409_v2  ;;  %v2052_v14 = vadd.f32 %v1722_v33, %v499_v63  ;;  %v2055_v15 = vadd.f32 %v1722_v33, %v381_v3 }
  0xcd   :  { %v1413_v11 = vpop.eup %1412  ;;  %1038 = vst.msk [vmem:[%s2561_s4 + $0x14] sm:$0xf] %vm1032_vm2, %v908_v1  ;;  %v892_v48 = vmul.f32 %v1411_v7, %v1901_v17  ;;  %1422 = vrcp.f32 %v765_v44  ;;  %v631_v9 = vmul.f32 1.442695, %v543_v25  ;;  %v559_v49 = vsub.f32 0.0, %v2044_v6 }
  0xce   :  { %989 = vst.msk [vmem:[%s2560_s3 + $0x54] sm:$0xf] %vm967_vm1, %v924_v58  ;;  %1424 = vrcp.f32 %v718_v8  ;;  %v734_v16 = vadd.f32 1.0, %v1413_v11  ;;  %v575_v19 = vsub.f32 0.0, %v2052_v14  ;;  %v528_v20 = vsub.f32 0.0, %v2055_v15 }
  0xcf   :  { %v1415_v18 = vpop.eup %1414  ;;  %1054 = vst.msk [vmem:[%s2561_s4 + $0x54] sm:$0xf] %vm1032_vm2, %v924_v58  ;;  %v956_v17 = vpack.c.bf16 %v892_v48, %v892_v48  ;;  %1426 = vpow2.f32 %v693_v60  ;;  %v663_v13 = vmul.f32 1.442695, %v559_v49  ;;  %v2074_v22 = vadd.f32 %v1722_v33, %v421_v45 }
  0xd0   :  { %v1417_v21 = vpop.eup %1416  ;;  %1005 = vst.msk [vmem:[%s2560_s3 + $0x94] sm:$0xf] %vm967_vm1, %v940_v12  ;;  %v845_v32 = vmul.f32 %v1415_v18, %v1904_v26  ;;  %1428 = vrcp.f32 %v734_v16  ;;  %v695_v27 = vmul.f32 1.442695, %v575_v19  ;;  %v601_v28 = vmul.f32 1.442695, %v528_v20 }
  0xd1   :  { %v1419_v24 = vpop.eup %1418  ;;  %1070 = vst.msk [vmem:[%s2561_s4 + $0x94] sm:$0xf] %vm1032_vm2, %v940_v12  ;;  %v861_v41 = vmul.f32 %v1417_v21, %v1927_v0  ;;  %1430 = vpow2.f32 %v599_v5  ;;  %v544_v31 = vsub.f32 0.0, %v2074_v22  ;;  %v461_v42 = vpop.f32.mrf.mxu2 }
  0xd2   :  { %v1421_v29 = vpop.eup %1420  ;;  %1021 = vst.msk [vmem:[%s2560_s3 + $0xd4] sm:$0xf] %vm967_vm1, %v956_v17  ;;  %v909_v26 = vpack.c.bf16 %v845_v32, %v845_v32  ;;  %v750_v30 = vadd.f32 1.0, %v1419_v24  ;;  %1432 = vpow2.f32 %v631_v9  ;;  %v501_v34 = vpop.f32.mrf.mxu3  ;;  %v2092_v36 = vadd.f32 %v1722_v33, %v461_v42 }
  0xd3   :  { %v1423_v39 = vpop.eup %1422  ;;  %1086 = vst.msk [vmem:[%s2561_s4 + $0xd4] sm:$0xf] %vm1032_vm2, %v956_v17  ;;  %v925_v0 = vpack.c.bf16 %v861_v41, %v861_v41  ;;  %v877_v35 = vmul.f32 %v1421_v29, %v1944_v53  ;;  %1434 = vpow2.f32 %v663_v13  ;;  %v384_v40 = vpop.f32.mrf.mxu0  ;;  %v633_v1 = vmul.f32 1.442695, %v544_v31 }
  0xd4   :  { %v424_v47 = vpop.f32.mrf.mxu1  ;;  %v1425_v43 = vpop.eup %1424  ;;  %974 = vst.msk [vmem:[%s2560_s3 + $0x18] sm:$0xf] %vm967_vm1, %v909_v26  ;;  %v893_v46 = vmul.f32 %v1423_v39, %v1947_v54  ;;  %1436 = vrcp.f32 %v750_v30  ;;  %v2100_v50 = vadd.f32 %v1722_v33, %v501_v34  ;;  %v560_v4 = vsub.f32 0.0, %v2092_v36 }
  0xd5   :  { %v1427_v53 = vpop.eup %1426  ;;  %1039 = vst.msk [vmem:[%s2561_s4 + $0x18] sm:$0xf] %vm1032_vm2, %v909_v26  ;;  %v941_v51 = vpack.c.bf16 %v877_v35, %v877_v35  ;;  %v846_v52 = vmul.f32 %v1425_v43, %v1954_v61  ;;  %1438 = vpow2.f32 %v695_v27  ;;  %v2123_v12 = vadd.f32 %v1722_v33, %v384_v40 }
  0xd6   :  { %v1429_v55 = vpop.eup %1428  ;;  %990 = vst.msk [vmem:[%s2560_s3 + $0x58] sm:$0xf] %vm967_vm1, %v925_v0  ;;  %v957_v54 = vpack.c.bf16 %v893_v46, %v893_v46  ;;  %v766_v57 = vadd.f32 1.0, %v1427_v53  ;;  %1440 = vpow2.f32 %v601_v28  ;;  %v576_v58 = vsub.f32 0.0, %v2100_v50 }
  0xd7   :  { %v1431_v59 = vpop.eup %1430  ;;  %1055 = vst.msk [vmem:[%s2561_s4 + $0x58] sm:$0xf] %vm1032_vm2, %v925_v0  ;;  %v862_v61 = vmul.f32 %v1429_v55, %v1970_v10  ;;  %1442 = vpow2.f32 %v633_v1  ;;  %v665_v60 = vmul.f32 1.442695, %v560_v4  ;;  %v910_v63 = vpack.c.bf16 %v846_v52, %v846_v52 }
  0xd8   :  { %v1433_v62 = vpop.eup %1432  ;;  %1006 = vst.msk [vmem:[%s2560_s3 + $0x98] sm:$0xf] %vm967_vm1, %v941_v51  ;;  %1444 = vrcp.f32 %v766_v57  ;;  %v719_v2 = vadd.f32 1.0, %v1431_v59  ;;  %v697_v5 = vmul.f32 1.442695, %v576_v58  ;;  %v2130_v3 = vadd.f32 %v1722_v33, %v424_v47 }
  0xd9   :  { %v1435_v44 = vpop.eup %1434  ;;  %1071 = vst.msk [vmem:[%s2561_s4 + $0x98] sm:$0xf] %vm1032_vm2, %v941_v51  ;;  %v735_v10 = vadd.f32 1.0, %v1433_v62  ;;  %1446 = vpow2.f32 %v665_v60  ;;  %v926_v7 = vpack.c.bf16 %v862_v61, %v862_v61  ;;  %v529_v25 = vsub.f32 0.0, %v2123_v12  ;;  %v464_v11 = vpop.f32.mrf.mxu2 }
  0xda   :  { %v1437_v45 = vpop.eup %1436  ;;  %1022 = vst.msk [vmem:[%s2560_s3 + $0xd8] sm:$0xf] %vm967_vm1, %v957_v54  ;;  %1448 = vrcp.f32 %v719_v2  ;;  %v751_v8 = vadd.f32 1.0, %v1435_v44  ;;  %v504_v48 = vpop.f32.mrf.mxu3  ;;  %v545_v49 = vsub.f32 0.0, %v2130_v3  ;;  %v2144_v18 = vadd.f32 %v1722_v33, %v464_v11 }
  0xdb   :  { %v1439_v16 = vpop.eup %1438  ;;  %1087 = vst.msk [vmem:[%s2561_s4 + $0xd8] sm:$0xf] %vm1032_vm2, %v957_v54  ;;  %v878_v9 = vmul.f32 %v1437_v45, %v1989_v23  ;;  %1450 = vrcp.f32 %v735_v10  ;;  %v386_v17 = vpop.f32.mrf.mxu0  ;;  %v603_v32 = vmul.f32 1.442695, %v529_v25  ;;  %v2151_v13 = vadd.f32 %v1722_v33, %v504_v48 }
  0xdc   :  { %v426_v19 = vpop.f32.mrf.mxu1  ;;  %v1441_v20 = vpop.eup %1440  ;;  %975 = vst.msk [vmem:[%s2560_s3 + $0x1c] sm:$0xf] %vm967_vm1, %v910_v63  ;;  %1452 = vrcp.f32 %v751_v8  ;;  %v767_v21 = vadd.f32 1.0, %v1439_v16  ;;  %v635_v27 = vmul.f32 1.442695, %v545_v49  ;;  %v561_v26 = vsub.f32 0.0, %v2144_v18 }
  0xdd   :  { %v1443_v23 = vpop.eup %1442  ;;  %1040 = vst.msk [vmem:[%s2561_s4 + $0x1c] sm:$0xf] %vm1032_vm2, %v910_v63  ;;  %v942_v24 = vpack.c.bf16 %v878_v9, %v878_v9  ;;  %v720_v41 = vadd.f32 1.0, %v1441_v20  ;;  %1454 = vpow2.f32 %v697_v5  ;;  %v577_v30 = vsub.f32 0.0, %v2151_v13 }
  0xde   :  { %v1445_v28 = vpop.eup %1444  ;;  %991 = vst.msk [vmem:[%s2560_s3 + $0x5c] sm:$0xf] %vm967_vm1, %v926_v7  ;;  %1456 = vrcp.f32 %v767_v21  ;;  %v736_v29 = vadd.f32 1.0, %v1443_v23  ;;  %v2169_v34 = vadd.f32 %v1722_v33, %v386_v17  ;;  %v2172_v39 = vadd.f32 %v1722_v33, %v426_v19 }
  0xdf   :  { %v1447_v31 = vpop.eup %1446  ;;  %1056 = vst.msk [vmem:[%s2561_s4 + $0x5c] sm:$0xf] %vm1032_vm2, %v926_v7  ;;  %v894_v42 = vmul.f32 %v1445_v28, %v2007_v37  ;;  %1458 = vrcp.f32 %v720_v41  ;;  %v667_v40 = vmul.f32 1.442695, %v561_v26  ;;  %v699_v33 = vmul.f32 1.442695, %v577_v30 }
  0xe0   :  { %v1449_v0 = vpop.eup %1448  ;;  %1007 = vst.msk [vmem:[%s2560_s3 + $0x9c] sm:$0xf] %vm967_vm1, %v942_v24  ;;  %1460 = vrcp.f32 %v736_v29  ;;  %v752_v35 = vadd.f32 1.0, %v1447_v31  ;;  %v530_v53 = vsub.f32 0.0, %v2169_v34  ;;  %v546_v51 = vsub.f32 0.0, %v2172_v39 }
  0xe1   :  { %v1451_v47 = vpop.eup %1450  ;;  %1072 = vst.msk [vmem:[%s2561_s4 + $0x9c] sm:$0xf] %vm1032_vm2, %v942_v24  ;;  %v958_v37 = vpack.c.bf16 %v894_v42, %v894_v42  ;;  %v847_v43 = vmul.f32 %v1449_v0, %v2010_v38  ;;  %1462 = vpow2.f32 %v603_v32  ;;  %v466_v52 = vpop.f32.mrf.mxu2 }
  0xe2   :  { %v1453_v46 = vpop.eup %1452  ;;  %v863_v1 = vmul.f32 %v1451_v47, %v2028_v56  ;;  %1464 = vrcp.f32 %v752_v35  ;;  %v506_v4 = vpop.f32.mrf.mxu3  ;;  %v2194_v56 = vld [vmem:[%s2559_s2] ss:$0 sm:$0xff]  ;;  %v637_v10 = vmul.f32 1.442695, %v546_v51 }
  0xe3   :  { %v1455_v55 = vpop.eup %1454  ;;  %1023 = vst.msk [vmem:[%s2560_s3 + $0xdc] sm:$0xf] %vm967_vm1, %v958_v37  ;;  %v911_v54 = vpack.c.bf16 %v847_v43, %v847_v43  ;;  %v879_v38 = vmul.f32 %v1453_v46, %v2044_v6  ;;  %1466 = vpow2.f32 %v635_v27  ;;  %v2197_v57 = vadd.f32 %v2194_v56, %v466_v52  ;;  %v389_v58 = vpop.f32.mrf.mxu0 }
  0xe4   :  { %v429_v59 = vpop.f32.mrf.mxu1  ;;  %v1457_v61 = vpop.eup %1456  ;;  %1088 = vst.msk [vmem:[%s2561_s4 + $0xdc] sm:$0xf] %vm1032_vm2, %v958_v37  ;;  %v927_v60 = vpack.c.bf16 %v863_v1, %v863_v1  ;;  %v768_v62 = vadd.f32 1.0, %v1455_v55  ;;  %1468 = vpow2.f32 %v667_v40  ;;  %v605_v6 = vmul.f32 1.442695, %v530_v53 }
  0xe5   :  { %v1459_v63 = vpop.eup %1458  ;;  %976 = vst.msk [vmem:[%s2560_s3 + $0x20] sm:$0xf] %vm967_vm1, %v911_v54  ;;  %v943_v2 = vpack.c.bf16 %v879_v38, %v879_v38  ;;  %v895_v44 = vmul.f32 %v1457_v61, %v2052_v14  ;;  %1470 = vpow2.f32 %v699_v33  ;;  %v562_v7 = vsub.f32 0.0, %v2197_v57 }
  0xe6   :  { %v1461_v5 = vpop.eup %1460  ;;  %1041 = vst.msk [vmem:[%s2561_s4 + $0x20] sm:$0xf] %vm1032_vm2, %v911_v54  ;;  %v848_v45 = vmul.f32 %v1459_v63, %v2055_v15  ;;  %1472 = vrcp.f32 %v768_v62  ;;  %v2215_v8 = vadd.f32 %v2194_v56, %v506_v4  ;;  %v2223_v48 = vadd.f32 %v2194_v56, %v389_v58 }
  0xe7   :  { %v1463_v25 = vpop.eup %1462  ;;  %992 = vst.msk [vmem:[%s2560_s3 + $0x60] sm:$0xf] %vm967_vm1, %v927_v60  ;;  %v959_v14 = vpack.c.bf16 %v895_v44, %v895_v44  ;;  %v864_v11 = vmul.f32 %v1461_v5, %v2074_v22  ;;  %1474 = vpow2.f32 %v605_v6  ;;  %v669_v9 = vmul.f32 1.442695, %v562_v7 }
  0xe8   :  { %v1465_v15 = vpop.eup %1464  ;;  %1057 = vst.msk [vmem:[%s2561_s4 + $0x60] sm:$0xf] %vm1032_vm2, %v927_v60  ;;  %v721_v16 = vadd.f32 1.0, %v1463_v25  ;;  %1476 = vpow2.f32 %v637_v10  ;;  %v912_v22 = vpack.c.bf16 %v848_v45, %v848_v45  ;;  %v578_v19 = vsub.f32 0.0, %v2215_v8 }
  0xe9   :  { %v1467_v49 = vpop.eup %1466  ;;  %1008 = vst.msk [vmem:[%s2560_s3 + $0xa0] sm:$0xf] %vm967_vm1, %v943_v2  ;;  %v880_v17 = vmul.f32 %v1465_v15, %v2092_v36  ;;  %v531_v20 = vsub.f32 0.0, %v2223_v48  ;;  %v928_v32 = vpack.c.bf16 %v864_v11, %v864_v11  ;;  %v2241_v24 = vadd.f32 %v2194_v56, %v429_v59  ;;  %v469_v41 = vpop.f32.mrf.mxu2 }
  0xea   :  { %v1469_v21 = vpop.eup %1468  ;;  %1073 = vst.msk [vmem:[%s2561_s4 + $0xa0] sm:$0xf] %vm1032_vm2, %v943_v2  ;;  %1478 = vrcp.f32 %v721_v16  ;;  %v737_v23 = vadd.f32 1.0, %v1467_v49  ;;  %v509_v27 = vpop.f32.mrf.mxu3  ;;  %v701_v26 = vmul.f32 1.442695, %v578_v19  ;;  %v2258_v43 = vadd.f32 %v2194_v56, %v469_v41 }
  0xeb   :  { %v1471_v28 = vpop.eup %1470  ;;  %1024 = vst.msk [vmem:[%s2560_s3 + $0xe0] sm:$0xf] %vm967_vm1, %v959_v14  ;;  %v944_v36 = vpack.c.bf16 %v880_v17, %v880_v17  ;;  %v753_v29 = vadd.f32 1.0, %v1469_v21  ;;  %1480 = vpow2.f32 %v669_v9  ;;  %v391_v30 = vpop.f32.mrf.mxu0  ;;  %v607_v35 = vmul.f32 1.442695, %v531_v20 }
  0xec   :  { %v431_v31 = vpop.f32.mrf.mxu1  ;;  %v1473_v42 = vpop.eup %1472  ;;  %1089 = vst.msk [vmem:[%s2561_s4 + $0xe0] sm:$0xf] %vm1032_vm2, %v959_v14  ;;  %1482 = vrcp.f32 %v737_v23  ;;  %v769_v0 = vadd.f32 1.0, %v1471_v28  ;;  %v547_v40 = vsub.f32 0.0, %v2241_v24  ;;  %v2261_v33 = vadd.f32 %v2194_v56, %v509_v27 }
  0xed   :  { %v1475_v47 = vpop.eup %1474  ;;  %977 = vst.msk [vmem:[%s2560_s3 + $0x24] sm:$0xf] %vm967_vm1, %v912_v22  ;;  %v896_v37 = vmul.f32 %v1473_v42, %v2100_v50  ;;  %1484 = vrcp.f32 %v753_v29  ;;  %v2268_v51 = vadd.f32 %v2194_v56, %v391_v30  ;;  %v563_v4 = vsub.f32 0.0, %v2258_v43 }
  0xee   :  { %v1477_v46 = vpop.eup %1476  ;;  %1042 = vst.msk [vmem:[%s2561_s4 + $0x24] sm:$0xf] %vm1032_vm2, %v912_v22  ;;  %1486 = vrcp.f32 %v769_v0  ;;  %v722_v1 = vadd.f32 1.0, %v1475_v47  ;;  %v639_v53 = vmul.f32 1.442695, %v547_v40  ;;  %v579_v54 = vsub.f32 0.0, %v2261_v33 }
  0xef   :  { %993 = vst.msk [vmem:[%s2560_s3 + $0x64] sm:$0xf] %vm967_vm1, %v928_v32  ;;  %v960_v50 = vpack.c.bf16 %v896_v37, %v896_v37  ;;  %v738_v52 = vadd.f32 1.0, %v1477_v46  ;;  %1488 = vpow2.f32 %v701_v26  ;;  %v532_v38 = vsub.f32 0.0, %v2268_v51 }
  0xf0   :  { %v1479_v55 = vpop.eup %1478  ;;  %1058 = vst.msk [vmem:[%s2561_s4 + $0x64] sm:$0xf] %vm1032_vm2, %v928_v32  ;;  %1490 = vrcp.f32 %v722_v1  ;;  %v2282_v58 = vadd.f32 %v2194_v56, %v431_v31  ;;  %v671_v60 = vmul.f32 1.442695, %v563_v4  ;;  %v703_v63 = vmul.f32 1.442695, %v579_v54 }
  0xf1   :  { %v1481_v59 = vpop.eup %1480  ;;  %1009 = vst.msk [vmem:[%s2560_s3 + $0xa4] sm:$0xf] %vm967_vm1, %v944_v36  ;;  %v849_v61 = vmul.f32 %v1479_v55, %v2123_v12  ;;  %1492 = vrcp.f32 %v738_v52  ;;  %v471_v44 = vpop.f32.mrf.mxu2  ;;  %v609_v7 = vmul.f32 1.442695, %v532_v38 }
  0xf2   :  { %v1483_v62 = vpop.eup %1482  ;;  %1074 = vst.msk [vmem:[%s2561_s4 + $0xa4] sm:$0xf] %vm1032_vm2, %v944_v36  ;;  %v754_v6 = vadd.f32 1.0, %v1481_v59  ;;  %1494 = vpow2.f32 %v607_v35  ;;  %v548_v2 = vsub.f32 0.0, %v2282_v58  ;;  %v511_v10 = vpop.f32.mrf.mxu3  ;;  %v2305_v9 = vadd.f32 %v2194_v56, %v471_v44 }
  0xf3   :  { %v1485_v5 = vpop.eup %1484  ;;  %1025 = vst.msk [vmem:[%s2560_s3 + $0xe4] sm:$0xf] %vm967_vm1, %v960_v50  ;;  %v913_v12 = vpack.c.bf16 %v849_v61, %v849_v61  ;;  %v865_v45 = vmul.f32 %v1483_v62, %v2130_v3  ;;  %1496 = vpow2.f32 %v639_v53  ;;  %v394_v25 = vpop.f32.mrf.mxu0  ;;  %v2313_v17 = vadd.f32 %v2194_v56, %v511_v10 }
  0xf4   :  { %v434_v14 = vpop.f32.mrf.mxu1  ;;  %v1487_v11 = vpop.eup %1486  ;;  %1090 = vst.msk [vmem:[%s2561_s4 + $0xe4] sm:$0xf] %vm1032_vm2, %v960_v50  ;;  %v881_v15 = vmul.f32 %v1485_v5, %v2144_v18  ;;  %1498 = vrcp.f32 %v754_v6  ;;  %v641_v16 = vmul.f32 1.442695, %v548_v2  ;;  %v564_v21 = vsub.f32 0.0, %v2305_v9 }
  0xf5   :  { %v1489_v49 = vpop.eup %1488  ;;  %978 = vst.msk [vmem:[%s2560_s3 + $0x28] sm:$0xf] %vm967_vm1, %v913_v12  ;;  %v929_v3 = vpack.c.bf16 %v865_v45, %v865_v45  ;;  %v897_v22 = vmul.f32 %v1487_v11, %v2151_v13  ;;  %1500 = vpow2.f32 %v671_v60  ;;  %v580_v41 = vsub.f32 0.0, %v2313_v17 }
  0xf6   :  { %v1491_v19 = vpop.eup %1490  ;;  %1043 = vst.msk [vmem:[%s2561_s4 + $0x28] sm:$0xf] %vm1032_vm2, %v913_v12  ;;  %v945_v18 = vpack.c.bf16 %v881_v15, %v881_v15  ;;  %v770_v20 = vadd.f32 1.0, %v1489_v49  ;;  %1502 = vpow2.f32 %v703_v63  ;;  %v673_v36 = vmul.f32 1.442695, %v564_v21 }
  0xf7   :  { %v1493_v32 = vpop.eup %1492  ;;  %994 = vst.msk [vmem:[%s2560_s3 + $0x68] sm:$0xf] %vm967_vm1, %v929_v3  ;;  %v961_v13 = vpack.c.bf16 %v897_v22, %v897_v22  ;;  %v850_v23 = vmul.f32 %v1491_v19, %v2169_v34  ;;  %1504 = vpow2.f32 %v609_v7  ;;  %v2332_v29 = vadd.f32 %v2194_v56, %v394_v25 }
  0xf8   :  { %v1495_v27 = vpop.eup %1494  ;;  %1059 = vst.msk [vmem:[%s2561_s4 + $0x68] sm:$0xf] %vm1032_vm2, %v929_v3  ;;  %v866_v28 = vmul.f32 %v1493_v32, %v2172_v39  ;;  %1506 = vrcp.f32 %v770_v20  ;;  %v705_v31 = vmul.f32 1.442695, %v580_v41  ;;  %v2349_v1 = vadd.f32 %v2194_v56, %v434_v14 }
  0xf9   :  { %v1497_v26 = vpop.eup %1496  ;;  %1010 = vst.msk [vmem:[%s2560_s3 + $0xa8] sm:$0xf] %vm967_vm1, %v945_v18  ;;  %v914_v34 = vpack.c.bf16 %v850_v23, %v850_v23  ;;  %v723_v30 = vadd.f32 1.0, %v1495_v27  ;;  %1508 = vpow2.f32 %v641_v16  ;;  %v533_v35 = vsub.f32 0.0, %v2332_v29  ;;  %v474_v40 = vpop.f32.mrf.mxu2 }
  0xfa   :  { %v1499_v42 = vpop.eup %1498  ;;  %1075 = vst.msk [vmem:[%s2561_s4 + $0xa8] sm:$0xf] %vm1032_vm2, %v945_v18  ;;  %v930_v39 = vpack.c.bf16 %v866_v28, %v866_v28  ;;  %v739_v0 = vadd.f32 1.0, %v1497_v26  ;;  %1510 = vpow2.f32 %v673_v36  ;;  %v514_v47 = vpop.f32.mrf.mxu3  ;;  %v2352_v53 = vadd.f32 %v2194_v56, %v474_v40 }
  0xfb   :  { %v1501_v37 = vpop.eup %1500  ;;  %1026 = vst.msk [vmem:[%s2560_s3 + $0xe8] sm:$0xf] %vm967_vm1, %v961_v13  ;;  %v882_v46 = vmul.f32 %v1499_v42, %v2197_v57  ;;  %1512 = vrcp.f32 %v723_v30  ;;  %v611_v4 = vmul.f32 1.442695, %v533_v35  ;;  %v2359_v55 = vadd.f32 %v2194_v56, %v514_v47  ;;  %v396_v57 = vpop.f32.mrf.mxu0 }
  0xfc   :  { %v1503_v50 = vpop.eup %1502  ;;  %1091 = vst.msk [vmem:[%s2561_s4 + $0xe8] sm:$0xf] %vm1032_vm2, %v961_v13  ;;  %1514 = vrcp.f32 %v739_v0  ;;  %v755_v52 = vadd.f32 1.0, %v1501_v37  ;;  %v549_v61 = vsub.f32 0.0, %v2349_v1  ;;  %v436_v60 = vpop.f32.mrf.mxu1  ;;  %v565_v63 = vsub.f32 0.0, %v2352_v53 }
  0xfd   :  { %v1505_v54 = vpop.eup %1504  ;;  %979 = vst.msk [vmem:[%s2560_s3 + $0x2c] sm:$0xf] %vm967_vm1, %v914_v34  ;;  %v946_v38 = vpack.c.bf16 %v882_v46, %v882_v46  ;;  %v771_v59 = vadd.f32 1.0, %v1503_v50  ;;  %1516 = vpow2.f32 %v705_v31  ;;  %v581_v2 = vsub.f32 0.0, %v2359_v55 }
  0xfe   :  { %v1507_v62 = vpop.eup %1506  ;;  %1044 = vst.msk [vmem:[%s2561_s4 + $0x2c] sm:$0xf] %vm1032_vm2, %v914_v34  ;;  %1518 = vrcp.f32 %v755_v52  ;;  %v724_v6 = vadd.f32 1.0, %v1505_v54  ;;  %v643_v5 = vmul.f32 1.442695, %v549_v61  ;;  %v2378_v12 = vadd.f32 %v2194_v56, %v396_v57 }
  0xff   :  { %v1509_v44 = vpop.eup %1508  ;;  %995 = vst.msk [vmem:[%s2560_s3 + $0x6c] sm:$0xf] %vm967_vm1, %v930_v39  ;;  %v898_v10 = vmul.f32 %v1507_v62, %v2215_v8  ;;  %1520 = vrcp.f32 %v771_v59  ;;  %v675_v25 = vmul.f32 1.442695, %v565_v63  ;;  %v2385_v14 = vadd.f32 %v2194_v56, %v436_v60 }
 0x100   :  { %v1511_v45 = vpop.eup %1510  ;;  %1060 = vst.msk [vmem:[%s2561_s4 + $0x6c] sm:$0xf] %vm1032_vm2, %v930_v39  ;;  %1522 = vrcp.f32 %v724_v6  ;;  %v740_v7 = vadd.f32 1.0, %v1509_v44  ;;  %v707_v16 = vmul.f32 1.442695, %v581_v2  ;;  %v534_v22 = vsub.f32 0.0, %v2378_v12 }
 0x101   :  { %v1513_v11 = vpop.eup %1512  ;;  %1011 = vst.msk [vmem:[%s2560_s3 + $0xac] sm:$0xf] %vm967_vm1, %v946_v38  ;;  %v962_v8 = vpack.c.bf16 %v898_v10, %v898_v10  ;;  %v756_v15 = vadd.f32 1.0, %v1511_v45  ;;  %1524 = vpow2.f32 %v611_v4  ;;  %v550_v19 = vsub.f32 0.0, %v2385_v14  ;;  %v476_v18 = vpop.f32.mrf.mxu2 }
 0x102   :  { %v1515_v49 = vpop.eup %1514  ;;  %1076 = vst.msk [vmem:[%s2561_s4 + $0xac] sm:$0xf] %vm1032_vm2, %v946_v38  ;;  %v851_v3 = vmul.f32 %v1513_v11, %v2223_v48  ;;  %1526 = vrcp.f32 %v740_v7  ;;  %v516_v20 = vpop.f32.mrf.mxu3  ;;  %v2404_v13 = vadd.f32 %v2194_v56, %v476_v18  ;;  %v613_v28 = vmul.f32 1.442695, %v534_v22 }
 0x103   :  { %v1517_v21 = vpop.eup %1516  ;;  %1027 = vst.msk [vmem:[%s2560_s3 + $0xec] sm:$0xf] %vm967_vm1, %v962_v8  ;;  %v867_v32 = vmul.f32 %v1515_v49, %v2241_v24  ;;  %1528 = vrcp.f32 %v756_v15  ;;  %v2407_v48 = vadd.f32 %v2194_v56, %v516_v20  ;;  %v645_v34 = vmul.f32 1.442695, %v550_v19 }
 0x104   :  { %v1519_v23 = vpop.eup %1518  ;;  %1092 = vst.msk [vmem:[%s2561_s4 + $0xec] sm:$0xf] %vm1032_vm2, %v962_v8  ;;  %v915_v41 = vpack.c.bf16 %v851_v3, %v851_v3  ;;  %v772_v27 = vadd.f32 1.0, %v1517_v21  ;;  %1530 = vpow2.f32 %v643_v5  ;;  %v566_v31 = vsub.f32 0.0, %v2404_v13 }
 0x105   :  { %v1521_v36 = vpop.eup %1520  ;;  %v931_v26 = vpack.c.bf16 %v867_v32, %v867_v32  ;;  %v883_v24 = vmul.f32 %v1519_v23, %v2258_v43  ;;  %1532 = vpow2.f32 %v675_v25  ;;  %v582_v42 = vsub.f32 0.0, %v2407_v48 }
 0x106   :  { %v1523_v30 = vpop.eup %1522  ;;  %980 = vst.msk [vmem:[%s2560_s3 + $0x30] sm:$0xf] %vm967_vm1, %v915_v41  ;;  %v899_v56 = vmul.f32 %v1521_v36, %v2261_v33  ;;  %1534 = vrcp.f32 %v772_v27  ;;  %v677_v47 = vmul.f32 1.442695, %v566_v31 }
 0x107   :  { %v1525_v39 = vpop.eup %1524  ;;  %1045 = vst.msk [vmem:[%s2561_s4 + $0x30] sm:$0xf] %vm1032_vm2, %v915_v41  ;;  %v947_v43 = vpack.c.bf16 %v883_v24, %v883_v24  ;;  %v852_v0 = vmul.f32 %v1523_v30, %v2268_v51  ;;  %1536 = vpow2.f32 %v707_v16  ;;  %v709_v51 = vmul.f32 1.442695, %v582_v42 }
 0x108   :  { %v1527_v35 = vpop.eup %1526  ;;  %996 = vst.msk [vmem:[%s2560_s3 + $0x70] sm:$0xf] %vm967_vm1, %v931_v26  ;;  %v963_v33 = vpack.c.bf16 %v899_v56, %v899_v56  ;;  %v725_v40 = vadd.f32 1.0, %v1525_v39  ;;  %1538 = vpow2.f32 %v613_v28 }
 0x109   :  { %v1529_v37 = vpop.eup %1528  ;;  %1061 = vst.msk [vmem:[%s2561_s4 + $0x70] sm:$0xf] %vm1032_vm2, %v931_v26  ;;  %v868_v46 = vmul.f32 %v1527_v35, %v2282_v58  ;;  %1540 = vpow2.f32 %v645_v34  ;;  %v916_v52 = vpack.c.bf16 %v852_v0, %v852_v0 }
 0x10a   :  { %v1531_v50 = vpop.eup %1530  ;;  %1012 = vst.msk [vmem:[%s2560_s3 + $0xb0] sm:$0xf] %vm967_vm1, %v947_v43  ;;  %v884_v4 = vmul.f32 %v1529_v37, %v2305_v9  ;;  %1542 = vrcp.f32 %v725_v40 }
 0x10b   :  { %v1533_v57 = vpop.eup %1532  ;;  %1077 = vst.msk [vmem:[%s2561_s4 + $0xb0] sm:$0xf] %vm1032_vm2, %v947_v43  ;;  %v741_v54 = vadd.f32 1.0, %v1531_v50  ;;  %1544 = vpow2.f32 %v677_v47  ;;  %v932_v38 = vpack.c.bf16 %v868_v46, %v868_v46 }
 0x10c   :  { %v1535_v58 = vpop.eup %1534  ;;  %1028 = vst.msk [vmem:[%s2560_s3 + $0xf0] sm:$0xf] %vm967_vm1, %v963_v33  ;;  %v757_v59 = vadd.f32 1.0, %v1533_v57  ;;  %1546 = vpow2.f32 %v709_v51  ;;  %v948_v62 = vpack.c.bf16 %v884_v4, %v884_v4 }
 0x10d   :  { %v1537_v61 = vpop.eup %1536  ;;  %1093 = vst.msk [vmem:[%s2561_s4 + $0xf0] sm:$0xf] %vm1032_vm2, %v963_v33  ;;  %v900_v9 = vmul.f32 %v1535_v58, %v2313_v17  ;;  %1548 = vrcp.f32 %v741_v54 }
 0x10e   :  { %v1539_v60 = vpop.eup %1538  ;;  %981 = vst.msk [vmem:[%s2560_s3 + $0x34] sm:$0xf] %vm967_vm1, %v916_v52  ;;  %1550 = vrcp.f32 %v757_v59  ;;  %v773_v6 = vadd.f32 1.0, %v1537_v61 }
 0x10f   :  { %v1541_v63 = vpop.eup %1540  ;;  %1046 = vst.msk [vmem:[%s2561_s4 + $0x34] sm:$0xf] %vm1032_vm2, %v916_v52  ;;  %v726_v2 = vadd.f32 1.0, %v1539_v60  ;;  %v964_v17 = vpack.c.bf16 %v900_v9, %v900_v9 }
 0x110   :  { %v1543_v44 = vpop.eup %1542  ;;  %997 = vst.msk [vmem:[%s2560_s3 + $0x74] sm:$0xf] %vm967_vm1, %v932_v38  ;;  %1552 = vrcp.f32 %v773_v6  ;;  %v742_v10 = vadd.f32 1.0, %v1541_v63 }
 0x111   :  { %v1545_v5 = vpop.eup %1544  ;;  %1062 = vst.msk [vmem:[%s2561_s4 + $0x74] sm:$0xf] %vm1032_vm2, %v932_v38  ;;  %v853_v45 = vmul.f32 %v1543_v44, %v2332_v29  ;;  %1554 = vrcp.f32 %v726_v2 }
 0x112   :  { %v1547_v7 = vpop.eup %1546  ;;  %1013 = vst.msk [vmem:[%s2560_s3 + $0xb4] sm:$0xf] %vm967_vm1, %v948_v62  ;;  %1556 = vrcp.f32 %v742_v10  ;;  %v758_v25 = vadd.f32 1.0, %v1545_v5 }
 0x113   :  { %v1549_v11 = vpop.eup %1548  ;;  %1078 = vst.msk [vmem:[%s2561_s4 + $0xb4] sm:$0xf] %vm1032_vm2, %v948_v62  ;;  %v917_v8 = vpack.c.bf16 %v853_v45, %v853_v45  ;;  %v774_v15 = vadd.f32 1.0, %v1547_v7 }
 0x114   :  { %v1551_v16 = vpop.eup %1550  ;;  %1029 = vst.msk [vmem:[%s2560_s3 + $0xf4] sm:$0xf] %vm967_vm1, %v964_v17  ;;  %v869_v29 = vmul.f32 %v1549_v11, %v2349_v1  ;;  %1558 = vrcp.f32 %v758_v25 }
 0x115   :  { %1094 = vst.msk [vmem:[%s2561_s4 + $0xf4] sm:$0xf] %vm1032_vm2, %v964_v17  ;;  %v885_v49 = vmul.f32 %v1551_v16, %v2352_v53  ;;  %1560 = vrcp.f32 %v774_v15 }
 0x116   :  { %v1553_v3 = vpop.eup %1552  ;;  %982 = vst.msk [vmem:[%s2560_s3 + $0x38] sm:$0xf] %vm967_vm1, %v917_v8  ;;  %v933_v22 = vpack.c.bf16 %v869_v29, %v869_v29 }
 0x117   :  { %v1555_v19 = vpop.eup %1554  ;;  %1047 = vst.msk [vmem:[%s2561_s4 + $0x38] sm:$0xf] %vm1032_vm2, %v917_v8  ;;  %v949_v1 = vpack.c.bf16 %v885_v49, %v885_v49  ;;  %v901_v18 = vmul.f32 %v1553_v3, %v2359_v55 }
 0x118   :  { %v1557_v20 = vpop.eup %1556  ;;  %998 = vst.msk [vmem:[%s2560_s3 + $0x78] sm:$0xf] %vm967_vm1, %v933_v22  ;;  %v854_v53 = vmul.f32 %v1555_v19, %v2378_v12 }
 0x119   :  { %1063 = vst.msk [vmem:[%s2561_s4 + $0x78] sm:$0xf] %vm1032_vm2, %v933_v22  ;;  %v965_v21 = vpack.c.bf16 %v901_v18, %v901_v18  ;;  %v870_v32 = vmul.f32 %v1557_v20, %v2385_v14 }
 0x11a   :  { %v1559_v23 = vpop.eup %1558  ;;  %1014 = vst.msk [vmem:[%s2560_s3 + $0xb8] sm:$0xf] %vm967_vm1, %v949_v1  ;;  %v918_v55 = vpack.c.bf16 %v854_v53, %v854_v53 }
 0x11b   :  { %v1561_v41 = vpop.eup %1560  ;;  %1079 = vst.msk [vmem:[%s2561_s4 + $0xb8] sm:$0xf] %vm1032_vm2, %v949_v1  ;;  %v886_v12 = vmul.f32 %v1559_v23, %v2404_v13  ;;  %v934_v14 = vpack.c.bf16 %v870_v32, %v870_v32 }
 0x11c   :  { %1030 = vst.msk [vmem:[%s2560_s3 + $0xf8] sm:$0xf] %vm967_vm1, %v965_v21  ;;  %v902_v27 = vmul.f32 %v1561_v41, %v2407_v48 }
 0x11d   :  { %1095 = vst.msk [vmem:[%s2561_s4 + $0xf8] sm:$0xf] %vm1032_vm2, %v965_v21  ;;  %v950_v28 = vpack.c.bf16 %v886_v12, %v886_v12 }
 0x11e   :  { %983 = vst.msk [vmem:[%s2560_s3 + $0x3c] sm:$0xf] %vm967_vm1, %v918_v55  ;;  %v966_v13 = vpack.c.bf16 %v902_v27, %v902_v27 }
 0x11f   :  { %1048 = vst.msk [vmem:[%s2561_s4 + $0x3c] sm:$0xf] %vm1032_vm2, %v918_v55 }
 0x120   :  { %999 = vst.msk [vmem:[%s2560_s3 + $0x7c] sm:$0xf] %vm967_vm1, %v934_v14 }
 0x121   :  { %1064 = vst.msk [vmem:[%s2561_s4 + $0x7c] sm:$0xf] %vm1032_vm2, %v934_v14 }
 0x122   :  { %1015 = vst.msk [vmem:[%s2560_s3 + $0xbc] sm:$0xf] %vm967_vm1, %v950_v28 }
 0x123   :  { %1080 = vst.msk [vmem:[%s2561_s4 + $0xbc] sm:$0xf] %vm1032_vm2, %v950_v28 }
 0x124   :  { %1031 = vst.msk [vmem:[%s2560_s3 + $0xfc] sm:$0xf] %vm967_vm1, %v966_v13 }
 0x125   :  { %1096 = vst.msk [vmem:[%s2561_s4 + $0xfc] sm:$0xf] %vm1032_vm2, %v966_v13 }

// kernel: c2f_forward.11
= control target key start
LH: loop header
LB: loop body
LE: loop exit
PB: predicated region body
PF: predicated region fallthrough
CT: control target
= control target key end

     0   :  { %vm321_vm0 = vcmask 130048   ;;  %vm759_vm1 = vcmask 261120   ;;  %vm2102_vm2 = vcmask 257024   ;;  %s3993_s3 = inlined_call_operand.vmem [shape: bf16[64,32], index: 3, kind: input, shape index: {}]   ;;  %s3994_s1 = inlined_call_operand.vmem [shape: bf16[512,16], index: 1, kind: input, shape index: {}]   ;;  %s3995_s2 = inlined_call_operand.vmem [shape: bf16[512,16], index: 2, kind: input, shape index: {}]   ;;  %s3996_s0 = inlined_call_operand.vmem [shape: bf16[512,32], index: 0, kind: input, shape index: {}]   ;;  %s3997_s4 = inlined_call_operand.vmem [shape: f32[1,32], index: 4, kind: input, shape index: {}]   ;;  %s3998_s5 = inlined_call_operand.vmem [shape: bf16[512,32], index: 5, kind: output, shape index: {}]  }
   0x1   :  { %v2733_v0 = vld [vmem:[%s3993_s3 + $0x10] sm:$0xff]  ;;  %v2700_v1 = vld [vmem:[%s3993_s3 + $0x8] sm:$0xff]  ;;  %v2766_v2 = vld [vmem:[%s3993_s3 + $0x18] sm:$0xff] }
   0x2   :  { %v2701_v3 = vld [vmem:[%s3994_s1] sm:$0xff]  ;;  %v2726_v4 = vld [vmem:[%s3994_s1 + $0xc8] sm:$0xff]  ;;  %425 = vmatpush.bf16.msra.mxu0 %v2733_v0  ;;  %2767 = vmatpush.bf16.msra.mxu3 %v2733_v0  ;;  %v2727_v9 = vld [vmem:[%s3994_s1 + $0xd0] sm:$0xff] }
   0x3   :  { %v2734_v5 = vld [vmem:[%s3995_s2] sm:$0xff]  ;;  %862 = vmatpush.bf16.msra.mxu1 %v2700_v1  ;;  %1360 = vmatpush.bf16.msra.mxu2 %v2766_v2  ;;  %v2702_v8 = vld [vmem:[%s3994_s1 + $0x8] sm:$0xff]  ;;  %v2703_v12 = vld [vmem:[%s3994_s1 + $0x10] sm:$0xff] }
   0x4   :  { %v2699_v6 = vld [vmem:[%s3993_s3] sm:$0xff]  ;;  %v2735_v10 = vld [vmem:[%s3995_s2 + $0x8] sm:$0xff]  ;;  %v2728_v13 = vld [vmem:[%s3994_s1 + $0xd8] sm:$0xff] }
   0x5   :  { %2303 = vmatmul.msk.bf16.vlgmr.msra.gmra.mxu0 %vm321_vm0, %v2701_v3  ;;  %2328 = vmatmul.msk.bf16.vlgmr.msra.gmra.mxu3 %vm321_vm0, %v2726_v4  ;;  %v2667_v7 = vld [vmem:[%s3996_s0] sm:$0xff]  ;;  %v2668_v11 = vld [vmem:[%s3996_s0 + $0x8] sm:$0xff]  ;;  %v2736_v14 = vld [vmem:[%s3995_s2 + $0x10] sm:$0xff] }
   0x6   :  { %2768 = vmatpush.bf16.msrb.mxu3 %v2700_v1  ;;  %2635 = vmatmul.msk.bf16.vlgmr.msra.gmra.mxu2 %vm321_vm0, %v2734_v5  ;;  %v2669_v15 = vld [vmem:[%s3996_s0 + $0x10] sm:$0xff]  ;;  %v2704_v16 = vld [vmem:[%s3994_s1 + $0x18] sm:$0xff]  ;;  %v2729_v17 = vld [vmem:[%s3994_s1 + $0xe0] sm:$0xff] }
   0x7   :  { %863 = vmatpush.bf16.msra.mxu1 %v2699_v6  ;;  %v2737_v18 = vld [vmem:[%s3995_s2 + $0x18] sm:$0xff]  ;;  %v2705_v20 = vld [vmem:[%s3994_s1 + $0x20] sm:$0xff]  ;;  %v2730_v21 = vld [vmem:[%s3994_s1 + $0xe8] sm:$0xff] }
   0x8   :  { %v2670_v19 = vld [vmem:[%s3996_s0 + $0x18] sm:$0xff]  ;;  %v2738_v22 = vld [vmem:[%s3995_s2 + $0x20] sm:$0xff]  ;;  %v2706_v24 = vld [vmem:[%s3994_s1 + $0x28] sm:$0xff] }
   0x9   :  { %v2671_v23 = vld [vmem:[%s3996_s0 + $0x20] sm:$0xff]  ;;  %v2731_v25 = vld [vmem:[%s3994_s1 + $0xf0] sm:$0xff]  ;;  %v2739_v26 = vld [vmem:[%s3995_s2 + $0x28] sm:$0xff] }
   0xa   :  { %2769 = vmatpush.bf16.msrb.mxu3 %v2699_v6  ;;  %2471 = vmatmul.msk.bf16.vlgmr.msra.gmra.mxu1 %vm759_vm1, %v2667_v7  ;;  %v2672_v27 = vld [vmem:[%s3996_s0 + $0x28] sm:$0xff]  ;;  %v2707_v28 = vld [vmem:[%s3994_s1 + $0x30] sm:$0xff]  ;;  %v2732_v29 = vld [vmem:[%s3994_s1 + $0xf8] sm:$0xff] }
   0xb   :  { %v2740_v30 = vld [vmem:[%s3995_s2 + $0x30] sm:$0xff]  ;;  %v2708_v32 = vld [vmem:[%s3994_s1 + $0x38] sm:$0xff]  ;;  %v2691_v33 = vld [vmem:[%s3996_s0 + $0xc0] sm:$0xff] }
   0xc   :  { %v2673_v31 = vld [vmem:[%s3996_s0 + $0x30] sm:$0xff]  ;;  %v2741_v34 = vld [vmem:[%s3995_s2 + $0x38] sm:$0xff]  ;;  %v2709_v36 = vld [vmem:[%s3994_s1 + $0x40] sm:$0xff] }
   0xd   :  { %v2674_v35 = vld [vmem:[%s3996_s0 + $0x38] sm:$0xff]  ;;  %v2692_v37 = vld [vmem:[%s3996_s0 + $0xc8] sm:$0xff]  ;;  %v2742_v39 = vld [vmem:[%s3995_s2 + $0x40] sm:$0xff] }
   0xe   :  { %2770 = vmatpush.bf16.msra.mxu3 %v2766_v2  ;;  %v2675_v40 = vld [vmem:[%s3996_s0 + $0x40] sm:$0xff]  ;;  %v2710_v55 = vld [vmem:[%s3994_s1 + $0x48] sm:$0xff]  ;;  %v2693_v56 = vld [vmem:[%s3996_s0 + $0xd0] sm:$0xff] }
   0xf   :  { %v3220_v44 = vld [vmem:[%s3997_s4] ss:$0 sm:$0xff]  ;;  %v2743_v59 = vld [vmem:[%s3995_s2 + $0x48] sm:$0xff] }
  0x10   :  { %v2676_v62 = vld [vmem:[%s3996_s0 + $0x48] sm:$0xff] }
  0x15   :  { %2304 = vmatmul.msk.bf16.gmra.mxu0 %vm321_vm0, %v2702_v8  ;;  %2329 = vmatmul.msk.bf16.gmra.mxu3 %vm321_vm0, %v2727_v9 }
  0x16   :  { %2636 = vmatmul.msk.bf16.gmra.mxu2 %vm321_vm0, %v2735_v10 }
  0x1a   :  { %2472 = vmatmul.msk.bf16.gmra.mxu1 %vm759_vm1, %v2668_v11 }
  0x25   :  { %2305 = vmatmul.msk.bf16.gmra.mxu0 %vm321_vm0, %v2703_v12  ;;  %2330 = vmatmul.msk.bf16.gmra.mxu3 %vm321_vm0, %v2728_v13 }
  0x26   :  { %2637 = vmatmul.msk.bf16.gmra.mxu2 %vm321_vm0, %v2736_v14 }
  0x2a   :  { %2473 = vmatmul.msk.bf16.gmra.mxu1 %vm759_vm1, %v2669_v15 }
  0x35   :  { %2306 = vmatmul.msk.bf16.gmra.mxu0 %vm321_vm0, %v2704_v16  ;;  %2331 = vmatmul.msk.bf16.gmra.mxu3 %vm321_vm0, %v2729_v17 }
  0x36   :  { %2638 = vmatmul.msk.bf16.gmra.mxu2 %vm321_vm0, %v2737_v18  ;;  %v2711_v18 = vld [vmem:[%s3994_s1 + $0x50] sm:$0xff] }
  0x3a   :  { %2474 = vmatmul.msk.bf16.gmra.mxu1 %vm759_vm1, %v2670_v19  ;;  %v2694_v19 = vld [vmem:[%s3996_s0 + $0xd8] sm:$0xff] }
  0x45   :  { %2307 = vmatmul.msk.bf16.gmra.mxu0 %vm321_vm0, %v2705_v20  ;;  %2332 = vmatmul.msk.bf16.gmra.mxu3 %vm321_vm0, %v2730_v21 }
  0x46   :  { %2639 = vmatmul.msk.bf16.gmra.mxu2 %vm321_vm0, %v2738_v22 }
  0x4a   :  { %2475 = vmatmul.msk.bf16.gmra.mxu1 %vm759_vm1, %v2671_v23  ;;  %v2744_v23 = vld [vmem:[%s3995_s2 + $0x50] sm:$0xff] }
  0x55   :  { %2308 = vmatmul.msk.bf16.gmra.mxu0 %vm321_vm0, %v2706_v24  ;;  %2333 = vmatmul.msk.bf16.gmra.mxu3 %vm321_vm0, %v2731_v25 }
  0x56   :  { %2640 = vmatmul.msk.bf16.gmra.mxu2 %vm321_vm0, %v2739_v26 }
  0x5a   :  { %2476 = vmatmul.msk.bf16.gmra.mxu1 %vm759_vm1, %v2672_v27  ;;  %v2677_v27 = vld [vmem:[%s3996_s0 + $0x50] sm:$0xff] }
  0x65   :  { %2309 = vmatmul.msk.bf16.gmra.mxu0 %vm321_vm0, %v2707_v28  ;;  %2334 = vmatmul.msk.bf16.gmra.mxu3 %vm321_vm0, %v2732_v29 }
  0x66   :  { %2641 = vmatmul.msk.bf16.gmra.mxu2 %vm321_vm0, %v2740_v30 }
  0x6a   :  { %2477 = vmatmul.msk.bf16.gmra.mxu1 %vm759_vm1, %v2673_v31 }
  0x75   :  { %2310 = vmatmul.msk.bf16.gmra.mxu0 %vm321_vm0, %v2708_v32  ;;  %2495 = vmatmul.msk.bf16.vlgmr.msrb.gmra.mxu3 %vm759_vm1, %v2691_v33 }
  0x76   :  { %2642 = vmatmul.msk.bf16.gmra.mxu2 %vm321_vm0, %v2741_v34 }
  0x7a   :  { %2478 = vmatmul.msk.bf16.gmra.mxu1 %vm759_vm1, %v2674_v35 }
  0x82   :  { %v427_v38 = vpop.f32.mrf.mxu0 }
  0x85   :  { %2311 = vmatmul.msk.bf16.gmra.mxu0 %vm321_vm0, %v2709_v36  ;;  %2496 = vmatmul.msk.bf16.gmra.mxu3 %vm759_vm1, %v2692_v37 }
  0x86   :  { %2643 = vmatmul.msk.bf16.gmra.mxu2 %vm321_vm0, %v2742_v39 }
  0x87   :  { %v865_v41 = vpop.f32.mrf.mxu1 }
  0x88   :  { %v866_v42 = vadd.f32 %v865_v41, %v427_v38  ;;  %v3215_v43 = vpop.f32.mrf.mxu3 }
  0x89   :  { %v1362_v45 = vpop.f32.mrf.mxu2 }
  0x8a   :  { %v1522_v46 = vadd.f32 %v1362_v45, %v866_v42  ;;  %2479 = vmatmul.msk.bf16.gmra.mxu1 %vm759_vm1, %v2675_v40  ;;  %v429_v47 = vpop.f32.mrf.mxu0 }
  0x8c   :  { %v1590_v48 = vadd.f32 %v3220_v44, %v1522_v46 }
  0x8e   :  { %v1654_v49 = vsub.f32 0.0, %v1590_v48 }
  0x8f   :  { %v867_v50 = vpop.f32.mrf.mxu1 }
  0x90   :  { %v1718_v51 = vmul.f32 1.442695, %v1654_v49  ;;  %v868_v52 = vadd.f32 %v867_v50, %v429_v47  ;;  %v3224_v53 = vpop.f32.mrf.mxu3 }
  0x91   :  { %v1364_v54 = vpop.f32.mrf.mxu2 }
  0x92   :  { %2772 = vpow2.f32 %v1718_v51  ;;  %v1523_v57 = vadd.f32 %v1364_v54, %v868_v52  ;;  %v432_v58 = vpop.f32.mrf.mxu0  ;;  %v2712_v52 = vld [vmem:[%s3994_s1 + $0x58] sm:$0xff]  ;;  %v2695_v54 = vld [vmem:[%s3996_s0 + $0xe0] sm:$0xff] }
  0x94   :  { %v1591_v60 = vadd.f32 %v3220_v44, %v1523_v57 }
  0x95   :  { %2312 = vmatmul.msk.bf16.gmra.mxu0 %vm321_vm0, %v2710_v55  ;;  %2497 = vmatmul.msk.bf16.gmra.mxu3 %vm759_vm1, %v2693_v56 }
  0x96   :  { %v1655_v61 = vsub.f32 0.0, %v1591_v60  ;;  %2644 = vmatmul.msk.bf16.gmra.mxu2 %vm321_vm0, %v2743_v59 }
  0x97   :  { %v870_v63 = vpop.f32.mrf.mxu1 }
  0x98   :  { %v2773_v0 = vpop.eup %2772  ;;  %v1720_v1 = vmul.f32 1.442695, %v1655_v61  ;;  %v871_v2 = vadd.f32 %v870_v63, %v432_v58  ;;  %v3242_v3 = vpop.f32.mrf.mxu3  ;;  %v2745_v58 = vld [vmem:[%s3995_s2 + $0x58] sm:$0xff] }
  0x99   :  { %v1846_v4 = vadd.f32 1.0, %v2773_v0  ;;  %v1367_v5 = vpop.f32.mrf.mxu2 }
  0x9a   :  { %2774 = vpow2.f32 %v1720_v1  ;;  %v1524_v6 = vadd.f32 %v1367_v5, %v871_v2  ;;  %2480 = vmatmul.msk.bf16.gmra.mxu1 %vm759_vm1, %v2676_v62  ;;  %v434_v7 = vpop.f32.mrf.mxu0  ;;  %v2678_v62 = vld [vmem:[%s3996_s0 + $0x58] sm:$0xff] }
  0x9b   :  { %2776 = vrcp.f32 %v1846_v4 }
  0x9c   :  { %v1592_v8 = vadd.f32 %v3220_v44, %v1524_v6 }
  0x9e   :  { %v1656_v9 = vsub.f32 0.0, %v1592_v8 }
  0x9f   :  { %v872_v10 = vpop.f32.mrf.mxu1 }
  0xa0   :  { %v2775_v11 = vpop.eup %2774  ;;  %v1722_v12 = vmul.f32 1.442695, %v1656_v9  ;;  %v873_v13 = vadd.f32 %v872_v10, %v434_v7  ;;  %v3246_v14 = vpop.f32.mrf.mxu3 }
  0xa1   :  { %v2777_v15 = vpop.eup %2776  ;;  %v1847_v16 = vadd.f32 1.0, %v2775_v11  ;;  %v1369_v17 = vpop.f32.mrf.mxu2 }
  0xa2   :  { %v1974_v20 = vmul.f32 %v2777_v15, %v1590_v48  ;;  %2778 = vpow2.f32 %v1722_v12  ;;  %v1525_v21 = vadd.f32 %v1369_v17, %v873_v13  ;;  %v437_v22 = vpop.f32.mrf.mxu0 }
  0xa3   :  { %2780 = vrcp.f32 %v1847_v16 }
  0xa4   :  { %v2038_v24 = vpack.c.bf16 %v1974_v20, %v1974_v20  ;;  %v1593_v25 = vadd.f32 %v3220_v44, %v1525_v21 }
  0xa5   :  { %2313 = vmatmul.msk.bf16.gmra.mxu0 %vm321_vm0, %v2711_v18  ;;  %2498 = vmatmul.msk.bf16.gmra.mxu3 %vm759_vm1, %v2694_v19 }
  0xa6   :  { %2103 = vst.msk [vmem:[%s3998_s5] sm:$0xf] %vm2102_vm2, %v2038_v24  ;;  %v1657_v26 = vsub.f32 0.0, %v1593_v25  ;;  %2645 = vmatmul.msk.bf16.gmra.mxu2 %vm321_vm0, %v2744_v23  ;;  %v2713_v23 = vld [vmem:[%s3994_s1 + $0x60] sm:$0xff]  ;;  %v2696_v24 = vld [vmem:[%s3996_s0 + $0xe8] sm:$0xff] }
  0xa7   :  { %v875_v28 = vpop.f32.mrf.mxu1 }
  0xa8   :  { %v2779_v29 = vpop.eup %2778  ;;  %v1724_v30 = vmul.f32 1.442695, %v1657_v26  ;;  %v876_v31 = vadd.f32 %v875_v28, %v437_v22  ;;  %v3268_v32 = vpop.f32.mrf.mxu3  ;;  %v2746_v28 = vld [vmem:[%s3995_s2 + $0x60] sm:$0xff] }
  0xa9   :  { %v2781_v33 = vpop.eup %2780  ;;  %v1848_v34 = vadd.f32 1.0, %v2779_v29  ;;  %v1372_v35 = vpop.f32.mrf.mxu2 }
  0xaa   :  { %v1975_v36 = vmul.f32 %v2781_v33, %v1591_v60  ;;  %2782 = vpow2.f32 %v1724_v30  ;;  %v1526_v37 = vadd.f32 %v1372_v35, %v876_v31  ;;  %2481 = vmatmul.msk.bf16.gmra.mxu1 %vm759_vm1, %v2677_v27  ;;  %v439_v38 = vpop.f32.mrf.mxu0  ;;  %v2679_v33 = vld [vmem:[%s3996_s0 + $0x60] sm:$0xff] }
  0xab   :  { %2784 = vrcp.f32 %v1848_v34 }
  0xac   :  { %v2039_v39 = vpack.c.bf16 %v1975_v36, %v1975_v36  ;;  %v1594_v40 = vadd.f32 %v3220_v44, %v1526_v37 }
  0xae   :  { %2104 = vst.msk [vmem:[%s3998_s5 + $0x4] sm:$0xf] %vm2102_vm2, %v2039_v39  ;;  %v1658_v41 = vsub.f32 0.0, %v1594_v40 }
  0xaf   :  { %v877_v42 = vpop.f32.mrf.mxu1 }
  0xb0   :  { %v2783_v45 = vpop.eup %2782  ;;  %v1726_v46 = vmul.f32 1.442695, %v1658_v41  ;;  %v878_v47 = vadd.f32 %v877_v42, %v439_v38  ;;  %v3276_v48 = vpop.f32.mrf.mxu3 }
  0xb1   :  { %v2785_v49 = vpop.eup %2784  ;;  %v1849_v50 = vadd.f32 1.0, %v2783_v45  ;;  %v1374_v51 = vpop.f32.mrf.mxu2 }
  0xb2   :  { %v1976_v55 = vmul.f32 %v2785_v49, %v1592_v8  ;;  %2786 = vpow2.f32 %v1726_v46  ;;  %v1527_v56 = vadd.f32 %v1374_v51, %v878_v47  ;;  %v442_v57 = vpop.f32.mrf.mxu0 }
  0xb3   :  { %2788 = vrcp.f32 %v1849_v50 }
  0xb4   :  { %v2040_v59 = vpack.c.bf16 %v1976_v55, %v1976_v55  ;;  %v1595_v60 = vadd.f32 %v3220_v44, %v1527_v56 }
  0xb5   :  { %2314 = vmatmul.msk.bf16.gmra.mxu0 %vm321_vm0, %v2712_v52  ;;  %2499 = vmatmul.msk.bf16.gmra.mxu3 %vm759_vm1, %v2695_v54 }
  0xb6   :  { %2105 = vst.msk [vmem:[%s3998_s5 + $0x8] sm:$0xf] %vm2102_vm2, %v2040_v59  ;;  %v1659_v61 = vsub.f32 0.0, %v1595_v60  ;;  %2646 = vmatmul.msk.bf16.gmra.mxu2 %vm321_vm0, %v2745_v58 }
  0xb7   :  { %v880_v63 = vpop.f32.mrf.mxu1 }
  0xb8   :  { %v2787_v0 = vpop.eup %2786  ;;  %v1728_v1 = vmul.f32 1.442695, %v1659_v61  ;;  %v881_v2 = vadd.f32 %v880_v63, %v442_v57  ;;  %v3298_v4 = vpop.f32.mrf.mxu3  ;;  %v2697_v61 = vld [vmem:[%s3996_s0 + $0xf0] sm:$0xff] }
  0xb9   :  { %v2789_v5 = vpop.eup %2788  ;;  %v1850_v6 = vadd.f32 1.0, %v2787_v0  ;;  %v1377_v7 = vpop.f32.mrf.mxu2 }
  0xba   :  { %v1977_v8 = vmul.f32 %v2789_v5, %v1593_v25  ;;  %2790 = vpow2.f32 %v1728_v1  ;;  %v1528_v9 = vadd.f32 %v1377_v7, %v881_v2  ;;  %2482 = vmatmul.msk.bf16.gmra.mxu1 %vm759_vm1, %v2678_v62  ;;  %v444_v10 = vpop.f32.mrf.mxu0  ;;  %v2747_v1 = vld [vmem:[%s3995_s2 + $0x68] sm:$0xff] }
  0xbb   :  { %2792 = vrcp.f32 %v1850_v6  ;;  %v2680_v7 = vld [vmem:[%s3996_s0 + $0x68] sm:$0xff] }
  0xbc   :  { %v2041_v11 = vpack.c.bf16 %v1977_v8, %v1977_v8  ;;  %v1596_v12 = vadd.f32 %v3220_v44, %v1528_v9 }
  0xbe   :  { %2106 = vst.msk [vmem:[%s3998_s5 + $0xc] sm:$0xf] %vm2102_vm2, %v2041_v11  ;;  %v1660_v13 = vsub.f32 0.0, %v1596_v12 }
  0xbf   :  { %v882_v15 = vpop.f32.mrf.mxu1 }
  0xc0   :  { %v2791_v16 = vpop.eup %2790  ;;  %v1730_v17 = vmul.f32 1.442695, %v1660_v13  ;;  %v883_v18 = vadd.f32 %v882_v15, %v444_v10  ;;  %v3306_v19 = vpop.f32.mrf.mxu3 }
  0xc1   :  { %v2793_v20 = vpop.eup %2792  ;;  %v1851_v21 = vadd.f32 1.0, %v2791_v16  ;;  %v1379_v22 = vpop.f32.mrf.mxu2 }
  0xc2   :  { %v1978_v25 = vmul.f32 %v2793_v20, %v1594_v40  ;;  %2794 = vpow2.f32 %v1730_v17  ;;  %v1529_v26 = vadd.f32 %v1379_v22, %v883_v18  ;;  %v447_v27 = vpop.f32.mrf.mxu0 }
  0xc3   :  { %2796 = vrcp.f32 %v1851_v21 }
  0xc4   :  { %v2042_v29 = vpack.c.bf16 %v1978_v25, %v1978_v25  ;;  %v1597_v30 = vadd.f32 %v3220_v44, %v1529_v26 }
  0xc5   :  { %2315 = vmatmul.msk.bf16.gmra.mxu0 %vm321_vm0, %v2713_v23  ;;  %2500 = vmatmul.msk.bf16.gmra.mxu3 %vm759_vm1, %v2696_v24 }
  0xc6   :  { %2107 = vst.msk [vmem:[%s3998_s5 + $0x10] sm:$0xf] %vm2102_vm2, %v2042_v29  ;;  %v1661_v31 = vsub.f32 0.0, %v1597_v30  ;;  %2647 = vmatmul.msk.bf16.gmra.mxu2 %vm321_vm0, %v2746_v28 }
  0xc7   :  { %v885_v34 = vpop.f32.mrf.mxu1 }
  0xc8   :  { %v2795_v35 = vpop.eup %2794  ;;  %v1732_v36 = vmul.f32 1.442695, %v1661_v31  ;;  %v886_v37 = vadd.f32 %v885_v34, %v447_v27  ;;  %v3328_v38 = vpop.f32.mrf.mxu3  ;;  %v2698_v34 = vld [vmem:[%s3996_s0 + $0xf8] sm:$0xff] }
  0xc9   :  { %v2797_v39 = vpop.eup %2796  ;;  %v1852_v40 = vadd.f32 1.0, %v2795_v35  ;;  %v1382_v41 = vpop.f32.mrf.mxu2 }
  0xca   :  { %v1979_v42 = vmul.f32 %v2797_v39, %v1595_v60  ;;  %2798 = vpow2.f32 %v1732_v36  ;;  %v1530_v45 = vadd.f32 %v1382_v41, %v886_v37  ;;  %2483 = vmatmul.msk.bf16.gmra.mxu1 %vm759_vm1, %v2679_v33  ;;  %v449_v46 = vpop.f32.mrf.mxu0  ;;  %v2714_v60 = vld [vmem:[%s3994_s1 + $0x68] sm:$0xff]  ;;  %v2715_v33 = vld [vmem:[%s3994_s1 + $0x70] sm:$0xff] }
  0xcb   :  { %2800 = vrcp.f32 %v1852_v40  ;;  %v2748_v39 = vld [vmem:[%s3995_s2 + $0x70] sm:$0xff] }
  0xcc   :  { %v2043_v47 = vpack.c.bf16 %v1979_v42, %v1979_v42  ;;  %v1598_v49 = vadd.f32 %v3220_v44, %v1530_v45  ;;  %v2681_v45 = vld [vmem:[%s3996_s0 + $0x70] sm:$0xff] }
  0xce   :  { %2108 = vst.msk [vmem:[%s3998_s5 + $0x14] sm:$0xf] %vm2102_vm2, %v2043_v47  ;;  %v1662_v50 = vsub.f32 0.0, %v1598_v49 }
  0xcf   :  { %v887_v51 = vpop.f32.mrf.mxu1 }
  0xd0   :  { %v2799_v52 = vpop.eup %2798  ;;  %v1734_v54 = vmul.f32 1.442695, %v1662_v50  ;;  %v888_v55 = vadd.f32 %v887_v51, %v449_v46  ;;  %v3336_v56 = vpop.f32.mrf.mxu3 }
  0xd1   :  { %v2801_v57 = vpop.eup %2800  ;;  %v1853_v58 = vadd.f32 1.0, %v2799_v52  ;;  %v1384_v59 = vpop.f32.mrf.mxu2 }
  0xd2   :  { %v1980_v62 = vmul.f32 %v2801_v57, %v1596_v12  ;;  %2802 = vpow2.f32 %v1734_v54  ;;  %v1531_v63 = vadd.f32 %v1384_v59, %v888_v55  ;;  %v452_v0 = vpop.f32.mrf.mxu0 }
  0xd3   :  { %2804 = vrcp.f32 %v1853_v58 }
  0xd4   :  { %v2044_v2 = vpack.c.bf16 %v1980_v62, %v1980_v62  ;;  %v1599_v5 = vadd.f32 %v3220_v44, %v1531_v63 }
  0xd5   :  { %2316 = vmatmul.msk.bf16.gmra.mxu0 %vm321_vm0, %v2714_v60  ;;  %2501 = vmatmul.msk.bf16.gmra.mxu3 %vm759_vm1, %v2697_v61 }
  0xd6   :  { %2109 = vst.msk [vmem:[%s3998_s5 + $0x18] sm:$0xf] %vm2102_vm2, %v2044_v2  ;;  %v1663_v6 = vsub.f32 0.0, %v1599_v5  ;;  %2648 = vmatmul.msk.bf16.gmra.mxu2 %vm321_vm0, %v2747_v1 }
  0xd7   :  { %v890_v8 = vpop.f32.mrf.mxu1 }
  0xd8   :  { %v2803_v9 = vpop.eup %2802  ;;  %v1736_v10 = vmul.f32 1.442695, %v1663_v6  ;;  %v891_v11 = vadd.f32 %v890_v8, %v452_v0  ;;  %v3358_v12 = vpop.f32.mrf.mxu3 }
  0xd9   :  { %v2805_v13 = vpop.eup %2804  ;;  %v1854_v15 = vadd.f32 1.0, %v2803_v9  ;;  %v1387_v16 = vpop.f32.mrf.mxu2  ;;  %v2716_v9 = vld [vmem:[%s3994_s1 + $0x78] sm:$0xff] }
  0xda   :  { %v1981_v17 = vmul.f32 %v2805_v13, %v1597_v30  ;;  %2806 = vpow2.f32 %v1736_v10  ;;  %v1532_v18 = vadd.f32 %v1387_v16, %v891_v11  ;;  %2484 = vmatmul.msk.bf16.gmra.mxu1 %vm759_vm1, %v2680_v7  ;;  %v454_v20 = vpop.f32.mrf.mxu0  ;;  %v2759_v10 = vld [vmem:[%s3995_s2 + $0xc8] sm:$0xff]  ;;  %v2749_v16 = vld [vmem:[%s3995_s2 + $0x78] sm:$0xff] }
  0xdb   :  { %2808 = vrcp.f32 %v1854_v15 }
  0xdc   :  { %v2045_v21 = vpack.c.bf16 %v1981_v17, %v1981_v17  ;;  %v1600_v22 = vadd.f32 %v3220_v44, %v1532_v18 }
  0xde   :  { %2110 = vst.msk [vmem:[%s3998_s5 + $0x1c] sm:$0xf] %vm2102_vm2, %v2045_v21  ;;  %v1664_v23 = vsub.f32 0.0, %v1600_v22  ;;  %v2682_v21 = vld [vmem:[%s3996_s0 + $0x78] sm:$0xff] }
  0xdf   :  { %v892_v24 = vpop.f32.mrf.mxu1 }
  0xe0   :  { %v2807_v25 = vpop.eup %2806  ;;  %v1738_v26 = vmul.f32 1.442695, %v1664_v23  ;;  %v893_v27 = vadd.f32 %v892_v24, %v454_v20  ;;  %v3366_v28 = vpop.f32.mrf.mxu3 }
  0xe1   :  { %v2809_v29 = vpop.eup %2808  ;;  %v1855_v30 = vadd.f32 1.0, %v2807_v25  ;;  %v1389_v31 = vpop.f32.mrf.mxu2 }
  0xe2   :  { %v1982_v35 = vmul.f32 %v2809_v29, %v1598_v49  ;;  %2810 = vpow2.f32 %v1738_v26  ;;  %v1533_v36 = vadd.f32 %v1389_v31, %v893_v27  ;;  %v457_v37 = vpop.f32.mrf.mxu0 }
  0xe3   :  { %2812 = vrcp.f32 %v1855_v30 }
  0xe4   :  { %v2046_v40 = vpack.c.bf16 %v1982_v35, %v1982_v35  ;;  %v1601_v41 = vadd.f32 %v3220_v44, %v1533_v36 }
  0xe5   :  { %2317 = vmatmul.msk.bf16.gmra.mxu0 %vm321_vm0, %v2715_v33  ;;  %2502 = vmatmul.msk.bf16.gmra.mxu3 %vm759_vm1, %v2698_v34 }
  0xe6   :  { %2111 = vst.msk [vmem:[%s3998_s5 + $0x20] sm:$0xf] %vm2102_vm2, %v2046_v40  ;;  %v1665_v42 = vsub.f32 0.0, %v1601_v41  ;;  %2649 = vmatmul.msk.bf16.gmra.mxu2 %vm321_vm0, %v2748_v39 }
  0xe7   :  { %v895_v46 = vpop.f32.mrf.mxu1 }
  0xe8   :  { %v2811_v47 = vpop.eup %2810  ;;  %v1740_v49 = vmul.f32 1.442695, %v1665_v42  ;;  %v896_v50 = vadd.f32 %v895_v46, %v457_v37  ;;  %v3388_v51 = vpop.f32.mrf.mxu3 }
  0xe9   :  { %v2813_v52 = vpop.eup %2812  ;;  %v1856_v54 = vadd.f32 1.0, %v2811_v47  ;;  %v1392_v55 = vpop.f32.mrf.mxu2 }
  0xea   :  { %v1983_v57 = vmul.f32 %v2813_v52, %v1599_v5  ;;  %2814 = vpow2.f32 %v1740_v49  ;;  %v1534_v58 = vadd.f32 %v1392_v55, %v896_v50  ;;  %2485 = vmatmul.msk.bf16.gmra.mxu1 %vm759_vm1, %v2681_v45  ;;  %v459_v59 = vpop.f32.mrf.mxu0  ;;  %v2717_v50 = vld [vmem:[%s3994_s1 + $0x80] sm:$0xff]  ;;  %v2760_v52 = vld [vmem:[%s3995_s2 + $0xd0] sm:$0xff] }
  0xeb   :  { %2816 = vrcp.f32 %v1856_v54 }
  0xec   :  { %v2047_v60 = vpack.c.bf16 %v1983_v57, %v1983_v57  ;;  %v1602_v61 = vadd.f32 %v3220_v44, %v1534_v58  ;;  %v2750_v58 = vld [vmem:[%s3995_s2 + $0x80] sm:$0xff] }
  0xee   :  { %2112 = vst.msk [vmem:[%s3998_s5 + $0x24] sm:$0xf] %vm2102_vm2, %v2047_v60  ;;  %v1666_v62 = vsub.f32 0.0, %v1602_v61 }
  0xef   :  { %v897_v63 = vpop.f32.mrf.mxu1 }
  0xf0   :  { %v2815_v0 = vpop.eup %2814  ;;  %v1742_v1 = vmul.f32 1.442695, %v1666_v62  ;;  %v898_v2 = vadd.f32 %v897_v63, %v459_v59  ;;  %v3396_v5 = vpop.f32.mrf.mxu3  ;;  %v2683_v62 = vld [vmem:[%s3996_s0 + $0x80] sm:$0xff] }
  0xf1   :  { %v2817_v6 = vpop.eup %2816  ;;  %v1857_v7 = vadd.f32 1.0, %v2815_v0  ;;  %v1394_v8 = vpop.f32.mrf.mxu2 }
  0xf2   :  { %v1984_v11 = vmul.f32 %v2817_v6, %v1600_v22  ;;  %2818 = vpow2.f32 %v1742_v1  ;;  %v1535_v13 = vadd.f32 %v1394_v8, %v898_v2  ;;  %v462_v15 = vpop.f32.mrf.mxu0 }
  0xf3   :  { %2820 = vrcp.f32 %v1857_v7 }
  0xf4   :  { %v2048_v17 = vpack.c.bf16 %v1984_v11, %v1984_v11  ;;  %v1603_v18 = vadd.f32 %v3220_v44, %v1535_v13 }
  0xf5   :  { %2318 = vmatmul.msk.bf16.gmra.mxu0 %vm321_vm0, %v2716_v9  ;;  %2660 = vmatmul.msk.bf16.vlgmr.msra.gmra.mxu3 %vm321_vm0, %v2759_v10 }
  0xf6   :  { %2113 = vst.msk [vmem:[%s3998_s5 + $0x28] sm:$0xf] %vm2102_vm2, %v2048_v17  ;;  %v1667_v20 = vsub.f32 0.0, %v1603_v18  ;;  %2650 = vmatmul.msk.bf16.gmra.mxu2 %vm321_vm0, %v2749_v16 }
  0xf7   :  { %v900_v22 = vpop.f32.mrf.mxu1 }
  0xf8   :  { %v2819_v23 = vpop.eup %2818  ;;  %v1744_v24 = vmul.f32 1.442695, %v1667_v20  ;;  %v901_v25 = vadd.f32 %v900_v22, %v462_v15  ;;  %v3418_v26 = vpop.f32.mrf.mxu3 }
  0xf9   :  { %v2821_v27 = vpop.eup %2820  ;;  %v1858_v29 = vadd.f32 1.0, %v2819_v23  ;;  %v1397_v30 = vpop.f32.mrf.mxu2 }
  0xfa   :  { %v1985_v31 = vmul.f32 %v2821_v27, %v1601_v41  ;;  %2822 = vpow2.f32 %v1744_v24  ;;  %v1536_v33 = vadd.f32 %v1397_v30, %v901_v25  ;;  %2486 = vmatmul.msk.bf16.gmra.mxu1 %vm759_vm1, %v2682_v21  ;;  %v464_v34 = vpop.f32.mrf.mxu0  ;;  %v2761_v30 = vld [vmem:[%s3995_s2 + $0xd8] sm:$0xff] }
  0xfb   :  { %2824 = vrcp.f32 %v1858_v29  ;;  %v2718_v29 = vld [vmem:[%s3994_s1 + $0x88] sm:$0xff] }
  0xfc   :  { %v2049_v35 = vpack.c.bf16 %v1985_v31, %v1985_v31  ;;  %v1604_v36 = vadd.f32 %v3220_v44, %v1536_v33 }
  0xfe   :  { %2114 = vst.msk [vmem:[%s3998_s5 + $0x2c] sm:$0xf] %vm2102_vm2, %v2049_v35  ;;  %v1668_v37 = vsub.f32 0.0, %v1604_v36  ;;  %v2751_v35 = vld [vmem:[%s3995_s2 + $0x88] sm:$0xff] }
  0xff   :  { %v902_v39 = vpop.f32.mrf.mxu1 }
 0x100   :  { %v2823_v40 = vpop.eup %2822  ;;  %v1746_v42 = vmul.f32 1.442695, %v1668_v37  ;;  %v903_v45 = vadd.f32 %v902_v39, %v464_v34  ;;  %v3426_v41 = vpop.f32.mrf.mxu3 }
 0x101   :  { %v2825_v46 = vpop.eup %2824  ;;  %v1859_v47 = vadd.f32 1.0, %v2823_v40  ;;  %v1399_v49 = vpop.f32.mrf.mxu2  ;;  %v2684_v40 = vld [vmem:[%s3996_s0 + $0x88] sm:$0xff] }
 0x102   :  { %v1986_v54 = vmul.f32 %v2825_v46, %v1602_v61  ;;  %2826 = vpow2.f32 %v1746_v42  ;;  %v1537_v55 = vadd.f32 %v1399_v49, %v903_v45  ;;  %v467_v57 = vpop.f32.mrf.mxu0 }
 0x103   :  { %2828 = vrcp.f32 %v1859_v47 }
 0x104   :  { %v2050_v59 = vpack.c.bf16 %v1986_v54, %v1986_v54  ;;  %v1605_v60 = vadd.f32 %v3220_v44, %v1537_v55 }
 0x105   :  { %2319 = vmatmul.msk.bf16.gmra.mxu0 %vm321_vm0, %v2717_v50  ;;  %2661 = vmatmul.msk.bf16.gmra.mxu3 %vm321_vm0, %v2760_v52 }
 0x106   :  { %2115 = vst.msk [vmem:[%s3998_s5 + $0x30] sm:$0xf] %vm2102_vm2, %v2050_v59  ;;  %v1669_v61 = vsub.f32 0.0, %v1605_v60  ;;  %2651 = vmatmul.msk.bf16.gmra.mxu2 %vm321_vm0, %v2750_v58 }
 0x107   :  { %v905_v63 = vpop.f32.mrf.mxu1 }
 0x108   :  { %v2827_v0 = vpop.eup %2826  ;;  %v1748_v1 = vmul.f32 1.442695, %v1669_v61  ;;  %v906_v2 = vadd.f32 %v905_v63, %v467_v57  ;;  %v3448_v6 = vpop.f32.mrf.mxu3 }
 0x109   :  { %v2829_v7 = vpop.eup %2828  ;;  %v1860_v8 = vadd.f32 1.0, %v2827_v0  ;;  %v1402_v9 = vpop.f32.mrf.mxu2 }
 0x10a   :  { %v1987_v10 = vmul.f32 %v2829_v7, %v1603_v18  ;;  %2830 = vpow2.f32 %v1748_v1  ;;  %v1538_v11 = vadd.f32 %v1402_v9, %v906_v2  ;;  %2487 = vmatmul.msk.bf16.gmra.mxu1 %vm759_vm1, %v2683_v62  ;;  %v469_v13 = vpop.f32.mrf.mxu0 }
 0x10b   :  { %2832 = vrcp.f32 %v1860_v8 }
 0x10c   :  { %v2051_v15 = vpack.c.bf16 %v1987_v10, %v1987_v10  ;;  %v1606_v16 = vadd.f32 %v3220_v44, %v1538_v11  ;;  %v2719_v10 = vld [vmem:[%s3994_s1 + $0x90] sm:$0xff]  ;;  %v2762_v11 = vld [vmem:[%s3995_s2 + $0xe0] sm:$0xff] }
 0x10e   :  { %2116 = vst.msk [vmem:[%s3998_s5 + $0x34] sm:$0xf] %vm2102_vm2, %v2051_v15  ;;  %v1670_v17 = vsub.f32 0.0, %v1606_v16 }
 0x10f   :  { %v907_v20 = vpop.f32.mrf.mxu1 }
 0x110   :  { %v2831_v21 = vpop.eup %2830  ;;  %v1750_v22 = vmul.f32 1.442695, %v1670_v17  ;;  %v908_v23 = vadd.f32 %v907_v20, %v469_v13  ;;  %v3456_v18 = vpop.f32.mrf.mxu3  ;;  %v2752_v20 = vld [vmem:[%s3995_s2 + $0x90] sm:$0xff] }
 0x111   :  { %v2833_v24 = vpop.eup %2832  ;;  %v1861_v25 = vadd.f32 1.0, %v2831_v21  ;;  %v1404_v27 = vpop.f32.mrf.mxu2 }
 0x112   :  { %v1988_v31 = vmul.f32 %v2833_v24, %v1604_v36  ;;  %2834 = vpow2.f32 %v1750_v22  ;;  %v1539_v33 = vadd.f32 %v1404_v27, %v908_v23  ;;  %v472_v34 = vpop.f32.mrf.mxu0  ;;  %v2685_v23 = vld [vmem:[%s3996_s0 + $0x90] sm:$0xff] }
 0x113   :  { %2836 = vrcp.f32 %v1861_v25 }
 0x114   :  { %v2052_v37 = vpack.c.bf16 %v1988_v31, %v1988_v31  ;;  %v1607_v39 = vadd.f32 %v3220_v44, %v1539_v33 }
 0x115   :  { %2320 = vmatmul.msk.bf16.gmra.mxu0 %vm321_vm0, %v2718_v29  ;;  %2662 = vmatmul.msk.bf16.gmra.mxu3 %vm321_vm0, %v2761_v30 }
 0x116   :  { %2117 = vst.msk [vmem:[%s3998_s5 + $0x38] sm:$0xf] %vm2102_vm2, %v2052_v37  ;;  %v1671_v36 = vsub.f32 0.0, %v1607_v39  ;;  %2652 = vmatmul.msk.bf16.gmra.mxu2 %vm321_vm0, %v2751_v35 }
 0x117   :  { %v910_v42 = vpop.f32.mrf.mxu1 }
 0x118   :  { %v2835_v45 = vpop.eup %2834  ;;  %v1752_v46 = vmul.f32 1.442695, %v1671_v36  ;;  %v911_v47 = vadd.f32 %v910_v42, %v472_v34  ;;  %v3478_v49 = vpop.f32.mrf.mxu3 }
 0x119   :  { %v2837_v50 = vpop.eup %2836  ;;  %v1862_v52 = vadd.f32 1.0, %v2835_v45  ;;  %v1407_v54 = vpop.f32.mrf.mxu2 }
 0x11a   :  { %v1989_v55 = vmul.f32 %v2837_v50, %v1605_v60  ;;  %2838 = vpow2.f32 %v1752_v46  ;;  %v1540_v57 = vadd.f32 %v1407_v54, %v911_v47  ;;  %2488 = vmatmul.msk.bf16.gmra.mxu1 %vm759_vm1, %v2684_v40  ;;  %v474_v58 = vpop.f32.mrf.mxu0 }
 0x11b   :  { %2840 = vrcp.f32 %v1862_v52 }
 0x11c   :  { %v2053_v59 = vpack.c.bf16 %v1989_v55, %v1989_v55  ;;  %v1608_v61 = vadd.f32 %v3220_v44, %v1540_v57 }
 0x11e   :  { %2118 = vst.msk [vmem:[%s3998_s5 + $0x3c] sm:$0xf] %vm2102_vm2, %v2053_v59  ;;  %v1672_v62 = vsub.f32 0.0, %v1608_v61  ;;  %v2763_v59 = vld [vmem:[%s3995_s2 + $0xe8] sm:$0xff] }
 0x11f   :  { %v912_v63 = vpop.f32.mrf.mxu1 }
 0x120   :  { %v2839_v0 = vpop.eup %2838  ;;  %v1754_v1 = vmul.f32 1.442695, %v1672_v62  ;;  %v913_v2 = vadd.f32 %v912_v63, %v474_v58  ;;  %v3486_v60 = vpop.f32.mrf.mxu3  ;;  %v2720_v58 = vld [vmem:[%s3994_s1 + $0x98] sm:$0xff] }
 0x121   :  { %v2841_v7 = vpop.eup %2840  ;;  %v1863_v8 = vadd.f32 1.0, %v2839_v0  ;;  %v1409_v9 = vpop.f32.mrf.mxu2 }
 0x122   :  { %v1990_v13 = vmul.f32 %v2841_v7, %v1606_v16  ;;  %2842 = vpow2.f32 %v1754_v1  ;;  %v1541_v15 = vadd.f32 %v1409_v9, %v913_v2  ;;  %v477_v17 = vpop.f32.mrf.mxu0  ;;  %v2753_v1 = vld [vmem:[%s3995_s2 + $0x98] sm:$0xff] }
 0x123   :  { %2844 = vrcp.f32 %v1863_v8  ;;  %v2686_v8 = vld [vmem:[%s3996_s0 + $0x98] sm:$0xff] }
 0x124   :  { %v2054_v21 = vpack.c.bf16 %v1990_v13, %v1990_v13  ;;  %v1609_v22 = vadd.f32 %v3220_v44, %v1541_v15 }
 0x125   :  { %2321 = vmatmul.msk.bf16.gmra.mxu0 %vm321_vm0, %v2719_v10  ;;  %2663 = vmatmul.msk.bf16.gmra.mxu3 %vm321_vm0, %v2762_v11 }
 0x126   :  { %2119 = vst.msk [vmem:[%s3998_s5 + $0x40] sm:$0xf] %vm2102_vm2, %v2054_v21  ;;  %v1673_v16 = vsub.f32 0.0, %v1609_v22  ;;  %2653 = vmatmul.msk.bf16.gmra.mxu2 %vm321_vm0, %v2752_v20 }
 0x127   :  { %v915_v24 = vpop.f32.mrf.mxu1 }
 0x128   :  { %v2843_v25 = vpop.eup %2842  ;;  %v1756_v27 = vmul.f32 1.442695, %v1673_v16  ;;  %v916_v29 = vadd.f32 %v915_v24, %v477_v17  ;;  %v3508_v30 = vpop.f32.mrf.mxu3 }
 0x129   :  { %v2845_v31 = vpop.eup %2844  ;;  %v1864_v33 = vadd.f32 1.0, %v2843_v25  ;;  %v1412_v34 = vpop.f32.mrf.mxu2 }
 0x12a   :  { %v1991_v35 = vmul.f32 %v2845_v31, %v1607_v39  ;;  %2846 = vpow2.f32 %v1756_v27  ;;  %v1542_v37 = vadd.f32 %v1412_v34, %v916_v29  ;;  %2489 = vmatmul.msk.bf16.gmra.mxu1 %vm759_vm1, %v2685_v23  ;;  %v479_v36 = vpop.f32.mrf.mxu0 }
 0x12b   :  { %2848 = vrcp.f32 %v1864_v33 }
 0x12c   :  { %v2055_v40 = vpack.c.bf16 %v1991_v35, %v1991_v35  ;;  %v1610_v42 = vadd.f32 %v3220_v44, %v1542_v37 }
 0x12e   :  { %2120 = vst.msk [vmem:[%s3998_s5 + $0x44] sm:$0xf] %vm2102_vm2, %v2055_v40  ;;  %v1674_v45 = vsub.f32 0.0, %v1610_v42 }
 0x12f   :  { %v917_v46 = vpop.f32.mrf.mxu1 }
 0x130   :  { %v2847_v47 = vpop.eup %2846  ;;  %v1758_v50 = vmul.f32 1.442695, %v1674_v45  ;;  %v918_v52 = vadd.f32 %v917_v46, %v479_v36  ;;  %v3516_v39 = vpop.f32.mrf.mxu3  ;;  %v2721_v45 = vld [vmem:[%s3994_s1 + $0xa0] sm:$0xff]  ;;  %v2764_v46 = vld [vmem:[%s3995_s2 + $0xf0] sm:$0xff] }
 0x131   :  { %v2849_v54 = vpop.eup %2848  ;;  %v1865_v55 = vadd.f32 1.0, %v2847_v47  ;;  %v1414_v57 = vpop.f32.mrf.mxu2 }
 0x132   :  { %v1992_v62 = vmul.f32 %v2849_v54, %v1608_v61  ;;  %2850 = vpow2.f32 %v1758_v50  ;;  %v1543_v63 = vadd.f32 %v1414_v57, %v918_v52  ;;  %v482_v0 = vpop.f32.mrf.mxu0  ;;  %v2754_v54 = vld [vmem:[%s3995_s2 + $0xa0] sm:$0xff] }
 0x133   :  { %2852 = vrcp.f32 %v1865_v55 }
 0x134   :  { %v2056_v2 = vpack.c.bf16 %v1992_v62, %v1992_v62  ;;  %v1611_v7 = vadd.f32 %v3220_v44, %v1543_v63 }
 0x135   :  { %2322 = vmatmul.msk.bf16.gmra.mxu0 %vm321_vm0, %v2720_v58  ;;  %2664 = vmatmul.msk.bf16.gmra.mxu3 %vm321_vm0, %v2763_v59  ;;  %v2687_v58 = vld [vmem:[%s3996_s0 + $0xa0] sm:$0xff] }
 0x136   :  { %2121 = vst.msk [vmem:[%s3998_s5 + $0x48] sm:$0xf] %vm2102_vm2, %v2056_v2  ;;  %v1675_v61 = vsub.f32 0.0, %v1611_v7  ;;  %2654 = vmatmul.msk.bf16.gmra.mxu2 %vm321_vm0, %v2753_v1 }
 0x137   :  { %v920_v9 = vpop.f32.mrf.mxu1 }
 0x138   :  { %v2851_v10 = vpop.eup %2850  ;;  %v1760_v11 = vmul.f32 1.442695, %v1675_v61  ;;  %v921_v13 = vadd.f32 %v920_v9, %v482_v0  ;;  %v3538_v15 = vpop.f32.mrf.mxu3 }
 0x139   :  { %v2853_v17 = vpop.eup %2852  ;;  %v1866_v20 = vadd.f32 1.0, %v2851_v10  ;;  %v1417_v21 = vpop.f32.mrf.mxu2 }
 0x13a   :  { %v1993_v16 = vmul.f32 %v2853_v17, %v1609_v22  ;;  %2854 = vpow2.f32 %v1760_v11  ;;  %v1544_v23 = vadd.f32 %v1417_v21, %v921_v13  ;;  %2490 = vmatmul.msk.bf16.gmra.mxu1 %vm759_vm1, %v2686_v8  ;;  %v484_v24 = vpop.f32.mrf.mxu0 }
 0x13b   :  { %2856 = vrcp.f32 %v1866_v20 }
 0x13c   :  { %v2057_v25 = vpack.c.bf16 %v1993_v16, %v1993_v16  ;;  %v1612_v27 = vadd.f32 %v3220_v44, %v1544_v23 }
 0x13e   :  { %2122 = vst.msk [vmem:[%s3998_s5 + $0x4c] sm:$0xf] %vm2102_vm2, %v2057_v25  ;;  %v1676_v29 = vsub.f32 0.0, %v1612_v27 }
 0x13f   :  { %v922_v31 = vpop.f32.mrf.mxu1 }
 0x140   :  { %v2855_v33 = vpop.eup %2854  ;;  %v1762_v34 = vmul.f32 1.442695, %v1676_v29  ;;  %v923_v35 = vadd.f32 %v922_v31, %v484_v24  ;;  %v3546_v22 = vpop.f32.mrf.mxu3 }
 0x141   :  { %v2857_v37 = vpop.eup %2856  ;;  %v1867_v36 = vadd.f32 1.0, %v2855_v33  ;;  %v1419_v40 = vpop.f32.mrf.mxu2  ;;  %v2722_v33 = vld [vmem:[%s3994_s1 + $0xa8] sm:$0xff] }
 0x142   :  { %v1994_v47 = vmul.f32 %v2857_v37, %v1610_v42  ;;  %2858 = vpow2.f32 %v1762_v34  ;;  %v1545_v50 = vadd.f32 %v1419_v40, %v923_v35  ;;  %v487_v52 = vpop.f32.mrf.mxu0 }
 0x143   :  { %2860 = vrcp.f32 %v1867_v36  ;;  %v2755_v36 = vld [vmem:[%s3995_s2 + $0xa8] sm:$0xff] }
 0x144   :  { %v2058_v55 = vpack.c.bf16 %v1994_v47, %v1994_v47  ;;  %v1613_v57 = vadd.f32 %v3220_v44, %v1545_v50  ;;  %v2688_v47 = vld [vmem:[%s3996_s0 + $0xa8] sm:$0xff] }
 0x145   :  { %2323 = vmatmul.msk.bf16.gmra.mxu0 %vm321_vm0, %v2721_v45  ;;  %2665 = vmatmul.msk.bf16.gmra.mxu3 %vm321_vm0, %v2764_v46  ;;  %v3590_v45 = vld [vmem:[%s3997_s4] ss:$0 sm:$0xff] }
 0x146   :  { %2123 = vst.msk [vmem:[%s3998_s5 + $0x50] sm:$0xf] %vm2102_vm2, %v2058_v55  ;;  %v1677_v42 = vsub.f32 0.0, %v1613_v57  ;;  %2655 = vmatmul.msk.bf16.gmra.mxu2 %vm321_vm0, %v2754_v54 }
 0x147   :  { %v925_v59 = vpop.f32.mrf.mxu1 }
 0x148   :  { %v2859_v62 = vpop.eup %2858  ;;  %v1764_v63 = vmul.f32 1.442695, %v1677_v42  ;;  %v926_v0 = vadd.f32 %v925_v59, %v487_v52  ;;  %v3568_v1 = vpop.f32.mrf.mxu3 }
 0x149   :  { %v2861_v2 = vpop.eup %2860  ;;  %v1868_v61 = vadd.f32 1.0, %v2859_v62  ;;  %v1422_v8 = vpop.f32.mrf.mxu2 }
 0x14a   :  { %v1995_v9 = vmul.f32 %v2861_v2, %v1611_v7  ;;  %2862 = vpow2.f32 %v1764_v63  ;;  %v1546_v10 = vadd.f32 %v1422_v8, %v926_v0  ;;  %2491 = vmatmul.msk.bf16.gmra.mxu1 %vm759_vm1, %v2687_v58  ;;  %v489_v11 = vpop.f32.mrf.mxu0 }
 0x14b   :  { %2864 = vrcp.f32 %v1868_v61 }
 0x14c   :  { %v2059_v13 = vpack.c.bf16 %v1995_v9, %v1995_v9  ;;  %v1614_v17 = vadd.f32 %v3220_v44, %v1546_v10  ;;  %v2765_v44 = vld [vmem:[%s3995_s2 + $0xf8] sm:$0xff] }
 0x14e   :  { %2124 = vst.msk [vmem:[%s3998_s5 + $0x54] sm:$0xf] %vm2102_vm2, %v2059_v13  ;;  %v1678_v20 = vsub.f32 0.0, %v1614_v17 }
 0x14f   :  { %v927_v21 = vpop.f32.mrf.mxu1 }
 0x150   :  { %v2863_v16 = vpop.eup %2862  ;;  %v1766_v23 = vmul.f32 1.442695, %v1678_v20  ;;  %v928_v24 = vadd.f32 %v927_v21, %v489_v11  ;;  %v3576_v7 = vpop.f32.mrf.mxu3 }
 0x151   :  { %v2865_v25 = vpop.eup %2864  ;;  %v1869_v29 = vadd.f32 1.0, %v2863_v16  ;;  %v1424_v31 = vpop.f32.mrf.mxu2 }
 0x152   :  { %v1996_v34 = vmul.f32 %v2865_v25, %v1612_v27  ;;  %2866 = vpow2.f32 %v1766_v23  ;;  %v1547_v35 = vadd.f32 %v1424_v31, %v928_v24  ;;  %v492_v37 = vpop.f32.mrf.mxu0  ;;  %v2723_v24 = vld [vmem:[%s3994_s1 + $0xb0] sm:$0xff] }
 0x153   :  { %2868 = vrcp.f32 %v1869_v29 }
 0x154   :  { %v2060_v40 = vpack.c.bf16 %v1996_v34, %v1996_v34  ;;  %v1615_v46 = vadd.f32 %v3590_v45, %v1547_v35 }
 0x155   :  { %2324 = vmatmul.msk.bf16.gmra.mxu0 %vm321_vm0, %v2722_v33  ;;  %2666 = vmatmul.msk.bf16.gmra.mxu3 %vm321_vm0, %v2765_v44  ;;  %v2756_v33 = vld [vmem:[%s3995_s2 + $0xb0] sm:$0xff] }
 0x156   :  { %2125 = vst.msk [vmem:[%s3998_s5 + $0x58] sm:$0xf] %vm2102_vm2, %v2060_v40  ;;  %v1679_v27 = vsub.f32 0.0, %v1615_v46  ;;  %2656 = vmatmul.msk.bf16.gmra.mxu2 %vm321_vm0, %v2755_v36 }
 0x157   :  { %v930_v50 = vpop.f32.mrf.mxu1 }
 0x158   :  { %v2867_v52 = vpop.eup %2866  ;;  %v1768_v54 = vmul.f32 1.442695, %v1679_v27  ;;  %v931_v55 = vadd.f32 %v930_v50, %v492_v37  ;;  %v3603_v42 = vpop.f32.mrf.mxu3 }
 0x159   :  { %v2869_v58 = vpop.eup %2868  ;;  %v1870_v59 = vadd.f32 1.0, %v2867_v52  ;;  %v1427_v62 = vpop.f32.mrf.mxu2 }
 0x15a   :  { %v1997_v63 = vmul.f32 %v2869_v58, %v1613_v57  ;;  %2870 = vpow2.f32 %v1768_v54  ;;  %v1548_v0 = vadd.f32 %v1427_v62, %v931_v55  ;;  %2492 = vmatmul.msk.bf16.gmra.mxu1 %vm759_vm1, %v2688_v47  ;;  %v494_v2 = vpop.f32.mrf.mxu0 }
 0x15b   :  { %2872 = vrcp.f32 %v1870_v59 }
 0x15c   :  { %v2061_v61 = vpack.c.bf16 %v1997_v63, %v1997_v63  ;;  %v1616_v8 = vadd.f32 %v3590_v45, %v1548_v0 }
 0x15e   :  { %2126 = vst.msk [vmem:[%s3998_s5 + $0x5c] sm:$0xf] %vm2102_vm2, %v2061_v61  ;;  %v1680_v9 = vsub.f32 0.0, %v1616_v8 }
 0x15f   :  { %v932_v10 = vpop.f32.mrf.mxu1 }
 0x160   :  { %v2871_v11 = vpop.eup %2870  ;;  %v1770_v13 = vmul.f32 1.442695, %v1680_v9  ;;  %v933_v20 = vadd.f32 %v932_v10, %v494_v2  ;;  %v3611_v57 = vpop.f32.mrf.mxu3 }
 0x161   :  { %v2873_v21 = vpop.eup %2872  ;;  %v1871_v16 = vadd.f32 1.0, %v2871_v11  ;;  %v1429_v23 = vpop.f32.mrf.mxu2 }
 0x162   :  { %v1998_v25 = vmul.f32 %v2873_v21, %v1614_v17  ;;  %2874 = vpow2.f32 %v1770_v13  ;;  %v1549_v29 = vadd.f32 %v1429_v23, %v933_v20  ;;  %v497_v31 = vpop.f32.mrf.mxu0  ;;  %v2689_v17 = vld [vmem:[%s3996_s0 + $0xb0] sm:$0xff]  ;;  %v2724_v21 = vld [vmem:[%s3994_s1 + $0xb8] sm:$0xff] }
 0x163   :  { %2876 = vrcp.f32 %v1871_v16 }
 0x164   :  { %v2062_v44 = vpack.c.bf16 %v1998_v25, %v1998_v25  ;;  %v1617_v34 = vadd.f32 %v3590_v45, %v1549_v29  ;;  %v2757_v25 = vld [vmem:[%s3995_s2 + $0xb8] sm:$0xff] }
 0x165   :  { %2325 = vmatmul.msk.bf16.gmra.mxu0 %vm321_vm0, %v2723_v24 }
 0x166   :  { %2127 = vst.msk [vmem:[%s3998_s5 + $0x60] sm:$0xf] %vm2102_vm2, %v2062_v44  ;;  %v1681_v35 = vsub.f32 0.0, %v1617_v34  ;;  %2657 = vmatmul.msk.bf16.gmra.mxu2 %vm321_vm0, %v2756_v33  ;;  %v2690_v33 = vld [vmem:[%s3996_s0 + $0xb8] sm:$0xff]  ;;  %v991_v44 = vadd.f32 %v3448_v6, %v3215_v43 }
 0x167   :  { %v935_v37 = vpop.f32.mrf.mxu1 }
 0x168   :  { %v2875_v36 = vpop.eup %2874  ;;  %v1772_v40 = vmul.f32 1.442695, %v1681_v35  ;;  %v936_v27 = vadd.f32 %v935_v37, %v497_v31  ;;  %v3629_v47 = vpop.f32.mrf.mxu3 }
 0x169   :  { %v2877_v50 = vpop.eup %2876  ;;  %v1872_v52 = vadd.f32 1.0, %v2875_v36  ;;  %v1432_v54 = vpop.f32.mrf.mxu2 }
 0x16a   :  { %v1999_v55 = vmul.f32 %v2877_v50, %v1615_v46  ;;  %2878 = vpow2.f32 %v1772_v40  ;;  %v1550_v58 = vadd.f32 %v1432_v54, %v936_v27  ;;  %2493 = vmatmul.msk.bf16.gmra.mxu1 %vm759_vm1, %v2689_v17  ;;  %v499_v59 = vpop.f32.mrf.mxu0 }
 0x16b   :  { %2880 = vrcp.f32 %v1872_v52 }
 0x16c   :  { %v2063_v62 = vpack.c.bf16 %v1999_v55, %v1999_v55  ;;  %v1618_v63 = vadd.f32 %v3590_v45, %v1550_v58 }
 0x16e   :  { %2128 = vst.msk [vmem:[%s3998_s5 + $0x64] sm:$0xf] %vm2102_vm2, %v2063_v62  ;;  %v1682_v0 = vsub.f32 0.0, %v1618_v63 }
 0x16f   :  { %v937_v2 = vpop.f32.mrf.mxu1 }
 0x170   :  { %v2879_v61 = vpop.eup %2878  ;;  %v1774_v9 = vmul.f32 1.442695, %v1682_v0  ;;  %v938_v10 = vadd.f32 %v937_v2, %v499_v59  ;;  %v3637_v46 = vpop.f32.mrf.mxu3  ;;  %v993_v2 = vadd.f32 %v3456_v18, %v3224_v53  ;;  %v2758_v53 = vld [vmem:[%s3995_s2 + $0xc0] sm:$0xff] }
 0x171   :  { %v2881_v11 = vpop.eup %2880  ;;  %v1873_v13 = vadd.f32 1.0, %v2879_v61  ;;  %v1434_v20 = vpop.f32.mrf.mxu2 }
 0x172   :  { %v2000_v16 = vmul.f32 %v2881_v11, %v1616_v8  ;;  %2882 = vpow2.f32 %v1774_v9  ;;  %v1551_v23 = vadd.f32 %v1434_v20, %v938_v10  ;;  %v502_v24 = vpop.f32.mrf.mxu0 }
 0x173   :  { %2884 = vrcp.f32 %v1873_v13 }
 0x174   :  { %v2064_v29 = vpack.c.bf16 %v2000_v16, %v2000_v16  ;;  %v3646_v31 = vadd.f32 %v3590_v45, %v1551_v23 }
 0x175   :  { %2326 = vmatmul.msk.bf16.gmra.mxu0 %vm321_vm0, %v2724_v21 }
 0x176   :  { %2129 = vst.msk [vmem:[%s3998_s5 + $0x68] sm:$0xf] %vm2102_vm2, %v2064_v29  ;;  %v1683_v8 = vsub.f32 0.0, %v3646_v31  ;;  %2658 = vmatmul.msk.bf16.gmra.mxu2 %vm321_vm0, %v2757_v25  ;;  %v2725_v25 = vld [vmem:[%s3994_s1 + $0xc0] sm:$0xff] }
 0x177   :  { %v940_v35 = vpop.f32.mrf.mxu1 }
 0x178   :  { %v2883_v17 = vpop.eup %2882  ;;  %v1776_v37 = vmul.f32 1.442695, %v1683_v8  ;;  %v941_v36 = vadd.f32 %v940_v35, %v502_v24  ;;  %v1487_v40 = vpop.f32.mrf.mxu3 }
 0x179   :  { %v2885_v27 = vpop.eup %2884  ;;  %v1874_v50 = vadd.f32 1.0, %v2883_v17  ;;  %v1437_v52 = vpop.f32.mrf.mxu2  ;;  %v1572_v54 = vadd.f32 %v1487_v40, %v991_v44 }
 0x17a   :  { %v2001_v55 = vmul.f32 %v2885_v27, %v1617_v34  ;;  %2886 = vpow2.f32 %v1776_v37  ;;  %v1552_v58 = vadd.f32 %v1437_v52, %v941_v36  ;;  %2494 = vmatmul.msk.bf16.gmra.mxu1 %vm759_vm1, %v2690_v33  ;;  %v504_v59 = vpop.f32.mrf.mxu0  ;;  %v996_v36 = vadd.f32 %v3478_v49, %v3242_v3 }
 0x17b   :  { %2888 = vrcp.f32 %v1874_v50  ;;  %v3662_v62 = vadd.f32 %v3590_v45, %v1572_v54 }
 0x17c   :  { %v2065_v43 = vpack.c.bf16 %v2001_v55, %v2001_v55  ;;  %v3665_v6 = vadd.f32 %v3590_v45, %v1552_v58 }
 0x17d   :  { %v1704_v0 = vsub.f32 0.0, %v3662_v62 }
 0x17e   :  { %2130 = vst.msk [vmem:[%s3998_s5 + $0x6c] sm:$0xf] %vm2102_vm2, %v2065_v43  ;;  %v1684_v34 = vsub.f32 0.0, %v3665_v6 }
 0x17f   :  { %v1818_v61 = vmul.f32 1.442695, %v1704_v0  ;;  %v942_v9 = vpop.f32.mrf.mxu1 }
 0x180   :  { %v2887_v10 = vpop.eup %2886  ;;  %v1778_v11 = vmul.f32 1.442695, %v1684_v34  ;;  %v943_v13 = vadd.f32 %v942_v9, %v504_v59  ;;  %v1489_v20 = vpop.f32.mrf.mxu3 }
 0x181   :  { %v2889_v21 = vpop.eup %2888  ;;  %v1875_v16 = vadd.f32 1.0, %v2887_v10  ;;  %2890 = vpow2.f32 %v1818_v61  ;;  %v1439_v23 = vpop.f32.mrf.mxu2  ;;  %v1573_v24 = vadd.f32 %v1489_v20, %v993_v2  ;;  %v998_v20 = vadd.f32 %v3486_v60, %v3246_v14 }
 0x182   :  { %v2002_v29 = vmul.f32 %v2889_v21, %v1618_v63  ;;  %2892 = vpow2.f32 %v1778_v11  ;;  %v1553_v8 = vadd.f32 %v1439_v23, %v943_v13  ;;  %v507_v33 = vpop.f32.mrf.mxu0 }
 0x183   :  { %2894 = vrcp.f32 %v1875_v16  ;;  %v3682_v18 = vadd.f32 %v3590_v45, %v1573_v24 }
 0x184   :  { %v2066_v44 = vpack.c.bf16 %v2002_v29, %v2002_v29  ;;  %v3685_v35 = vadd.f32 %v3590_v45, %v1553_v8 }
 0x185   :  { %v1705_v17 = vsub.f32 0.0, %v3682_v18  ;;  %2327 = vmatmul.msk.bf16.gmra.mxu0 %vm321_vm0, %v2725_v25 }
 0x186   :  { %2131 = vst.msk [vmem:[%s3998_s5 + $0x70] sm:$0xf] %vm2102_vm2, %v2066_v44  ;;  %v1685_v63 = vsub.f32 0.0, %v3685_v35  ;;  %2659 = vmatmul.msk.bf16.gmra.mxu2 %vm321_vm0, %v2758_v53 }
 0x187   :  { %v2891_v37 = vpop.eup %2890  ;;  %v1820_v40 = vmul.f32 1.442695, %v1705_v17  ;;  %v945_v27 = vpop.f32.mrf.mxu1 }
 0x188   :  { %v2893_v50 = vpop.eup %2892  ;;  %v1896_v52 = vadd.f32 1.0, %v2891_v37  ;;  %v1780_v54 = vmul.f32 1.442695, %v1685_v63  ;;  %v946_v55 = vadd.f32 %v945_v27, %v507_v33  ;;  %v1492_v58 = vpop.f32.mrf.mxu3 }
 0x189   :  { %v2895_v59 = vpop.eup %2894  ;;  %v1876_v43 = vadd.f32 1.0, %v2893_v50  ;;  %2896 = vpow2.f32 %v1820_v40  ;;  %v1442_v0 = vpop.f32.mrf.mxu2  ;;  %v1574_v34 = vadd.f32 %v1492_v58, %v996_v36 }
 0x18a   :  { %v2003_v2 = vmul.f32 %v2895_v59, %v3646_v31  ;;  %2898 = vrcp.f32 %v1896_v52  ;;  %v1554_v61 = vadd.f32 %v1442_v0, %v946_v55  ;;  %v509_v9 = vpop.f32.mrf.mxu0  ;;  %v1001_v55 = vadd.f32 %v3508_v30, %v3268_v32 }
 0x18b   :  { %2900 = vrcp.f32 %v1876_v43  ;;  %v3699_v3 = vadd.f32 %v3590_v45, %v1574_v34 }
 0x18c   :  { %v2067_v49 = vpack.c.bf16 %v2003_v2, %v2003_v2  ;;  %2902 = vpow2.f32 %v1780_v54  ;;  %v3702_v10 = vadd.f32 %v3590_v45, %v1554_v61 }
 0x18d   :  { %v1706_v11 = vsub.f32 0.0, %v3699_v3 }
 0x18e   :  { %2132 = vst.msk [vmem:[%s3998_s5 + $0x74] sm:$0xf] %vm2102_vm2, %v2067_v49  ;;  %v1686_v31 = vsub.f32 0.0, %v3702_v10 }
 0x18f   :  { %v2897_v13 = vpop.eup %2896  ;;  %v1822_v21 = vmul.f32 1.442695, %v1706_v11  ;;  %v947_v16 = vpop.f32.mrf.mxu1 }
 0x190   :  { %v2899_v23 = vpop.eup %2898  ;;  %v1897_v24 = vadd.f32 1.0, %v2897_v13  ;;  %v1782_v25 = vmul.f32 1.442695, %v1686_v31  ;;  %v948_v29 = vadd.f32 %v947_v16, %v509_v9  ;;  %v1494_v8 = vpop.f32.mrf.mxu3 }
 0x191   :  { %v2901_v33 = vpop.eup %2900  ;;  %v2024_v53 = vmul.f32 %v2899_v23, %v3662_v62  ;;  %2904 = vpow2.f32 %v1822_v21  ;;  %v1444_v44 = vpop.f32.mrf.mxu2  ;;  %v1575_v17 = vadd.f32 %v1494_v8, %v998_v20 }
 0x192   :  { %v2903_v63 = vpop.eup %2902  ;;  %v2004_v37 = vmul.f32 %v2901_v33, %v3665_v6  ;;  %2906 = vrcp.f32 %v1897_v24  ;;  %v1555_v36 = vadd.f32 %v1444_v44, %v948_v29  ;;  %v512_v40 = vpop.f32.mrf.mxu0  ;;  %v1003_v33 = vadd.f32 %v3516_v39, %v3276_v48 }
 0x193   :  { %v2088_v14 = vpack.c.bf16 %v2024_v53, %v2024_v53  ;;  %v1877_v60 = vadd.f32 1.0, %v2903_v63  ;;  %2908 = vpow2.f32 %v1782_v25  ;;  %v3715_v27 = vadd.f32 %v3590_v45, %v1575_v17 }
 0x194   :  { %v2068_v50 = vpack.c.bf16 %v2004_v37, %v2004_v37  ;;  %v3718_v52 = vadd.f32 %v3590_v45, %v1555_v36 }
 0x195   :  { %2153 = vst.msk [vmem:[%s3998_s5 + $0xc8] sm:$0xf] %vm2102_vm2, %v2088_v14  ;;  %2910 = vrcp.f32 %v1877_v60  ;;  %v1707_v62 = vsub.f32 0.0, %v3715_v27 }
 0x196   :  { %2133 = vst.msk [vmem:[%s3998_s5 + $0x78] sm:$0xf] %vm2102_vm2, %v2068_v50  ;;  %v1687_v6 = vsub.f32 0.0, %v3718_v52 }
 0x197   :  { %v2905_v54 = vpop.eup %2904  ;;  %v1824_v58 = vmul.f32 1.442695, %v1707_v62  ;;  %v950_v59 = vpop.f32.mrf.mxu1 }
 0x198   :  { %v2907_v43 = vpop.eup %2906  ;;  %v1898_v0 = vadd.f32 1.0, %v2905_v54  ;;  %v1784_v34 = vmul.f32 1.442695, %v1687_v6  ;;  %v951_v2 = vadd.f32 %v950_v59, %v512_v40  ;;  %v1497_v61 = vpop.f32.mrf.mxu3 }
 0x199   :  { %v2909_v9 = vpop.eup %2908  ;;  %v2025_v49 = vmul.f32 %v2907_v43, %v3682_v18  ;;  %2912 = vpow2.f32 %v1824_v58  ;;  %v1447_v11 = vpop.f32.mrf.mxu2  ;;  %v1576_v31 = vadd.f32 %v1497_v61, %v1001_v55 }
 0x19a   :  { %v1878_v13 = vadd.f32 1.0, %v2909_v9  ;;  %2914 = vrcp.f32 %v1898_v0  ;;  %v1556_v20 = vadd.f32 %v1447_v11, %v951_v2  ;;  %v514_v21 = vpop.f32.mrf.mxu0 }
 0x19b   :  { %v2911_v16 = vpop.eup %2910  ;;  %v2089_v23 = vpack.c.bf16 %v2025_v49, %v2025_v49  ;;  %2916 = vpow2.f32 %v1784_v34  ;;  %v3734_v32 = vadd.f32 %v3590_v45, %v1576_v31  ;;  %v1006_v34 = vadd.f32 %v3538_v15, %v3298_v4 }
 0x19c   :  { %v2005_v30 = vmul.f32 %v2911_v16, %v3685_v35  ;;  %2918 = vrcp.f32 %v1878_v13  ;;  %v3738_v24 = vadd.f32 %v3590_v45, %v1556_v20 }
 0x19d   :  { %2154 = vst.msk [vmem:[%s3998_s5 + $0xcc] sm:$0xf] %vm2102_vm2, %v2089_v23  ;;  %v1708_v18 = vsub.f32 0.0, %v3734_v32 }
 0x19e   :  { %v2069_v25 = vpack.c.bf16 %v2005_v30, %v2005_v30  ;;  %v1688_v29 = vsub.f32 0.0, %v3738_v24 }
 0x19f   :  { %v2913_v8 = vpop.eup %2912  ;;  %v1826_v53 = vmul.f32 1.442695, %v1708_v18  ;;  %v952_v35 = vpop.f32.mrf.mxu1 }
 0x1a0   :  { %v2915_v44 = vpop.eup %2914  ;;  %2134 = vst.msk [vmem:[%s3998_s5 + $0x7c] sm:$0xf] %vm2102_vm2, %v2069_v25  ;;  %v1899_v17 = vadd.f32 1.0, %v2913_v8  ;;  %v1786_v63 = vmul.f32 1.442695, %v1688_v29  ;;  %v953_v37 = vadd.f32 %v952_v35, %v514_v21  ;;  %v1499_v36 = vpop.f32.mrf.mxu3 }
 0x1a1   :  { %v2917_v40 = vpop.eup %2916  ;;  %v2026_v14 = vmul.f32 %v2915_v44, %v3699_v3  ;;  %2920 = vpow2.f32 %v1826_v53  ;;  %v1449_v60 = vpop.f32.mrf.mxu2  ;;  %v1577_v50 = vadd.f32 %v1499_v36, %v1003_v33  ;;  %v1008_v44 = vadd.f32 %v3546_v22, %v3306_v19 }
 0x1a2   :  { %v2919_v62 = vpop.eup %2918  ;;  %v1879_v48 = vadd.f32 1.0, %v2917_v40  ;;  %2922 = vrcp.f32 %v1899_v17  ;;  %v1557_v39 = vadd.f32 %v1449_v60, %v953_v37  ;;  %v517_v6 = vpop.f32.mrf.mxu0 }
 0x1a3   :  { %v2006_v54 = vmul.f32 %v2919_v62, %v3702_v10  ;;  %v2090_v55 = vpack.c.bf16 %v2026_v14, %v2026_v14  ;;  %2924 = vpow2.f32 %v1786_v63  ;;  %v3755_v58 = vadd.f32 %v3590_v45, %v1577_v50 }
 0x1a4   :  { %2926 = vrcp.f32 %v1879_v48  ;;  %v3758_v59 = vadd.f32 %v3590_v45, %v1557_v39 }
 0x1a5   :  { %v2070_v3 = vpack.c.bf16 %v2006_v54, %v2006_v54  ;;  %2155 = vst.msk [vmem:[%s3998_s5 + $0xd0] sm:$0xf] %vm2102_vm2, %v2090_v55  ;;  %v1709_v43 = vsub.f32 0.0, %v3755_v58 }
 0x1a6   :  { %v1689_v0 = vsub.f32 0.0, %v3758_v59 }
 0x1a7   :  { %v2921_v10 = vpop.eup %2920  ;;  %2135 = vst.msk [vmem:[%s3998_s5 + $0x80] sm:$0xf] %vm2102_vm2, %v2070_v3  ;;  %v1828_v2 = vmul.f32 1.442695, %v1709_v43  ;;  %v955_v61 = vpop.f32.mrf.mxu1 }
 0x1a8   :  { %v2923_v9 = vpop.eup %2922  ;;  %v1900_v49 = vadd.f32 1.0, %v2921_v10  ;;  %v1788_v11 = vmul.f32 1.442695, %v1689_v0  ;;  %v956_v31 = vadd.f32 %v955_v61, %v517_v6  ;;  %v1502_v13 = vpop.f32.mrf.mxu3 }
 0x1a9   :  { %v2925_v20 = vpop.eup %2924  ;;  %v2027_v21 = vmul.f32 %v2923_v9, %v3715_v27  ;;  %2928 = vpow2.f32 %v1828_v2  ;;  %v1452_v16 = vpop.f32.mrf.mxu2  ;;  %v1578_v23 = vadd.f32 %v1502_v13, %v1006_v34  ;;  %v1011_v2 = vadd.f32 %v3568_v1, %v3328_v38 }
 0x1aa   :  { %v2927_v30 = vpop.eup %2926  ;;  %v1880_v4 = vadd.f32 1.0, %v2925_v20  ;;  %2930 = vrcp.f32 %v1900_v49  ;;  %v1558_v15 = vadd.f32 %v1452_v16, %v956_v31  ;;  %v519_v18 = vpop.f32.mrf.mxu0 }
 0x1ab   :  { %v2007_v25 = vmul.f32 %v2927_v30, %v3718_v52  ;;  %v2091_v29 = vpack.c.bf16 %v2027_v21, %v2027_v21  ;;  %2932 = vpow2.f32 %v1788_v11  ;;  %v3775_v8 = vadd.f32 %v3590_v45, %v1578_v23 }
 0x1ac   :  { %2934 = vrcp.f32 %v1880_v4  ;;  %v3778_v33 = vadd.f32 %v3590_v45, %v1558_v15 }
 0x1ad   :  { %v2071_v27 = vpack.c.bf16 %v2007_v25, %v2007_v25  ;;  %2156 = vst.msk [vmem:[%s3998_s5 + $0xd4] sm:$0xf] %vm2102_vm2, %v2091_v29  ;;  %v1710_v53 = vsub.f32 0.0, %v3775_v8 }
 0x1ae   :  { %v1690_v35 = vsub.f32 0.0, %v3778_v33 }
 0x1af   :  { %v2929_v52 = vpop.eup %2928  ;;  %2136 = vst.msk [vmem:[%s3998_s5 + $0x84] sm:$0xf] %vm2102_vm2, %v2071_v27  ;;  %v1830_v17 = vmul.f32 1.442695, %v1710_v53  ;;  %v957_v63 = vpop.f32.mrf.mxu1 }
 0x1b0   :  { %v2931_v37 = vpop.eup %2930  ;;  %v1901_v36 = vadd.f32 1.0, %v2929_v52  ;;  %v1790_v40 = vmul.f32 1.442695, %v1690_v35  ;;  %v958_v14 = vadd.f32 %v957_v63, %v519_v18  ;;  %v1504_v60 = vpop.f32.mrf.mxu3  ;;  %v1013_v52 = vadd.f32 %v3576_v7, %v3336_v56 }
 0x1b1   :  { %v2933_v50 = vpop.eup %2932  ;;  %v2028_v62 = vmul.f32 %v2931_v37, %v3734_v32  ;;  %2936 = vpow2.f32 %v1830_v17  ;;  %v1454_v48 = vpop.f32.mrf.mxu2  ;;  %v1579_v39 = vadd.f32 %v1504_v60, %v1008_v44 }
 0x1b2   :  { %v2935_v6 = vpop.eup %2934  ;;  %v1881_v19 = vadd.f32 1.0, %v2933_v50  ;;  %2938 = vrcp.f32 %v1901_v36  ;;  %v1559_v22 = vadd.f32 %v1454_v48, %v958_v14  ;;  %v522_v54 = vpop.f32.mrf.mxu0 }
 0x1b3   :  { %v2008_v55 = vmul.f32 %v2935_v6, %v3738_v24  ;;  %v2092_v3 = vpack.c.bf16 %v2028_v62, %v2028_v62  ;;  %2940 = vpow2.f32 %v1790_v40  ;;  %v3795_v43 = vadd.f32 %v3590_v45, %v1579_v39 }
 0x1b4   :  { %2942 = vrcp.f32 %v1881_v19  ;;  %v3798_v0 = vadd.f32 %v3590_v45, %v1559_v22 }
 0x1b5   :  { %v2072_v32 = vpack.c.bf16 %v2008_v55, %v2008_v55  ;;  %2157 = vst.msk [vmem:[%s3998_s5 + $0xd8] sm:$0xf] %vm2102_vm2, %v2092_v3  ;;  %v1711_v10 = vsub.f32 0.0, %v3795_v43 }
 0x1b6   :  { %v1691_v34 = vsub.f32 0.0, %v3798_v0 }
 0x1b7   :  { %v2937_v24 = vpop.eup %2936  ;;  %2137 = vst.msk [vmem:[%s3998_s5 + $0x88] sm:$0xf] %vm2102_vm2, %v2072_v32  ;;  %v1832_v61 = vmul.f32 1.442695, %v1711_v10  ;;  %v960_v9 = vpop.f32.mrf.mxu1  ;;  %v1016_v10 = vadd.f32 %v3603_v42, %v3358_v12 }
 0x1b8   :  { %v2939_v49 = vpop.eup %2938  ;;  %v1902_v11 = vadd.f32 1.0, %v2937_v24  ;;  %v1792_v31 = vmul.f32 1.442695, %v1691_v34  ;;  %v961_v13 = vadd.f32 %v960_v9, %v522_v54  ;;  %v1507_v20 = vpop.f32.mrf.mxu3 }
 0x1b9   :  { %v2941_v21 = vpop.eup %2940  ;;  %v2029_v16 = vmul.f32 %v2939_v49, %v3755_v58  ;;  %2944 = vpow2.f32 %v1832_v61  ;;  %v1457_v23 = vpop.f32.mrf.mxu2  ;;  %v1580_v30 = vadd.f32 %v1507_v20, %v1011_v2 }
 0x1ba   :  { %v2943_v4 = vpop.eup %2942  ;;  %v1882_v38 = vadd.f32 1.0, %v2941_v21  ;;  %2946 = vrcp.f32 %v1902_v11  ;;  %v1560_v1 = vadd.f32 %v1457_v23, %v961_v13  ;;  %v524_v15 = vpop.f32.mrf.mxu0 }
 0x1bb   :  { %v2009_v18 = vmul.f32 %v2943_v4, %v3758_v59  ;;  %v2093_v25 = vpack.c.bf16 %v2029_v16, %v2029_v16  ;;  %2948 = vpow2.f32 %v1792_v31  ;;  %v3815_v29 = vadd.f32 %v3590_v45, %v1580_v30 }
 0x1bc   :  { %2950 = vrcp.f32 %v1882_v38  ;;  %v3818_v27 = vadd.f32 %v3590_v45, %v1560_v1 }
 0x1bd   :  { %v2073_v58 = vpack.c.bf16 %v2009_v18, %v2009_v18  ;;  %2158 = vst.msk [vmem:[%s3998_s5 + $0xdc] sm:$0xf] %vm2102_vm2, %v2093_v25  ;;  %v1712_v53 = vsub.f32 0.0, %v3815_v29  ;;  %v1018_v25 = vadd.f32 %v3611_v57, %v3366_v28 }
 0x1be   :  { %v1692_v35 = vsub.f32 0.0, %v3818_v27 }
 0x1bf   :  { %v2945_v59 = vpop.eup %2944  ;;  %2138 = vst.msk [vmem:[%s3998_s5 + $0x8c] sm:$0xf] %vm2102_vm2, %v2073_v58  ;;  %v1834_v44 = vmul.f32 1.442695, %v1712_v53  ;;  %v962_v17 = vpop.f32.mrf.mxu1 }
 0x1c0   :  { %v2947_v63 = vpop.eup %2946  ;;  %v1903_v37 = vadd.f32 1.0, %v2945_v59  ;;  %v1794_v36 = vmul.f32 1.442695, %v1692_v35  ;;  %v963_v40 = vadd.f32 %v962_v17, %v524_v15  ;;  %v1509_v14 = vpop.f32.mrf.mxu3 }
 0x1c1   :  { %v2949_v60 = vpop.eup %2948  ;;  %v2030_v50 = vmul.f32 %v2947_v63, %v3775_v8  ;;  %2952 = vpow2.f32 %v1834_v44  ;;  %v1459_v62 = vpop.f32.mrf.mxu2  ;;  %v1581_v48 = vadd.f32 %v1509_v14, %v1013_v52 }
 0x1c2   :  { %v2951_v39 = vpop.eup %2950  ;;  %v1883_v56 = vadd.f32 1.0, %v2949_v60  ;;  %2954 = vrcp.f32 %v1903_v37  ;;  %v1561_v7 = vadd.f32 %v1459_v62, %v963_v40  ;;  %v527_v6 = vpop.f32.mrf.mxu0 }
 0x1c3   :  { %v2010_v19 = vmul.f32 %v2951_v39, %v3778_v33  ;;  %v2094_v22 = vpack.c.bf16 %v2030_v50, %v2030_v50  ;;  %2956 = vpow2.f32 %v1794_v36  ;;  %v3835_v54 = vadd.f32 %v3590_v45, %v1581_v48 }
 0x1c4   :  { %2958 = vrcp.f32 %v1883_v56  ;;  %v3838_v55 = vadd.f32 %v3590_v45, %v1561_v7 }
 0x1c5   :  { %v2074_v8 = vpack.c.bf16 %v2010_v19, %v2010_v19  ;;  %2159 = vst.msk [vmem:[%s3998_s5 + $0xe0] sm:$0xf] %vm2102_vm2, %v2094_v22  ;;  %v1713_v3 = vsub.f32 0.0, %v3835_v54 }
 0x1c6   :  { %v1693_v32 = vsub.f32 0.0, %v3838_v55 }
 0x1c7   :  { %v2953_v33 = vpop.eup %2952  ;;  %2139 = vst.msk [vmem:[%s3998_s5 + $0x90] sm:$0xf] %vm2102_vm2, %v2074_v8  ;;  %v1836_v34 = vmul.f32 1.442695, %v1713_v3  ;;  %v965_v24 = vpop.f32.mrf.mxu1 }
 0x1c8   :  { %v2955_v2 = vpop.eup %2954  ;;  %v1904_v61 = vadd.f32 1.0, %v2953_v33  ;;  %v1796_v9 = vmul.f32 1.442695, %v1693_v32  ;;  %v966_v49 = vadd.f32 %v965_v24, %v527_v6  ;;  %v1512_v11 = vpop.f32.mrf.mxu3  ;;  %v1021_v6 = vadd.f32 %v3629_v47, %v3388_v51 }
 0x1c9   :  { %v2957_v31 = vpop.eup %2956  ;;  %v2031_v13 = vmul.f32 %v2955_v2, %v3795_v43  ;;  %2960 = vpow2.f32 %v1836_v34  ;;  %v1462_v20 = vpop.f32.mrf.mxu2  ;;  %v1582_v21 = vadd.f32 %v1512_v11, %v1016_v10 }
 0x1ca   :  { %v2959_v16 = vpop.eup %2958  ;;  %v1884_v12 = vadd.f32 1.0, %v2957_v31  ;;  %2962 = vrcp.f32 %v1904_v61  ;;  %v1562_v42 = vadd.f32 %v1462_v20, %v966_v49  ;;  %v529_v23 = vpop.f32.mrf.mxu0 }
 0x1cb   :  { %v2011_v30 = vmul.f32 %v2959_v16, %v3798_v0  ;;  %v2095_v4 = vpack.c.bf16 %v2031_v13, %v2031_v13  ;;  %2964 = vpow2.f32 %v1796_v9  ;;  %v3855_v38 = vadd.f32 %v3590_v45, %v1582_v21 }
 0x1cc   :  { %2966 = vrcp.f32 %v1884_v12  ;;  %v3858_v1 = vadd.f32 %v3590_v45, %v1562_v42  ;;  %v1023_v12 = vadd.f32 %v3637_v46, %v3396_v5 }
 0x1cd   :  { %v2075_v43 = vpack.c.bf16 %v2011_v30, %v2011_v30  ;;  %2160 = vst.msk [vmem:[%s3998_s5 + $0xe4] sm:$0xf] %vm2102_vm2, %v2095_v4  ;;  %v1714_v15 = vsub.f32 0.0, %v3855_v38 }
 0x1ce   :  { %v1694_v18 = vsub.f32 0.0, %v3858_v1 }
 0x1cf   :  { %v2961_v0 = vpop.eup %2960  ;;  %2140 = vst.msk [vmem:[%s3998_s5 + $0x94] sm:$0xf] %vm2102_vm2, %v2075_v43  ;;  %v1838_v58 = vmul.f32 1.442695, %v1714_v15  ;;  %v967_v53 = vpop.f32.mrf.mxu1 }
 0x1d0   :  { %v2963_v35 = vpop.eup %2962  ;;  %v1905_v59 = vadd.f32 1.0, %v2961_v0  ;;  %v1798_v52 = vmul.f32 1.442695, %v1694_v18  ;;  %v968_v44 = vadd.f32 %v967_v53, %v529_v23  ;;  %v1514_v17 = vpop.f32.mrf.mxu3 }
 0x1d1   :  { %v2965_v63 = vpop.eup %2964  ;;  %v2032_v37 = vmul.f32 %v2963_v35, %v3815_v29  ;;  %2968 = vpow2.f32 %v1838_v58  ;;  %v1464_v36 = vpop.f32.mrf.mxu2  ;;  %v1583_v40 = vadd.f32 %v1514_v17, %v1018_v25 }
 0x1d2   :  { %v2967_v14 = vpop.eup %2966  ;;  %v1885_v28 = vadd.f32 1.0, %v2965_v63  ;;  %2970 = vrcp.f32 %v1905_v59  ;;  %v1563_v57 = vadd.f32 %v1464_v36, %v968_v44  ;;  %v532_v60 = vpop.f32.mrf.mxu0 }
 0x1d3   :  { %v2012_v50 = vmul.f32 %v2967_v14, %v3818_v27  ;;  %v2096_v62 = vpack.c.bf16 %v2032_v37, %v2032_v37  ;;  %2972 = vpow2.f32 %v1798_v52  ;;  %v3875_v48 = vadd.f32 %v3590_v45, %v1583_v40 }
 0x1d4   :  { %2974 = vrcp.f32 %v1885_v28  ;;  %v3878_v39 = vadd.f32 %v3590_v45, %v1563_v57 }
 0x1d5   :  { %v2076_v29 = vpack.c.bf16 %v2012_v50, %v2012_v50  ;;  %2161 = vst.msk [vmem:[%s3998_s5 + $0xe8] sm:$0xf] %vm2102_vm2, %v2096_v62  ;;  %v1715_v56 = vsub.f32 0.0, %v3875_v48 }
 0x1d6   :  { %v1695_v7 = vsub.f32 0.0, %v3878_v39 }
 0x1d7   :  { %v2969_v27 = vpop.eup %2968  ;;  %2141 = vst.msk [vmem:[%s3998_s5 + $0x98] sm:$0xf] %vm2102_vm2, %v2076_v29  ;;  %v1840_v19 = vmul.f32 1.442695, %v1715_v56  ;;  %v970_v22 = vpop.f32.mrf.mxu1 }
 0x1d8   :  { %v2971_v8 = vpop.eup %2970  ;;  %v1906_v3 = vadd.f32 1.0, %v2969_v27  ;;  %v1800_v32 = vmul.f32 1.442695, %v1695_v7  ;;  %v971_v33 = vadd.f32 %v970_v22, %v532_v60  ;;  %v1517_v10 = vpop.f32.mrf.mxu3 }
 0x1d9   :  { %v2973_v34 = vpop.eup %2972  ;;  %v2033_v24 = vmul.f32 %v2971_v8, %v3835_v54  ;;  %2976 = vpow2.f32 %v1840_v19  ;;  %v1467_v2 = vpop.f32.mrf.mxu2  ;;  %v1584_v61 = vadd.f32 %v1517_v10, %v1021_v6  ;;  %v3932_v8 = vld [vmem:[%s3997_s4] ss:$0 sm:$0xff] }
 0x1da   :  { %v2975_v9 = vpop.eup %2974  ;;  %v1886_v51 = vadd.f32 1.0, %v2973_v34  ;;  %2978 = vrcp.f32 %v1906_v3  ;;  %v1564_v47 = vadd.f32 %v1467_v2, %v971_v33  ;;  %v534_v49 = vpop.f32.mrf.mxu0 }
 0x1db   :  { %v2013_v11 = vmul.f32 %v2975_v9, %v3838_v55  ;;  %v2097_v31 = vpack.c.bf16 %v2033_v24, %v2033_v24  ;;  %2980 = vpow2.f32 %v1800_v32  ;;  %v3895_v13 = vadd.f32 %v3590_v45, %v1584_v61 }
 0x1dc   :  { %2982 = vrcp.f32 %v1886_v51  ;;  %v3898_v20 = vadd.f32 %v3590_v45, %v1564_v47 }
 0x1dd   :  { %v2077_v54 = vpack.c.bf16 %v2013_v11, %v2013_v11  ;;  %2162 = vst.msk [vmem:[%s3998_s5 + $0xec] sm:$0xf] %vm2102_vm2, %v2097_v31  ;;  %v1716_v21 = vsub.f32 0.0, %v3895_v13 }
 0x1de   :  { %v1696_v16 = vsub.f32 0.0, %v3898_v20 }
 0x1df   :  { %v2977_v55 = vpop.eup %2976  ;;  %2142 = vst.msk [vmem:[%s3998_s5 + $0x9c] sm:$0xf] %vm2102_vm2, %v2077_v54  ;;  %v1842_v42 = vmul.f32 1.442695, %v1716_v21  ;;  %v972_v23 = vpop.f32.mrf.mxu1 }
 0x1e0   :  { %v2979_v30 = vpop.eup %2978  ;;  %v1907_v4 = vadd.f32 1.0, %v2977_v55  ;;  %v1802_v43 = vmul.f32 1.442695, %v1696_v16  ;;  %v973_v15 = vadd.f32 %v972_v23, %v534_v49  ;;  %v1519_v18 = vpop.f32.mrf.mxu3 }
 0x1e1   :  { %v2981_v0 = vpop.eup %2980  ;;  %v2034_v25 = vmul.f32 %v2979_v30, %v3855_v38  ;;  %2984 = vpow2.f32 %v1842_v42  ;;  %v1469_v58 = vpop.f32.mrf.mxu2  ;;  %v1585_v53 = vadd.f32 %v1519_v18, %v1023_v12 }
 0x1e2   :  { %v2983_v35 = vpop.eup %2982  ;;  %v1887_v5 = vadd.f32 1.0, %v2981_v0  ;;  %2986 = vrcp.f32 %v1907_v4  ;;  %v1565_v46 = vadd.f32 %v1469_v58, %v973_v15  ;;  %v537_v59 = vpop.f32.mrf.mxu0 }
 0x1e3   :  { %v2014_v52 = vmul.f32 %v2983_v35, %v3858_v1  ;;  %v2098_v44 = vpack.c.bf16 %v2034_v25, %v2034_v25  ;;  %2988 = vpow2.f32 %v1802_v43  ;;  %v1653_v17 = vadd.f32 %v3590_v45, %v1585_v53 }
 0x1e4   :  { %2990 = vrcp.f32 %v1887_v5  ;;  %v3916_v63 = vadd.f32 %v3590_v45, %v1565_v46 }
 0x1e5   :  { %v2078_v37 = vpack.c.bf16 %v2014_v52, %v2014_v52  ;;  %2163 = vst.msk [vmem:[%s3998_s5 + $0xf0] sm:$0xf] %vm2102_vm2, %v2098_v44  ;;  %v1717_v38 = vsub.f32 0.0, %v1653_v17 }
 0x1e6   :  { %v1697_v36 = vsub.f32 0.0, %v3916_v63 }
 0x1e7   :  { %v2985_v40 = vpop.eup %2984  ;;  %2143 = vst.msk [vmem:[%s3998_s5 + $0xa0] sm:$0xf] %vm2102_vm2, %v2078_v37  ;;  %v1844_v1 = vmul.f32 1.442695, %v1717_v38  ;;  %v975_v14 = vpop.f32.mrf.mxu1 }
 0x1e8   :  { %v2987_v28 = vpop.eup %2986  ;;  %v1908_v45 = vadd.f32 1.0, %v2985_v40  ;;  %v1804_v57 = vmul.f32 1.442695, %v1697_v36  ;;  %v976_v60 = vadd.f32 %v975_v14, %v537_v59 }
 0x1e9   :  { %v2989_v50 = vpop.eup %2988  ;;  %v2035_v62 = vmul.f32 %v2987_v28, %v3875_v48  ;;  %2992 = vpow2.f32 %v1844_v1  ;;  %v1472_v29 = vpop.f32.mrf.mxu2 }
 0x1ea   :  { %v2991_v56 = vpop.eup %2990  ;;  %v1888_v7 = vadd.f32 1.0, %v2989_v50  ;;  %2994 = vrcp.f32 %v1908_v45  ;;  %v1566_v27 = vadd.f32 %v1472_v29, %v976_v60  ;;  %v539_v6 = vpop.f32.mrf.mxu0 }
 0x1eb   :  { %v2015_v19 = vmul.f32 %v2991_v56, %v3878_v39  ;;  %v2099_v22 = vpack.c.bf16 %v2035_v62, %v2035_v62  ;;  %2996 = vpow2.f32 %v1804_v57 }
 0x1ec   :  { %2998 = vrcp.f32 %v1888_v7  ;;  %v1634_v3 = vadd.f32 %v3932_v8, %v1566_v27 }
 0x1ed   :  { %v2079_v48 = vpack.c.bf16 %v2015_v19, %v2015_v19  ;;  %2164 = vst.msk [vmem:[%s3998_s5 + $0xf4] sm:$0xf] %vm2102_vm2, %v2099_v22 }
 0x1ee   :  { %v1698_v32 = vsub.f32 0.0, %v1634_v3 }
 0x1ef   :  { %v2993_v33 = vpop.eup %2992  ;;  %2144 = vst.msk [vmem:[%s3998_s5 + $0xa4] sm:$0xf] %vm2102_vm2, %v2079_v48  ;;  %v977_v39 = vpop.f32.mrf.mxu1 }
 0x1f0   :  { %v2995_v10 = vpop.eup %2994  ;;  %v1909_v34 = vadd.f32 1.0, %v2993_v33  ;;  %v1806_v24 = vmul.f32 1.442695, %v1698_v32  ;;  %v978_v2 = vadd.f32 %v977_v39, %v539_v6 }
 0x1f1   :  { %v2997_v61 = vpop.eup %2996  ;;  %v2036_v9 = vmul.f32 %v2995_v10, %v3895_v13  ;;  %v1474_v51 = vpop.f32.mrf.mxu2 }
 0x1f2   :  { %v2999_v47 = vpop.eup %2998  ;;  %v1889_v49 = vadd.f32 1.0, %v2997_v61  ;;  %3000 = vrcp.f32 %v1909_v34  ;;  %v1567_v11 = vadd.f32 %v1474_v51, %v978_v2  ;;  %v542_v31 = vpop.f32.mrf.mxu0 }
 0x1f3   :  { %v2016_v54 = vmul.f32 %v2999_v47, %v3898_v20  ;;  %v2100_v21 = vpack.c.bf16 %v2036_v9, %v2036_v9  ;;  %3002 = vpow2.f32 %v1806_v24 }
 0x1f4   :  { %3004 = vrcp.f32 %v1889_v49  ;;  %v1635_v16 = vadd.f32 %v3932_v8, %v1567_v11 }
 0x1f5   :  { %v2080_v55 = vpack.c.bf16 %v2016_v54, %v2016_v54  ;;  %2165 = vst.msk [vmem:[%s3998_s5 + $0xf8] sm:$0xf] %vm2102_vm2, %v2100_v21 }
 0x1f6   :  { %v1699_v13 = vsub.f32 0.0, %v1635_v16 }
 0x1f7   :  { %2145 = vst.msk [vmem:[%s3998_s5 + $0xa8] sm:$0xf] %vm2102_vm2, %v2080_v55  ;;  %v980_v12 = vpop.f32.mrf.mxu1 }
 0x1f8   :  { %v3001_v42 = vpop.eup %3000  ;;  %v1808_v20 = vmul.f32 1.442695, %v1699_v13  ;;  %v981_v23 = vadd.f32 %v980_v12, %v542_v31 }
 0x1f9   :  { %v3003_v30 = vpop.eup %3002  ;;  %v2037_v4 = vmul.f32 %v3001_v42, %v1653_v17  ;;  %v1477_v43 = vpop.f32.mrf.mxu2 }
 0x1fa   :  { %v3005_v15 = vpop.eup %3004  ;;  %v1890_v18 = vadd.f32 1.0, %v3003_v30  ;;  %3006 = vpow2.f32 %v1808_v20  ;;  %v1568_v0 = vadd.f32 %v1477_v43, %v981_v23  ;;  %v544_v25 = vpop.f32.mrf.mxu0 }
 0x1fb   :  { %v2017_v58 = vmul.f32 %v3005_v15, %v3916_v63  ;;  %v2101_v53 = vpack.c.bf16 %v2037_v4, %v2037_v4 }
 0x1fc   :  { %3008 = vrcp.f32 %v1890_v18  ;;  %v1636_v35 = vadd.f32 %v3932_v8, %v1568_v0 }
 0x1fd   :  { %v2081_v5 = vpack.c.bf16 %v2017_v58, %v2017_v58  ;;  %2166 = vst.msk [vmem:[%s3998_s5 + $0xfc] sm:$0xf] %vm2102_vm2, %v2101_v53 }
 0x1fe   :  { %v1700_v46 = vsub.f32 0.0, %v1636_v35 }
 0x1ff   :  { %2146 = vst.msk [vmem:[%s3998_s5 + $0xac] sm:$0xf] %vm2102_vm2, %v2081_v5  ;;  %v982_v59 = vpop.f32.mrf.mxu1 }
 0x200   :  { %v3007_v52 = vpop.eup %3006  ;;  %v1810_v44 = vmul.f32 1.442695, %v1700_v46  ;;  %v983_v17 = vadd.f32 %v982_v59, %v544_v25 }
 0x201   :  { %v1891_v63 = vadd.f32 1.0, %v3007_v52  ;;  %v1479_v37 = vpop.f32.mrf.mxu2 }
 0x202   :  { %v3009_v38 = vpop.eup %3008  ;;  %3010 = vpow2.f32 %v1810_v44  ;;  %v1569_v36 = vadd.f32 %v1479_v37, %v983_v17  ;;  %v547_v1 = vpop.f32.mrf.mxu0 }
 0x203   :  { %v2018_v40 = vmul.f32 %v3009_v38, %v1634_v3  ;;  %3012 = vrcp.f32 %v1891_v63  ;;  %v986_v50 = vadd.f32 %v3418_v26, %v547_v1 }
 0x204   :  { %v1637_v14 = vadd.f32 %v3932_v8, %v1569_v36 }
 0x205   :  { %v2082_v28 = vpack.c.bf16 %v2018_v40, %v2018_v40 }
 0x206   :  { %v1701_v45 = vsub.f32 0.0, %v1637_v14 }
 0x207   :  { %2147 = vst.msk [vmem:[%s3998_s5 + $0xb0] sm:$0xf] %vm2102_vm2, %v2082_v28 }
 0x208   :  { %v3011_v57 = vpop.eup %3010  ;;  %v1812_v60 = vmul.f32 1.442695, %v1701_v45 }
 0x209   :  { %v3013_v62 = vpop.eup %3012  ;;  %v1892_v29 = vadd.f32 1.0, %v3011_v57  ;;  %v1482_v56 = vpop.f32.mrf.mxu2 }
 0x20a   :  { %v2019_v7 = vmul.f32 %v3013_v62, %v1635_v16  ;;  %3014 = vpow2.f32 %v1812_v60  ;;  %v1570_v27 = vadd.f32 %v1482_v56, %v986_v50  ;;  %v549_v22 = vpop.f32.mrf.mxu0 }
 0x20b   :  { %3016 = vrcp.f32 %v1892_v29  ;;  %v988_v26 = vadd.f32 %v3426_v41, %v549_v22 }
 0x20c   :  { %v2083_v6 = vpack.c.bf16 %v2019_v7, %v2019_v7  ;;  %v1638_v19 = vadd.f32 %v3932_v8, %v1570_v27 }
 0x20e   :  { %2148 = vst.msk [vmem:[%s3998_s5 + $0xb4] sm:$0xf] %vm2102_vm2, %v2083_v6  ;;  %v1702_v3 = vsub.f32 0.0, %v1638_v19 }
 0x210   :  { %v3015_v48 = vpop.eup %3014  ;;  %v1814_v32 = vmul.f32 1.442695, %v1702_v3 }
 0x211   :  { %v3017_v33 = vpop.eup %3016  ;;  %v1893_v39 = vadd.f32 1.0, %v3015_v48  ;;  %v1484_v10 = vpop.f32.mrf.mxu2 }
 0x212   :  { %v2020_v34 = vmul.f32 %v3017_v33, %v1636_v35  ;;  %3018 = vpow2.f32 %v1814_v32  ;;  %v1571_v24 = vadd.f32 %v1484_v10, %v988_v26 }
 0x213   :  { %3020 = vrcp.f32 %v1893_v39 }
 0x214   :  { %v2084_v2 = vpack.c.bf16 %v2020_v34, %v2020_v34  ;;  %v1639_v61 = vadd.f32 %v3932_v8, %v1571_v24 }
 0x216   :  { %2149 = vst.msk [vmem:[%s3998_s5 + $0xb8] sm:$0xf] %vm2102_vm2, %v2084_v2  ;;  %v1703_v9 = vsub.f32 0.0, %v1639_v61 }
 0x218   :  { %v3019_v51 = vpop.eup %3018  ;;  %v1816_v47 = vmul.f32 1.442695, %v1703_v9 }
 0x219   :  { %v3021_v49 = vpop.eup %3020  ;;  %v1894_v41 = vadd.f32 1.0, %v3019_v51 }
 0x21a   :  { %v2021_v11 = vmul.f32 %v3021_v49, %v1637_v14  ;;  %3022 = vpow2.f32 %v1816_v47 }
 0x21b   :  { %3024 = vrcp.f32 %v1894_v41 }
 0x21c   :  { %v2085_v31 = vpack.c.bf16 %v2021_v11, %v2021_v11 }
 0x21e   :  { %2150 = vst.msk [vmem:[%s3998_s5 + $0xbc] sm:$0xf] %vm2102_vm2, %v2085_v31 }
 0x220   :  { %v3023_v8 = vpop.eup %3022 }
 0x221   :  { %v3025_v54 = vpop.eup %3024  ;;  %v1895_v21 = vadd.f32 1.0, %v3023_v8 }
 0x222   :  { %v2022_v16 = vmul.f32 %v3025_v54, %v1638_v19 }
 0x223   :  { %3026 = vrcp.f32 %v1895_v21 }
 0x224   :  { %v2086_v55 = vpack.c.bf16 %v2022_v16, %v2022_v16 }
 0x226   :  { %2151 = vst.msk [vmem:[%s3998_s5 + $0xc0] sm:$0xf] %vm2102_vm2, %v2086_v55 }
 0x229   :  { %v3027_v13 = vpop.eup %3026 }
 0x22a   :  { %v2023_v12 = vmul.f32 %v3027_v13, %v1639_v61 }
 0x22c   :  { %v2087_v42 = vpack.c.bf16 %v2023_v12, %v2023_v12 }
 0x22e   :  { %2152 = vst.msk [vmem:[%s3998_s5 + $0xc4] sm:$0xf] %vm2102_vm2, %v2087_v42 }

// kernel: c2f_forward.7
= control target key start
LH: loop header
LB: loop body
LE: loop exit
PB: predicated region body
PF: predicated region fallthrough
CT: control target
= control target key end

     0   :  { %s5302_s12 = smov 0   ;;  %s5304_s13 = smov 0   ;;  %s6843_s0 = inlined_call_operand.vmem [shape: bf16[2,1,18,18,16], index: 0, kind: input, shape index: {}]   ;;  %s6844_s1 = inlined_call_operand.vmem [shape: bf16[144,16], index: 1, kind: input, shape index: {}]   ;;  %s6845_s2 = inlined_call_operand.vmem [shape: f32[1,16], index: 2, kind: input, shape index: {}]   ;;  %s6846_s3 = inlined_call_operand.vmem [shape: bf16[2,256,16], index: 3, kind: output, shape index: {}]  }
   0x1   :  { %s5306_s14 = smov 0  }
   0x2 LB: > { %s25_s15 = sadd.s32 1, %s5276_s13  ;;  %p4438_p0 = scmp.ge.s32.totalorder %s5280_s14, 1  ;;  %s5280_s14 = sphi %s5306_s14, %s13_s14   ;;  %s5276_s13 = sphi %s5304_s13, %s6864_s13   ;;  %s5272_s12 = sphi %s5302_s12, %s6863_s12  }
   0x3   : > { %p27_p1 = scmp.ge.s32.totalorder %s25_s15, 2  ;;  %p157_p2 = scmp.lt.s32.totalorder %s5280_s14, 3 }
   0x5   : > { %s6866_s15 = smov (%p27_p1, %s25_s15), 0  ;;  %p158_p3 = pnand %p4438_p0, %p157_p2 }
   0x7   : > { %161 = sbr.rel (%p158_p3) target bundleno = 781 (0x30d), region = 32 }
   0xc   : > { %v5042_v0 = vld [vmem:[%s6844_s1 + $0x8] sm:$0xff]  ;;  %p189_p4 = scmp.lt.s32.totalorder %s5272_s12, 1  ;;  %v5043_v1 = vld [vmem:[%s6844_s1 + $0x10] sm:$0xff]  ;;  %v5044_v2 = vld [vmem:[%s6844_s1 + $0x18] sm:$0xff]  ;;  %vm257_vm0 = vsmask.f32 3328 }
   0xd   : > { %5050 = vmatpush.bf16.msra.mxu1 %v5042_v0  ;;  %5051 = vmatpush.bf16.msra.mxu2 %v5042_v0  ;;  %v5041_v3 = vld [vmem:[%s6844_s1] sm:$0xff]  ;;  %vm258_vm1 = vsmask.f32 7440  ;;  %vm2099_vm3 = vcmask 130048   ;;  %vm708_vm4 = vcmask 1042432   ;;  %vm709_vm5 = vcmask 1046532  }
   0xe   : > { %s6868_s12 = smov (!%p189_p4, %s5272_s12), 1  ;;  %5052 = vmatpush.bf16.msra.mxu3 %v5042_v0  ;;  %2155 = vmatpush.bf16.msra.mxu0 %v5042_v0  ;;  %v5045_v4 = vld [vmem:[%s6844_s1 + $0x20] sm:$0xff]  ;;  %vm5353_vm2 = vmor %vm257_vm0, %vm258_vm1  ;;  %vm4311_vm7 = vcmask 125952  }
   0xf   : > { %s5053_s26 = smul.u32 216, %s6868_s12  ;;  %vm5536_vm6 = vmor %vm708_vm4, %vm709_vm5  ;;  %s4992_s17 = sshll.u32 %s6868_s12, 7 }
  0x10   : > { %s6484_s19 = scalar_lea.vmem %s6846_s3, %s4992_s17 }
  0x11   : > { %2555 = vmatpush.bf16.msrb.mxu2 %v5043_v1  ;;  %2362 = vmatpush.bf16.msrb.mxu1 %v5041_v3  ;;  %s5341_s29 = scalar_lea.vmem %s6843_s0, %s5053_s26 }
  0x12   : > { %2796 = vmatpush.bf16.msrb.mxu3 %v5044_v2  ;;  %3021 = vmatpush.bf16.msrb.mxu0 %v5045_v4  ;;  %v217_v5 = vld [vmem:[%s5341_s29 + $0x30] sm:$0xf]  ;;  %v218_v6 = vld [vmem:[%s5341_s29 + $0x34] sm:$0xf]  ;;  %v245_v7 = vld [vmem:[%s5341_s29 + $0x38] sm:$0x1] }
  0x13   : > { %v357_v8 = vshrl.u32 %v217_v5, 16  ;;  %v360_v9 = vshll.u32 %v217_v5, 16  ;;  %v366_v10 = vshll.u32 %v218_v6, 16  ;;  %v370_v11 = vshrl.u32 %v218_v6, 16  ;;  %v225_v12 = vld [vmem:[%s5341_s29 + $0x60] sm:$0xf] }
  0x14   : > { %v376_v13 = vshll.u32 %v245_v7, 16  ;;  %v226_v14 = vld [vmem:[%s5341_s29 + $0x64] sm:$0xf]  ;;  %v249_v15 = vld [vmem:[%s5341_s29 + $0x68] sm:$0x1]  ;;  %v453_v16 = vshrl.u32 %v225_v12, 16 }
  0x15   : > { %v359_v17 = vrot.slane %v357_v8, 4  ;;  %v362_v18 = vrot.slane %v360_v9, 5  ;;  %v368_v19 = vrot.slane %v366_v10, 5  ;;  %v372_v20 = vrot.slane %v370_v11, 4  ;;  %v233_v21 = vld [vmem:[%s5341_s29 + $0x90] sm:$0xf] }
  0x16   : > { %v378_v22 = vrot.slane %v376_v13, 5  ;;  %v455_v23 = vrot.slane %v453_v16, 4  ;;  %v456_v24 = vshll.u32 %v225_v12, 16  ;;  %v462_v25 = vshll.u32 %v226_v14, 16  ;;  %v234_v30 = vld [vmem:[%s5341_s29 + $0x94] sm:$0xf] }
  0x17   : > { %v363_v26 = vor.u32 %v362_v18, %v359_v17  ;;  %v373_v27 = vor.u32 %v372_v20, %v368_v19  ;;  %v466_v28 = vshrl.u32 %v226_v14, 16  ;;  %v472_v29 = vshll.u32 %v249_v15, 16  ;;  %v253_v40 = vld [vmem:[%s5341_s29 + $0x98] sm:$0x1]  ;;  %v209_v56 = vld [vmem:[%s5341_s29] sm:$0xf] }
  0x18   : > { %v458_v32 = vrot.slane %v456_v24, 5  ;;  %v464_v33 = vrot.slane %v462_v25, 5  ;;  %v549_v34 = vshrl.u32 %v233_v21, 16  ;;  %v552_v42 = vshll.u32 %v233_v21, 16  ;;  %v5366_v60 = vld [vmem:[%s5341_s29 + $0x4] sm:$0xf] }
  0x19   : > { %v364_v35 = vrot.slane %v363_v26, 4  ;;  %v374_v36 = vrot.slane %v373_v27, 4  ;;  %v468_v37 = vrot.slane %v466_v28, 4  ;;  %v474_v38 = vrot.slane %v472_v29, 5  ;;  %v5369_v61 = vld [vmem:[%s5341_s29 + $0x8] sm:$0x1] }
  0x1a   : > { %v459_v39 = vor.u32 %v458_v32, %v455_v23  ;;  %v551_v41 = vrot.slane %v549_v34, 4  ;;  %v558_v43 = vshll.u32 %v234_v30, 16  ;;  %v562_v47 = vshrl.u32 %v234_v30, 16  ;;  %v219_v14 = vld [vmem:[%s5341_s29 + $0x3c] sm:$0xf] }
  0x1b   : > { %v369_v44 = vsel %vm5353_vm2, %v364_v35, %v368_v19  ;;  %v379_v45 = vsel %vm5353_vm2, %v374_v36, %v378_v22  ;;  %v469_v46 = vor.u32 %v468_v37, %v464_v33  ;;  %v554_v51 = vrot.slane %v552_v42, 5  ;;  %v5381_v15 = vld [vmem:[%s5341_s29 + $0x40] sm:$0xf]  ;;  %v5386_v20 = vld [vmem:[%s5341_s29 + $0x44] sm:$0x1] }
  0x1c   : > { %v2053_v48 = vunpack.c.l.b16 %v369_v44  ;;  %v2054_v49 = vunpack.c.l.b16 %v379_v45  ;;  %v460_v50 = vrot.slane %v459_v39, 4  ;;  %v560_v53 = vrot.slane %v558_v43, 5  ;;  %v227_v28 = vld [vmem:[%s5341_s29 + $0x6c] sm:$0xf]  ;;  %v250_v42 = vld [vmem:[%s5341_s29 + $0x74] sm:$0x1] }
  0x1d   : > { %v470_v52 = vrot.slane %v469_v46, 4  ;;  %v564_v54 = vrot.slane %v562_v47, 4  ;;  %v568_v55 = vshll.u32 %v253_v40, 16  ;;  %v555_v59 = vor.u32 %v554_v51, %v551_v41 }
  0x1e   : > { %v2081_v57 = vpack.c.b16 %v2054_v49, %v2053_v48  ;;  %v465_v58 = vsel %vm5353_vm2, %v460_v50, %v464_v33  ;;  %v261_v4 = vshrl.u32 %v209_v56, 16  ;;  %v264_v5 = vshll.u32 %v209_v56, 16  ;;  %v235_v56 = vld [vmem:[%s5341_s29 + $0x9c] sm:$0xf] }
  0x1f   : > { %v475_v62 = vsel %vm5353_vm2, %v470_v52, %v474_v38  ;;  %v2061_v63 = vunpack.c.l.b16 %v465_v58  ;;  %v565_v0 = vor.u32 %v564_v54, %v560_v53  ;;  %v570_v1 = vrot.slane %v568_v55, 5  ;;  %v228_v38 = vld [vmem:[%s5341_s29 + $0x70] sm:$0xf] }
  0x20   : > { %4626 = vmatmul.msk.bf16.vlgmr.msra.gmra.mxu1 %vm2099_vm3, %v2081_v57  ;;  %v2062_v2 = vunpack.c.l.b16 %v475_v62  ;;  %v556_v3 = vrot.slane %v555_v59, 4  ;;  %v270_v7 = vshll.u32 %v5366_v60, 16  ;;  %v274_v8 = vshrl.u32 %v5366_v60, 16  ;;  %v236_v62 = vld [vmem:[%s5341_s29 + $0xa0] sm:$0xf] }
  0x21   : > { %v566_v6 = vrot.slane %v565_v0, 4  ;;  %v280_v9 = vshll.u32 %v5369_v61, 16  ;;  %v263_v12 = vrot.slane %v261_v4, 4  ;;  %v266_v13 = vrot.slane %v264_v5, 5 }
  0x22   : > { %v2085_v10 = vpack.c.b16 %v2062_v2, %v2061_v63  ;;  %v561_v11 = vsel %vm5353_vm2, %v556_v3, %v560_v53  ;;  %v272_v18 = vrot.slane %v270_v7, 5  ;;  %v276_v19 = vrot.slane %v274_v8, 4  ;;  %v254_v3 = vld [vmem:[%s5341_s29 + $0xa4] sm:$0x1] }
  0x23   : > { %v571_v16 = vsel %vm5353_vm2, %v566_v6, %v570_v1  ;;  %v2069_v17 = vunpack.c.l.b16 %v561_v11  ;;  %v267_v22 = vor.u32 %v266_v13, %v263_v12  ;;  %v282_v23 = vrot.slane %v280_v9, 5 }
  0x24   : > { %4630 = vmatmul.msk.bf16.vlgmr.msra.gmra.mxu2 %vm2099_vm3, %v2085_v10  ;;  %v2070_v21 = vunpack.c.l.b16 %v571_v16  ;;  %v277_v24 = vor.u32 %v276_v19, %v272_v18  ;;  %v381_v25 = vshrl.u32 %v219_v14, 16  ;;  %v384_v26 = vshll.u32 %v219_v14, 16 }
  0x25   : > { %v390_v27 = vshll.u32 %v5381_v15, 16  ;;  %v268_v30 = vrot.slane %v267_v22, 4  ;;  %v394_v32 = vshrl.u32 %v5381_v15, 16  ;;  %v400_v33 = vshll.u32 %v5386_v20, 16 }
  0x26   : > { %v2089_v29 = vpack.c.b16 %v2070_v21, %v2069_v17  ;;  %v278_v34 = vrot.slane %v277_v24, 4  ;;  %v383_v35 = vrot.slane %v381_v25, 4  ;;  %v386_v36 = vrot.slane %v384_v26, 5  ;;  %v211_v17 = vld [vmem:[%s5341_s29 + $0xc] sm:$0xf] }
  0x27   : > { %v392_v37 = vrot.slane %v390_v27, 5  ;;  %v273_v39 = vsel %vm5353_vm2, %v268_v30, %v272_v18  ;;  %v396_v40 = vrot.slane %v394_v32, 4  ;;  %v402_v41 = vrot.slane %v400_v33, 5  ;;  %v5415_v27 = vld [vmem:[%s5341_s29 + $0x14] sm:$0x1] }
  0x28   : > { %4634 = vmatmul.msk.bf16.vlgmr.msra.gmra.mxu3 %vm2099_vm3, %v2089_v29  ;;  %v477_v43 = vshrl.u32 %v227_v28, 16  ;;  %v283_v44 = vsel %vm5353_vm2, %v278_v34, %v282_v23  ;;  %v2045_v45 = vunpack.c.l.b16 %v273_v39  ;;  %v387_v46 = vor.u32 %v386_v36, %v383_v35  ;;  %v5412_v23 = vld [vmem:[%s5341_s29 + $0x10] sm:$0xf] }
  0x29   : > { %v480_v47 = vshll.u32 %v227_v28, 16  ;;  %v2046_v48 = vunpack.c.l.b16 %v283_v44  ;;  %v397_v49 = vor.u32 %v396_v40, %v392_v37  ;;  %v486_v51 = vshll.u32 %v228_v38, 16 }
  0x2a   : > { %v479_v50 = vrot.slane %v477_v43, 4  ;;  %v388_v52 = vrot.slane %v387_v46, 4  ;;  %v490_v54 = vshrl.u32 %v228_v38, 16  ;;  %v496_v55 = vshll.u32 %v250_v42, 16  ;;  %v5425_v42 = vld [vmem:[%s5341_s29 + $0x4c] sm:$0xf] }
  0x2b   : > { %v482_v53 = vrot.slane %v480_v47, 5  ;;  %v2077_v57 = vpack.c.b16 %v2046_v48, %v2045_v45  ;;  %v398_v58 = vrot.slane %v397_v49, 4  ;;  %v488_v59 = vrot.slane %v486_v51, 5  ;;  %v5430_v51 = vld [vmem:[%s5341_s29 + $0x50] sm:$0x1] }
  0x2c   : > { %v393_v63 = vsel %vm5353_vm2, %v388_v52, %v392_v37  ;;  %v492_v1 = vrot.slane %v490_v54, 4  ;;  %v498_v2 = vrot.slane %v496_v55, 5  ;;  %v573_v6 = vshrl.u32 %v235_v56, 16  ;;  %v221_v37 = vld [vmem:[%s5341_s29 + $0x48] sm:$0xf] }
  0x2d   : > { %v483_v0 = vor.u32 %v482_v53, %v479_v50  ;;  %4622 = vmatmul.msk.bf16.vlgmr.msra.gmra.mxu0 %vm2099_vm3, %v2077_v57  ;;  %v403_v4 = vsel %vm5353_vm2, %v398_v58, %v402_v41  ;;  %v2055_v5 = vunpack.c.l.b16 %v393_v63  ;;  %v576_v7 = vshll.u32 %v235_v56, 16 }
  0x2e   : > { %v2056_v8 = vunpack.c.l.b16 %v403_v4  ;;  %v493_v10 = vor.u32 %v492_v1, %v488_v59  ;;  %v582_v11 = vshll.u32 %v236_v62, 16  ;;  %v575_v12 = vrot.slane %v573_v6, 4 }
  0x2f   : > { %v484_v9 = vrot.slane %v483_v0, 4  ;;  %v578_v13 = vrot.slane %v576_v7, 5  ;;  %v586_v14 = vshrl.u32 %v236_v62, 16  ;;  %v592_v16 = vshll.u32 %v254_v3, 16  ;;  %v229_v62 = vld [vmem:[%s5341_s29 + $0x78] sm:$0xf] }
  0x30   : > { %v2082_v18 = vpack.c.b16 %v2056_v8, %v2055_v5  ;;  %v494_v21 = vrot.slane %v493_v10, 4  ;;  %v584_v22 = vrot.slane %v582_v11, 5  ;;  %v285_v30 = vshrl.u32 %v211_v17, 16  ;;  %v230_v3 = vld [vmem:[%s5341_s29 + $0x7c] sm:$0xf] }
  0x31   : > { %v489_v19 = vsel %vm5353_vm2, %v484_v9, %v488_v59  ;;  %v579_v25 = vor.u32 %v578_v13, %v575_v12  ;;  %v588_v26 = vrot.slane %v586_v14, 4  ;;  %v594_v29 = vrot.slane %v592_v16, 5  ;;  %v251_v11 = vld [vmem:[%s5341_s29 + $0x80] sm:$0x1] }
  0x32   : > { %v2063_v24 = vunpack.c.l.b16 %v489_v19  ;;  %4627 = vmatmul.msk.bf16.gmra.mxu1 %vm2099_vm3, %v2082_v18  ;;  %v499_v28 = vsel %vm5353_vm2, %v494_v21, %v498_v2  ;;  %v288_v32 = vshll.u32 %v211_v17, 16  ;;  %v294_v36 = vshll.u32 %v5412_v23, 16 }
  0x33   : > { %v2064_v33 = vunpack.c.l.b16 %v499_v28  ;;  %v580_v34 = vrot.slane %v579_v25, 4  ;;  %v589_v35 = vor.u32 %v588_v26, %v584_v22  ;;  %v287_v38 = vrot.slane %v285_v30, 4 }
  0x34   : > { %v290_v39 = vrot.slane %v288_v32, 5  ;;  %v298_v40 = vshrl.u32 %v5412_v23, 16  ;;  %v304_v41 = vshll.u32 %v5415_v27, 16  ;;  %v296_v46 = vrot.slane %v294_v36, 5 }
  0x35   : > { %v2086_v43 = vpack.c.b16 %v2064_v33, %v2063_v24  ;;  %v585_v44 = vsel %vm5353_vm2, %v580_v34, %v584_v22  ;;  %v590_v45 = vrot.slane %v589_v35, 4  ;;  %v405_v53 = vshrl.u32 %v221_v37, 16  ;;  %v238_v34 = vld [vmem:[%s5341_s29 + $0xac] sm:$0xf]  ;;  %v255_v35 = vld [vmem:[%s5341_s29 + $0xb0] sm:$0x1] }
  0x36   : > { %v2071_v47 = vunpack.c.l.b16 %v585_v44  ;;  %v291_v48 = vor.u32 %v290_v39, %v287_v38  ;;  %v300_v49 = vrot.slane %v298_v40, 4  ;;  %v306_v50 = vrot.slane %v304_v41, 5 }
  0x37   : > { %4631 = vmatmul.msk.bf16.gmra.mxu2 %vm2099_vm3, %v2086_v43  ;;  %v595_v52 = vsel %vm5353_vm2, %v590_v45, %v594_v29  ;;  %v408_v54 = vshll.u32 %v221_v37, 16  ;;  %v414_v55 = vshll.u32 %v5425_v42, 16  ;;  %v418_v59 = vshrl.u32 %v5425_v42, 16  ;;  %v237_v29 = vld [vmem:[%s5341_s29 + $0xa8] sm:$0xf] }
  0x38   : > { %v2072_v56 = vunpack.c.l.b16 %v595_v52  ;;  %v292_v57 = vrot.slane %v291_v48, 4  ;;  %v301_v58 = vor.u32 %v300_v49, %v296_v46  ;;  %v407_v63 = vrot.slane %v405_v53, 4 }
  0x39   : > { %v410_v0 = vrot.slane %v408_v54, 5  ;;  %v416_v1 = vrot.slane %v414_v55, 5  ;;  %v424_v2 = vshll.u32 %v5430_v51, 16  ;;  %v420_v7 = vrot.slane %v418_v59, 4  ;;  %v213_v54 = vld [vmem:[%s5341_s29 + $0x18] sm:$0xf] }
  0x3a   : > { %v2090_v4 = vpack.c.b16 %v2072_v56, %v2071_v47  ;;  %v297_v5 = vsel %vm5353_vm2, %v292_v57, %v296_v46  ;;  %v302_v6 = vrot.slane %v301_v58, 4  ;;  %v501_v12 = vshrl.u32 %v229_v62, 16  ;;  %v5458_v58 = vld [vmem:[%s5341_s29 + $0x1c] sm:$0xf]  ;;  %v5461_v59 = vld [vmem:[%s5341_s29 + $0x20] sm:$0x1] }
  0x3b   : > { %v2047_v8 = vunpack.c.l.b16 %v297_v5  ;;  %v411_v9 = vor.u32 %v410_v0, %v407_v63  ;;  %v426_v10 = vrot.slane %v424_v2, 5  ;;  %v421_v14 = vor.u32 %v420_v7, %v416_v1 }
  0x3c   : > { %4635 = vmatmul.msk.bf16.gmra.mxu3 %vm2099_vm3, %v2090_v4  ;;  %v307_v13 = vsel %vm5353_vm2, %v302_v6, %v306_v50  ;;  %v504_v16 = vshll.u32 %v229_v62, 16  ;;  %v510_v17 = vshll.u32 %v230_v3, 16  ;;  %v503_v21 = vrot.slane %v501_v12, 4 }
  0x3d   : > { %v2048_v18 = vunpack.c.l.b16 %v307_v13  ;;  %v412_v19 = vrot.slane %v411_v9, 4  ;;  %v514_v22 = vshrl.u32 %v230_v3, 16  ;;  %v422_v24 = vrot.slane %v421_v14, 4 }
  0x3e   : > { %v506_v25 = vrot.slane %v504_v16, 5  ;;  %v512_v26 = vrot.slane %v510_v17, 5  ;;  %v520_v28 = vshll.u32 %v251_v11, 16  ;;  %v597_v43 = vshrl.u32 %v237_v29, 16  ;;  %v5471_v16 = vld [vmem:[%s5341_s29 + $0x58] sm:$0xf] }
  0x3f   : > { %v2078_v30 = vpack.c.b16 %v2048_v18, %v2047_v8  ;;  %v417_v32 = vsel %vm5353_vm2, %v412_v19, %v416_v1  ;;  %v516_v33 = vrot.slane %v514_v22, 4  ;;  %v427_v36 = vsel %vm5353_vm2, %v422_v24, %v426_v10  ;;  %v223_v10 = vld [vmem:[%s5341_s29 + $0x54] sm:$0xf]  ;;  %v5476_v22 = vld [vmem:[%s5341_s29 + $0x5c] sm:$0x1] }
  0x40   : > { %v2057_v37 = vunpack.c.l.b16 %v417_v32  ;;  %v507_v38 = vor.u32 %v506_v25, %v503_v21  ;;  %v522_v39 = vrot.slane %v520_v28, 5  ;;  %v2058_v40 = vunpack.c.l.b16 %v427_v36 }
  0x41   : > { %4623 = vmatmul.msk.bf16.gmra.mxu0 %vm2099_vm3, %v2078_v30  ;;  %v517_v41 = vor.u32 %v516_v33, %v512_v26  ;;  %v600_v44 = vshll.u32 %v237_v29, 16  ;;  %v606_v46 = vshll.u32 %v238_v34, 16  ;;  %v610_v47 = vshrl.u32 %v238_v34, 16  ;;  %v231_v34 = vld [vmem:[%s5341_s29 + $0x84] sm:$0xf] }
  0x42   : > { %v508_v45 = vrot.slane %v507_v38, 4  ;;  %v616_v48 = vshll.u32 %v255_v35, 16  ;;  %v2083_v49 = vpack.c.b16 %v2058_v40, %v2057_v37  ;;  %v599_v52 = vrot.slane %v597_v43, 4 }
  0x43   : > { %v518_v50 = vrot.slane %v517_v41, 4  ;;  %v602_v53 = vrot.slane %v600_v44, 5  ;;  %v608_v56 = vrot.slane %v606_v46, 5  ;;  %v612_v57 = vrot.slane %v610_v47, 4  ;;  %v232_v44 = vld [vmem:[%s5341_s29 + $0x88] sm:$0xf] }
  0x44   : > { %v513_v55 = vsel %vm5353_vm2, %v508_v45, %v512_v26  ;;  %4628 = vmatmul.msk.bf16.gmra.mxu1 %vm2099_vm3, %v2083_v49  ;;  %v618_v1 = vrot.slane %v616_v48, 5  ;;  %v309_v4 = vshrl.u32 %v213_v54, 16  ;;  %v312_v5 = vshll.u32 %v213_v54, 16  ;;  %v252_v48 = vld [vmem:[%s5341_s29 + $0x8c] sm:$0x1] }
  0x45   : > { %v523_v62 = vsel %vm5353_vm2, %v518_v50, %v522_v39  ;;  %v2065_v63 = vunpack.c.l.b16 %v513_v55  ;;  %v603_v0 = vor.u32 %v602_v53, %v599_v52  ;;  %v613_v3 = vor.u32 %v612_v57, %v608_v56 }
  0x46   : > { %v2066_v2 = vunpack.c.l.b16 %v523_v62  ;;  %v318_v7 = vshll.u32 %v5458_v58, 16  ;;  %v322_v8 = vshrl.u32 %v5458_v58, 16  ;;  %v328_v9 = vshll.u32 %v5461_v59, 16 }
  0x47   : > { %v604_v6 = vrot.slane %v603_v0, 4  ;;  %v614_v12 = vrot.slane %v613_v3, 4  ;;  %v311_v13 = vrot.slane %v309_v4, 4  ;;  %v314_v14 = vrot.slane %v312_v5, 5  ;;  %v239_v3 = vld [vmem:[%s5341_s29 + $0xb4] sm:$0xf] }
  0x48   : > { %v2087_v11 = vpack.c.b16 %v2066_v2, %v2065_v63  ;;  %v320_v18 = vrot.slane %v318_v7, 5  ;;  %v324_v19 = vrot.slane %v322_v8, 4  ;;  %v330_v21 = vrot.slane %v328_v9, 5  ;;  %v240_v7 = vld [vmem:[%s5341_s29 + $0xb8] sm:$0xf] }
  0x49   : > { %v609_v17 = vsel %vm5353_vm2, %v604_v6, %v608_v56  ;;  %v619_v24 = vsel %vm5353_vm2, %v614_v12, %v618_v1  ;;  %v315_v26 = vor.u32 %v314_v14, %v311_v13  ;;  %v429_v28 = vshrl.u32 %v223_v10, 16  ;;  %v256_v12 = vld [vmem:[%s5341_s29 + $0xbc] sm:$0x1]  ;;  %v5047_v13 = vld [vmem:[%s6844_s1 + $0x30] sm:$0xff] }
  0x4a   : > { %4632 = vmatmul.msk.bf16.gmra.mxu2 %vm2099_vm3, %v2087_v11  ;;  %v2073_v25 = vunpack.c.l.b16 %v609_v17  ;;  %v2074_v29 = vunpack.c.l.b16 %v619_v24  ;;  %v325_v30 = vor.u32 %v324_v19, %v320_v18  ;;  %v432_v32 = vshll.u32 %v223_v10, 16 }
  0x4b   : > { %v438_v33 = vshll.u32 %v5471_v16, 16  ;;  %v316_v35 = vrot.slane %v315_v26, 4  ;;  %v431_v36 = vrot.slane %v429_v28, 4  ;;  %v442_v37 = vshrl.u32 %v5471_v16, 16  ;;  %3487 = vmatpush.bf16.msra.mxu2 %v5047_v13 }
  0x4c   : > { %v448_v38 = vshll.u32 %v5476_v22, 16  ;;  %v2091_v39 = vpack.c.b16 %v2074_v29, %v2073_v25  ;;  %v326_v40 = vrot.slane %v325_v30, 4  ;;  %v434_v41 = vrot.slane %v432_v32, 5 }
  0x4d   : > { %v440_v43 = vrot.slane %v438_v33, 5  ;;  %v321_v45 = vsel %vm5353_vm2, %v316_v35, %v320_v18  ;;  %v444_v46 = vrot.slane %v442_v37, 4  ;;  %v525_v49 = vshrl.u32 %v231_v34, 16  ;;  %v215_v33 = vld [vmem:[%s5341_s29 + $0x24] sm:$0xf] }
  0x4e   : > { %v450_v47 = vrot.slane %v448_v38, 5  ;;  %4636 = vmatmul.msk.bf16.gmra.mxu3 %vm2099_vm3, %v2091_v39  ;;  %v331_v50 = vsel %vm5353_vm2, %v326_v40, %v330_v21  ;;  %v2049_v52 = vunpack.c.l.b16 %v321_v45  ;;  %v435_v53 = vor.u32 %v434_v41, %v431_v36  ;;  %v5507_v38 = vld [vmem:[%s5341_s29 + $0x28] sm:$0xf]  ;;  %v5510_v39 = vld [vmem:[%s5341_s29 + $0x2c] sm:$0x1]  ;;  %v5048_v45 = vld [vmem:[%s6844_s1 + $0x38] sm:$0xff] }
  0x4f   : > { %v528_v54 = vshll.u32 %v231_v34, 16  ;;  %v2050_v55 = vunpack.c.l.b16 %v331_v50  ;;  %v445_v56 = vor.u32 %v444_v46, %v440_v43  ;;  %v527_v57 = vrot.slane %v525_v49, 4  ;;  %v5046_v46 = vld [vmem:[%s6844_s1 + $0x28] sm:$0xff]  ;;  %3712 = vmatpush.bf16.msra.mxu3 %v5048_v45 }
  0x50   : > { %v534_v62 = vshll.u32 %v232_v44, 16  ;;  %v436_v63 = vrot.slane %v435_v53, 4  ;;  %v538_v1 = vshrl.u32 %v232_v44, 16  ;;  %v544_v2 = vshll.u32 %v252_v48, 16  ;;  %3246 = vmatpush.bf16.msra.mxu1 %v5046_v46 }
  0x51   : > { %v530_v0 = vrot.slane %v528_v54, 5  ;;  %v2079_v4 = vpack.c.b16 %v2050_v55, %v2049_v52  ;;  %v446_v5 = vrot.slane %v445_v56, 4  ;;  %v621_v18 = vshrl.u32 %v239_v3, 16 }
  0x52   : > { %v536_v6 = vrot.slane %v534_v62, 5  ;;  %v441_v8 = vsel %vm5353_vm2, %v436_v63, %v440_v43  ;;  %v540_v10 = vrot.slane %v538_v1, 4  ;;  %v546_v11 = vrot.slane %v544_v2, 5  ;;  %v644_v1 = vld [vmem:[%s5341_s29] sm:$0xe] }
  0x53   : > { %v531_v9 = vor.u32 %v530_v0, %v527_v57  ;;  %4624 = vmatmul.msk.bf16.gmra.mxu0 %vm2099_vm3, %v2079_v4  ;;  %v451_v14 = vsel %vm5353_vm2, %v446_v5, %v450_v47  ;;  %v2059_v17 = vunpack.c.l.b16 %v441_v8  ;;  %v624_v19 = vshll.u32 %v239_v3, 16  ;;  %v5049_v47 = vld [vmem:[%s6844_s1 + $0x40] sm:$0xff] }
  0x54   : > { %v2060_v21 = vunpack.c.l.b16 %v451_v14  ;;  %v541_v25 = vor.u32 %v540_v10, %v536_v6  ;;  %v630_v26 = vshll.u32 %v240_v7, 16  ;;  %v623_v28 = vrot.slane %v621_v18, 4  ;;  %3937 = vmatpush.bf16.msra.mxu0 %v5049_v47  ;;  %v4458_v10 = vld [vmem:[%s5341_s29 + $0xc] sm:$0xf] }
  0x55   : > { %v532_v24 = vrot.slane %v531_v9, 4  ;;  %v626_v29 = vrot.slane %v624_v19, 5  ;;  %v634_v30 = vshrl.u32 %v240_v7, 16  ;;  %v640_v32 = vshll.u32 %v256_v12, 16 }
  0x56   : > { %v2084_v34 = vpack.c.b16 %v2060_v21, %v2059_v17  ;;  %v542_v36 = vrot.slane %v541_v25, 4  ;;  %v632_v37 = vrot.slane %v630_v26, 5  ;;  %v716_v40 = vrot.slane %v5369_v61, 5  ;;  %v4460_v61 = vld [vmem:[%s5341_s29 + $0x18] sm:$0xf] }
  0x57   : > { %v537_v35 = vsel %vm5353_vm2, %v532_v24, %v536_v6  ;;  %v627_v43 = vor.u32 %v626_v29, %v623_v28  ;;  %v636_v44 = vrot.slane %v634_v30, 4  ;;  %v642_v49 = vrot.slane %v640_v32, 5 }
  0x58   : > { %v2067_v41 = vunpack.c.l.b16 %v537_v35  ;;  %4629 = vmatmul.msk.bf16.gmra.mxu1 %vm2099_vm3, %v2084_v34  ;;  %v547_v48 = vsel %vm5353_vm2, %v542_v36, %v546_v11  ;;  %v333_v50 = vshrl.u32 %v215_v33, 16  ;;  %v336_v52 = vshll.u32 %v215_v33, 16  ;;  %v4459_v11 = vld [vmem:[%s5341_s29 + $0x10] sm:$0xf] }
  0x59   : > { %v2068_v53 = vunpack.c.l.b16 %v547_v48  ;;  %v628_v54 = vrot.slane %v627_v43, 4  ;;  %v637_v55 = vor.u32 %v636_v44, %v632_v37  ;;  %v342_v56 = vshll.u32 %v5507_v38, 16  ;;  %v4993_v48 = vld [vmem:[%s5341_s29] sm:$0xff] }
  0x5a   : > { %v335_v57 = vrot.slane %v333_v50, 4  ;;  %v338_v62 = vrot.slane %v336_v52, 5  ;;  %v346_v63 = vshrl.u32 %v5507_v38, 16  ;;  %v352_v0 = vshll.u32 %v5510_v39, 16 }
  0x5b   : > { %v2088_v2 = vpack.c.b16 %v2068_v53, %v2067_v41  ;;  %v633_v3 = vsel %vm5353_vm2, %v628_v54, %v632_v37  ;;  %v638_v4 = vrot.slane %v637_v55, 4  ;;  %v344_v5 = vrot.slane %v342_v56, 5  ;;  %v4490_v37 = vld [vmem:[%s5341_s29 + $0x14] sm:$0x1] }
  0x5c   : > { %v2075_v6 = vunpack.c.l.b16 %v633_v3  ;;  %v339_v7 = vor.u32 %v338_v62, %v335_v57  ;;  %v348_v8 = vrot.slane %v346_v63, 4  ;;  %v354_v9 = vrot.slane %v352_v0, 5  ;;  %v4461_v63 = vld [vmem:[%s5341_s29 + $0x1c] sm:$0xf]  ;;  %v645_v0 = vld [vmem:[%s5341_s29 + $0xc] sm:$0xe] }
  0x5d   : > { %4633 = vmatmul.msk.bf16.gmra.mxu2 %vm2099_vm3, %v2088_v2  ;;  %v643_v12 = vsel %vm5353_vm2, %v638_v4, %v642_v49  ;;  %v4442_v13 = vrot.slane %v644_v1, 9  ;;  %v713_v21 = vrot.slane %v5366_v60, 5  ;;  %v873_v24 = vshrl.u32 %v4458_v10, 16 }
  0x5e   : > { %v2076_v14 = vunpack.c.l.b16 %v643_v12  ;;  %v340_v17 = vrot.slane %v339_v7, 4  ;;  %v349_v18 = vor.u32 %v348_v8, %v344_v5  ;;  %v876_v25 = vshll.u32 %v4458_v10, 16  ;;  %v5009_v7 = vld [vmem:[%s5341_s29 + $0xc] sm:$0xff] }
  0x5f   : > { %v882_v26 = vshll.u32 %v4459_v11, 16  ;;  %v886_v28 = vshrl.u32 %v4459_v11, 16  ;;  %v714_v33 = vsel %vm5536_vm6, %v4442_v13, %v713_v21  ;;  %v715_v35 = vrot.slane %v713_v21, 4 }
  0x60   : > { %v2092_v29 = vpack.c.b16 %v2076_v14, %v2075_v6  ;;  %v345_v30 = vsel %vm5353_vm2, %v340_v17, %v344_v5  ;;  %v350_v32 = vrot.slane %v349_v18, 4  ;;  %v2446_v36 = vunpack.c.l.b16 %v714_v33  ;;  %v4491_v18 = vld [vmem:[%s5341_s29 + $0x20] sm:$0x1] }
  0x61   : > { %v2051_v34 = vunpack.c.l.b16 %v345_v30  ;;  %v875_v41 = vrot.slane %v873_v24, 4  ;;  %v878_v43 = vrot.slane %v876_v25, 5  ;;  %v884_v44 = vrot.slane %v882_v26, 5  ;;  %v4994_v26 = vld [vmem:[%s5341_s29 + $0xc] sm:$0xff] }
  0x62   : > { %4637 = vmatmul.msk.bf16.gmra.mxu3 %vm2099_vm3, %v2092_v29  ;;  %v355_v60 = vsel %vm5353_vm2, %v350_v32, %v354_v9  ;;  %v888_v45 = vrot.slane %v886_v28, 4  ;;  %v717_v47 = vsel %vm5536_vm6, %v715_v35, %v716_v40  ;;  %v892_v53 = vshll.u32 %v4490_v37, 16  ;;  %v4463_v37 = vld [vmem:[%s5341_s29 + $0x28] sm:$0xf] }
  0x63   : > { %v2052_v46 = vunpack.c.l.b16 %v355_v60  ;;  %v2447_v49 = vunpack.c.l.b16 %v717_v47  ;;  %v879_v50 = vor.u32 %v878_v43, %v875_v41  ;;  %v720_v40 = vrot.slane %v5412_v23, 5  ;;  %v646_v60 = vld [vmem:[%s5341_s29 + $0x18] sm:$0xe] }
  0x64   : > { %v889_v52 = vor.u32 %v888_v45, %v884_v44  ;;  %v894_v62 = vrot.slane %v892_v53, 5  ;;  %v897_v1 = vshrl.u32 %v4460_v61, 16  ;;  %v900_v2 = vshll.u32 %v4460_v61, 16 }
  0x65   : > { %v2080_v54 = vpack.c.b16 %v2052_v46, %v2051_v34  ;;  %v2478_v55 = vpack.c.b16 %v2447_v49, %v2446_v36  ;;  %v880_v56 = vrot.slane %v879_v50, 4  ;;  %v906_v5 = vshll.u32 %v4461_v63, 16  ;;  %v4462_v34 = vld [vmem:[%s5341_s29 + $0x24] sm:$0xf] }
  0x66   : > { %v890_v57 = vrot.slane %v889_v52, 4  ;;  %v910_v6 = vshrl.u32 %v4461_v63, 16  ;;  %v4443_v8 = vrot.slane %v645_v0, 9  ;;  %v722_v9 = vrot.slane %v720_v40, 4  ;;  %v5010_v52 = vld [vmem:[%s5341_s29 + $0x18] sm:$0xff] }
  0x67   : > { %4625 = vmatmul.msk.bf16.gmra.mxu0 %vm2099_vm3, %v2080_v54  ;;  %v885_v3 = vsel %vm5353_vm2, %v880_v56, %v884_v44  ;;  %v723_v23 = vrot.slane %v5415_v27, 5  ;;  %v899_v12 = vrot.slane %v897_v1, 4  ;;  %v902_v13 = vrot.slane %v900_v2, 5  ;;  %v4492_v63 = vld [vmem:[%s5341_s29 + $0x2c] sm:$0x1] }
  0x68   : > { %4706 = vmatmul.msk.bf16.vlgmr.msrb.gmra.mxu1 %vm2099_vm3, %v4993_v48  ;;  %v895_v4 = vsel %vm5353_vm2, %v890_v57, %v894_v62  ;;  %v2912_v10 = vunpack.c.l.b16 %v885_v3  ;;  %v908_v14 = vrot.slane %v906_v5, 5  ;;  %v912_v17 = vrot.slane %v910_v6, 4 }
  0x69   : > { %v2913_v11 = vunpack.c.l.b16 %v895_v4  ;;  %v721_v21 = vsel %vm5536_vm6, %v4443_v8, %v720_v40  ;;  %v724_v24 = vsel %vm5536_vm6, %v722_v9, %v723_v23  ;;  %v903_v27 = vor.u32 %v902_v13, %v899_v12  ;;  %v4995_v4 = vld [vmem:[%s5341_s29 + $0x18] sm:$0xff] }
  0x6a   : > { %v913_v28 = vor.u32 %v912_v17, %v908_v14  ;;  %v916_v29 = vshll.u32 %v4491_v18, 16  ;;  %v2448_v30 = vunpack.c.l.b16 %v721_v21  ;;  %v2449_v32 = vunpack.c.l.b16 %v724_v24  ;;  %v647_v17 = vld [vmem:[%s5341_s29 + $0x24] sm:$0xe] }
  0x6b   : > { %v2944_v25 = vpack.c.b16 %v2913_v11, %v2912_v10  ;;  %v904_v33 = vrot.slane %v903_v27, 4  ;;  %v727_v43 = vrot.slane %v5458_v58, 5  ;;  %v921_v44 = vshrl.u32 %v4462_v34, 16  ;;  %v4464_v10 = vld [vmem:[%s5341_s29 + $0x30] sm:$0xf]  ;;  %v5011_v27 = vld [vmem:[%s5341_s29 + $0x24] sm:$0xff] }
  0x6c   : > { %v914_v35 = vrot.slane %v913_v28, 4  ;;  %v918_v36 = vrot.slane %v916_v29, 5  ;;  %v2479_v41 = vpack.c.b16 %v2449_v32, %v2448_v30  ;;  %v924_v46 = vshll.u32 %v4462_v34, 16  ;;  %v4465_v11 = vld [vmem:[%s5341_s29 + $0x34] sm:$0xf] }
  0x6d   : > { %4726 = vmatmul.msk.bf16.vlgmr.msrb.gmra.mxu2 %vm2099_vm3, %v2478_v55  ;;  %v909_v45 = vsel %vm5353_vm2, %v904_v33, %v908_v14  ;;  %v930_v47 = vshll.u32 %v4463_v37, 16  ;;  %v934_v48 = vshrl.u32 %v4463_v37, 16  ;;  %v4444_v50 = vrot.slane %v646_v60, 9 }
  0x6e   : > { %v919_v49 = vsel %vm5353_vm2, %v914_v35, %v918_v36  ;;  %v2914_v53 = vunpack.c.l.b16 %v909_v45  ;;  %v729_v54 = vrot.slane %v727_v43, 4  ;;  %v730_v58 = vrot.slane %v5461_v59, 5  ;;  %v4493_v36 = vld [vmem:[%s5341_s29 + $0x38] sm:$0x1] }
  0x6f   : > { %v923_v55 = vrot.slane %v921_v44, 4  ;;  %v2915_v56 = vunpack.c.l.b16 %v919_v49  ;;  %v926_v57 = vrot.slane %v924_v46, 5  ;;  %v932_v62 = vrot.slane %v930_v47, 5  ;;  %v4467_v49 = vld [vmem:[%s5341_s29 + $0x40] sm:$0xf] }
  0x70   : > { %v936_v61 = vrot.slane %v934_v48, 4  ;;  %v728_v40 = vsel %vm5536_vm6, %v4444_v50, %v727_v43  ;;  %v731_v0 = vsel %vm5536_vm6, %v729_v54, %v730_v58  ;;  %v940_v59 = vshll.u32 %v4492_v63, 16  ;;  %v4466_v48 = vld [vmem:[%s5341_s29 + $0x3c] sm:$0xf]  ;;  %v5207_v58 = vld [vmem:[%s5341_s29 + $0x34] sm:$0xf] }
  0x71   : > { %v2945_v1 = vpack.c.b16 %v2915_v56, %v2914_v53  ;;  %v927_v2 = vor.u32 %v926_v57, %v923_v55  ;;  %v2450_v5 = vunpack.c.l.b16 %v728_v40  ;;  %v2451_v6 = vunpack.c.l.b16 %v731_v0  ;;  %v648_v56 = vld [vmem:[%s5341_s29 + $0x30] sm:$0xe] }
  0x72   : > { %4810 = vmatmul.msk.bf16.vlgmr.msrb.gmra.mxu3 %vm2099_vm3, %v5009_v7  ;;  %v937_v3 = vor.u32 %v936_v61, %v932_v62  ;;  %v942_v9 = vrot.slane %v940_v59, 5  ;;  %v734_v12 = vrot.slane %v5507_v38, 5  ;;  %v945_v18 = vshrl.u32 %v4464_v10, 16  ;;  %v5208_v59 = vld [vmem:[%s5341_s29 + $0x38] sm:$0x1] }
  0x73   : > { %v928_v7 = vrot.slane %v927_v2, 4  ;;  %v2480_v23 = vpack.c.b16 %v2451_v6, %v2450_v5  ;;  %v948_v21 = vshll.u32 %v4464_v10, 16  ;;  %v954_v24 = vshll.u32 %v4465_v11, 16  ;;  %v5012_v5 = vld [vmem:[%s5341_s29 + $0x30] sm:$0xff] }
  0x74   : > { %v938_v8 = vrot.slane %v937_v3, 4  ;;  %v736_v28 = vrot.slane %v734_v12, 4  ;;  %v737_v38 = vrot.slane %v5510_v39, 5  ;;  %v947_v32 = vrot.slane %v945_v18, 4  ;;  %v4996_v39 = vld [vmem:[%s5341_s29 + $0x24] sm:$0xff] }
  0x75   : > { %v933_v13 = vsel %vm5353_vm2, %v928_v7, %v932_v62  ;;  %v950_v33 = vrot.slane %v948_v21, 5  ;;  %v956_v34 = vrot.slane %v954_v24, 5  ;;  %v964_v45 = vshll.u32 %v4493_v36, 16  ;;  %v4997_v24 = vld [vmem:[%s5341_s29 + $0x30] sm:$0xff] }
  0x76   : > { %v943_v14 = vsel %vm5353_vm2, %v938_v8, %v942_v9  ;;  %v2916_v29 = vunpack.c.l.b16 %v933_v13  ;;  %v741_v55 = vrot.slane %v5207_v58, 5  ;;  %v969_v57 = vshrl.u32 %v4466_v48, 16 }
  0x77   : > { %4830 = vmatmul.msk.bf16.vlgmr.msrb.gmra.mxu0 %vm2099_vm3, %v2944_v25  ;;  %v958_v25 = vshrl.u32 %v4465_v11, 16  ;;  %v2917_v30 = vunpack.c.l.b16 %v943_v14  ;;  %v951_v43 = vor.u32 %v950_v33, %v947_v32  ;;  %v966_v53 = vrot.slane %v964_v45, 5  ;;  %v4494_v11 = vld [vmem:[%s5341_s29 + $0x44] sm:$0x1]  ;;  %v4468_v32 = vld [vmem:[%s5341_s29 + $0x48] sm:$0xf] }
  0x78   : > { %4707 = vmatmul.msk.bf16.gmra.mxu1 %vm2099_vm3, %v4994_v26  ;;  %v4445_v26 = vrot.slane %v647_v17, 9  ;;  %v972_v62 = vshll.u32 %v4466_v48, 16  ;;  %v978_v61 = vshll.u32 %v4467_v49, 16  ;;  %v982_v63 = vshrl.u32 %v4467_v49, 16  ;;  %v4469_v33 = vld [vmem:[%s5341_s29 + $0x4c] sm:$0xf] }
  0x79   : > { %v960_v35 = vrot.slane %v958_v25, 4  ;;  %v2946_v60 = vpack.c.b16 %v2917_v30, %v2916_v29  ;;  %v952_v50 = vrot.slane %v951_v43, 4  ;;  %v4446_v2 = vrot.slane %v648_v56, 9  ;;  %v5013_v48 = vld [vmem:[%s5341_s29 + $0x3c] sm:$0xff] }
  0x7a   : > { %v735_v37 = vsel %vm5536_vm6, %v4445_v26, %v734_v12  ;;  %v743_v3 = vrot.slane %v741_v55, 4  ;;  %v971_v6 = vrot.slane %v969_v57, 4  ;;  %v974_v7 = vrot.slane %v972_v62, 5  ;;  %v4495_v62 = vld [vmem:[%s5341_s29 + $0x50] sm:$0x1] }
  0x7b   : > { %v961_v44 = vor.u32 %v960_v35, %v956_v34  ;;  %v2452_v46 = vunpack.c.l.b16 %v735_v37  ;;  %v957_v0 = vsel %vm5353_vm2, %v952_v50, %v956_v34  ;;  %v980_v8 = vrot.slane %v978_v61, 5 }
  0x7c   : > { %v984_v9 = vrot.slane %v982_v63, 4  ;;  %v742_v12 = vsel %vm5536_vm6, %v4446_v2, %v741_v55  ;;  %v975_v14 = vor.u32 %v974_v7, %v971_v6  ;;  %v988_v18 = vshll.u32 %v4494_v11, 16 }
  0x7d   : > { %4727 = vmatmul.msk.bf16.gmra.mxu2 %vm2099_vm3, %v2479_v41  ;;  %v738_v41 = vsel %vm5536_vm6, %v736_v28, %v737_v38  ;;  %v993_v43 = vshrl.u32 %v4468_v32, 16  ;;  %v1002_v45 = vshll.u32 %v4469_v33, 16 }
  0x7e   : > { %v2453_v47 = vunpack.c.l.b16 %v738_v41  ;;  %v985_v17 = vor.u32 %v984_v9, %v980_v8  ;;  %v976_v38 = vrot.slane %v975_v14, 4  ;;  %v990_v30 = vrot.slane %v988_v18, 5 }
  0x7f   : > { %v1004_v56 = vrot.slane %v1002_v45, 5  ;;  %v755_v14 = vrot.slane %v5425_v42, 5 }
  0x80   : > { %v2481_v54 = vpack.c.b16 %v2453_v47, %v2452_v46  ;;  %v986_v29 = vrot.slane %v985_v17, 4  ;;  %v981_v36 = vsel %vm5353_vm2, %v976_v38, %v980_v8  ;;  %v1006_v46 = vshrl.u32 %v4469_v33, 16 }
  0x81   : > { %v2920_v47 = vunpack.c.l.b16 %v981_v36  ;;  %v757_v33 = vrot.slane %v755_v14, 4 }
  0x82   : > { %4811 = vmatmul.msk.bf16.gmra.mxu3 %vm2099_vm3, %v5010_v52  ;;  %v962_v52 = vrot.slane %v961_v44, 4  ;;  %v991_v37 = vsel %vm5353_vm2, %v986_v29, %v990_v30  ;;  %v996_v44 = vshll.u32 %v4468_v32, 16  ;;  %v1008_v57 = vrot.slane %v1006_v46, 4  ;;  %v5014_v30 = vld [vmem:[%s5341_s29 + $0x48] sm:$0xff]  ;;  %v4496_v46 = vld [vmem:[%s5341_s29 + $0x5c] sm:$0x1] }
  0x83   : > { %v2921_v49 = vunpack.c.l.b16 %v991_v37 }
  0x84   : > { %v998_v55 = vrot.slane %v996_v44, 5  ;;  %v1009_v2 = vor.u32 %v1008_v57, %v1004_v56 }
  0x86   : > { %v1010_v8 = vrot.slane %v1009_v2, 4 }
  0x87   : > { %4831 = vmatmul.msk.bf16.gmra.mxu0 %vm2099_vm3, %v2945_v1  ;;  %v967_v1 = vsel %vm5353_vm2, %v962_v52, %v966_v53 }
  0x88   : > { %4708 = vmatmul.msk.bf16.gmra.mxu1 %vm2099_vm3, %v4995_v4  ;;  %v744_v4 = vrot.slane %v5208_v59, 5  ;;  %v2919_v10 = vunpack.c.l.b16 %v967_v1 }
  0x8a   : > { %v745_v13 = vsel %vm5536_vm6, %v743_v3, %v744_v4  ;;  %v1012_v3 = vshll.u32 %v4495_v62, 16  ;;  %v4998_v4 = vld [vmem:[%s5341_s29 + $0x3c] sm:$0xff] }
  0x8b   : > { %v2455_v26 = vunpack.c.l.b16 %v745_v13  ;;  %v4471_v13 = vld [vmem:[%s5341_s29 + $0x58] sm:$0xf]  ;;  %v4472_v62 = vld [vmem:[%s5341_s29 + $0x60] sm:$0xf] }
  0x8c   : > { %v1014_v9 = vrot.slane %v1012_v3, 5  ;;  %v1030_v38 = vshrl.u32 %v4471_v13, 16 }
  0x8d   : > { %4728 = vmatmul.msk.bf16.gmra.mxu2 %vm2099_vm3, %v2480_v23  ;;  %v2918_v23 = vunpack.c.l.b16 %v957_v0  ;;  %v2948_v0 = vpack.c.b16 %v2921_v49, %v2920_v47 }
  0x8e   : > { %v1015_v18 = vsel %vm5353_vm2, %v1010_v8, %v1014_v9  ;;  %v1032_v44 = vrot.slane %v1030_v38, 4 }
  0x8f   : > { %v2947_v21 = vpack.c.b16 %v2919_v10, %v2918_v23  ;;  %v2923_v37 = vunpack.c.l.b16 %v1015_v18 }
  0x92   : > { %4812 = vmatmul.msk.bf16.gmra.mxu3 %vm2099_vm3, %v5011_v27  ;;  %v2454_v27 = vunpack.c.l.b16 %v742_v12  ;;  %v4470_v12 = vld [vmem:[%s5341_s29 + $0x54] sm:$0xf] }
  0x94   : > { %v2482_v35 = vpack.c.b16 %v2455_v26, %v2454_v27  ;;  %v1020_v27 = vshll.u32 %v4470_v12, 16  ;;  %v1026_v26 = vshll.u32 %v4471_v13, 16 }
  0x97   : > { %4832 = vmatmul.msk.bf16.gmra.mxu0 %vm2099_vm3, %v2946_v60  ;;  %v748_v60 = vrot.slane %v5381_v15, 5  ;;  %v995_v15 = vrot.slane %v993_v43, 4  ;;  %v1028_v43 = vrot.slane %v1026_v26, 5  ;;  %v765_v26 = vrot.slane %v5476_v22, 5 }
  0x98   : > { %4709 = vmatmul.msk.bf16.gmra.mxu1 %vm2099_vm3, %v4996_v39  ;;  %v649_v39 = vld [vmem:[%s5341_s29 + $0x3c] sm:$0xe] }
  0x99   : > { %v4447_v52 = vrot.slane %v649_v39, 9  ;;  %v750_v53 = vrot.slane %v748_v60, 4  ;;  %v1022_v39 = vrot.slane %v1020_v27, 5 }
  0x9b   : > { %v749_v61 = vsel %vm5536_vm6, %v4447_v52, %v748_v60  ;;  %v4999_v52 = vld [vmem:[%s5341_s29 + $0x48] sm:$0xff] }
  0x9d   : > { %v5620_v40 = vpop.f32.mrf.mxu1  ;;  %4729 = vmatmul.msk.bf16.gmra.mxu2 %vm2099_vm3, %v2481_v54  ;;  %v751_v54 = vrot.slane %v5386_v20, 5  ;;  %v999_v20 = vor.u32 %v998_v55, %v995_v15  ;;  %v1036_v15 = vshll.u32 %v4496_v46, 16  ;;  %v5000_v46 = vld [vmem:[%s5341_s29 + $0x54] sm:$0xff] }
  0x9f   : > { %v752_v63 = vsel %vm5536_vm6, %v750_v53, %v751_v54  ;;  %v1000_v7 = vrot.slane %v999_v20, 4  ;;  %v1033_v54 = vor.u32 %v1032_v44, %v1028_v43  ;;  %v1038_v2 = vrot.slane %v1036_v15, 5 }
  0xa0   : > { %v2457_v6 = vunpack.c.l.b16 %v752_v63 }
  0xa1   : > { %v1005_v17 = vsel %vm5353_vm2, %v1000_v7, %v1004_v56  ;;  %v1034_v20 = vrot.slane %v1033_v54, 4  ;;  %v762_v7 = vrot.slane %v5471_v16, 5 }
  0xa2   : > { %4813 = vmatmul.msk.bf16.gmra.mxu3 %vm2099_vm3, %v5012_v5  ;;  %v2456_v5 = vunpack.c.l.b16 %v749_v61  ;;  %v2922_v36 = vunpack.c.l.b16 %v1005_v17  ;;  %v4473_v61 = vld [vmem:[%s5341_s29 + $0x64] sm:$0xf] }
  0xa3   : > { %v1054_v8 = vshrl.u32 %v4473_v61, 16  ;;  %v1039_v13 = vsel %vm5353_vm2, %v1034_v20, %v1038_v2  ;;  %v764_v27 = vrot.slane %v762_v7, 4  ;;  %v5209_v2 = vld [vmem:[%s5341_s29 + $0x64] sm:$0xf] }
  0xa4   : > { %v2483_v10 = vpack.c.b16 %v2457_v6, %v2456_v5  ;;  %v2949_v49 = vpack.c.b16 %v2923_v37, %v2922_v36  ;;  %v1044_v5 = vshll.u32 %v4472_v62, 16  ;;  %v1050_v6 = vshll.u32 %v4473_v61, 16 }
  0xa5   : > { %v5636_v25 = vpop.f32.mrf.mxu1  ;;  %v1056_v38 = vrot.slane %v1054_v8, 4 }
  0xa6   : > { %v1046_v18 = vrot.slane %v1044_v5, 5  ;;  %v652_v5 = vld [vmem:[%s5341_s29 + $0x60] sm:$0xe] }
  0xa7   : > { %v5638_v28 = vpop.f32.mrf.mxu2  ;;  %4833 = vmatmul.msk.bf16.gmra.mxu0 %vm2099_vm3, %v2947_v21  ;;  %v650_v21 = vld [vmem:[%s5341_s29 + $0x48] sm:$0xe] }
  0xa8   : > { %4710 = vmatmul.msk.bf16.gmra.mxu1 %vm2099_vm3, %v4997_v24  ;;  %v1017_v24 = vshrl.u32 %v4470_v12, 16  ;;  %v4448_v42 = vrot.slane %v650_v21, 9  ;;  %v1052_v21 = vrot.slane %v1050_v6, 5 }
  0xaa   : > { %v5644_v34 = vpop.f32.mrf.mxu0  ;;  %v1019_v60 = vrot.slane %v1017_v24, 4  ;;  %v5015_v24 = vld [vmem:[%s5341_s29 + $0x54] sm:$0xff]  ;;  %v1057_v22 = vor.u32 %v1056_v38, %v1052_v21 }
  0xab   : > { %v5650_v41 = vpop.f32.mrf.mxu3 }
  0xac   : > { %v1023_v53 = vor.u32 %v1022_v39, %v1019_v60  ;;  %v766_v39 = vsel %vm5536_vm6, %v764_v27, %v765_v26  ;;  %v1058_v54 = vrot.slane %v1057_v22, 4 }
  0xad   : > { %4730 = vmatmul.msk.bf16.gmra.mxu2 %vm2099_vm3, %v2482_v35  ;;  %v758_v35 = vrot.slane %v5430_v51, 5 }
  0xaf   : > { %v5656_v50 = vpop.f32.mrf.mxu1  ;;  %v5659_v58 = vpop.f32.mrf.mxu2  ;;  %v759_v51 = vsel %vm5536_vm6, %v757_v33, %v758_v35  ;;  %v4497_v33 = vld [vmem:[%s5341_s29 + $0x68] sm:$0x1] }
  0xb0   : > { %v2459_v56 = vunpack.c.l.b16 %v759_v51 }
  0xb2   : > { %4814 = vmatmul.msk.bf16.gmra.mxu3 %vm2099_vm3, %v5013_v48  ;;  %v5667_v1 = vpop.f32.mrf.mxu0  ;;  %v756_v48 = vsel %vm5536_vm6, %v4448_v42, %v755_v14  ;;  %v2925_v42 = vunpack.c.l.b16 %v1039_v13 }
  0xb3   : > { %v5669_v59 = vpop.f32.mrf.mxu3  ;;  %v2458_v55 = vunpack.c.l.b16 %v756_v48 }
  0xb5   : > { %v2484_v3 = vpack.c.b16 %v2459_v56, %v2458_v55  ;;  %v4474_v55 = vld [vmem:[%s5341_s29 + $0x6c] sm:$0xf]  ;;  %v4475_v56 = vld [vmem:[%s5341_s29 + $0x70] sm:$0xf] }
  0xb6   : > { %v1065_v6 = vshrl.u32 %v4474_v55, 16  ;;  %v1074_v8 = vshll.u32 %v4475_v56, 16 }
  0xb7   : > { %4834 = vmatmul.msk.bf16.gmra.mxu0 %vm2099_vm3, %v2948_v0  ;;  %v5673_v23 = vpop.f32.mrf.mxu1  ;;  %v1024_v0 = vrot.slane %v1023_v53, 4 }
  0xb8   : > { %4711 = vmatmul.msk.bf16.gmra.mxu1 %vm2099_vm3, %v4998_v4  ;;  %v1041_v4 = vshrl.u32 %v4472_v62, 16  ;;  %v1067_v26 = vrot.slane %v1065_v6, 4  ;;  %v4477_v6 = vld [vmem:[%s5341_s29 + $0x7c] sm:$0xf] }
  0xb9   : > { %v1029_v12 = vsel %vm5353_vm2, %v1024_v0, %v1028_v43  ;;  %v1060_v43 = vshll.u32 %v4497_v33, 16 }
  0xba   : > { %v5676_v11 = vpop.f32.mrf.mxu2  ;;  %v1043_v17 = vrot.slane %v1041_v4, 4 }
  0xbb   : > { %v1062_v15 = vrot.slane %v1060_v43, 5 }
  0xbc   : > { %v1047_v37 = vor.u32 %v1046_v18, %v1043_v17  ;;  %v5016_v18 = vld [vmem:[%s5341_s29 + $0x60] sm:$0xff] }
  0xbd   : > { %4731 = vmatmul.msk.bf16.gmra.mxu2 %vm2099_vm3, %v2483_v10  ;;  %v651_v10 = vld [vmem:[%s5341_s29 + $0x54] sm:$0xe]  ;;  %v1063_v20 = vsel %vm5353_vm2, %v1058_v54, %v1062_v15 }
  0xbe   : > { %v5686_v29 = vpop.f32.mrf.mxu0  ;;  %v4449_v16 = vrot.slane %v651_v10, 9  ;;  %v1048_v53 = vrot.slane %v1047_v37, 4  ;;  %v1078_v10 = vshrl.u32 %v4475_v56, 16  ;;  %v4498_v37 = vld [vmem:[%s5341_s29 + $0x74] sm:$0x1] }
  0xbf   : > { %v5690_v32 = vpop.f32.mrf.mxu3 }
  0xc0   : > { %v763_v60 = vsel %vm5536_vm6, %v4449_v16, %v762_v7  ;;  %v1053_v0 = vsel %vm5353_vm2, %v1048_v53, %v1052_v21  ;;  %v1068_v7 = vshll.u32 %v4474_v55, 16  ;;  %v4450_v16 = vrot.slane %v652_v5, 9  ;;  %v4476_v5 = vld [vmem:[%s5341_s29 + $0x78] sm:$0xf] }
  0xc1   : > { %v5693_v45 = vpop.f32.mrf.mxu1  ;;  %v2460_v51 = vunpack.c.l.b16 %v763_v60  ;;  %v2926_v21 = vunpack.c.l.b16 %v1053_v0 }
  0xc2   : > { %4815 = vmatmul.msk.bf16.gmra.mxu3 %vm2099_vm3, %v5014_v30  ;;  %v5697_v47 = vpop.f32.mrf.mxu2  ;;  %v2924_v30 = vunpack.c.l.b16 %v1029_v12  ;;  %v5210_v12 = vld [vmem:[%s5341_s29 + $0x68] sm:$0x1]  ;;  %v1070_v38 = vrot.slane %v1068_v7, 5  ;;  %v5211_v7 = vld [vmem:[%s5341_s29 + $0x70] sm:$0xf] }
  0xc3   : > { %v772_v13 = vrot.slane %v5210_v12, 5  ;;  %v653_v12 = vld [vmem:[%s5341_s29 + $0x6c] sm:$0xe] }
  0xc4   : > { %v2950_v44 = vpack.c.b16 %v2925_v42, %v2924_v30  ;;  %v1076_v30 = vrot.slane %v1074_v8, 5  ;;  %v1080_v42 = vrot.slane %v1078_v10, 4  ;;  %v1071_v43 = vor.u32 %v1070_v38, %v1067_v26  ;;  %v5212_v38 = vld [vmem:[%s5341_s29 + $0x74] sm:$0x1] }
  0xc5   : > { %v776_v8 = vrot.slane %v5211_v7, 5 }
  0xc6   : > { %v5704_v57 = vpop.f32.mrf.mxu0 }
  0xc7   : > { %4835 = vmatmul.msk.bf16.gmra.mxu0 %vm2099_vm3, %v2949_v49  ;;  %v5709_v63 = vpop.f32.mrf.mxu3  ;;  %v2461_v49 = vunpack.c.l.b16 %v766_v39 }
  0xc8   : > { %4712 = vmatmul.msk.bf16.gmra.mxu1 %vm2099_vm3, %v4999_v52 }
  0xc9   : > { %v5713_v9 = vpop.f32.mrf.mxu1  ;;  %v2485_v62 = vpack.c.b16 %v2461_v49, %v2460_v51  ;;  %v5001_v49 = vld [vmem:[%s5341_s29 + $0x60] sm:$0xff] }
  0xcd   : > { %v5720_v14 = vpop.f32.mrf.mxu2  ;;  %4732 = vmatmul.msk.bf16.gmra.mxu2 %vm2099_vm3, %v2484_v3  ;;  %v769_v3 = vrot.slane %v5209_v2, 5 }
  0xcf   : > { %v771_v27 = vrot.slane %v769_v3, 4  ;;  %v770_v60 = vsel %vm5536_vm6, %v4450_v16, %v769_v3  ;;  %v1102_v16 = vshrl.u32 %v4477_v6, 16 }
  0xd0   : > { %v5726_v35 = vpop.f32.mrf.mxu0  ;;  %v2462_v15 = vunpack.c.l.b16 %v770_v60  ;;  %v4451_v60 = vrot.slane %v653_v12, 9 }
  0xd1   : > { %v5728_v36 = vpop.f32.mrf.mxu3  ;;  %v773_v39 = vsel %vm5536_vm6, %v771_v27, %v772_v13 }
  0xd2   : > { %4816 = vmatmul.msk.bf16.gmra.mxu3 %vm2099_vm3, %v5015_v24  ;;  %v2927_v24 = vunpack.c.l.b16 %v1063_v20  ;;  %v2463_v55 = vunpack.c.l.b16 %v773_v39  ;;  %v778_v39 = vrot.slane %v776_v8, 4 }
  0xd4   : > { %v2951_v22 = vpack.c.b16 %v2927_v24, %v2926_v21  ;;  %v2486_v3 = vpack.c.b16 %v2463_v55, %v2462_v15  ;;  %v1092_v21 = vshll.u32 %v4476_v5, 16  ;;  %v1098_v24 = vshll.u32 %v4477_v6, 16 }
  0xd5   : > { %v5736_v48 = vpop.f32.mrf.mxu1  ;;  %v5738_v52 = vpop.f32.mrf.mxu2  ;;  %v1104_v15 = vrot.slane %v1102_v16, 4 }
  0xd7   : > { %4836 = vmatmul.msk.bf16.gmra.mxu0 %vm2099_vm3, %v2950_v44  ;;  %v1081_v44 = vor.u32 %v1080_v42, %v1076_v30  ;;  %v779_v42 = vrot.slane %v5212_v38, 5 }
  0xd8   : > { %4713 = vmatmul.msk.bf16.gmra.mxu1 %vm2099_vm3, %v5000_v46  ;;  %v5744_v61 = vpop.f32.mrf.mxu0  ;;  %v1084_v46 = vshll.u32 %v4498_v37, 16  ;;  %v5017_v37 = vld [vmem:[%s5341_s29 + $0x6c] sm:$0xff] }
  0xd9   : > { %v5751_v4 = vpop.f32.mrf.mxu3  ;;  %v1082_v0 = vrot.slane %v1081_v44, 4 }
  0xda   : > { %v1086_v20 = vrot.slane %v1084_v46, 5 }
  0xdd   : > { %4733 = vmatmul.msk.bf16.gmra.mxu2 %vm2099_vm3, %v2485_v62  ;;  %v5756_v17 = vpop.f32.mrf.mxu1  ;;  %v1072_v62 = vrot.slane %v1071_v43, 4 }
  0xdf   : > { %v1077_v10 = vsel %vm5353_vm2, %v1072_v62, %v1076_v30  ;;  %v4499_v62 = vld [vmem:[%s5341_s29 + $0x80] sm:$0x1] }
  0xe0   : > { %v5759_v33 = vpop.f32.mrf.mxu2 }
  0xe2   : > { %4817 = vmatmul.msk.bf16.gmra.mxu3 %vm2099_vm3, %v5016_v18  ;;  %v1089_v18 = vshrl.u32 %v4476_v5, 16  ;;  %v5002_v5 = vld [vmem:[%s5341_s29 + $0x6c] sm:$0xff] }
  0xe4   : > { %v5767_v51 = vpop.f32.mrf.mxu0  ;;  %v1091_v46 = vrot.slane %v1089_v18, 4 }
  0xe5   : > { %v5770_v53 = vpop.f32.mrf.mxu3  ;;  %v2364_v54 = vpop.f32.mrf.mxu1 }
  0xe6   : > { %v2365_v56 = vadd.f32 %v2364_v54, %v5644_v34  ;;  %v1087_v34 = vsel %vm5353_vm2, %v1082_v0, %v1086_v20  ;;  %v1100_v54 = vrot.slane %v1098_v24, 5  ;;  %v777_v0 = vsel %vm5536_vm6, %v4451_v60, %v776_v8 }
  0xe7   : > { %4837 = vmatmul.msk.bf16.gmra.mxu0 %vm2099_vm3, %v2951_v22  ;;  %v2928_v22 = vunpack.c.l.b16 %v1077_v10  ;;  %v2929_v43 = vunpack.c.l.b16 %v1087_v34  ;;  %v1108_v10 = vshll.u32 %v4499_v62, 16 }
  0xe8   : > { %v5774_v2 = vpop.f32.mrf.mxu2  ;;  %4714 = vmatmul.msk.bf16.gmra.mxu1 %vm2099_vm3, %v5001_v49  ;;  %v1094_v49 = vrot.slane %v1092_v21, 5  ;;  %v1105_v7 = vor.u32 %v1104_v15, %v1100_v54 }
  0xe9   : > { %v2952_v20 = vpack.c.b16 %v2929_v43, %v2928_v22  ;;  %v1110_v38 = vrot.slane %v1108_v10, 5  ;;  %v4479_v22 = vld [vmem:[%s5341_s29 + $0x88] sm:$0xf]  ;;  %v5213_v43 = vld [vmem:[%s5341_s29 + $0x7c] sm:$0xf] }
  0xea   : > { %v1095_v6 = vor.u32 %v1094_v49, %v1091_v46  ;;  %v654_v46 = vld [vmem:[%s5341_s29 + $0x78] sm:$0xe] }
  0xec   : > { %v5785_v13 = vpop.f32.mrf.mxu0  ;;  %v1096_v16 = vrot.slane %v1095_v6, 4 }
  0xed   : > { %v5787_v27 = vpop.f32.mrf.mxu3  ;;  %4734 = vmatmul.msk.bf16.gmra.mxu2 %vm2099_vm3, %v2486_v3  ;;  %v2366_v26 = vpop.f32.mrf.mxu1 }
  0xee   : > { %v2367_v30 = vadd.f32 %v2366_v26, %v5667_v1  ;;  %v780_v1 = vsel %vm5536_vm6, %v778_v39, %v779_v42  ;;  %v1106_v26 = vrot.slane %v1105_v7, 4  ;;  %v4478_v42 = vld [vmem:[%s5341_s29 + $0x84] sm:$0xf]  ;;  %v5018_v7 = vld [vmem:[%s5341_s29 + $0x78] sm:$0xff] }
  0xef   : > { %v2465_v18 = vunpack.c.l.b16 %v780_v1  ;;  %v1116_v49 = vshll.u32 %v4478_v42, 16  ;;  %v1126_v1 = vshrl.u32 %v4479_v22, 16 }
  0xf0   : > { %v2557_v44 = vpop.f32.mrf.mxu2  ;;  %v1111_v62 = vsel %vm5353_vm2, %v1106_v26, %v1110_v38 }
  0xf1   : > { %v2637_v55 = vadd.f32 %v2557_v44, %v2365_v56  ;;  %v2464_v56 = vunpack.c.l.b16 %v777_v0  ;;  %v783_v44 = vrot.slane %v5213_v43, 5  ;;  %v1122_v0 = vshll.u32 %v4479_v22, 16 }
  0xf2   : > { %4818 = vmatmul.msk.bf16.gmra.mxu3 %vm2099_vm3, %v5017_v37  ;;  %v1128_v26 = vrot.slane %v1126_v1, 4 }
  0xf3   : > { %v2487_v39 = vpack.c.b16 %v2465_v18, %v2464_v56 }
  0xf4   : > { %v3023_v3 = vpop.f32.mrf.mxu0 }
  0xf5   : > { %v2798_v34 = vpop.f32.mrf.mxu3  ;;  %v2369_v12 = vpop.f32.mrf.mxu1 }
  0xf6   : > { %v2878_v21 = vadd.f32 %v2798_v34, %v2637_v55  ;;  %v2370_v8 = vadd.f32 %v2369_v12, %v5686_v29  ;;  %v1113_v29 = vshrl.u32 %v4478_v42, 16  ;;  %v1101_v55 = vsel %vm5353_vm2, %v1096_v16, %v1100_v54 }
  0xf7   : > { %4838 = vmatmul.msk.bf16.gmra.mxu0 %vm2099_vm3, %v2952_v20  ;;  %v5214_v20 = vld [vmem:[%s5341_s29 + $0x80] sm:$0x1]  ;;  %v4452_v34 = vrot.slane %v654_v46, 9  ;;  %v785_v12 = vrot.slane %v783_v44, 4  ;;  %v2930_v56 = vunpack.c.l.b16 %v1101_v55  ;;  %v2931_v54 = vunpack.c.l.b16 %v1111_v62 }
  0xf8   : > { %v2559_v24 = vpop.f32.mrf.mxu2  ;;  %4715 = vmatmul.msk.bf16.gmra.mxu1 %vm2099_vm3, %v5002_v5  ;;  %v5804_v37 = vadd.f32 %v3023_v3, %v2878_v21  ;;  %v786_v3 = vrot.slane %v5214_v20, 5  ;;  %v1115_v18 = vrot.slane %v1113_v29, 4  ;;  %v1118_v21 = vrot.slane %v1116_v49, 5  ;;  %v5003_v29 = vld [vmem:[%s5341_s29 + $0x78] sm:$0xff] }
  0xf9   : > { %v2638_v60 = vadd.f32 %v2559_v24, %v2367_v30  ;;  %v1124_v16 = vrot.slane %v1122_v0, 5  ;;  %v2953_v22 = vpack.c.b16 %v2931_v54, %v2930_v56  ;;  %v4481_v56 = vld [vmem:[%s5341_s29 + $0x94] sm:$0xf]  ;;  %v5215_v54 = vld [vmem:[%s5341_s29 + $0x88] sm:$0xf] }
  0xfa   : > { %v1119_v43 = vor.u32 %v1118_v21, %v1115_v18  ;;  %v790_v18 = vrot.slane %v5215_v54, 5  ;;  %v655_v21 = vld [vmem:[%s5341_s29 + $0x84] sm:$0xe] }
  0xfb   : > { %v1129_v49 = vor.u32 %v1128_v26, %v1124_v16 }
  0xfc   : > { %v3025_v15 = vpop.f32.mrf.mxu0  ;;  %v1120_v20 = vrot.slane %v1119_v43, 4 }
  0xfd   : > { %v2800_v30 = vpop.f32.mrf.mxu3  ;;  %4735 = vmatmul.msk.bf16.gmra.mxu2 %vm2099_vm3, %v2487_v39  ;;  %v2371_v5 = vpop.f32.mrf.mxu1  ;;  %v4500_v39 = vld [vmem:[%s5341_s29 + $0x8c] sm:$0x1] }
  0xfe   : > { %v2879_v6 = vadd.f32 %v2800_v30, %v2638_v60  ;;  %v2372_v10 = vadd.f32 %v2371_v5, %v5704_v57  ;;  %v784_v60 = vsel %vm5536_vm6, %v4452_v34, %v783_v44  ;;  %v787_v57 = vsel %vm5536_vm6, %v785_v12, %v786_v3 }
  0xff   : > { %v1132_v55 = vshll.u32 %v4500_v39, 16  ;;  %v2467_v0 = vunpack.c.l.b16 %v787_v57  ;;  %v1130_v30 = vrot.slane %v1129_v49, 4  ;;  %v1150_v57 = vshrl.u32 %v4481_v56, 16  ;;  %v5019_v49 = vld [vmem:[%s5341_s29 + $0x84] sm:$0xff] }
 0x100   : > { %v2562_v24 = vpop.f32.mrf.mxu2  ;;  %v5817_v38 = vadd.f32 %v3025_v15, %v2879_v6  ;;  %v4480_v6 = vld [vmem:[%s5341_s29 + $0x90] sm:$0xf] }
 0x101   : > { %v2639_v42 = vadd.f32 %v2562_v24, %v2370_v8  ;;  %v2466_v8 = vunpack.c.l.b16 %v784_v60  ;;  %v1134_v5 = vrot.slane %v1132_v55, 5  ;;  %v1137_v24 = vshrl.u32 %v4480_v6, 16 }
 0x102   : > { %4819 = vmatmul.msk.bf16.gmra.mxu3 %vm2099_vm3, %v5018_v7  ;;  %v1140_v39 = vshll.u32 %v4480_v6, 16  ;;  %v1146_v60 = vshll.u32 %v4481_v56, 16  ;;  %v4453_v55 = vrot.slane %v655_v21, 9 }
 0x103   : > { %v2488_v12 = vpack.c.b16 %v2467_v0, %v2466_v8  ;;  %v1139_v0 = vrot.slane %v1137_v24, 4 }
 0x104   : > { %v3028_v46 = vpop.f32.mrf.mxu0 }
 0x105   : > { %v2803_v62 = vpop.f32.mrf.mxu3  ;;  %v2374_v15 = vpop.f32.mrf.mxu1 }
 0x106   : > { %v2880_v1 = vadd.f32 %v2803_v62, %v2639_v42  ;;  %v2375_v44 = vadd.f32 %v2374_v15, %v5726_v35  ;;  %v1125_v35 = vsel %vm5353_vm2, %v1120_v20, %v1124_v16  ;;  %v1135_v42 = vsel %vm5353_vm2, %v1130_v30, %v1134_v5 }
 0x107   : > { %4839 = vmatmul.msk.bf16.gmra.mxu0 %vm2099_vm3, %v2953_v22  ;;  %v5216_v22 = vld [vmem:[%s5341_s29 + $0x8c] sm:$0x1]  ;;  %v792_v62 = vrot.slane %v790_v18, 4  ;;  %v2932_v15 = vunpack.c.l.b16 %v1125_v35  ;;  %v2933_v8 = vunpack.c.l.b16 %v1135_v42  ;;  %v1142_v20 = vrot.slane %v1140_v39, 5  ;;  %v5004_v35 = vld [vmem:[%s5341_s29 + $0x84] sm:$0xff] }
 0x108   : > { %v2564_v3 = vpop.f32.mrf.mxu2  ;;  %4716 = vmatmul.msk.bf16.gmra.mxu1 %vm2099_vm3, %v5003_v29  ;;  %v5830_v7 = vadd.f32 %v3028_v46, %v2880_v1  ;;  %v793_v43 = vrot.slane %v5216_v22, 5  ;;  %v1152_v30 = vrot.slane %v1150_v57, 4 }
 0x109   : > { %v2640_v34 = vadd.f32 %v2564_v3, %v2372_v10  ;;  %v1148_v3 = vrot.slane %v1146_v60, 5  ;;  %v2954_v56 = vpack.c.b16 %v2933_v8, %v2932_v15  ;;  %v1143_v21 = vor.u32 %v1142_v20, %v1139_v0  ;;  %v4483_v15 = vld [vmem:[%s5341_s29 + $0xa0] sm:$0xf]  ;;  %v656_v20 = vld [vmem:[%s5341_s29 + $0x90] sm:$0xe] }
 0x10b   : > { %v1153_v24 = vor.u32 %v1152_v30, %v1148_v3 }
 0x10c   : > { %v3030_v26 = vpop.f32.mrf.mxu0 }
 0x10d   : > { %v2805_v10 = vpop.f32.mrf.mxu3  ;;  %4736 = vmatmul.msk.bf16.gmra.mxu2 %vm2099_vm3, %v2488_v12  ;;  %v2376_v46 = vpop.f32.mrf.mxu1  ;;  %v4501_v12 = vld [vmem:[%s5341_s29 + $0x98] sm:$0x1] }
 0x10e   : > { %v2881_v29 = vadd.f32 %v2805_v10, %v2640_v34  ;;  %v2377_v16 = vadd.f32 %v2376_v46, %v5744_v61  ;;  %v791_v61 = vsel %vm5536_vm6, %v4453_v55, %v790_v18  ;;  %v794_v34 = vsel %vm5536_vm6, %v792_v62, %v793_v43  ;;  %v4482_v18 = vld [vmem:[%s5341_s29 + $0x9c] sm:$0xf] }
 0x10f   : > { %v1156_v42 = vshll.u32 %v4501_v12, 16  ;;  %v2469_v60 = vunpack.c.l.b16 %v794_v34  ;;  %v1144_v10 = vrot.slane %v1143_v21, 4  ;;  %v1154_v46 = vrot.slane %v1153_v24, 4 }
 0x110   : > { %v2567_v1 = vpop.f32.mrf.mxu2  ;;  %v5843_v5 = vadd.f32 %v3030_v26, %v2881_v29  ;;  %v1161_v8 = vshrl.u32 %v4482_v18, 16  ;;  %v1164_v0 = vshll.u32 %v4482_v18, 16  ;;  %v1174_v34 = vshrl.u32 %v4483_v15, 16 }
 0x111   : > { %v2641_v6 = vadd.f32 %v2567_v1, %v2375_v44  ;;  %v2468_v44 = vunpack.c.l.b16 %v791_v61  ;;  %v1158_v29 = vrot.slane %v1156_v42, 5  ;;  %v5217_v1 = vld [vmem:[%s5341_s29 + $0x94] sm:$0xf]  ;;  %v1170_v61 = vshll.u32 %v4483_v15, 16 }
 0x112   : > { %4820 = vmatmul.msk.bf16.gmra.mxu3 %vm2099_vm3, %v5019_v49  ;;  %v1163_v21 = vrot.slane %v1161_v8, 4  ;;  %v1166_v24 = vrot.slane %v1164_v0, 5 }
 0x113   : > { %v2489_v62 = vpack.c.b16 %v2469_v60, %v2468_v44  ;;  %v1159_v12 = vsel %vm5353_vm2, %v1154_v46, %v1158_v29  ;;  %v4454_v44 = vrot.slane %v656_v20, 9 }
 0x114   : > { %v3033_v54 = vpop.f32.mrf.mxu0  ;;  %v1167_v15 = vor.u32 %v1166_v24, %v1163_v21  ;;  %v4485_v21 = vld [vmem:[%s5341_s29 + $0xac] sm:$0xf] }
 0x115   : > { %v2808_v39 = vpop.f32.mrf.mxu3  ;;  %v2379_v26 = vpop.f32.mrf.mxu1 }
 0x116   : > { %v2882_v57 = vadd.f32 %v2808_v39, %v2641_v6  ;;  %v2380_v22 = vadd.f32 %v2379_v26, %v5767_v51  ;;  %v797_v51 = vrot.slane %v5217_v1, 5  ;;  %v1149_v6 = vsel %vm5353_vm2, %v1144_v10, %v1148_v3  ;;  %v5020_v39 = vld [vmem:[%s5341_s29 + $0x90] sm:$0xff] }
 0x117   : > { %4840 = vmatmul.msk.bf16.gmra.mxu0 %vm2099_vm3, %v2954_v56  ;;  %v5218_v56 = vld [vmem:[%s5341_s29 + $0x98] sm:$0x1]  ;;  %v2934_v60 = vunpack.c.l.b16 %v1149_v6  ;;  %v1176_v10 = vrot.slane %v1174_v34, 4  ;;  %v5005_v1 = vld [vmem:[%s5341_s29 + $0x90] sm:$0xff] }
 0x118   : > { %v2569_v43 = vpop.f32.mrf.mxu2  ;;  %4717 = vmatmul.msk.bf16.gmra.mxu1 %vm2099_vm3, %v5004_v35  ;;  %v5856_v49 = vadd.f32 %v3033_v54, %v2882_v57  ;;  %v800_v54 = vrot.slane %v5218_v56, 5  ;;  %v799_v3 = vrot.slane %v797_v51, 4  ;;  %v2935_v57 = vunpack.c.l.b16 %v1159_v12 }
 0x119   : > { %v2642_v55 = vadd.f32 %v2569_v43, %v2377_v16  ;;  %v1172_v43 = vrot.slane %v1170_v61, 5  ;;  %v1168_v56 = vrot.slane %v1167_v15, 4  ;;  %v5220_v15 = vld [vmem:[%s5341_s29 + $0xa4] sm:$0x1] }
 0x11a   : > { %v2955_v8 = vpack.c.b16 %v2935_v57, %v2934_v60  ;;  %v5219_v60 = vld [vmem:[%s5341_s29 + $0xa0] sm:$0xf] }
 0x11b   : > { %v1177_v20 = vor.u32 %v1176_v10, %v1172_v43  ;;  %v804_v57 = vrot.slane %v5219_v60, 5  ;;  %v657_v10 = vld [vmem:[%s5341_s29 + $0x9c] sm:$0xe] }
 0x11c   : > { %v3035_v30 = vpop.f32.mrf.mxu0 }
 0x11d   : > { %v2810_v16 = vpop.f32.mrf.mxu3  ;;  %4737 = vmatmul.msk.bf16.gmra.mxu2 %vm2099_vm3, %v2489_v62  ;;  %v2381_v35 = vpop.f32.mrf.mxu1  ;;  %v4502_v62 = vld [vmem:[%s5341_s29 + $0xa4] sm:$0x1] }
 0x11e   : > { %v2883_v42 = vadd.f32 %v2810_v16, %v2642_v55  ;;  %v2382_v26 = vadd.f32 %v2381_v35, %v5785_v13  ;;  %v798_v55 = vsel %vm5536_vm6, %v4454_v44, %v797_v51  ;;  %v801_v13 = vsel %vm5536_vm6, %v799_v3, %v800_v54  ;;  %v4484_v16 = vld [vmem:[%s5341_s29 + $0xa8] sm:$0xf] }
 0x11f   : > { %v1180_v6 = vshll.u32 %v4502_v62, 16  ;;  %v2471_v61 = vunpack.c.l.b16 %v801_v13  ;;  %v1178_v54 = vrot.slane %v1177_v20, 4  ;;  %v1185_v44 = vshrl.u32 %v4484_v16, 16 }
 0x120   : > { %v2572_v18 = vpop.f32.mrf.mxu2  ;;  %v5869_v46 = vadd.f32 %v3035_v30, %v2883_v42  ;;  %v1173_v3 = vsel %vm5353_vm2, %v1168_v56, %v1172_v43  ;;  %v1198_v62 = vshrl.u32 %v4485_v21, 16 }
 0x121   : > { %v2643_v29 = vadd.f32 %v2572_v18, %v2380_v22  ;;  %v2470_v22 = vunpack.c.l.b16 %v798_v55  ;;  %v1182_v35 = vrot.slane %v1180_v6, 5  ;;  %v1188_v18 = vshll.u32 %v4484_v16, 16  ;;  %v5021_v6 = vld [vmem:[%s5341_s29 + $0x9c] sm:$0xff] }
 0x122   : > { %4821 = vmatmul.msk.bf16.gmra.mxu3 %vm2099_vm3, %v5020_v39  ;;  %v1187_v43 = vrot.slane %v1185_v44, 4 }
 0x123   : > { %v2490_v39 = vpack.c.b16 %v2471_v61, %v2470_v22  ;;  %v1183_v13 = vsel %vm5353_vm2, %v1178_v54, %v1182_v35  ;;  %v806_v22 = vrot.slane %v804_v57, 4  ;;  %v1190_v61 = vrot.slane %v1188_v18, 5  ;;  %v4503_v35 = vld [vmem:[%s5341_s29 + $0xb0] sm:$0x1] }
 0x124   : > { %v3038_v0 = vpop.f32.mrf.mxu0  ;;  %v2937_v56 = vunpack.c.l.b16 %v1183_v13 }
 0x125   : > { %v2813_v30 = vpop.f32.mrf.mxu3  ;;  %v2384_v12 = vpop.f32.mrf.mxu1  ;;  %v1191_v44 = vor.u32 %v1190_v61, %v1187_v43 }
 0x126   : > { %v2884_v34 = vadd.f32 %v2813_v30, %v2643_v29  ;;  %v1194_v29 = vshll.u32 %v4485_v21, 16  ;;  %v4455_v30 = vrot.slane %v657_v10, 9  ;;  %v5006_v10 = vld [vmem:[%s5341_s29 + $0x9c] sm:$0xff] }
 0x127   : > { %4841 = vmatmul.msk.bf16.gmra.mxu0 %vm2099_vm3, %v2955_v8  ;;  %v807_v8 = vrot.slane %v5220_v15, 5 }
 0x128   : > { %v2574_v51 = vpop.f32.mrf.mxu2  ;;  %4718 = vmatmul.msk.bf16.gmra.mxu1 %vm2099_vm3, %v5005_v1  ;;  %v5882_v24 = vadd.f32 %v3038_v0, %v2884_v34  ;;  %v2936_v0 = vunpack.c.l.b16 %v1173_v3  ;;  %v2385_v34 = vadd.f32 %v2384_v12, %v5620_v40  ;;  %v1196_v16 = vrot.slane %v1194_v29, 5 }
 0x129   : > { %v2644_v42 = vadd.f32 %v2574_v51, %v2382_v26  ;;  %v1200_v51 = vrot.slane %v1198_v62, 4  ;;  %v1204_v3 = vshll.u32 %v4503_v35, 16 }
 0x12a   : > { %v2956_v40 = vpack.c.b16 %v2937_v56, %v2936_v0  ;;  %v4486_v0 = vld [vmem:[%s5341_s29 + $0xb4] sm:$0xf] }
 0x12b   : > { %v1201_v12 = vor.u32 %v1200_v51, %v1196_v16  ;;  %v1206_v43 = vrot.slane %v1204_v3, 5  ;;  %v1212_v35 = vshll.u32 %v4486_v0, 16 }
 0x12c   : > { %v3040_v55 = vpop.f32.mrf.mxu0 }
 0x12d   : > { %v2815_v26 = vpop.f32.mrf.mxu3  ;;  %4738 = vmatmul.msk.bf16.gmra.mxu2 %vm2099_vm3, %v2490_v39  ;;  %v2386_v1 = vpop.f32.mrf.mxu1  ;;  %v808_v39 = vsel %vm5536_vm6, %v806_v22, %v807_v8  ;;  %v1202_v8 = vrot.slane %v1201_v12, 4 }
 0x12e   : > { %v2885_v20 = vadd.f32 %v2815_v26, %v2644_v42  ;;  %v805_v42 = vsel %vm5536_vm6, %v4455_v30, %v804_v57  ;;  %v2473_v13 = vunpack.c.l.b16 %v808_v39  ;;  %v1192_v26 = vrot.slane %v1191_v44, 4  ;;  %v5222_v44 = vld [vmem:[%s5341_s29 + $0xb0] sm:$0x1] }
 0x12f   : > { %v2387_v57 = vadd.f32 %v2386_v1, %v5636_v25  ;;  %v1209_v25 = vshrl.u32 %v4486_v0, 16  ;;  %v1207_v1 = vsel %vm5353_vm2, %v1202_v8, %v1206_v43 }
 0x130   : > { %v2577_v54 = vpop.f32.mrf.mxu2  ;;  %v5895_v21 = vadd.f32 %v3040_v55, %v2885_v20  ;;  %v2472_v55 = vunpack.c.l.b16 %v805_v42  ;;  %v1197_v51 = vsel %vm5353_vm2, %v1192_v26, %v1196_v16 }
 0x131   : > { %v2645_v60 = vadd.f32 %v2577_v54, %v2385_v34  ;;  %v5221_v34 = vld [vmem:[%s5341_s29 + $0xac] sm:$0xf]  ;;  %v658_v54 = vld [vmem:[%s5341_s29 + $0xa8] sm:$0xe] }
 0x132   : > { %4822 = vmatmul.msk.bf16.gmra.mxu3 %vm2099_vm3, %v5021_v6  ;;  %v4487_v6 = vld [vmem:[%s5341_s29 + $0xb8] sm:$0xf]  ;;  %v2491_v61 = vpack.c.b16 %v2473_v13, %v2472_v55  ;;  %v811_v56 = vrot.slane %v5221_v34, 5  ;;  %v2938_v55 = vunpack.c.l.b16 %v1197_v51  ;;  %v2939_v13 = vunpack.c.l.b16 %v1207_v1  ;;  %v4504_v34 = vld [vmem:[%s5341_s29 + $0xbc] sm:$0x1] }
 0x133   : > { %v1222_v42 = vshrl.u32 %v4487_v6, 16 }
 0x134   : > { %v3043_v18 = vpop.f32.mrf.mxu0 }
 0x135   : > { %v2818_v29 = vpop.f32.mrf.mxu3  ;;  %v2389_v62 = vpop.f32.mrf.mxu1  ;;  %v1224_v43 = vrot.slane %v1222_v42, 4 }
 0x136   : > { %v2886_v15 = vadd.f32 %v2818_v29, %v2645_v60  ;;  %v1218_v60 = vshll.u32 %v4487_v6, 16  ;;  %v5022_v29 = vld [vmem:[%s5341_s29 + $0xa8] sm:$0xff]  ;;  %v2390_v26 = vadd.f32 %v2389_v62, %v5656_v50  ;;  %v2957_v50 = vpack.c.b16 %v2939_v13, %v2938_v55 }
 0x137   : > { %4842 = vmatmul.msk.bf16.gmra.mxu0 %vm2099_vm3, %v2956_v40  ;;  %v814_v40 = vrot.slane %v5222_v44, 5 }
 0x138   : > { %v2579_v20 = vpop.f32.mrf.mxu2  ;;  %4719 = vmatmul.msk.bf16.gmra.mxu1 %vm2099_vm3, %v5006_v10  ;;  %v5908_v30 = vadd.f32 %v3043_v18, %v2886_v15  ;;  %v4456_v18 = vrot.slane %v658_v54, 9  ;;  %v813_v10 = vrot.slane %v811_v56, 4  ;;  %v1211_v15 = vrot.slane %v1209_v25, 4  ;;  %v5007_v25 = vld [vmem:[%s5341_s29 + $0xa8] sm:$0xff] }
 0x139   : > { %v2646_v22 = vadd.f32 %v2579_v20, %v2387_v57  ;;  %v1214_v57 = vrot.slane %v1212_v35, 5  ;;  %v5920_v8 = vrot.slane %v1218_v60, 5  ;;  %v1228_v60 = vshll.u32 %v4504_v34, 16 }
 0x13b   : > { %v1215_v62 = vor.u32 %v1214_v57, %v1211_v15  ;;  %v1225_v51 = vor.u32 %v1224_v43, %v5920_v8  ;;  %v1230_v15 = vrot.slane %v1228_v60, 5 }
 0x13c   : > { %v3045_v39 = vpop.f32.mrf.mxu0 }
 0x13d   : > { %v2820_v12 = vpop.f32.mrf.mxu3  ;;  %4739 = vmatmul.msk.bf16.gmra.mxu2 %vm2099_vm3, %v2491_v61  ;;  %v2391_v3 = vpop.f32.mrf.mxu1  ;;  %v812_v61 = vsel %vm5536_vm6, %v4456_v18, %v811_v56  ;;  %v4488_v56 = vld [vmem:[%s5341_s29 + $0xc0] sm:$0xf]  ;;  %v5223_v18 = vld [vmem:[%s5341_s29 + $0x10] sm:$0xf] }
 0x13e   : > { %v2887_v16 = vadd.f32 %v2820_v12, %v2646_v22  ;;  %v815_v22 = vsel %vm5536_vm6, %v813_v10, %v814_v40  ;;  %v2474_v1 = vunpack.c.l.b16 %v812_v61  ;;  %v4489_v12 = vld [vmem:[%s5341_s29 + $0xc4] sm:$0xf]  ;;  %v1322_v40 = vrot.slane %v5223_v18, 5 }
 0x13f   : > { %v2475_v35 = vunpack.c.l.b16 %v815_v22  ;;  %v2392_v10 = vadd.f32 %v2391_v3, %v5673_v23  ;;  %v1236_v57 = vshll.u32 %v4488_v56, 16  ;;  %v5224_v22 = vld [vmem:[%s5341_s29 + $0xb8] sm:$0xf]  ;;  %v659_v3 = vld [vmem:[%s5341_s29 + $0xb4] sm:$0xe] }
 0x140   : > { %v2582_v0 = vpop.f32.mrf.mxu2  ;;  %v5922_v20 = vadd.f32 %v3045_v39, %v2887_v16  ;;  %v1216_v16 = vrot.slane %v1215_v62, 4  ;;  %v818_v34 = vrot.slane %v5224_v22, 5  ;;  %v1324_v62 = vrot.slane %v1322_v40, 4  ;;  %v5023_v22 = vld [vmem:[%s5341_s29 + $0xb4] sm:$0xff] }
 0x141   : > { %v2647_v6 = vadd.f32 %v2582_v0, %v2390_v26  ;;  %v2492_v13 = vpack.c.b16 %v2475_v35, %v2474_v1  ;;  %v1233_v26 = vshrl.u32 %v4488_v56, 16  ;;  %v1242_v0 = vshll.u32 %v4489_v12, 16 }
 0x142   : > { %4823 = vmatmul.msk.bf16.gmra.mxu3 %vm2099_vm3, %v5022_v29  ;;  %v1226_v29 = vrot.slane %v1225_v51, 4  ;;  %v5226_v51 = vld [vmem:[%s5341_s29 + $0x14] sm:$0x1]  ;;  %v1221_v1 = vsel %vm5353_vm2, %v1216_v16, %v5920_v8 }
 0x143   : > { %v1235_v56 = vrot.slane %v1233_v26, 4  ;;  %v2940_v16 = vunpack.c.l.b16 %v1221_v1 }
 0x144   : > { %v3048_v54 = vpop.f32.mrf.mxu0  ;;  %v1231_v35 = vsel %vm5353_vm2, %v1226_v29, %v1230_v15 }
 0x145   : > { %v2823_v42 = vpop.f32.mrf.mxu3  ;;  %v2394_v39 = vpop.f32.mrf.mxu1  ;;  %v2941_v29 = vunpack.c.l.b16 %v1231_v35 }
 0x146   : > { %v2888_v44 = vadd.f32 %v2823_v42, %v2647_v6  ;;  %v1246_v6 = vshrl.u32 %v4489_v12, 16  ;;  %v1325_v42 = vrot.slane %v5226_v51, 5  ;;  %v5950_v12 = vrot.slane %v1242_v0, 5 }
 0x147   : > { %4843 = vmatmul.msk.bf16.gmra.mxu0 %vm2099_vm3, %v2957_v50  ;;  %v5225_v50 = vld [vmem:[%s5341_s29 + $0xbc] sm:$0x1]  ;;  %v820_v51 = vrot.slane %v818_v34, 4  ;;  %v2395_v8 = vadd.f32 %v2394_v39, %v5693_v45 }
 0x148   : > { %v2584_v55 = vpop.f32.mrf.mxu2  ;;  %4720 = vmatmul.msk.bf16.gmra.mxu1 %vm2099_vm3, %v5007_v25  ;;  %v5938_v61 = vadd.f32 %v3048_v54, %v2888_v44  ;;  %v821_v23 = vrot.slane %v5225_v50, 5  ;;  %v1238_v44 = vrot.slane %v1236_v57, 5  ;;  %v1248_v18 = vrot.slane %v1246_v6, 4 }
 0x149   : > { %v2648_v43 = vadd.f32 %v2584_v55, %v2392_v10  ;;  %v4506_v10 = vld [vmem:[%s5341_s29 + $0xc] sm:$0xe]  ;;  %v4457_v50 = vrot.slane %v659_v3, 9  ;;  %v1326_v57 = vsel %vm5536_vm6, %v1324_v62, %v1325_v42  ;;  %v4538_v62 = vld [vmem:[%s5341_s29 + $0x18] sm:$0xf] }
 0x14a   : > { %6851 = vst [vmem:[#allocation2_spill] sm:$0xff] %v5938_v61  ;;  %v4522_v61 = vrot.slane %v4506_v10, 9  ;;  %v1239_v0 = vor.u32 %v1238_v44, %v1235_v56  ;;  %v3138_v3 = vunpack.c.l.b16 %v1326_v57  ;;  %v822_v39 = vsel %vm5536_vm6, %v820_v51, %v821_v23  ;;  %v5008_v56 = vld [vmem:[%s5341_s29 + $0xb4] sm:$0xff]  ;;  %v5973_v44 = vld [vmem:[%s5341_s29 + $0x1c] sm:$0xf] }
 0x14b   : > { %v819_v45 = vsel %vm5536_vm6, %v4457_v50, %v818_v34  ;;  %v1249_v1 = vor.u32 %v1248_v18, %v5950_v12  ;;  %v2477_v34 = vunpack.c.l.b16 %v822_v39  ;;  %v1482_v51 = vshrl.u32 %v4538_v62, 16 }
 0x14c   : > { %v3050_v25 = vpop.f32.mrf.mxu0  ;;  %v1323_v26 = vsel %vm5536_vm6, %v4522_v61, %v1322_v40  ;;  %v2958_v40 = vpack.c.b16 %v2941_v29, %v2940_v16  ;;  %v1240_v50 = vrot.slane %v1239_v0, 4  ;;  %v1485_v18 = vshll.u32 %v4538_v62, 16 }
 0x14d   : > { %v2825_v54 = vpop.f32.mrf.mxu3  ;;  %4740 = vmatmul.msk.bf16.gmra.mxu2 %vm2099_vm3, %v2492_v13  ;;  %v2396_v60 = vpop.f32.mrf.mxu1  ;;  %v4505_v13 = vld [vmem:[%s5341_s29 + $0xc8] sm:$0x1]  ;;  %v3137_v6 = vunpack.c.l.b16 %v1323_v26  ;;  %v1250_v23 = vrot.slane %v1249_v1, 4  ;;  %v1495_v29 = vshrl.u32 %v5973_v44, 16  ;;  %v1484_v0 = vrot.slane %v1482_v51, 4 }
 0x14e   : > { %v2889_v55 = vadd.f32 %v2825_v54, %v2648_v43  ;;  %v1252_v61 = vshll.u32 %v4505_v13, 16  ;;  %v2397_v16 = vadd.f32 %v2396_v60, %v5713_v9  ;;  %v1245_v9 = vsel %vm5353_vm2, %v1240_v50, %v5950_v12  ;;  %v4570_v1 = vld [vmem:[%s5341_s29 + $0x20] sm:$0x1]  ;;  %v4540_v51 = vld [vmem:[%s5341_s29 + $0x24] sm:$0xf] }
 0x14f   : > { %v5966_v35 = vpack.c.b16 %v3138_v3, %v3137_v6  ;;  %v1487_v6 = vrot.slane %v1485_v18, 5  ;;  %v1501_v50 = vshll.u32 %v4570_v1, 16  ;;  %v5993_v18 = vld [vmem:[%s5341_s29 + $0x28] sm:$0xf] }
 0x150   : > { %v2587_v15 = vpop.f32.mrf.mxu2  ;;  %v5969_v42 = vadd.f32 %v3050_v25, %v2889_v55  ;;  %v1254_v25 = vrot.slane %v1252_v61, 5  ;;  %v1491_v55 = vshll.u32 %v5973_v44, 16 }
 0x151   : > { %v2649_v43 = vadd.f32 %v2587_v15, %v2395_v8  ;;  %v2476_v8 = vunpack.c.l.b16 %v819_v45  ;;  %v1497_v45 = vrot.slane %v1495_v29, 4  ;;  %v1503_v29 = vrot.slane %v1501_v50, 5 }
 0x152   : > { %4824 = vmatmul.msk.bf16.gmra.mxu3 %vm2099_vm3, %v5023_v22  ;;  %v1255_v60 = vsel %vm5353_vm2, %v1250_v23, %v1254_v25  ;;  %v1493_v3 = vrot.slane %v1491_v55, 5 }
 0x153   : > { %v2493_v57 = vpack.c.b16 %v2477_v34, %v2476_v8  ;;  %v1488_v8 = vor.u32 %v1487_v6, %v1484_v0  ;;  %v1509_v0 = vshll.u32 %v4540_v51, 16  ;;  %v1515_v6 = vshll.u32 %v5993_v18, 16 }
 0x154   : > { %v3053_v54 = vpop.f32.mrf.mxu0  ;;  %v1498_v34 = vor.u32 %v1497_v45, %v1493_v3 }
 0x155   : > { %v2828_v10 = vpop.f32.mrf.mxu3  ;;  %v2399_v22 = vpop.f32.mrf.mxu1  ;;  %v1489_v25 = vrot.slane %v1488_v8, 4 }
 0x156   : > { %v2890_v15 = vadd.f32 %v2828_v10, %v2649_v43  ;;  %v2943_v10 = vunpack.c.l.b16 %v1255_v60  ;;  %v2400_v12 = vadd.f32 %v2399_v22, %v5736_v48  ;;  %v1499_v55 = vrot.slane %v1498_v34, 4 }
 0x157   : > { %4844 = vmatmul.msk.bf16.gmra.mxu0 %vm2099_vm3, %v2958_v40 }
 0x158   : > { %v2589_v13 = vpop.f32.mrf.mxu2  ;;  %4721 = vmatmul.msk.bf16.gmra.mxu1 %vm2099_vm3, %v5008_v56  ;;  %v5980_v43 = vadd.f32 %v3053_v54, %v2890_v15  ;;  %v5024_v54 = vld [vmem:[%s5341_s29 + $0xc0] sm:$0xff]  ;;  %v2942_v56 = vunpack.c.l.b16 %v1245_v9  ;;  %v1519_v9 = vshrl.u32 %v5993_v18, 16  ;;  %v1504_v34 = vsel %vm5353_vm2, %v1499_v55, %v1503_v29  ;;  %v6019_v29 = vld [vmem:[%s5341_s29 + $0x2c] sm:$0x1] }
 0x159   : > { %v2650_v26 = vadd.f32 %v2589_v13, %v2397_v16  ;;  %v4586_v13 = vld [vmem:[%s5341_s29 + $0x18] sm:$0xe]  ;;  %v3604_v55 = vunpack.c.l.b16 %v1504_v34 }
 0x15a   : > { %v2959_v16 = vpack.c.b16 %v2943_v10, %v2942_v56  ;;  %v5228_v56 = vld [vmem:[%s5341_s29 + $0x20] sm:$0x1] }
 0x15b   : > { %v1332_v10 = vrot.slane %v5228_v56, 5 }
 0x15c   : > { %v3055_v39 = vpop.f32.mrf.mxu0 }
 0x15d   : > { %v2830_v40 = vpop.f32.mrf.mxu3  ;;  %4741 = vmatmul.msk.bf16.gmra.mxu2 %vm2099_vm3, %v2493_v57  ;;  %v2401_v61 = vpop.f32.mrf.mxu1  ;;  %v1506_v57 = vshrl.u32 %v4540_v51, 16 }
 0x15e   : > { %v2891_v62 = vadd.f32 %v2830_v40, %v2650_v26  ;;  %v1931_v26 = vrot.slane %v5973_v44, 5  ;;  %v5227_v40 = vld [vmem:[%s5341_s29 + $0x1c] sm:$0xf]  ;;  %v1494_v44 = vsel %vm5353_vm2, %v1489_v25, %v1493_v3  ;;  %v1521_v3 = vrot.slane %v1519_v9, 4 }
 0x160   : > { %v2592_v15 = vpop.f32.mrf.mxu2  ;;  %v5998_v48 = vadd.f32 %v3055_v39, %v2891_v62  ;;  %v4602_v39 = vrot.slane %v4586_v13, 9  ;;  %v4507_v62 = vld [vmem:[%s5341_s29 + $0x18] sm:$0xe]  ;;  %v1933_v50 = vrot.slane %v1931_v26, 4 }
 0x161   : > { %v2651_v23 = vadd.f32 %v2592_v15, %v2400_v12  ;;  %v2402_v12 = vadd.f32 %v2401_v61, %v5756_v17  ;;  %v1934_v15 = vrot.slane %v4570_v1, 5  ;;  %v5025_v13 = vld [vmem:[%s5341_s29 + $0x18] sm:$0xff]  ;;  %v3603_v61 = vunpack.c.l.b16 %v1494_v44 }
 0x162   : > { %4825 = vmatmul.msk.bf16.gmra.mxu3 %vm2099_vm3, %v5024_v54  ;;  %6852 = vst [vmem:[#allocation3_spill] sm:$0xff] %v5998_v48  ;;  %v1329_v54 = vrot.slane %v5227_v40, 5  ;;  %v6013_v40 = vrot.slane %v1515_v6, 5  ;;  %v1932_v48 = vsel %vm5536_vm6, %v4602_v39, %v1931_v26  ;;  %v1525_v26 = vshll.u32 %v6019_v29, 16 }
 0x163   : > { %v3635_v39 = vpack.c.b16 %v3604_v55, %v3603_v61  ;;  %v5229_v61 = vld [vmem:[%s5341_s29 + $0x28] sm:$0xf] }
 0x164   : > { %v3058_v22 = vpop.f32.mrf.mxu0  ;;  %v1331_v56 = vrot.slane %v1329_v54, 4  ;;  %v1336_v55 = vrot.slane %v5229_v61, 5 }
 0x165   : > { %v2833_v60 = vpop.f32.mrf.mxu3  ;;  %v2404_v45 = vpop.f32.mrf.mxu1 }
 0x166   : > { %v2892_v8 = vadd.f32 %v2833_v60, %v2651_v23  ;;  %v1508_v23 = vrot.slane %v1506_v57, 4  ;;  %v1511_v60 = vrot.slane %v1509_v0, 5  ;;  %v1333_v9 = vsel %vm5536_vm6, %v1331_v56, %v1332_v10  ;;  %v6038_v56 = vld [vmem:[%s5341_s29 + $0x34] sm:$0xf] }
 0x167   : > { %4845 = vmatmul.msk.bf16.gmra.mxu0 %vm2099_vm3, %v2959_v16  ;;  %v4523_v16 = vrot.slane %v4507_v62, 9  ;;  %v2405_v62 = vadd.f32 %v2404_v45, %v5638_v28 }
 0x168   : > { %v2594_v51 = vpop.f32.mrf.mxu2  ;;  %4850 = vmatmul.msk.bf16.vlgmr.msra.gmra.mxu1 %vm2099_vm3, %v5966_v35  ;;  %v6016_v17 = vadd.f32 %v3058_v22, %v2892_v8  ;;  %v1935_v35 = vsel %vm5536_vm6, %v1933_v50, %v1934_v15  ;;  %v1512_v57 = vor.u32 %v1511_v60, %v1508_v23  ;;  %v1522_v8 = vor.u32 %v1521_v3, %v6013_v40  ;;  %v4587_v3 = vld [vmem:[%s5341_s29 + $0x24] sm:$0xe] }
 0x169   : > { %v2652_v25 = vadd.f32 %v2594_v51, %v2402_v12  ;;  %v1330_v22 = vsel %vm5536_vm6, %v4523_v16, %v1329_v54  ;;  %v3828_v12 = vunpack.c.l.b16 %v1932_v48  ;;  %v3829_v34 = vunpack.c.l.b16 %v1935_v35 }
 0x16a   : > { %v3139_v15 = vunpack.c.l.b16 %v1330_v22  ;;  %v3140_v54 = vunpack.c.l.b16 %v1333_v9  ;;  %v1513_v23 = vrot.slane %v1512_v57, 4  ;;  %v1523_v10 = vrot.slane %v1522_v8, 4 }
 0x16b   : > { %v1527_v60 = vrot.slane %v1525_v26, 5  ;;  %v1938_v16 = vrot.slane %v5993_v18, 5  ;;  %v4603_v9 = vrot.slane %v4587_v3, 9  ;;  %v4508_v18 = vld [vmem:[%s5341_s29 + $0x24] sm:$0xe] }
 0x16c   : > { %v3060_v1 = vpop.f32.mrf.mxu0  ;;  %v3170_v45 = vpack.c.b16 %v3140_v54, %v3139_v15 }
 0x16d   : > { %v2835_v0 = vpop.f32.mrf.mxu3  ;;  %4934 = vmatmul.msk.bf16.vlgmr.msra.gmra.mxu2 %vm2099_vm3, %v5025_v13  ;;  %v2406_v6 = vpop.f32.mrf.mxu1  ;;  %v4542_v13 = vld [vmem:[%s5341_s29 + $0x30] sm:$0xf]  ;;  %v1528_v22 = vsel %vm5353_vm2, %v1523_v10, %v1527_v60  ;;  %v5026_v60 = vld [vmem:[%s5341_s29 + $0x24] sm:$0xff] }
 0x16e   : > { %v2893_v44 = vadd.f32 %v2835_v0, %v2652_v25  ;;  %v3860_v25 = vpack.c.b16 %v3829_v34, %v3828_v12  ;;  %v1518_v0 = vsel %vm5353_vm2, %v1513_v23, %v6013_v40  ;;  %v1530_v8 = vshrl.u32 %v4542_v13, 16  ;;  %v5230_v34 = vld [vmem:[%s5341_s29 + $0x2c] sm:$0x1] }
 0x16f   : > { %v1940_v12 = vrot.slane %v1938_v16, 4  ;;  %v1941_v40 = vrot.slane %v6019_v29, 5  ;;  %v3605_v54 = vunpack.c.l.b16 %v1518_v0  ;;  %v1338_v23 = vrot.slane %v1336_v55, 4 }
 0x170   : > { %v2597_v50 = vpop.f32.mrf.mxu2  ;;  %v6040_v28 = vadd.f32 %v3060_v1, %v2893_v44  ;;  %v1533_v1 = vshll.u32 %v4542_v13, 16  ;;  %v1539_v44 = vshll.u32 %v6038_v56, 16  ;;  %v3606_v3 = vunpack.c.l.b16 %v1528_v22 }
 0x171   : > { %v2653_v51 = vadd.f32 %v2597_v50, %v2405_v62  ;;  %v2407_v62 = vadd.f32 %v2406_v6, %v5659_v58  ;;  %v1339_v50 = vrot.slane %v5230_v34, 5  ;;  %v1939_v13 = vsel %vm5536_vm6, %v4603_v9, %v1938_v16 }
 0x172   : > { %4954 = vmatmul.msk.bf16.vlgmr.msra.gmra.mxu3 %vm2099_vm3, %v3635_v39  ;;  %v1543_v39 = vshrl.u32 %v6038_v56, 16  ;;  %v1532_v58 = vrot.slane %v1530_v8, 4  ;;  %v1535_v6 = vrot.slane %v1533_v1, 5  ;;  %v6061_v29 = vrot.slane %v1539_v44, 5 }
 0x173   : > { %v1340_v22 = vsel %vm5536_vm6, %v1338_v23, %v1339_v50  ;;  %v3830_v9 = vunpack.c.l.b16 %v1939_v13  ;;  %v4588_v13 = vld [vmem:[%s5341_s29 + $0x30] sm:$0xe] }
 0x174   : > { %v3063_v48 = vpop.f32.mrf.mxu0  ;;  %v1545_v61 = vrot.slane %v1543_v39, 4  ;;  %v1536_v44 = vor.u32 %v1535_v6, %v1532_v58 }
 0x175   : > { %v2838_v35 = vpop.f32.mrf.mxu3  ;;  %v2409_v57 = vpop.f32.mrf.mxu1 }
 0x176   : > { %v2894_v26 = vadd.f32 %v2838_v35, %v2653_v51  ;;  %v4524_v51 = vrot.slane %v4508_v18, 9  ;;  %v6070_v18 = vld [vmem:[%s5341_s29 + $0x38] sm:$0x1]  ;;  %v1546_v39 = vor.u32 %v1545_v61, %v6061_v29  ;;  %v1537_v23 = vrot.slane %v1536_v44, 4 }
 0x177   : > { %4974 = vmatmul.msk.bf16.vlgmr.msra.gmra.mxu0 %vm2099_vm3, %v3860_v25 }
 0x178   : > { %v2599_v15 = vpop.f32.mrf.mxu2  ;;  %4851 = vmatmul.msk.bf16.gmra.mxu1 %vm2099_vm3, %v3170_v45  ;;  %v6059_v25 = vadd.f32 %v3063_v48, %v2894_v26  ;;  %v1942_v45 = vsel %vm5536_vm6, %v1940_v12, %v1941_v40  ;;  %v1337_v0 = vsel %vm5536_vm6, %v4524_v51, %v1336_v55  ;;  %v3636_v48 = vpack.c.b16 %v3606_v3, %v3605_v54  ;;  %v6078_v51 = vld [vmem:[%s5341_s29 + $0x40] sm:$0xf] }
 0x179   : > { %v2654_v10 = vadd.f32 %v2599_v15, %v2407_v62  ;;  %v3831_v1 = vunpack.c.l.b16 %v1942_v45  ;;  %v2410_v55 = vadd.f32 %v2409_v57, %v5676_v11  ;;  %v3141_v62 = vunpack.c.l.b16 %v1337_v0  ;;  %v4544_v15 = vld [vmem:[%s5341_s29 + $0x3c] sm:$0xf] }
 0x17a   : > { %v3142_v12 = vunpack.c.l.b16 %v1340_v22  ;;  %v1549_v40 = vshll.u32 %v6070_v18, 16  ;;  %v1945_v11 = vrot.slane %v6038_v56, 5  ;;  %v1554_v6 = vshrl.u32 %v4544_v15, 16 }
 0x17b   : > { %v3861_v54 = vpack.c.b16 %v3831_v1, %v3830_v9  ;;  %v1557_v61 = vshll.u32 %v4544_v15, 16  ;;  %v1563_v45 = vshll.u32 %v6078_v51, 16  ;;  %v1567_v0 = vshrl.u32 %v6078_v51, 16  ;;  %v5232_v1 = vld [vmem:[%s5341_s29 + $0x38] sm:$0x1] }
 0x17c   : > { %v3065_v35 = vpop.f32.mrf.mxu0  ;;  %v1551_v3 = vrot.slane %v1549_v40, 5  ;;  %v1346_v44 = vrot.slane %v5232_v1, 5  ;;  %v1948_v56 = vrot.slane %v6070_v18, 5  ;;  %v1947_v40 = vrot.slane %v1945_v11, 4  ;;  %v6105_v1 = vld [vmem:[%s5341_s29 + $0x44] sm:$0x1] }
 0x17d   : > { %v2840_v16 = vpop.f32.mrf.mxu3  ;;  %4935 = vmatmul.msk.bf16.gmra.mxu2 %vm2099_vm3, %v5026_v60  ;;  %v2411_v8 = vpop.f32.mrf.mxu1  ;;  %v3171_v60 = vpack.c.b16 %v3142_v12, %v3141_v62  ;;  %v1542_v62 = vsel %vm5353_vm2, %v1537_v23, %v6061_v29  ;;  %v1559_v15 = vrot.slane %v1557_v61, 5  ;;  %v6099_v18 = vrot.slane %v1563_v45, 5 }
 0x17e   : > { %v2895_v26 = vadd.f32 %v2840_v16, %v2654_v10  ;;  %v1547_v10 = vrot.slane %v1546_v39, 4  ;;  %v3607_v29 = vunpack.c.l.b16 %v1542_v62 }
 0x180   : > { %v2602_v34 = vpop.f32.mrf.mxu2  ;;  %v6083_v57 = vadd.f32 %v3065_v35, %v2895_v26  ;;  %v4509_v35 = vld [vmem:[%s5341_s29 + $0x30] sm:$0xe]  ;;  %v2412_v26 = vadd.f32 %v2411_v8, %v5697_v47  ;;  %v1552_v12 = vsel %vm5353_vm2, %v1547_v10, %v1551_v3 }
 0x181   : > { %v2655_v50 = vadd.f32 %v2602_v34, %v2410_v55  ;;  %v4604_v55 = vrot.slane %v4588_v13, 9  ;;  %v1569_v13 = vrot.slane %v1567_v0, 4  ;;  %v4525_v47 = vrot.slane %v4509_v35, 9 }
 0x182   : > { %4955 = vmatmul.msk.bf16.gmra.mxu3 %vm2099_vm3, %v3636_v48  ;;  %v5231_v48 = vld [vmem:[%s5341_s29 + $0x34] sm:$0xf]  ;;  %v3608_v23 = vunpack.c.l.b16 %v1552_v12 }
 0x183   : > { %v1343_v9 = vrot.slane %v5231_v48, 5  ;;  %v1946_v3 = vsel %vm5536_vm6, %v4604_v55, %v1945_v11  ;;  %v1573_v11 = vshll.u32 %v6105_v1, 16 }
 0x184   : > { %v3068_v58 = vpop.f32.mrf.mxu0  ;;  %v3637_v35 = vpack.c.b16 %v3608_v23, %v3607_v29  ;;  %v5233_v23 = vld [vmem:[%s5341_s29 + $0x40] sm:$0xf] }
 0x185   : > { %v2843_v22 = vpop.f32.mrf.mxu3  ;;  %v2414_v16 = vpop.f32.mrf.mxu1  ;;  %v1345_v8 = vrot.slane %v1343_v9, 4 }
 0x186   : > { %v2896_v39 = vadd.f32 %v2843_v22, %v2655_v50  ;;  %v1556_v50 = vrot.slane %v1554_v6, 4  ;;  %v5027_v22 = vld [vmem:[%s5341_s29 + $0x30] sm:$0xff] }
 0x187   : > { %4975 = vmatmul.msk.bf16.gmra.mxu0 %vm2099_vm3, %v3861_v54  ;;  %v1347_v0 = vsel %vm5536_vm6, %v1345_v8, %v1346_v44  ;;  %v6124_v8 = vld [vmem:[%s5341_s29 + $0x4c] sm:$0xf] }
 0x188   : > { %v2604_v34 = vpop.f32.mrf.mxu2  ;;  %4852 = vmatmul.msk.bf16.gmra.mxu1 %vm2099_vm3, %v3171_v60  ;;  %v6102_v48 = vadd.f32 %v3068_v58, %v2896_v39  ;;  %v1949_v60 = vsel %vm5536_vm6, %v1947_v40, %v1948_v56  ;;  %v1560_v6 = vor.u32 %v1559_v15, %v1556_v50  ;;  %v1344_v58 = vsel %vm5536_vm6, %v4525_v47, %v1343_v9 }
 0x189   : > { %v2656_v54 = vadd.f32 %v2604_v34, %v2412_v26  ;;  %v1570_v39 = vor.u32 %v1569_v13, %v6099_v18  ;;  %v2415_v56 = vadd.f32 %v2414_v16, %v5720_v14  ;;  %v3832_v26 = vunpack.c.l.b16 %v1946_v3  ;;  %v4589_v13 = vld [vmem:[%s5341_s29 + $0x3c] sm:$0xe] }
 0x18a   : > { %v3833_v62 = vunpack.c.l.b16 %v1949_v60  ;;  %v3143_v40 = vunpack.c.l.b16 %v1344_v58  ;;  %v3144_v9 = vunpack.c.l.b16 %v1347_v0  ;;  %v1561_v50 = vrot.slane %v1560_v6, 4 }
 0x18b   : > { %v1571_v44 = vrot.slane %v1570_v39, 4  ;;  %v1575_v15 = vrot.slane %v1573_v11, 5  ;;  %v1952_v47 = vrot.slane %v6078_v51, 5  ;;  %v1350_v3 = vrot.slane %v5233_v23, 5  ;;  %v4510_v51 = vld [vmem:[%s5341_s29 + $0x3c] sm:$0xe] }
 0x18c   : > { %v3070_v10 = vpop.f32.mrf.mxu0  ;;  %v3172_v29 = vpack.c.b16 %v3144_v9, %v3143_v40  ;;  %v4605_v0 = vrot.slane %v4589_v13, 9 }
 0x18d   : > { %v2845_v61 = vpop.f32.mrf.mxu3  ;;  %4936 = vmatmul.msk.bf16.gmra.mxu2 %vm2099_vm3, %v5027_v22  ;;  %v2416_v45 = vpop.f32.mrf.mxu1  ;;  %v4546_v22 = vld [vmem:[%s5341_s29 + $0x48] sm:$0xf]  ;;  %v1576_v58 = vsel %vm5353_vm2, %v1571_v44, %v1575_v15  ;;  %v5028_v15 = vld [vmem:[%s5341_s29 + $0x3c] sm:$0xff] }
 0x18e   : > { %v2897_v55 = vadd.f32 %v2845_v61, %v2656_v54  ;;  %v3862_v54 = vpack.c.b16 %v3833_v62, %v3832_v26  ;;  %v1566_v61 = vsel %vm5353_vm2, %v1561_v50, %v6099_v18  ;;  %v1578_v39 = vshrl.u32 %v4546_v22, 16  ;;  %v5234_v62 = vld [vmem:[%s5341_s29 + $0x44] sm:$0x1] }
 0x18f   : > { %v1954_v26 = vrot.slane %v1952_v47, 4  ;;  %v1955_v18 = vrot.slane %v6105_v1, 5  ;;  %v3609_v9 = vunpack.c.l.b16 %v1566_v61  ;;  %v1352_v50 = vrot.slane %v1350_v3, 4 }
 0x190   : > { %v2607_v12 = vpop.f32.mrf.mxu2  ;;  %v6126_v14 = vadd.f32 %v3070_v10, %v2897_v55  ;;  %v1581_v10 = vshll.u32 %v4546_v22, 16  ;;  %v1587_v55 = vshll.u32 %v6124_v8, 16  ;;  %v3610_v13 = vunpack.c.l.b16 %v1576_v58 }
 0x191   : > { %v2657_v34 = vadd.f32 %v2607_v12, %v2415_v56  ;;  %v2417_v56 = vadd.f32 %v2416_v45, %v5738_v52  ;;  %v1353_v12 = vrot.slane %v5234_v62, 5  ;;  %v1953_v22 = vsel %vm5536_vm6, %v4605_v0, %v1952_v47 }
 0x192   : > { %4956 = vmatmul.msk.bf16.gmra.mxu3 %vm2099_vm3, %v3637_v35  ;;  %v1591_v35 = vshrl.u32 %v6124_v8, 16  ;;  %v1580_v52 = vrot.slane %v1578_v39, 4  ;;  %v1583_v45 = vrot.slane %v1581_v10, 5  ;;  %v6147_v1 = vrot.slane %v1587_v55, 5 }
 0x193   : > { %v1354_v58 = vsel %vm5536_vm6, %v1352_v50, %v1353_v12  ;;  %v3834_v0 = vunpack.c.l.b16 %v1953_v22  ;;  %v4590_v22 = vld [vmem:[%s5341_s29 + $0x48] sm:$0xe] }
 0x194   : > { %v3073_v16 = vpop.f32.mrf.mxu0  ;;  %v1593_v23 = vrot.slane %v1591_v35, 4  ;;  %v1584_v55 = vor.u32 %v1583_v45, %v1580_v52 }
 0x195   : > { %v2848_v60 = vpop.f32.mrf.mxu3  ;;  %v2419_v6 = vpop.f32.mrf.mxu1 }
 0x196   : > { %v2898_v11 = vadd.f32 %v2848_v60, %v2657_v34  ;;  %v4526_v34 = vrot.slane %v4510_v51, 9  ;;  %v6156_v51 = vld [vmem:[%s5341_s29 + $0x50] sm:$0x1]  ;;  %v1594_v35 = vor.u32 %v1593_v23, %v6147_v1  ;;  %v1585_v50 = vrot.slane %v1584_v55, 4 }
 0x197   : > { %4976 = vmatmul.msk.bf16.gmra.mxu0 %vm2099_vm3, %v3862_v54 }
 0x198   : > { %v2609_v40 = vpop.f32.mrf.mxu2  ;;  %4853 = vmatmul.msk.bf16.gmra.mxu1 %vm2099_vm3, %v3172_v29  ;;  %v6145_v54 = vadd.f32 %v3073_v16, %v2898_v11  ;;  %v1956_v29 = vsel %vm5536_vm6, %v1954_v26, %v1955_v18  ;;  %v1351_v61 = vsel %vm5536_vm6, %v4526_v34, %v1350_v3  ;;  %v3638_v16 = vpack.c.b16 %v3610_v13, %v3609_v9  ;;  %v6164_v34 = vld [vmem:[%s5341_s29 + $0x58] sm:$0xf] }
 0x199   : > { %v2658_v44 = vadd.f32 %v2609_v40, %v2417_v56  ;;  %v3835_v10 = vunpack.c.l.b16 %v1956_v29  ;;  %v2420_v3 = vadd.f32 %v2419_v6, %v5759_v33  ;;  %v3145_v56 = vunpack.c.l.b16 %v1351_v61  ;;  %v4548_v40 = vld [vmem:[%s5341_s29 + $0x54] sm:$0xf] }
 0x19a   : > { %v3146_v26 = vunpack.c.l.b16 %v1354_v58  ;;  %v1597_v18 = vshll.u32 %v6156_v51, 16  ;;  %v1959_v33 = vrot.slane %v6124_v8, 5  ;;  %v1602_v45 = vshrl.u32 %v4548_v40, 16 }
 0x19b   : > { %v3863_v9 = vpack.c.b16 %v3835_v10, %v3834_v0  ;;  %v1605_v23 = vshll.u32 %v4548_v40, 16  ;;  %v1611_v29 = vshll.u32 %v6164_v34, 16  ;;  %v1615_v61 = vshrl.u32 %v6164_v34, 16  ;;  %v5236_v10 = vld [vmem:[%s5341_s29 + $0x50] sm:$0x1] }
 0x19c   : > { %v3075_v60 = vpop.f32.mrf.mxu0  ;;  %v1599_v13 = vrot.slane %v1597_v18, 5  ;;  %v1360_v55 = vrot.slane %v5236_v10, 5  ;;  %v1962_v8 = vrot.slane %v6156_v51, 5  ;;  %v1961_v18 = vrot.slane %v1959_v33, 4  ;;  %v6191_v10 = vld [vmem:[%s5341_s29 + $0x5c] sm:$0x1] }
 0x19d   : > { %v2850_v47 = vpop.f32.mrf.mxu3  ;;  %4937 = vmatmul.msk.bf16.gmra.mxu2 %vm2099_vm3, %v5028_v15  ;;  %v2421_v39 = vpop.f32.mrf.mxu1  ;;  %v3173_v15 = vpack.c.b16 %v3146_v26, %v3145_v56  ;;  %v1590_v56 = vsel %vm5353_vm2, %v1585_v50, %v6147_v1  ;;  %v1607_v40 = vrot.slane %v1605_v23, 5  ;;  %v6185_v51 = vrot.slane %v1611_v29, 5 }
 0x19e   : > { %v2899_v11 = vadd.f32 %v2850_v47, %v2658_v44  ;;  %v1595_v44 = vrot.slane %v1594_v35, 4  ;;  %v3611_v1 = vunpack.c.l.b16 %v1590_v56 }
 0x1a0   : > { %v2612_v62 = vpop.f32.mrf.mxu2  ;;  %v6169_v6 = vadd.f32 %v3075_v60, %v2899_v11  ;;  %v4511_v60 = vld [vmem:[%s5341_s29 + $0x48] sm:$0xe]  ;;  %v2422_v11 = vadd.f32 %v2421_v39, %v5774_v2  ;;  %v1600_v26 = vsel %vm5353_vm2, %v1595_v44, %v1599_v13 }
 0x1a1   : > { %v2659_v12 = vadd.f32 %v2612_v62, %v2420_v3  ;;  %v4606_v3 = vrot.slane %v4590_v22, 9  ;;  %v1617_v22 = vrot.slane %v1615_v61, 4  ;;  %v4527_v2 = vrot.slane %v4511_v60, 9 }
 0x1a2   : > { %4957 = vmatmul.msk.bf16.gmra.mxu3 %vm2099_vm3, %v3638_v16  ;;  %v5235_v16 = vld [vmem:[%s5341_s29 + $0x4c] sm:$0xf]  ;;  %v3612_v50 = vunpack.c.l.b16 %v1600_v26 }
 0x1a3   : > { %v1357_v0 = vrot.slane %v5235_v16, 5  ;;  %v1960_v13 = vsel %vm5536_vm6, %v4606_v3, %v1959_v33  ;;  %v1621_v33 = vshll.u32 %v6191_v10, 16 }
 0x1a4   : > { %v3078_v52 = vpop.f32.mrf.mxu0  ;;  %v3639_v60 = vpack.c.b16 %v3612_v50, %v3611_v1  ;;  %v5237_v50 = vld [vmem:[%s5341_s29 + $0x58] sm:$0xf] }
 0x1a5   : > { %v2853_v58 = vpop.f32.mrf.mxu3  ;;  %v2424_v47 = vpop.f32.mrf.mxu1  ;;  %v1359_v39 = vrot.slane %v1357_v0, 4 }
 0x1a6   : > { %v2900_v35 = vadd.f32 %v2853_v58, %v2659_v12  ;;  %v1604_v12 = vrot.slane %v1602_v45, 4  ;;  %v5029_v58 = vld [vmem:[%s5341_s29 + $0x48] sm:$0xff] }
 0x1a7   : > { %4977 = vmatmul.msk.bf16.gmra.mxu0 %vm2099_vm3, %v3863_v9  ;;  %v1361_v61 = vsel %vm5536_vm6, %v1359_v39, %v1360_v55  ;;  %v6210_v39 = vld [vmem:[%s5341_s29 + $0x64] sm:$0xf] }
 0x1a8   : > { %v2614_v62 = vpop.f32.mrf.mxu2  ;;  %4854 = vmatmul.msk.bf16.gmra.mxu1 %vm2099_vm3, %v3173_v15  ;;  %v6188_v16 = vadd.f32 %v3078_v52, %v2900_v35  ;;  %v1963_v15 = vsel %vm5536_vm6, %v1961_v18, %v1962_v8  ;;  %v1608_v45 = vor.u32 %v1607_v40, %v1604_v12  ;;  %v1358_v52 = vsel %vm5536_vm6, %v4527_v2, %v1357_v0 }
 0x1a9   : > { %v2660_v9 = vadd.f32 %v2614_v62, %v2422_v11  ;;  %v1618_v35 = vor.u32 %v1617_v22, %v6185_v51  ;;  %v2425_v8 = vadd.f32 %v2424_v47, %v5650_v41  ;;  %v3836_v11 = vunpack.c.l.b16 %v1960_v13  ;;  %v4591_v22 = vld [vmem:[%s5341_s29 + $0x54] sm:$0xe] }
 0x1aa   : > { %v3837_v56 = vunpack.c.l.b16 %v1963_v15  ;;  %v3147_v18 = vunpack.c.l.b16 %v1358_v52  ;;  %v3148_v0 = vunpack.c.l.b16 %v1361_v61  ;;  %v1609_v12 = vrot.slane %v1608_v45, 4 }
 0x1ab   : > { %v1619_v55 = vrot.slane %v1618_v35, 4  ;;  %v1623_v40 = vrot.slane %v1621_v33, 5  ;;  %v1966_v2 = vrot.slane %v6164_v34, 5  ;;  %v1364_v13 = vrot.slane %v5237_v50, 5  ;;  %v4512_v34 = vld [vmem:[%s5341_s29 + $0x54] sm:$0xe] }
 0x1ac   : > { %v3080_v44 = vpop.f32.mrf.mxu0  ;;  %v3174_v1 = vpack.c.b16 %v3148_v0, %v3147_v18  ;;  %v4607_v61 = vrot.slane %v4591_v22, 9 }
 0x1ad   : > { %v2855_v23 = vpop.f32.mrf.mxu3  ;;  %4938 = vmatmul.msk.bf16.gmra.mxu2 %vm2099_vm3, %v5029_v58  ;;  %v2426_v29 = vpop.f32.mrf.mxu1  ;;  %v4550_v58 = vld [vmem:[%s5341_s29 + $0x60] sm:$0xf]  ;;  %v1624_v52 = vsel %vm5353_vm2, %v1619_v55, %v1623_v40  ;;  %v5030_v40 = vld [vmem:[%s5341_s29 + $0x54] sm:$0xff] }
 0x1ae   : > { %v2901_v3 = vadd.f32 %v2855_v23, %v2660_v9  ;;  %v3864_v9 = vpack.c.b16 %v3837_v56, %v3836_v11  ;;  %v1614_v23 = vsel %vm5353_vm2, %v1609_v12, %v6185_v51  ;;  %v1626_v35 = vshrl.u32 %v4550_v58, 16  ;;  %v5238_v56 = vld [vmem:[%s5341_s29 + $0x5c] sm:$0x1] }
 0x1af   : > { %v1968_v11 = vrot.slane %v1966_v2, 4  ;;  %v1969_v51 = vrot.slane %v6191_v10, 5  ;;  %v3613_v0 = vunpack.c.l.b16 %v1614_v23  ;;  %v1366_v12 = vrot.slane %v1364_v13, 4 }
 0x1b0   : > { %v2617_v26 = vpop.f32.mrf.mxu2  ;;  %v6212_v41 = vadd.f32 %v3080_v44, %v2901_v3  ;;  %v1629_v44 = vshll.u32 %v4550_v58, 16  ;;  %v1635_v3 = vshll.u32 %v6210_v39, 16  ;;  %v3614_v22 = vunpack.c.l.b16 %v1624_v52 }
 0x1b1   : > { %v2661_v62 = vadd.f32 %v2617_v26, %v2425_v8  ;;  %v2427_v8 = vadd.f32 %v2426_v29, %v5669_v59  ;;  %v1367_v26 = vrot.slane %v5238_v56, 5  ;;  %v1967_v58 = vsel %vm5536_vm6, %v4607_v61, %v1966_v2 }
 0x1b2   : > { %4958 = vmatmul.msk.bf16.gmra.mxu3 %vm2099_vm3, %v3639_v60  ;;  %v1639_v60 = vshrl.u32 %v6210_v39, 16  ;;  %v1628_v59 = vrot.slane %v1626_v35, 4  ;;  %v1631_v29 = vrot.slane %v1629_v44, 5  ;;  %v6233_v10 = vrot.slane %v1635_v3, 5 }
 0x1b3   : > { %v1368_v52 = vsel %vm5536_vm6, %v1366_v12, %v1367_v26  ;;  %v3838_v61 = vunpack.c.l.b16 %v1967_v58  ;;  %v4592_v58 = vld [vmem:[%s5341_s29 + $0x60] sm:$0xe] }
 0x1b4   : > { %v3083_v47 = vpop.f32.mrf.mxu0  ;;  %v1641_v50 = vrot.slane %v1639_v60, 4  ;;  %v1632_v3 = vor.u32 %v1631_v29, %v1628_v59 }
 0x1b5   : > { %v2858_v15 = vpop.f32.mrf.mxu3  ;;  %v2429_v45 = vpop.f32.mrf.mxu1 }
 0x1b6   : > { %v2902_v33 = vadd.f32 %v2858_v15, %v2661_v62  ;;  %v4528_v62 = vrot.slane %v4512_v34, 9  ;;  %v6242_v34 = vld [vmem:[%s5341_s29 + $0x68] sm:$0x1]  ;;  %v1642_v60 = vor.u32 %v1641_v50, %v6233_v10  ;;  %v1633_v12 = vrot.slane %v1632_v3, 4 }
 0x1b7   : > { %4978 = vmatmul.msk.bf16.gmra.mxu0 %vm2099_vm3, %v3864_v9 }
 0x1b8   : > { %v2619_v18 = vpop.f32.mrf.mxu2  ;;  %4855 = vmatmul.msk.bf16.gmra.mxu1 %vm2099_vm3, %v3174_v1  ;;  %v6231_v9 = vadd.f32 %v3083_v47, %v2902_v33  ;;  %v1970_v1 = vsel %vm5536_vm6, %v1968_v11, %v1969_v51  ;;  %v1365_v23 = vsel %vm5536_vm6, %v4528_v62, %v1364_v13  ;;  %v3640_v47 = vpack.c.b16 %v3614_v22, %v3613_v0  ;;  %v6250_v62 = vld [vmem:[%s5341_s29 + $0x70] sm:$0xf] }
 0x1b9   : > { %v2662_v55 = vadd.f32 %v2619_v18, %v2427_v8  ;;  %v3839_v44 = vunpack.c.l.b16 %v1970_v1  ;;  %v2430_v13 = vadd.f32 %v2429_v45, %v5690_v32  ;;  %v3149_v8 = vunpack.c.l.b16 %v1365_v23  ;;  %v4552_v18 = vld [vmem:[%s5341_s29 + $0x6c] sm:$0xf] }
 0x1ba   : > { %v3150_v11 = vunpack.c.l.b16 %v1368_v52  ;;  %v1645_v51 = vshll.u32 %v6242_v34, 16  ;;  %v1973_v32 = vrot.slane %v6210_v39, 5  ;;  %v1650_v29 = vshrl.u32 %v4552_v18, 16 }
 0x1bb   : > { %v3865_v0 = vpack.c.b16 %v3839_v44, %v3838_v61  ;;  %v1653_v50 = vshll.u32 %v4552_v18, 16  ;;  %v1659_v1 = vshll.u32 %v6250_v62, 16  ;;  %v1663_v23 = vshrl.u32 %v6250_v62, 16  ;;  %v5240_v44 = vld [vmem:[%s5341_s29 + $0x68] sm:$0x1] }
 0x1bc   : > { %v3085_v15 = vpop.f32.mrf.mxu0  ;;  %v1647_v22 = vrot.slane %v1645_v51, 5  ;;  %v1374_v3 = vrot.slane %v5240_v44, 5  ;;  %v1976_v39 = vrot.slane %v6242_v34, 5  ;;  %v1975_v51 = vrot.slane %v1973_v32, 4 }
 0x1bd   : > { %v2860_v2 = vpop.f32.mrf.mxu3  ;;  %4939 = vmatmul.msk.bf16.gmra.mxu2 %vm2099_vm3, %v5030_v40  ;;  %v2431_v35 = vpop.f32.mrf.mxu1  ;;  %v3175_v40 = vpack.c.b16 %v3150_v11, %v3149_v8  ;;  %v1638_v8 = vsel %vm5353_vm2, %v1633_v12, %v6233_v10  ;;  %v1655_v18 = vrot.slane %v1653_v50, 5  ;;  %v1661_v34 = vrot.slane %v1659_v1, 5  ;;  %v6275_v12 = vld [vmem:[%s5341_s29 + $0x74] sm:$0x1] }
 0x1be   : > { %v2903_v33 = vadd.f32 %v2860_v2, %v2662_v55  ;;  %v1643_v55 = vrot.slane %v1642_v60, 4  ;;  %v3615_v44 = vunpack.c.l.b16 %v1638_v8 }
 0x1c0   : > { %v2622_v56 = vpop.f32.mrf.mxu2  ;;  %v6255_v45 = vadd.f32 %v3085_v15, %v2903_v33  ;;  %v4513_v15 = vld [vmem:[%s5341_s29 + $0x60] sm:$0xe]  ;;  %v2432_v33 = vadd.f32 %v2431_v35, %v5709_v63  ;;  %v1648_v11 = vsel %vm5353_vm2, %v1643_v55, %v1647_v22 }
 0x1c1   : > { %v2663_v26 = vadd.f32 %v2622_v56, %v2430_v13  ;;  %v4608_v13 = vrot.slane %v4592_v58, 9  ;;  %v1665_v58 = vrot.slane %v1663_v23, 4  ;;  %v3616_v10 = vunpack.c.l.b16 %v1648_v11 }
 0x1c2   : > { %4959 = vmatmul.msk.bf16.gmra.mxu3 %vm2099_vm3, %v3640_v47  ;;  %6853 = vst [vmem:[#allocation4_spill] sm:$0xff] %v6255_v45  ;;  %v5239_v47 = vld [vmem:[%s5341_s29 + $0x64] sm:$0xf] }
 0x1c3   : > { %v1371_v61 = vrot.slane %v5239_v47, 5  ;;  %v4529_v47 = vrot.slane %v4513_v15, 9  ;;  %v1974_v55 = vsel %vm5536_vm6, %v4608_v13, %v1973_v32  ;;  %v1666_v23 = vor.u32 %v1665_v58, %v1661_v34  ;;  %v4554_v58 = vld [vmem:[%s5341_s29 + $0x78] sm:$0xf] }
 0x1c4   : > { %v3088_v59 = vpop.f32.mrf.mxu0  ;;  %v3641_v13 = vpack.c.b16 %v3616_v10, %v3615_v44  ;;  %v3840_v15 = vunpack.c.l.b16 %v1974_v55 }
 0x1c5   : > { %v2863_v52 = vpop.f32.mrf.mxu3  ;;  %v2434_v2 = vpop.f32.mrf.mxu1  ;;  %v1373_v63 = vrot.slane %v1371_v61, 4 }
 0x1c6   : > { %v2904_v60 = vadd.f32 %v2863_v52, %v2663_v26  ;;  %v1652_v26 = vrot.slane %v1650_v29, 4 }
 0x1c7   : > { %4979 = vmatmul.msk.bf16.gmra.mxu0 %vm2099_vm3, %v3865_v0  ;;  %v5031_v0 = vld [vmem:[%s5341_s29 + $0x60] sm:$0xff]  ;;  %v1375_v1 = vsel %vm5536_vm6, %v1373_v63, %v1374_v3  ;;  %v4593_v3 = vld [vmem:[%s5341_s29 + $0x6c] sm:$0xe] }
 0x1c8   : > { %v2624_v56 = vpop.f32.mrf.mxu2  ;;  %4856 = vmatmul.msk.bf16.gmra.mxu1 %vm2099_vm3, %v3175_v40  ;;  %v6272_v35 = vadd.f32 %v3088_v59, %v2904_v60  ;;  %v1977_v40 = vsel %vm5536_vm6, %v1975_v51, %v1976_v39  ;;  %v1656_v22 = vor.u32 %v1655_v18, %v1652_v26  ;;  %v1372_v59 = vsel %vm5536_vm6, %v4529_v47, %v1371_v61  ;;  %v6293_v47 = vld [vmem:[%s5341_s29 + $0x7c] sm:$0xf] }
 0x1c9   : > { %v2664_v52 = vadd.f32 %v2624_v56, %v2432_v33  ;;  %v1669_v60 = vshll.u32 %v6275_v12, 16  ;;  %v2435_v39 = vadd.f32 %v2434_v2, %v5728_v36  ;;  %v3841_v33 = vunpack.c.l.b16 %v1977_v40 }
 0x1ca   : > { %v3151_v11 = vunpack.c.l.b16 %v1372_v59  ;;  %v3152_v51 = vunpack.c.l.b16 %v1375_v1  ;;  %v1657_v61 = vrot.slane %v1656_v22, 4  ;;  %v1667_v26 = vrot.slane %v1666_v23, 4  ;;  %v5241_v59 = vld [vmem:[%s5341_s29 + $0x70] sm:$0xf] }
 0x1cb   : > { %v1671_v18 = vrot.slane %v1669_v60, 5  ;;  %v4609_v44 = vrot.slane %v4593_v3, 9  ;;  %v1378_v1 = vrot.slane %v5241_v59, 5  ;;  %v1674_v23 = vshrl.u32 %v4554_v58, 16 }
 0x1cc   : > { %v3090_v45 = vpop.f32.mrf.mxu0  ;;  %v3176_v63 = vpack.c.b16 %v3152_v51, %v3151_v11  ;;  %v1662_v40 = vsel %vm5353_vm2, %v1657_v61, %v1661_v34  ;;  %v1677_v60 = vshll.u32 %v4554_v58, 16  ;;  %v5032_v61 = vld [vmem:[%s5341_s29 + $0x6c] sm:$0xff] }
 0x1cd   : > { %v2865_v29 = vpop.f32.mrf.mxu3  ;;  %4940 = vmatmul.msk.bf16.gmra.mxu2 %vm2099_vm3, %v5031_v0  ;;  %v2436_v50 = vpop.f32.mrf.mxu1  ;;  %v1980_v0 = vrot.slane %v6250_v62, 5  ;;  %v1672_v22 = vsel %vm5353_vm2, %v1667_v26, %v1671_v18  ;;  %v1380_v26 = vrot.slane %v1378_v1, 4  ;;  %v5242_v18 = vld [vmem:[%s5341_s29 + $0x74] sm:$0x1] }
 0x1ce   : > { %v2905_v32 = vadd.f32 %v2865_v29, %v2664_v52  ;;  %v3866_v52 = vpack.c.b16 %v3841_v33, %v3840_v15  ;;  %v4514_v29 = vld [vmem:[%s5341_s29 + $0x6c] sm:$0xe]  ;;  %v3617_v33 = vunpack.c.l.b16 %v1662_v40  ;;  %v1381_v3 = vrot.slane %v5242_v18, 5  ;;  %v6320_v40 = vld [vmem:[%s5341_s29 + $0x80] sm:$0x1] }
 0x1cf   : > { %v1982_v34 = vrot.slane %v1980_v0, 4  ;;  %v1981_v11 = vsel %vm5536_vm6, %v4609_v44, %v1980_v0  ;;  %v4530_v51 = vrot.slane %v4514_v29, 9 }
 0x1d0   : > { %v2627_v8 = vpop.f32.mrf.mxu2  ;;  %v6295_v36 = vadd.f32 %v3090_v45, %v2905_v32  ;;  %v1683_v45 = vshll.u32 %v6293_v47, 16  ;;  %v1687_v32 = vshrl.u32 %v6293_v47, 16  ;;  %v1382_v59 = vsel %vm5536_vm6, %v1380_v26, %v1381_v3  ;;  %v4594_v26 = vld [vmem:[%s5341_s29 + $0x78] sm:$0xe] }
 0x1d1   : > { %v2665_v56 = vadd.f32 %v2627_v8, %v2435_v39  ;;  %v1983_v39 = vrot.slane %v6275_v12, 5  ;;  %v3618_v8 = vunpack.c.l.b16 %v1672_v22  ;;  %v3842_v22 = vunpack.c.l.b16 %v1981_v11  ;;  %v6332_v11 = vld [vmem:[%s5341_s29 + $0x88] sm:$0xf] }
 0x1d2   : > { %4960 = vmatmul.msk.bf16.gmra.mxu3 %vm2099_vm3, %v3641_v13  ;;  %v2437_v13 = vadd.f32 %v2436_v50, %v5751_v4  ;;  %v1676_v4 = vrot.slane %v1674_v23, 4  ;;  %v1679_v50 = vrot.slane %v1677_v60, 5  ;;  %v6315_v12 = vrot.slane %v1683_v45, 5 }
 0x1d3   : > { %v3642_v44 = vpack.c.b16 %v3618_v8, %v3617_v33  ;;  %v1379_v29 = vsel %vm5536_vm6, %v4530_v51, %v1378_v1  ;;  %v4556_v33 = vld [vmem:[%s5341_s29 + $0x84] sm:$0xf] }
 0x1d4   : > { %v3093_v2 = vpop.f32.mrf.mxu0  ;;  %v1680_v60 = vor.u32 %v1679_v50, %v1676_v4  ;;  %v1701_v50 = vshll.u32 %v4556_v33, 16 }
 0x1d5   : > { %v2868_v10 = vpop.f32.mrf.mxu3  ;;  %v2439_v55 = vpop.f32.mrf.mxu1 }
 0x1d6   : > { %v2906_v62 = vadd.f32 %v2868_v10, %v2665_v56  ;;  %v1681_v51 = vrot.slane %v1680_v60, 4 }
 0x1d7   : > { %4980 = vmatmul.msk.bf16.gmra.mxu0 %vm2099_vm3, %v3866_v52  ;;  %v1689_v52 = vrot.slane %v1687_v32, 4  ;;  %v2440_v32 = vadd.f32 %v2439_v55, %v5770_v53  ;;  %v1987_v53 = vrot.slane %v6293_v47, 5  ;;  %v1698_v55 = vshrl.u32 %v4556_v33, 16 }
 0x1d8   : > { %v2629_v15 = vpop.f32.mrf.mxu2  ;;  %4857 = vmatmul.msk.bf16.gmra.mxu1 %vm2099_vm3, %v3176_v63  ;;  %v6313_v58 = vadd.f32 %v3093_v2, %v2906_v62  ;;  %v1984_v63 = vsel %vm5536_vm6, %v1982_v34, %v1983_v39  ;;  %v3153_v39 = vunpack.c.l.b16 %v1379_v29  ;;  %v5243_v29 = vld [vmem:[%s5341_s29 + $0x7c] sm:$0xf]  ;;  %v1686_v47 = vsel %vm5353_vm2, %v1681_v51, %v6315_v12 }
 0x1d9   : > { %v2666_v56 = vadd.f32 %v2629_v15, %v2437_v13  ;;  %v3843_v62 = vunpack.c.l.b16 %v1984_v63  ;;  %v1690_v45 = vor.u32 %v1689_v52, %v6315_v12  ;;  %v1693_v13 = vshll.u32 %v6320_v40, 16  ;;  %v5033_v51 = vld [vmem:[%s5341_s29 + $0x78] sm:$0xff] }
 0x1da   : > { %v3154_v15 = vunpack.c.l.b16 %v1382_v59  ;;  %v1707_v52 = vshll.u32 %v6332_v11, 16  ;;  %v1711_v63 = vshrl.u32 %v6332_v11, 16  ;;  %v1385_v59 = vrot.slane %v5243_v29, 5 }
 0x1db   : > { %v3867_v1 = vpack.c.b16 %v3843_v62, %v3842_v22  ;;  %v4515_v22 = vld [vmem:[%s5341_s29 + $0x78] sm:$0xe] }
 0x1dc   : > { %v3095_v10 = vpop.f32.mrf.mxu0  ;;  %v3177_v4 = vpack.c.b16 %v3154_v15, %v3153_v39  ;;  %v4531_v39 = vrot.slane %v4515_v22, 9  ;;  %v1703_v15 = vrot.slane %v1701_v50, 5  ;;  %v1709_v12 = vrot.slane %v1707_v52, 5 }
 0x1dd   : > { %v2870_v0 = vpop.f32.mrf.mxu3  ;;  %4941 = vmatmul.msk.bf16.gmra.mxu2 %vm2099_vm3, %v5032_v61  ;;  %v2441_v2 = vpop.f32.mrf.mxu1  ;;  %v1695_v61 = vrot.slane %v1693_v13, 5  ;;  %v1700_v13 = vrot.slane %v1698_v55, 4  ;;  %v1713_v33 = vrot.slane %v1711_v63, 4 }
 0x1de   : > { %v2907_v23 = vadd.f32 %v2870_v0, %v2666_v56  ;;  %v1691_v56 = vrot.slane %v1690_v45, 4  ;;  %v2442_v60 = vadd.f32 %v2441_v2, %v5787_v27  ;;  %v3619_v27 = vunpack.c.l.b16 %v1686_v47 }
 0x1df   : > { %v1704_v50 = vor.u32 %v1703_v15, %v1700_v13  ;;  %v1714_v29 = vor.u32 %v1713_v33, %v1709_v12 }
 0x1e0   : > { %v2632_v34 = vpop.f32.mrf.mxu2  ;;  %v6337_v18 = vadd.f32 %v3095_v10, %v2907_v23  ;;  %v4610_v10 = vrot.slane %v4594_v26, 9  ;;  %v1990_v23 = vrot.slane %v6320_v40, 5  ;;  %v1696_v45 = vsel %vm5353_vm2, %v1691_v56, %v1695_v61  ;;  %v5244_v26 = vld [vmem:[%s5341_s29 + $0x80] sm:$0x1]  ;;  %v6357_v56 = vld [vmem:[%s5341_s29 + $0x8c] sm:$0x1] }
 0x1e1   : > { %v2667_v8 = vadd.f32 %v2632_v34, %v2440_v32  ;;  %v1989_v32 = vrot.slane %v1987_v53, 4  ;;  %v1387_v40 = vrot.slane %v1385_v59, 4  ;;  %v3620_v2 = vunpack.c.l.b16 %v1696_v45 }
 0x1e2   : > { %4961 = vmatmul.msk.bf16.gmra.mxu3 %vm2099_vm3, %v3642_v44  ;;  %6854 = vst [vmem:[#allocation5_spill] sm:$0xff] %v6337_v18  ;;  %v1988_v61 = vsel %vm5536_vm6, %v4610_v10, %v1987_v53  ;;  %v1705_v15 = vrot.slane %v1704_v50, 4 }
 0x1e3   : > { %v1991_v55 = vsel %vm5536_vm6, %v1989_v32, %v1990_v23  ;;  %v3643_v47 = vpack.c.b16 %v3620_v2, %v3619_v27  ;;  %v3844_v10 = vunpack.c.l.b16 %v1988_v61  ;;  %v1994_v27 = vrot.slane %v6332_v11, 5 }
 0x1e4   : > { %v3098_v3 = vpop.f32.mrf.mxu0  ;;  %v3845_v23 = vunpack.c.l.b16 %v1991_v55  ;;  %v1710_v50 = vsel %vm5353_vm2, %v1705_v15, %v1709_v12 }
 0x1e5   : > { %v2873_v0 = vpop.f32.mrf.mxu3  ;;  %v3248_v44 = vpop.f32.mrf.mxu1 }
 0x1e6   : > { %v2908_v62 = vadd.f32 %v2873_v0, %v2667_v8  ;;  %v3328_v45 = vadd.f32 %v3248_v44, %v5804_v37  ;;  %v3868_v33 = vpack.c.b16 %v3845_v23, %v3844_v10 }
 0x1e7   : > { %4981 = vmatmul.msk.bf16.gmra.mxu0 %vm2099_vm3, %v3867_v1  ;;  %v1388_v1 = vrot.slane %v5244_v26, 5 }
 0x1e8   : > { %v2634_v34 = vpop.f32.mrf.mxu2  ;;  %4858 = vmatmul.msk.bf16.gmra.mxu1 %vm2099_vm3, %v3177_v4  ;;  %v6354_v0 = vadd.f32 %v3098_v3, %v2908_v62  ;;  %v1386_v3 = vsel %vm5536_vm6, %v4531_v39, %v1385_v59  ;;  %v1717_v62 = vshll.u32 %v6357_v56, 16  ;;  %v1715_v59 = vrot.slane %v1714_v29, 4 }
 0x1e9   : > { %v2668_v8 = vadd.f32 %v2634_v34, %v2442_v60  ;;  %v1389_v22 = vsel %vm5536_vm6, %v1387_v40, %v1388_v1  ;;  %v4558_v60 = vld [vmem:[%s5341_s29 + $0x90] sm:$0xf]  ;;  %v3155_v13 = vunpack.c.l.b16 %v1386_v3  ;;  %v4595_v40 = vld [vmem:[%s5341_s29 + $0x84] sm:$0xe] }
 0x1ea   : > { %6855 = vst [vmem:[#allocation6_spill] sm:$0xff] %v6354_v0  ;;  %v3156_v34 = vunpack.c.l.b16 %v1389_v22  ;;  %v1719_v39 = vrot.slane %v1717_v62, 5  ;;  %v1722_v26 = vshrl.u32 %v4558_v60, 16  ;;  %v1725_v1 = vshll.u32 %v4558_v60, 16  ;;  %v4516_v62 = vld [vmem:[%s5341_s29 + $0x84] sm:$0xe] }
 0x1eb   : > { %v4611_v29 = vrot.slane %v4595_v40, 9  ;;  %v3621_v60 = vunpack.c.l.b16 %v1710_v50  ;;  %v5248_v0 = vld [vmem:[%s5341_s29 + $0x98] sm:$0x1] }
 0x1ec   : > { %v3100_v4 = vpop.f32.mrf.mxu0  ;;  %v3178_v55 = vpack.c.b16 %v3156_v34, %v3155_v13  ;;  %v1720_v22 = vsel %vm5353_vm2, %v1715_v59, %v1719_v39  ;;  %v1724_v23 = vrot.slane %v1722_v26, 4  ;;  %v1727_v12 = vrot.slane %v1725_v1, 5  ;;  %v5246_v26 = vld [vmem:[%s5341_s29 + $0x8c] sm:$0x1] }
 0x1ed   : > { %v2875_v52 = vpop.f32.mrf.mxu3  ;;  %4942 = vmatmul.msk.bf16.gmra.mxu2 %vm2099_vm3, %v5033_v51  ;;  %v3250_v63 = vpop.f32.mrf.mxu1  ;;  %v6372_v51 = vld [vmem:[%s5341_s29 + $0x94] sm:$0xf]  ;;  %v3622_v39 = vunpack.c.l.b16 %v1720_v22  ;;  %v1995_v40 = vsel %vm5536_vm6, %v4611_v29, %v1994_v27  ;;  %v1395_v1 = vrot.slane %v5246_v26, 5  ;;  %v1402_v18 = vrot.slane %v5248_v0, 5 }
 0x1ee   : > { %v2909_v53 = vadd.f32 %v2875_v52, %v2668_v8  ;;  %v1731_v37 = vshll.u32 %v6372_v51, 16  ;;  %v1735_v44 = vshrl.u32 %v6372_v51, 16  ;;  %v3329_v15 = vadd.f32 %v3250_v63, %v5817_v38  ;;  %v4560_v63 = vld [vmem:[%s5341_s29 + $0x9c] sm:$0xf] }
 0x1ef   : > { %v1728_v38 = vor.u32 %v1727_v12, %v1724_v23  ;;  %v3644_v22 = vpack.c.b16 %v3622_v39, %v3621_v60  ;;  %v3846_v29 = vunpack.c.l.b16 %v1995_v40 }
 0x1f0   : > { %v3489_v32 = vpop.f32.mrf.mxu2  ;;  %v6379_v2 = vadd.f32 %v3100_v4, %v2909_v53  ;;  %v6390_v4 = vld [vmem:[%s6845_s2] ss:$0 sm:$0xff]  ;;  %v1997_v53 = vrot.slane %v6357_v56, 5  ;;  %v1737_v13 = vrot.slane %v1735_v44, 4  ;;  %v4532_v56 = vrot.slane %v4516_v62, 9 }
 0x1f1   : > { %v3569_v8 = vadd.f32 %v3489_v32, %v3328_v45  ;;  %v1996_v45 = vrot.slane %v1994_v27, 4  ;;  %v6394_v32 = vrot.slane %v1731_v37, 5 }
 0x1f2   : > { %4962 = vmatmul.msk.bf16.gmra.mxu3 %vm2099_vm3, %v3643_v47  ;;  %6856 = vst [vmem:[#allocation7_spill] sm:$0xff] %v6379_v2  ;;  %v5245_v47 = vld [vmem:[%s5341_s29 + $0x88] sm:$0xf] }
 0x1f3   : > { %v1392_v11 = vrot.slane %v5245_v47, 5  ;;  %v1738_v50 = vor.u32 %v1737_v13, %v6394_v32  ;;  %v6416_v47 = vld [vmem:[%s5341_s29 + $0xa0] sm:$0xf]  ;;  %v1749_v13 = vshll.u32 %v4560_v63, 16 }
 0x1f4   : > { %v3939_v61 = vpop.f32.mrf.mxu0 }
 0x1f5   : > { %v3714_v52 = vpop.f32.mrf.mxu3  ;;  %v3253_v3 = vpop.f32.mrf.mxu1  ;;  %v1393_v62 = vsel %vm5536_vm6, %v4532_v56, %v1392_v11  ;;  %v1755_v56 = vshll.u32 %v6416_v47, 16 }
 0x1f6   : > { %v3794_v10 = vadd.f32 %v3714_v52, %v3569_v8  ;;  %v5034_v8 = vld [vmem:[%s5341_s29 + $0x84] sm:$0xff]  ;;  %v3157_v39 = vunpack.c.l.b16 %v1393_v62 }
 0x1f7   : > { %4982 = vmatmul.msk.bf16.gmra.mxu0 %vm2099_vm3, %v3868_v33  ;;  %v1394_v33 = vrot.slane %v1392_v11, 4  ;;  %v1739_v11 = vrot.slane %v1738_v50, 4 }
 0x1f8   : > { %v4019_v34 = vadd.f32 %v3939_v61, %v3794_v10  ;;  %v3491_v59 = vpop.f32.mrf.mxu2  ;;  %4859 = vmatmul.msk.bf16.gmra.mxu1 %vm2099_vm3, %v3178_v55  ;;  %v6406_v61 = vld [vmem:[%s5341_s29 + $0x98] sm:$0x1]  ;;  %v1998_v55 = vsel %vm5536_vm6, %v1996_v45, %v1997_v53  ;;  %v1746_v45 = vshrl.u32 %v4560_v63, 16 }
 0x1f9   : > { %v3570_v44 = vadd.f32 %v3491_v59, %v3329_v15  ;;  %v1396_v12 = vsel %vm5536_vm6, %v1394_v33, %v1395_v1  ;;  %v1741_v53 = vshll.u32 %v6406_v61, 16  ;;  %v3847_v15 = vunpack.c.l.b16 %v1998_v55 }
 0x1fa   : > { %v6403_v37 = vadd.f32 %v6390_v4, %v4019_v34  ;;  %v1729_v59 = vrot.slane %v1728_v38, 4  ;;  %v3330_v33 = vadd.f32 %v3253_v3, %v5830_v7  ;;  %v3158_v1 = vunpack.c.l.b16 %v1396_v12 }
 0x1fb   : > { %v1743_v63 = vrot.slane %v1741_v53, 5  ;;  %v1748_v38 = vrot.slane %v1746_v45, 4  ;;  %v1751_v55 = vrot.slane %v1749_v13, 5  ;;  %v6436_v3 = vrot.slane %v1755_v56, 5 }
 0x1fc   : > { %v4087_v52 = vsub.f32 0.0, %v6403_v37  ;;  %v3941_v27 = vpop.f32.mrf.mxu0  ;;  %v3179_v45 = vpack.c.b16 %v3158_v1, %v3157_v39 }
 0x1fd   : > { %v3716_v10 = vpop.f32.mrf.mxu3  ;;  %4943 = vmatmul.msk.bf16.gmra.mxu2 %vm2099_vm3, %v5034_v8  ;;  %v3255_v23 = vpop.f32.mrf.mxu1  ;;  %v1759_v8 = vshrl.u32 %v6416_v47, 16 }
 0x1fe   : > { %v4119_v34 = vmul.f32 1.442695, %v4087_v52  ;;  %v3795_v60 = vadd.f32 %v3716_v10, %v3570_v44  ;;  %v4596_v52 = vld [vmem:[%s5341_s29 + $0x90] sm:$0xe]  ;;  %v2001_v44 = vrot.slane %v6372_v51, 5 }
 0x1ff   : > { %v6432_v10 = vld [vmem:[%s5341_s29 + $0xa4] sm:$0x1]  ;;  %v1761_v12 = vrot.slane %v1759_v8, 4  ;;  %v4612_v13 = vrot.slane %v4596_v52, 9 }
 0x200   : > { %5079 = vpow2.f32 %v4119_v34  ;;  %v4020_v40 = vadd.f32 %v3941_v27, %v3795_v60  ;;  %v3494_v26 = vpop.f32.mrf.mxu2  ;;  %v3869_v34 = vpack.c.b16 %v3847_v15, %v3846_v29  ;;  %v4517_v27 = vld [vmem:[%s5341_s29 + $0x90] sm:$0xe]  ;;  %v5247_v60 = vld [vmem:[%s5341_s29 + $0x94] sm:$0xf]  ;;  %v1734_v29 = vsel %vm5353_vm2, %v1729_v59, %v6394_v32 }
 0x201   : > { %v3571_v62 = vadd.f32 %v3494_v26, %v3330_v33  ;;  %v1399_v7 = vrot.slane %v5247_v60, 5  ;;  %v1744_v15 = vsel %vm5353_vm2, %v1739_v11, %v1743_v63  ;;  %v2003_v56 = vrot.slane %v2001_v44, 4 }
 0x202   : > { %v6428_v50 = vadd.f32 %v6390_v4, %v4020_v40  ;;  %4963 = vmatmul.msk.bf16.gmra.mxu3 %vm2099_vm3, %v3644_v22  ;;  %v2004_v40 = vrot.slane %v6406_v61, 5  ;;  %v1752_v33 = vor.u32 %v1751_v55, %v1748_v38  ;;  %v4533_v39 = vrot.slane %v4517_v27, 9  ;;  %v5035_v38 = vld [vmem:[%s5341_s29 + $0x90] sm:$0xff] }
 0x203   : > { %v1765_v1 = vshll.u32 %v6432_v10, 16  ;;  %v1401_v61 = vrot.slane %v1399_v7, 4  ;;  %v1762_v32 = vor.u32 %v1761_v12, %v6436_v3  ;;  %v3331_v11 = vadd.f32 %v3255_v23, %v5843_v5 }
 0x204   : > { %v4088_v53 = vsub.f32 0.0, %v6428_v50  ;;  %v3944_v51 = vpop.f32.mrf.mxu0  ;;  %v3624_v55 = vunpack.c.l.b16 %v1744_v15  ;;  %v1400_v5 = vsel %vm5536_vm6, %v4533_v39, %v1399_v7  ;;  %v1753_v23 = vrot.slane %v1752_v33, 4  ;;  %v4562_v33 = vld [vmem:[%s5341_s29 + $0xa8] sm:$0xf] }
 0x205   : > { %v3719_v2 = vpop.f32.mrf.mxu3  ;;  %v3258_v22 = vpop.f32.mrf.mxu1  ;;  %v1403_v12 = vsel %vm5536_vm6, %v1401_v61, %v1402_v18 }
 0x206   : > { %v5080_v8 = vpop.eup %5079  ;;  %v4121_v26 = vmul.f32 1.442695, %v4088_v53  ;;  %v3796_v60 = vadd.f32 %v3719_v2, %v3571_v62  ;;  %v3623_v2 = vunpack.c.l.b16 %v1734_v29  ;;  %v2002_v62 = vsel %vm5536_vm6, %v4612_v13, %v2001_v44 }
 0x207   : > { %v4183_v52 = vadd.f32 1.0, %v5080_v8  ;;  %4983 = vmatmul.msk.bf16.gmra.mxu0 %vm2099_vm3, %v3869_v34  ;;  %v2005_v34 = vsel %vm5536_vm6, %v2003_v56, %v2004_v40  ;;  %v1763_v53 = vrot.slane %v1762_v32, 4  ;;  %v3848_v29 = vunpack.c.l.b16 %v2002_v62 }
 0x208   : > { %5081 = vpow2.f32 %v4121_v26  ;;  %v4021_v59 = vadd.f32 %v3944_v51, %v3796_v60  ;;  %v3496_v63 = vpop.f32.mrf.mxu2  ;;  %4860 = vmatmul.msk.bf16.gmra.mxu1 %vm2099_vm3, %v3179_v45  ;;  %v1767_v51 = vrot.slane %v1765_v1, 5  ;;  %v3645_v40 = vpack.c.b16 %v3624_v55, %v3623_v2  ;;  %v6473_v1 = vld [vmem:[%s5341_s29 + $0xac] sm:$0xf] }
 0x209   : > { %5083 = vrcp.f32 %v4183_v52  ;;  %v3572_v27 = vadd.f32 %v3496_v63, %v3331_v11  ;;  %v3849_v15 = vunpack.c.l.b16 %v2005_v34  ;;  %v3159_v56 = vunpack.c.l.b16 %v1400_v5  ;;  %v4597_v11 = vld [vmem:[%s5341_s29 + $0x9c] sm:$0xe] }
 0x20a   : > { %v6457_v0 = vadd.f32 %v6390_v4, %v4021_v59  ;;  %v3160_v60 = vunpack.c.l.b16 %v1403_v12  ;;  %v1758_v39 = vsel %vm5353_vm2, %v1753_v23, %v6436_v3  ;;  %v3332_v32 = vadd.f32 %v3258_v22, %v5856_v49 }
 0x20b   : > { %v1768_v59 = vsel %vm5353_vm2, %v1763_v53, %v1767_v51  ;;  %v2008_v63 = vrot.slane %v6416_v47, 5  ;;  %v1770_v3 = vshrl.u32 %v4562_v33, 16  ;;  %v1773_v49 = vshll.u32 %v4562_v33, 16  ;;  %v4518_v53 = vld [vmem:[%s5341_s29 + $0x9c] sm:$0xe] }
 0x20c   : > { %v4089_v44 = vsub.f32 0.0, %v6457_v0  ;;  %v3946_v45 = vpop.f32.mrf.mxu0  ;;  %v1779_v22 = vshll.u32 %v6473_v1, 16  ;;  %v1783_v47 = vshrl.u32 %v6473_v1, 16  ;;  %v3870_v5 = vpack.c.b16 %v3849_v15, %v3848_v29  ;;  %v5249_v51 = vld [vmem:[%s5341_s29 + $0xa0] sm:$0xf] }
 0x20d   : > { %v3721_v13 = vpop.f32.mrf.mxu3  ;;  %4944 = vmatmul.msk.bf16.gmra.mxu2 %vm2099_vm3, %v5035_v38  ;;  %v6465_v7 = vpop.f32.mrf.mxu1  ;;  %v2010_v23 = vrot.slane %v2008_v63, 4  ;;  %v2011_v12 = vrot.slane %v6432_v10, 5  ;;  %v3180_v33 = vpack.c.b16 %v3160_v60, %v3159_v56  ;;  %v1772_v29 = vrot.slane %v1770_v3, 4  ;;  %v6507_v56 = vld [vmem:[%s5341_s29 + $0xb0] sm:$0x1] }
 0x20e   : > { %v5082_v8 = vpop.eup %5081  ;;  %v4123_v18 = vmul.f32 1.442695, %v4089_v44  ;;  %v3797_v26 = vadd.f32 %v3721_v13, %v3572_v27  ;;  %v4613_v27 = vrot.slane %v4597_v11, 9  ;;  %v1406_v44 = vrot.slane %v5249_v51, 5  ;;  %v5250_v3 = vld [vmem:[%s5341_s29 + $0xa4] sm:$0x1] }
 0x20f   : > { %v5084_v52 = vpop.eup %5083  ;;  %v4184_v61 = vadd.f32 1.0, %v5082_v8  ;;  %v6498_v8 = vunpack.c.l.b16 %v1758_v39  ;;  %v1775_v15 = vrot.slane %v1773_v49, 5  ;;  %v6502_v10 = vrot.slane %v1779_v22, 5 }
 0x210   : > { %v4247_v2 = vmul.f32 %v5084_v52, %v6403_v37  ;;  %5085 = vpow2.f32 %v4123_v18  ;;  %v4022_v38 = vadd.f32 %v3946_v45, %v3797_v26  ;;  %v3499_v55 = vpop.f32.mrf.mxu2  ;;  %v6500_v18 = vunpack.c.l.b16 %v1768_v59 }
 0x211   : > { %5087 = vrcp.f32 %v4184_v61  ;;  %v3573_v34 = vadd.f32 %v3499_v55, %v3332_v32  ;;  %v1785_v52 = vrot.slane %v1783_v47, 4  ;;  %v2012_v59 = vsel %vm5536_vm6, %v2010_v23, %v2011_v12 }
 0x212   : > { %v4279_v62 = vpack.c.bf16 %v4247_v2, %v4247_v2  ;;  %v6489_v37 = vadd.f32 %v6390_v4, %v4022_v38  ;;  %4964 = vmatmul.msk.bf16.gmra.mxu3 %vm2099_vm3, %v3645_v40  ;;  %v2009_v2 = vsel %vm5536_vm6, %v4613_v27, %v2008_v63  ;;  %v4534_v38 = vrot.slane %v4518_v53, 9 }
 0x213   : > { %v1408_v55 = vrot.slane %v1406_v44, 4  ;;  %v1409_v49 = vrot.slane %v5250_v3, 5  ;;  %v3333_v47 = vadd.f32 %v6465_v7, %v5869_v46  ;;  %v1776_v27 = vor.u32 %v1775_v15, %v1772_v29  ;;  %v4598_v7 = vld [vmem:[%s5341_s29 + $0xa8] sm:$0xe]  ;;  %v4564_v15 = vld [vmem:[%s5341_s29 + $0xb4] sm:$0xf] }
 0x214   : > { %4312 = vst.msk [vmem:[%s6484_s19] sm:$0xf] %vm4311_vm7, %v4279_v62  ;;  %v4090_v45 = vsub.f32 0.0, %v6489_v37  ;;  %v3949_v13 = vpop.f32.mrf.mxu0  ;;  %v1789_v23 = vshll.u32 %v6507_v56, 16  ;;  %v1407_v51 = vsel %vm5536_vm6, %v4534_v38, %v1406_v44  ;;  %v3851_v29 = vunpack.c.l.b16 %v2012_v59 }
 0x215   : > { %v3724_v40 = vpop.f32.mrf.mxu3  ;;  %v3263_v26 = vpop.f32.mrf.mxu1  ;;  %v1410_v46 = vsel %vm5536_vm6, %v1408_v55, %v1409_v49  ;;  %v3161_v44 = vunpack.c.l.b16 %v1407_v51  ;;  %v4614_v49 = vrot.slane %v4598_v7, 9  ;;  %v6552_v51 = vld [vmem:[%s5341_s29 + $0xb8] sm:$0xf]  ;;  %v2018_v7 = vrot.slane %v6507_v56, 5 }
 0x216   : > { %v5086_v61 = vpop.eup %5085  ;;  %v4125_v32 = vmul.f32 1.442695, %v4090_v45  ;;  %v3798_v11 = vadd.f32 %v3724_v40, %v3573_v34  ;;  %v5036_v34 = vld [vmem:[%s5341_s29 + $0x9c] sm:$0xff]  ;;  %v3850_v40 = vunpack.c.l.b16 %v2009_v2  ;;  %v1791_v38 = vrot.slane %v1789_v23, 5 }
 0x217   : > { %v5088_v60 = vpop.eup %5087  ;;  %v4185_v39 = vadd.f32 1.0, %v5086_v61  ;;  %4984 = vmatmul.msk.bf16.gmra.mxu0 %vm2099_vm3, %v3870_v5  ;;  %v1786_v5 = vor.u32 %v1785_v52, %v6502_v10  ;;  %v3162_v3 = vunpack.c.l.b16 %v1410_v46  ;;  %v1797_v2 = vshll.u32 %v4564_v15, 16 }
 0x218   : > { %v4248_v22 = vmul.f32 %v5088_v60, %v6428_v50  ;;  %5089 = vpow2.f32 %v4125_v32  ;;  %v4023_v63 = vadd.f32 %v3949_v13, %v3798_v11  ;;  %v3501_v62 = vpop.f32.mrf.mxu2  ;;  %4861 = vmatmul.msk.bf16.gmra.mxu1 %vm2099_vm3, %v3180_v33  ;;  %v3646_v33 = vpack.c.b16 %v6500_v18, %v6498_v8 }
 0x219   : > { %5091 = vrcp.f32 %v4185_v39  ;;  %v3574_v53 = vadd.f32 %v3501_v62, %v3333_v47  ;;  %v1777_v32 = vrot.slane %v1776_v27, 4  ;;  %v1787_v11 = vrot.slane %v1786_v5, 4 }
 0x21a   : > { %v4280_v12 = vpack.c.bf16 %v4248_v22, %v4248_v22  ;;  %v6521_v50 = vadd.f32 %v6390_v4, %v4023_v63  ;;  %v2015_v8 = vrot.slane %v6473_v1, 5  ;;  %v1794_v18 = vshrl.u32 %v4564_v15, 16 }
 0x21b   : > { %v3334_v62 = vadd.f32 %v3263_v26, %v5882_v24  ;;  %v3871_v27 = vpack.c.b16 %v3851_v29, %v3850_v40  ;;  %v1782_v5 = vsel %vm5353_vm2, %v1777_v32, %v6502_v10  ;;  %v1792_v1 = vsel %vm5353_vm2, %v1787_v11, %v1791_v38  ;;  %v4519_v24 = vld [vmem:[%s5341_s29 + $0xa8] sm:$0xe]  ;;  %v5251_v26 = vld [vmem:[%s5341_s29 + $0xac] sm:$0xf] }
 0x21c   : > { %4313 = vst.msk [vmem:[%s6484_s19 + $0x4] sm:$0xf] %vm4311_vm7, %v4280_v12  ;;  %v4091_v45 = vsub.f32 0.0, %v6521_v50  ;;  %v3951_v13 = vpop.f32.mrf.mxu0  ;;  %v2017_v46 = vrot.slane %v2015_v8, 4  ;;  %v1796_v10 = vrot.slane %v1794_v18, 4  ;;  %v3181_v29 = vpack.c.b16 %v3162_v3, %v3161_v44 }
 0x21d   : > { %v3726_v52 = vpop.f32.mrf.mxu3  ;;  %4945 = vmatmul.msk.bf16.gmra.mxu2 %vm2099_vm3, %v5036_v34  ;;  %v6535_v61 = vpop.f32.mrf.mxu1  ;;  %v6562_v15 = vsel %vm5536_vm6, %v4614_v49, %v2015_v8  ;;  %v6567_v56 = vunpack.c.l.b16 %v1792_v1  ;;  %v4535_v38 = vrot.slane %v4519_v24, 9 }
 0x21e   : > { %v5090_v60 = vpop.eup %5089  ;;  %v4127_v39 = vmul.f32 1.442695, %v4091_v45  ;;  %v3799_v55 = vadd.f32 %v3726_v52, %v3574_v53  ;;  %v1413_v53 = vrot.slane %v5251_v26, 5  ;;  %v1799_v45 = vrot.slane %v1797_v2, 5  ;;  %v6565_v52 = vld [vmem:[%s5341_s29 + $0xbc] sm:$0x1] }
 0x21f   : > { %v5092_v22 = vpop.eup %5091  ;;  %v4186_v63 = vadd.f32 1.0, %v5090_v60  ;;  %v1803_v60 = vshll.u32 %v6552_v51, 16  ;;  %v2019_v2 = vsel %vm5536_vm6, %v2017_v46, %v2018_v7 }
 0x220   : > { %v4249_v59 = vmul.f32 %v5092_v22, %v6457_v0  ;;  %5093 = vpow2.f32 %v4127_v39  ;;  %v4024_v47 = vadd.f32 %v3951_v13, %v3799_v55  ;;  %v3504_v34 = vpop.f32.mrf.mxu2  ;;  %v1807_v39 = vshrl.u32 %v6552_v51, 16 }
 0x221   : > { %5095 = vrcp.f32 %v4186_v63  ;;  %v3575_v0 = vadd.f32 %v3504_v34, %v3334_v62  ;;  %v1415_v3 = vrot.slane %v1413_v53, 4  ;;  %v5252_v63 = vld [vmem:[%s5341_s29 + $0xb0] sm:$0x1] }
 0x222   : > { %v4281_v23 = vpack.c.bf16 %v4249_v59, %v4249_v59  ;;  %v6546_v12 = vadd.f32 %v6390_v4, %v4024_v47  ;;  %4965 = vmatmul.msk.bf16.gmra.mxu3 %vm2099_vm3, %v3646_v33  ;;  %v6558_v33 = vunpack.c.l.b16 %v1782_v5  ;;  %v1416_v18 = vrot.slane %v5252_v63, 5 }
 0x223   : > { %v1800_v59 = vor.u32 %v1799_v45, %v1796_v10  ;;  %v1813_v47 = vshll.u32 %v6565_v52, 16  ;;  %v3335_v5 = vadd.f32 %v6535_v61, %v5895_v21  ;;  %v1809_v24 = vrot.slane %v1807_v39, 4 }
 0x224   : > { %4314 = vst.msk [vmem:[%s6484_s19 + $0x8] sm:$0xf] %vm4311_vm7, %v4281_v23  ;;  %v4092_v13 = vsub.f32 0.0, %v6546_v12  ;;  %v3954_v40 = vpop.f32.mrf.mxu0  ;;  %v1414_v23 = vsel %vm5536_vm6, %v4535_v38, %v1413_v53  ;;  %v1417_v7 = vsel %vm5536_vm6, %v1415_v3, %v1416_v18  ;;  %v3647_v53 = vpack.c.b16 %v6567_v56, %v6558_v33  ;;  %v4566_v18 = vld [vmem:[%s5341_s29 + $0xc0] sm:$0xf] }
 0x225   : > { %v3729_v32 = vpop.f32.mrf.mxu3  ;;  %v3268_v11 = vpop.f32.mrf.mxu1  ;;  %v1801_v21 = vrot.slane %v1800_v59, 4  ;;  %v3852_v45 = vunpack.c.l.b16 %v6562_v15  ;;  %v3163_v38 = vunpack.c.l.b16 %v1414_v23  ;;  %v6596_v3 = vrot.slane %v1813_v47, 5  ;;  %v6610_v23 = vld [vmem:[%s5341_s29 + $0xc4] sm:$0xf] }
 0x226   : > { %v5094_v55 = vpop.eup %5093  ;;  %v4129_v22 = vmul.f32 1.442695, %v4092_v13  ;;  %v3800_v44 = vadd.f32 %v3729_v32, %v3575_v0  ;;  %v1805_v0 = vrot.slane %v1803_v60, 5  ;;  %v4599_v13 = vld [vmem:[%s5341_s29 + $0xb4] sm:$0xe]  ;;  %v3164_v60 = vunpack.c.l.b16 %v1417_v7 }
 0x227   : > { %v5096_v49 = vpop.eup %5095  ;;  %v4187_v8 = vadd.f32 1.0, %v5094_v55  ;;  %4985 = vmatmul.msk.bf16.gmra.mxu0 %vm2099_vm3, %v3871_v27  ;;  %v5037_v27 = vld [vmem:[%s5341_s29 + $0xa8] sm:$0xff]  ;;  %v2022_v63 = vrot.slane %v6552_v51, 5  ;;  %v3336_v47 = vadd.f32 %v3268_v11, %v5908_v30 }
 0x228   : > { %v4250_v62 = vmul.f32 %v5096_v49, %v6489_v37  ;;  %5097 = vpow2.f32 %v4129_v22  ;;  %v4025_v34 = vadd.f32 %v3954_v40, %v3800_v44  ;;  %v3506_v1 = vpop.f32.mrf.mxu2  ;;  %4862 = vmatmul.msk.bf16.gmra.mxu1 %vm2099_vm3, %v3181_v29  ;;  %v3853_v29 = vunpack.c.l.b16 %v2019_v2 }
 0x229   : > { %5099 = vrcp.f32 %v4187_v8  ;;  %v3576_v46 = vadd.f32 %v3506_v1, %v3335_v5  ;;  %v1810_v39 = vor.u32 %v1809_v24, %v1805_v0  ;;  %v1806_v15 = vsel %vm5353_vm2, %v1801_v21, %v1805_v0  ;;  %v5253_v24 = vld [vmem:[%s5341_s29 + $0xb8] sm:$0xf] }
 0x22a   : > { %v4282_v26 = vpack.c.bf16 %v4250_v62, %v4250_v62  ;;  %v6584_v37 = vadd.f32 %v6390_v4, %v4025_v34  ;;  %v4615_v49 = vrot.slane %v4599_v13, 9  ;;  %v2025_v8 = vrot.slane %v6565_v52, 5 }
 0x22b   : > { %v1811_v51 = vrot.slane %v1810_v39, 4  ;;  %v1818_v34 = vshrl.u32 %v4566_v18, 16  ;;  %v1821_v5 = vshll.u32 %v4566_v18, 16  ;;  %v3872_v0 = vpack.c.b16 %v3853_v29, %v3852_v45 }
 0x22c   : > { %4315 = vst.msk [vmem:[%s6484_s19 + $0xc] sm:$0xf] %vm4311_vm7, %v4282_v26  ;;  %v4093_v61 = vsub.f32 0.0, %v6584_v37  ;;  %v3956_v10 = vpop.f32.mrf.mxu0  ;;  %v1420_v26 = vrot.slane %v5253_v24, 5  ;;  %v6616_v7 = vunpack.c.l.b16 %v1806_v15  ;;  %v6620_v21 = vsel %vm5536_vm6, %v4615_v49, %v2022_v63 }
 0x22d   : > { %v3731_v40 = vpop.f32.mrf.mxu3  ;;  %4946 = vmatmul.msk.bf16.gmra.mxu2 %vm2099_vm3, %v5037_v27  ;;  %v3270_v32 = vpop.f32.mrf.mxu1  ;;  %v1820_v13 = vrot.slane %v1818_v34, 4  ;;  %v1827_v45 = vshll.u32 %v6610_v23, 16  ;;  %v1831_v29 = vshrl.u32 %v6610_v23, 16 }
 0x22e   : > { %v5098_v55 = vpop.eup %5097  ;;  %v4131_v22 = vmul.f32 1.442695, %v4093_v61  ;;  %v3801_v44 = vadd.f32 %v3731_v40, %v3576_v46  ;;  %v3182_v46 = vpack.c.b16 %v3164_v60, %v3163_v38  ;;  %v4520_v61 = vld [vmem:[%s5341_s29 + $0xb4] sm:$0xe]  ;;  %v1823_v40 = vrot.slane %v1821_v5, 5 }
 0x22f   : > { %v5100_v33 = vpop.eup %5099  ;;  %v4188_v56 = vadd.f32 1.0, %v5098_v55  ;;  %v1816_v38 = vsel %vm5353_vm2, %v1811_v51, %v6596_v3  ;;  %v3337_v18 = vadd.f32 %v3270_v32, %v5922_v20  ;;  %v5254_v3 = vld [vmem:[%s5341_s29 + $0xbc] sm:$0x1]  ;;  %v1829_v51 = vrot.slane %v1827_v45, 5 }
 0x230   : > { %v4251_v2 = vmul.f32 %v5100_v33, %v6521_v50  ;;  %5101 = vpow2.f32 %v4131_v22  ;;  %v4026_v59 = vadd.f32 %v3956_v10, %v3801_v44  ;;  %v3509_v62 = vpop.f32.mrf.mxu2  ;;  %v2024_v50 = vrot.slane %v2022_v63, 4 }
 0x231   : > { %5103 = vrcp.f32 %v4188_v56  ;;  %v3577_v52 = vadd.f32 %v3509_v62, %v3336_v47  ;;  %v4536_v33 = vrot.slane %v4520_v61, 9  ;;  %v1422_v56 = vrot.slane %v1420_v26, 4  ;;  %v5038_v47 = vld [vmem:[%s5341_s29 + $0xb4] sm:$0xff] }
 0x232   : > { %v4283_v1 = vpack.c.bf16 %v4251_v2, %v4251_v2  ;;  %v6606_v27 = vadd.f32 %v6390_v4, %v4026_v59  ;;  %4966 = vmatmul.msk.bf16.gmra.mxu3 %vm2099_vm3, %v3647_v53  ;;  %v6630_v60 = vsel %vm5536_vm6, %v2024_v50, %v2025_v8  ;;  %v1423_v8 = vrot.slane %v5254_v3, 5  ;;  %v6638_v59 = vld [vmem:[%s5341_s29 + $0xc8] sm:$0x1] }
 0x233   : > { %v1824_v62 = vor.u32 %v1823_v40, %v1820_v13  ;;  %v1833_v20 = vrot.slane %v1831_v29, 4  ;;  %v3630_v5 = vunpack.c.l.b16 %v1816_v38  ;;  %v3855_v61 = vunpack.c.l.b16 %v6630_v60  ;;  %v6857_v60 = vld [vmem:[#allocation2_spill] sm:$0xff] }
 0x234   : > { %4316 = vst.msk [vmem:[%s6484_s19 + $0x10] sm:$0xf] %vm4311_vm7, %v4283_v1  ;;  %v4094_v30 = vsub.f32 0.0, %v6606_v27  ;;  %v3959_v11 = vpop.f32.mrf.mxu0  ;;  %v1421_v1 = vsel %vm5536_vm6, %v4536_v33, %v1420_v26  ;;  %v1424_v24 = vsel %vm5536_vm6, %v1422_v56, %v1423_v8 }
 0x235   : > { %v3734_v10 = vpop.f32.mrf.mxu3  ;;  %v3273_v53 = vpop.f32.mrf.mxu1  ;;  %v1825_v26 = vrot.slane %v1824_v62, 4  ;;  %v1834_v13 = vor.u32 %v1833_v20, %v1829_v51  ;;  %v5255_v20 = vld [vmem:[%s5341_s29 + $0xc4] sm:$0xf] }
 0x236   : > { %v5102_v39 = vpop.eup %5101  ;;  %v4133_v55 = vmul.f32 1.442695, %v4094_v30  ;;  %v3802_v22 = vadd.f32 %v3734_v10, %v3577_v52  ;;  %v1837_v52 = vshll.u32 %v6638_v59, 16  ;;  %v4600_v30 = vld [vmem:[%s5341_s29 + $0xc0] sm:$0xe]  ;;  %v3338_v56 = vadd.f32 %v3273_v53, %v6857_v60 }
 0x237   : > { %v5104_v44 = vpop.eup %5103  ;;  %v4189_v63 = vadd.f32 1.0, %v5102_v39  ;;  %4986 = vmatmul.msk.bf16.gmra.mxu0 %vm2099_vm3, %v3872_v0  ;;  %v3648_v39 = vpack.c.b16 %v3630_v5, %v6616_v7  ;;  %v1830_v7 = vsel %vm5353_vm2, %v1825_v26, %v1829_v51  ;;  %v5039_v60 = vld [vmem:[%s5341_s29 + $0xc0] sm:$0xff] }
 0x238   : > { %v4252_v15 = vmul.f32 %v5104_v44, %v6546_v12  ;;  %5105 = vpow2.f32 %v4133_v55  ;;  %v4027_v49 = vadd.f32 %v3959_v11, %v3802_v22  ;;  %v3511_v2 = vpop.f32.mrf.mxu2  ;;  %4863 = vmatmul.msk.bf16.gmra.mxu1 %vm2099_vm3, %v3182_v46  ;;  %v3854_v46 = vunpack.c.l.b16 %v6620_v21 }
 0x239   : > { %5107 = vrcp.f32 %v4189_v63  ;;  %v3578_v12 = vadd.f32 %v3511_v2, %v3337_v18  ;;  %v3165_v55 = vunpack.c.l.b16 %v1421_v1  ;;  %v3166_v44 = vunpack.c.l.b16 %v1424_v24 }
 0x23a   : > { %v4284_v32 = vpack.c.bf16 %v4252_v15, %v4252_v15  ;;  %v6642_v34 = vadd.f32 %v6390_v4, %v4027_v49  ;;  %v1839_v63 = vrot.slane %v1837_v52, 5  ;;  %v4616_v18 = vrot.slane %v4600_v30, 9 }
 0x23b   : > { %v1835_v49 = vrot.slane %v1834_v13, 4  ;;  %v2029_v2 = vrot.slane %v6610_v23, 5  ;;  %v3873_v62 = vpack.c.b16 %v3855_v61, %v3854_v46  ;;  %v3183_v53 = vpack.c.b16 %v3166_v44, %v3165_v55 }
 0x23c   : > { %4317 = vst.msk [vmem:[%s6484_s19 + $0x14] sm:$0xf] %vm4311_vm7, %v4284_v32  ;;  %v4095_v50 = vsub.f32 0.0, %v6642_v34  ;;  %v3961_v0 = vpop.f32.mrf.mxu0  ;;  %v1427_v32 = vrot.slane %v5255_v20, 5  ;;  %v6674_v5 = vunpack.c.l.b16 %v1830_v7  ;;  %v2032_v52 = vrot.slane %v6638_v59, 5 }
 0x23d   : > { %v3736_v11 = vpop.f32.mrf.mxu3  ;;  %4947 = vmatmul.msk.bf16.gmra.mxu2 %vm2099_vm3, %v5038_v47  ;;  %v3275_v10 = vpop.f32.mrf.mxu1  ;;  %v4568_v47 = vld [vmem:[%s5341_s29 + $0xcc] sm:$0xf]  ;;  %v6678_v1 = vsel %vm5536_vm6, %v4616_v18, %v2029_v2  ;;  %v1840_v30 = vsel %vm5353_vm2, %v1835_v49, %v1839_v63 }
 0x23e   : > { %v5106_v40 = vpop.eup %5105  ;;  %v4135_v45 = vmul.f32 1.442695, %v4095_v50  ;;  %v3803_v29 = vadd.f32 %v3736_v11, %v3578_v12  ;;  %v6669_v12 = vld [vmem:[%s5341_s29 + $0xd0] sm:$0xf]  ;;  %v4521_v50 = vld [vmem:[%s5341_s29 + $0xc0] sm:$0xe]  ;;  %v3339_v55 = vadd.f32 %v3275_v10, %v5969_v42 }
 0x23f   : > { %v5108_v22 = vpop.eup %5107  ;;  %v4190_v38 = vadd.f32 1.0, %v5106_v40  ;;  %v2031_v11 = vrot.slane %v2029_v2, 4  ;;  %v1842_v46 = vshrl.u32 %v4568_v47, 16  ;;  %v1845_v61 = vshll.u32 %v4568_v47, 16  ;;  %v6698_v2 = vld [vmem:[%s5341_s29 + $0xd4] sm:$0x1] }
 0x240   : > { %v4253_v33 = vmul.f32 %v5108_v22, %v6584_v37  ;;  %5109 = vpow2.f32 %v4135_v45  ;;  %v4028_v21 = vadd.f32 %v3961_v0, %v3803_v29  ;;  %v3514_v15 = vpop.f32.mrf.mxu2  ;;  %v1851_v45 = vshll.u32 %v6669_v12, 16 }
 0x241   : > { %5111 = vrcp.f32 %v4190_v38  ;;  %v3579_v37 = vadd.f32 %v3514_v15, %v3338_v56  ;;  %v1855_v29 = vshrl.u32 %v6669_v12, 16  ;;  %v4537_v22 = vrot.slane %v4521_v50, 9 }
 0x242   : > { %v4285_v3 = vpack.c.bf16 %v4253_v33, %v4253_v33  ;;  %v6663_v8 = vadd.f32 %v6390_v4, %v4028_v21  ;;  %4967 = vmatmul.msk.bf16.gmra.mxu3 %vm2099_vm3, %v3648_v39  ;;  %v1429_v38 = vrot.slane %v1427_v32, 4  ;;  %v5256_v33 = vld [vmem:[%s5341_s29 + $0xc8] sm:$0x1]  ;;  %v3632_v56 = vunpack.c.l.b16 %v1840_v30 }
 0x243   : > { %v1430_v21 = vrot.slane %v5256_v33, 5  ;;  %v2033_v15 = vsel %vm5536_vm6, %v2031_v11, %v2032_v52  ;;  %v1844_v42 = vrot.slane %v1842_v46, 4  ;;  %v1847_v49 = vrot.slane %v1845_v61, 5 }
 0x244   : > { %4318 = vst.msk [vmem:[%s6484_s19 + $0x18] sm:$0xf] %vm4311_vm7, %v4285_v3  ;;  %v4096_v51 = vsub.f32 0.0, %v6663_v8  ;;  %v3964_v23 = vpop.f32.mrf.mxu0  ;;  %v6700_v3 = vrot.slane %v1851_v45, 5  ;;  %v3856_v52 = vunpack.c.l.b16 %v6678_v1  ;;  %v3857_v50 = vunpack.c.l.b16 %v2033_v15 }
 0x245   : > { %v3739_v0 = vpop.f32.mrf.mxu3  ;;  %v3278_v24 = vpop.f32.mrf.mxu1  ;;  %v1431_v20 = vsel %vm5536_vm6, %v1429_v38, %v1430_v21  ;;  %v1848_v61 = vor.u32 %v1847_v49, %v1844_v42  ;;  %v4601_v21 = vld [vmem:[%s5341_s29 + $0xcc] sm:$0xe] }
 0x246   : > { %v5110_v26 = vpop.eup %5109  ;;  %v4137_v13 = vmul.f32 1.442695, %v4096_v51  ;;  %v3804_v40 = vadd.f32 %v3739_v0, %v3579_v37  ;;  %v1857_v37 = vrot.slane %v1855_v29, 4  ;;  %v3168_v45 = vunpack.c.l.b16 %v1431_v20 }
 0x247   : > { %v5112_v39 = vpop.eup %5111  ;;  %v4191_v59 = vadd.f32 1.0, %v5110_v26  ;;  %4987 = vmatmul.msk.bf16.gmra.mxu0 %vm2099_vm3, %v3873_v62  ;;  %v1861_v26 = vshll.u32 %v6698_v2, 16  ;;  %v3340_v1 = vadd.f32 %v3278_v24, %v5980_v43  ;;  %v2039_v20 = vrot.slane %v6698_v2, 5 }
 0x248   : > { %v4254_v44 = vmul.f32 %v5112_v39, %v6606_v27  ;;  %5113 = vpow2.f32 %v4137_v13  ;;  %v4029_v63 = vadd.f32 %v3964_v23, %v3804_v40  ;;  %v3516_v18 = vpop.f32.mrf.mxu2  ;;  %4864 = vmatmul.msk.bf16.gmra.mxu1 %vm2099_vm3, %v3183_v53  ;;  %v1428_v53 = vsel %vm5536_vm6, %v4537_v22, %v1427_v32 }
 0x249   : > { %5115 = vrcp.f32 %v4191_v59  ;;  %v3580_v27 = vadd.f32 %v3516_v18, %v3339_v55  ;;  %v3649_v23 = vpack.c.b16 %v3632_v56, %v6674_v5  ;;  %v3167_v40 = vunpack.c.l.b16 %v1428_v53 }
 0x24a   : > { %v4286_v10 = vpack.c.bf16 %v4254_v44, %v4254_v44  ;;  %v6695_v7 = vadd.f32 %v6390_v4, %v4029_v63  ;;  %v1858_v29 = vor.u32 %v1857_v37, %v6700_v3  ;;  %v1849_v44 = vrot.slane %v1848_v61, 4 }
 0x24b   : > { %v3874_v63 = vpack.c.b16 %v3857_v50, %v3856_v52  ;;  %v1863_v33 = vrot.slane %v1861_v26, 5  ;;  %v4617_v37 = vrot.slane %v4601_v21, 9  ;;  %v6858_v52 = vld [vmem:[#allocation3_spill] sm:$0xff] }
 0x24c   : > { %4319 = vst.msk [vmem:[%s6484_s19 + $0x1c] sm:$0xf] %vm4311_vm7, %v4286_v10  ;;  %v4097_v47 = vsub.f32 0.0, %v6695_v7  ;;  %v3966_v62 = vpop.f32.mrf.mxu0  ;;  %v1859_v18 = vrot.slane %v1858_v29, 4  ;;  %v1854_v49 = vsel %vm5353_vm2, %v1849_v44, %v6700_v3  ;;  %v5040_v3 = vld [vmem:[%s5341_s29 + $0xcc] sm:$0xff] }
 0x24d   : > { %v3741_v51 = vpop.f32.mrf.mxu3  ;;  %4948 = vmatmul.msk.bf16.gmra.mxu2 %vm2099_vm3, %v5039_v60  ;;  %v3280_v0 = vpop.f32.mrf.mxu1  ;;  %v3184_v60 = vpack.c.b16 %v3168_v45, %v3167_v40 }
 0x24e   : > { %v5114_v30 = vpop.eup %5113  ;;  %v4139_v11 = vmul.f32 1.442695, %v4097_v47  ;;  %v3805_v46 = vadd.f32 %v3741_v51, %v3580_v27  ;;  %v3341_v50 = vadd.f32 %v3280_v0, %v6858_v52 }
 0x24f   : > { %v5116_v13 = vpop.eup %5115  ;;  %v4192_v32 = vadd.f32 1.0, %v5114_v30 }
 0x250   : > { %v4255_v39 = vmul.f32 %v5116_v13, %v6642_v34  ;;  %5117 = vpow2.f32 %v4139_v11  ;;  %v4030_v5 = vadd.f32 %v3966_v62, %v3805_v46  ;;  %v3519_v59 = vpop.f32.mrf.mxu2  ;;  %v2036_v34 = vrot.slane %v6669_v12, 5 }
 0x251   : > { %5119 = vrcp.f32 %v4192_v32  ;;  %v3581_v38 = vadd.f32 %v3519_v59, %v3340_v1  ;;  %v1864_v12 = vsel %vm5353_vm2, %v1859_v18, %v1863_v33  ;;  %v3633_v11 = vunpack.c.l.b16 %v1854_v49  ;;  %v6749_v33 = vld [vmem:[%s6845_s2] ss:$0 sm:$0xff] }
 0x252   : > { %v4287_v55 = vpack.c.bf16 %v4255_v39, %v4255_v39  ;;  %v6717_v22 = vadd.f32 %v6390_v4, %v4030_v5  ;;  %4968 = vmatmul.msk.bf16.gmra.mxu3 %vm2099_vm3, %v3649_v23  ;;  %v2038_v53 = vrot.slane %v2036_v34, 4  ;;  %v3634_v26 = vunpack.c.l.b16 %v1864_v12 }
 0x254   : > { %4320 = vst.msk [vmem:[%s6484_s19 + $0x20] sm:$0xf] %vm4311_vm7, %v4287_v55  ;;  %v4098_v43 = vsub.f32 0.0, %v6717_v22  ;;  %v3969_v24 = vpop.f32.mrf.mxu0  ;;  %v2040_v0 = vsel %vm5536_vm6, %v2038_v53, %v2039_v20 }
 0x255   : > { %v3744_v56 = vpop.f32.mrf.mxu3  ;;  %v3283_v15 = vpop.f32.mrf.mxu1  ;;  %v3859_v55 = vunpack.c.l.b16 %v2040_v0 }
 0x256   : > { %v5118_v42 = vpop.eup %5117  ;;  %v4141_v10 = vmul.f32 1.442695, %v4098_v43  ;;  %v3806_v27 = vadd.f32 %v3744_v56, %v3581_v38  ;;  %v3342_v19 = vadd.f32 %v3283_v15, %v6016_v17 }
 0x257   : > { %v5120_v47 = vpop.eup %5119  ;;  %v4193_v62 = vadd.f32 1.0, %v5118_v42  ;;  %4988 = vmatmul.msk.bf16.gmra.mxu0 %vm2099_vm3, %v3874_v63 }
 0x258   : > { %v4256_v51 = vmul.f32 %v5120_v47, %v6663_v8  ;;  %5121 = vpow2.f32 %v4141_v10  ;;  %v4031_v23 = vadd.f32 %v3969_v24, %v3806_v27  ;;  %v3521_v30 = vpop.f32.mrf.mxu2  ;;  %4865 = vmatmul.msk.bf16.gmra.mxu1 %vm2099_vm3, %v3184_v60  ;;  %v2037_v8 = vsel %vm5536_vm6, %v4617_v37, %v2036_v34 }
 0x259   : > { %5123 = vrcp.f32 %v4193_v62  ;;  %v3582_v61 = vadd.f32 %v3521_v30, %v3341_v50  ;;  %v3858_v59 = vunpack.c.l.b16 %v2037_v8 }
 0x25a   : > { %v4288_v46 = vpack.c.bf16 %v4256_v51, %v4256_v51  ;;  %v4067_v31 = vadd.f32 %v6390_v4, %v4031_v23  ;;  %v3650_v4 = vpack.c.b16 %v3634_v26, %v3633_v11 }
 0x25b   : > { %v3875_v43 = vpack.c.b16 %v3859_v55, %v3858_v59 }
 0x25c   : > { %4321 = vst.msk [vmem:[%s6484_s19 + $0x24] sm:$0xf] %vm4311_vm7, %v4288_v46  ;;  %v4099_v2 = vsub.f32 0.0, %v4067_v31  ;;  %v3971_v13 = vpop.f32.mrf.mxu0 }
 0x25d   : > { %v3746_v32 = vpop.f32.mrf.mxu3  ;;  %4949 = vmatmul.msk.bf16.gmra.mxu2 %vm2099_vm3, %v5040_v3  ;;  %v3285_v40 = vpop.f32.mrf.mxu1 }
 0x25e   : > { %v5122_v45 = vpop.eup %5121  ;;  %v4143_v29 = vmul.f32 1.442695, %v4099_v2  ;;  %v3807_v39 = vadd.f32 %v3746_v32, %v3582_v61  ;;  %v3343_v47 = vadd.f32 %v3285_v40, %v6040_v28 }
 0x25f   : > { %v5124_v5 = vpop.eup %5123  ;;  %v4194_v1 = vadd.f32 1.0, %v5122_v45 }
 0x260   : > { %v4257_v38 = vmul.f32 %v5124_v5, %v6695_v7  ;;  %5125 = vpow2.f32 %v4143_v29  ;;  %v4032_v44 = vadd.f32 %v3971_v13, %v3807_v39  ;;  %v3524_v63 = vpop.f32.mrf.mxu2 }
 0x261   : > { %5127 = vrcp.f32 %v4194_v1  ;;  %v3583_v34 = vadd.f32 %v3524_v63, %v3342_v19 }
 0x262   : > { %v4289_v18 = vpack.c.bf16 %v4257_v38, %v4257_v38  ;;  %v4068_v21 = vadd.f32 %v6749_v33, %v4032_v44  ;;  %4969 = vmatmul.msk.bf16.gmra.mxu3 %vm2099_vm3, %v3650_v4 }
 0x264   : > { %4322 = vst.msk [vmem:[%s6484_s19 + $0x28] sm:$0xf] %vm4311_vm7, %v4289_v18  ;;  %v4100_v7 = vsub.f32 0.0, %v4068_v21  ;;  %v3974_v24 = vpop.f32.mrf.mxu0 }
 0x265   : > { %v3749_v60 = vpop.f32.mrf.mxu3  ;;  %v3288_v17 = vpop.f32.mrf.mxu1 }
 0x266   : > { %v5126_v56 = vpop.eup %5125  ;;  %v4145_v15 = vmul.f32 1.442695, %v4100_v7  ;;  %v3808_v42 = vadd.f32 %v3749_v60, %v3583_v34  ;;  %v3344_v26 = vadd.f32 %v3288_v17, %v6059_v25 }
 0x267   : > { %v5128_v10 = vpop.eup %5127  ;;  %v4195_v27 = vadd.f32 1.0, %v5126_v56  ;;  %4989 = vmatmul.msk.bf16.gmra.mxu0 %vm2099_vm3, %v3875_v43 }
 0x268   : > { %v4258_v49 = vmul.f32 %v5128_v10, %v6717_v22  ;;  %5129 = vpow2.f32 %v4145_v15  ;;  %v4033_v37 = vadd.f32 %v3974_v24, %v3808_v42  ;;  %v3526_v62 = vpop.f32.mrf.mxu2 }
 0x269   : > { %5131 = vrcp.f32 %v4195_v27  ;;  %v3584_v20 = vadd.f32 %v3526_v62, %v3343_v47 }
 0x26a   : > { %v4290_v12 = vpack.c.bf16 %v4258_v49, %v4258_v49  ;;  %v4069_v53 = vadd.f32 %v6749_v33, %v4033_v37 }
 0x26c   : > { %4323 = vst.msk [vmem:[%s6484_s19 + $0x2c] sm:$0xf] %vm4311_vm7, %v4290_v12  ;;  %v4101_v51 = vsub.f32 0.0, %v4069_v53  ;;  %v3976_v23 = vpop.f32.mrf.mxu0 }
 0x26d   : > { %v3751_v52 = vpop.f32.mrf.mxu3  ;;  %v3290_v50 = vpop.f32.mrf.mxu1 }
 0x26e   : > { %v5130_v30 = vpop.eup %5129  ;;  %v4147_v3 = vmul.f32 1.442695, %v4101_v51  ;;  %v3809_v22 = vadd.f32 %v3751_v52, %v3584_v20  ;;  %v3345_v55 = vadd.f32 %v3290_v50, %v6083_v57 }
 0x26f   : > { %v5132_v11 = vpop.eup %5131  ;;  %v4196_v46 = vadd.f32 1.0, %v5130_v30 }
 0x270   : > { %v4259_v61 = vmul.f32 %v5132_v11, %v4067_v31  ;;  %5133 = vpow2.f32 %v4147_v3  ;;  %v4034_v28 = vadd.f32 %v3976_v23, %v3809_v22  ;;  %v3529_v2 = vpop.f32.mrf.mxu2 }
 0x271   : > { %5135 = vrcp.f32 %v4196_v46  ;;  %v3585_v0 = vadd.f32 %v3529_v2, %v3344_v26 }
 0x272   : > { %v4291_v13 = vpack.c.bf16 %v4259_v61, %v4259_v61  ;;  %v4070_v8 = vadd.f32 %v6749_v33, %v4034_v28 }
 0x274   : > { %4324 = vst.msk [vmem:[%s6484_s19 + $0x30] sm:$0xf] %vm4311_vm7, %v4291_v13  ;;  %v4102_v32 = vsub.f32 0.0, %v4070_v8  ;;  %v3979_v40 = vpop.f32.mrf.mxu0 }
 0x275   : > { %v3754_v45 = vpop.f32.mrf.mxu3  ;;  %v3293_v29 = vpop.f32.mrf.mxu1 }
 0x276   : > { %v5134_v39 = vpop.eup %5133  ;;  %v4149_v4 = vmul.f32 1.442695, %v4102_v32  ;;  %v3810_v31 = vadd.f32 %v3754_v45, %v3585_v0  ;;  %v3346_v42 = vadd.f32 %v3293_v29, %v6102_v48 }
 0x277   : > { %v5136_v5 = vpop.eup %5135  ;;  %v4197_v1 = vadd.f32 1.0, %v5134_v39 }
 0x278   : > { %v4260_v59 = vmul.f32 %v5136_v5, %v4068_v21  ;;  %5137 = vpow2.f32 %v4149_v4  ;;  %v4035_v25 = vadd.f32 %v3979_v40, %v3810_v31  ;;  %v3531_v38 = vpop.f32.mrf.mxu2 }
 0x279   : > { %5139 = vrcp.f32 %v4197_v1  ;;  %v3586_v63 = vadd.f32 %v3531_v38, %v3345_v55 }
 0x27a   : > { %v4292_v44 = vpack.c.bf16 %v4260_v59, %v4260_v59  ;;  %v4071_v19 = vadd.f32 %v6749_v33, %v4035_v25 }
 0x27c   : > { %4325 = vst.msk [vmem:[%s6484_s19 + $0x34] sm:$0xf] %vm4311_vm7, %v4292_v44  ;;  %v4103_v18 = vsub.f32 0.0, %v4071_v19  ;;  %v3981_v34 = vpop.f32.mrf.mxu0 }
 0x27d   : > { %v3756_v43 = vpop.f32.mrf.mxu3  ;;  %v3295_v7 = vpop.f32.mrf.mxu1 }
 0x27e   : > { %v5138_v24 = vpop.eup %5137  ;;  %v4151_v60 = vmul.f32 1.442695, %v4103_v18  ;;  %v3811_v21 = vadd.f32 %v3756_v43, %v3586_v63  ;;  %v3347_v3 = vadd.f32 %v3295_v7, %v6126_v14 }
 0x27f   : > { %v5140_v17 = vpop.eup %5139  ;;  %v4198_v56 = vadd.f32 1.0, %v5138_v24 }
 0x280   : > { %v4261_v15 = vmul.f32 %v5140_v17, %v4069_v53  ;;  %5141 = vpow2.f32 %v4151_v60  ;;  %v4036_v57 = vadd.f32 %v3981_v34, %v3811_v21  ;;  %v3534_v10 = vpop.f32.mrf.mxu2 }
 0x281   : > { %5143 = vrcp.f32 %v4198_v56  ;;  %v3587_v37 = vadd.f32 %v3534_v10, %v3346_v42 }
 0x282   : > { %v4293_v27 = vpack.c.bf16 %v4261_v15, %v4261_v15  ;;  %v4072_v49 = vadd.f32 %v6749_v33, %v4036_v57 }
 0x284   : > { %4326 = vst.msk [vmem:[%s6484_s19 + $0x38] sm:$0xf] %vm4311_vm7, %v4293_v27  ;;  %v4104_v47 = vsub.f32 0.0, %v4072_v49  ;;  %v3984_v62 = vpop.f32.mrf.mxu0 }
 0x285   : > { %v3759_v12 = vpop.f32.mrf.mxu3  ;;  %v3298_v20 = vpop.f32.mrf.mxu1 }
 0x286   : > { %v5142_v51 = vpop.eup %5141  ;;  %v4153_v23 = vmul.f32 1.442695, %v4104_v47  ;;  %v3812_v53 = vadd.f32 %v3759_v12, %v3587_v37  ;;  %v3348_v39 = vadd.f32 %v3298_v20, %v6145_v54 }
 0x287   : > { %v5144_v52 = vpop.eup %5143  ;;  %v4199_v50 = vadd.f32 1.0, %v5142_v51 }
 0x288   : > { %v4262_v30 = vmul.f32 %v5144_v52, %v4070_v8  ;;  %5145 = vpow2.f32 %v4153_v23  ;;  %v4037_v48 = vadd.f32 %v3984_v62, %v3812_v53  ;;  %v3536_v22 = vpop.f32.mrf.mxu2 }
 0x289   : > { %5147 = vrcp.f32 %v4199_v50  ;;  %v3588_v61 = vadd.f32 %v3536_v22, %v3347_v3 }
 0x28a   : > { %v4294_v11 = vpack.c.bf16 %v4262_v30, %v4262_v30  ;;  %v4073_v46 = vadd.f32 %v6749_v33, %v4037_v48 }
 0x28c   : > { %4327 = vst.msk [vmem:[%s6484_s19 + $0x3c] sm:$0xf] %vm4311_vm7, %v4294_v11  ;;  %v4105_v28 = vsub.f32 0.0, %v4073_v46  ;;  %v3986_v26 = vpop.f32.mrf.mxu0 }
 0x28d   : > { %v3761_v2 = vpop.f32.mrf.mxu3  ;;  %v3300_v13 = vpop.f32.mrf.mxu1 }
 0x28e   : > { %v5146_v0 = vpop.eup %5145  ;;  %v4155_v32 = vmul.f32 1.442695, %v4105_v28  ;;  %v3813_v8 = vadd.f32 %v3761_v2, %v3588_v61  ;;  %v3349_v7 = vadd.f32 %v3300_v13, %v6169_v6 }
 0x28f   : > { %v5148_v40 = vpop.eup %5147  ;;  %v4200_v45 = vadd.f32 1.0, %v5146_v0 }
 0x290   : > { %v4263_v29 = vmul.f32 %v5148_v40, %v4071_v19  ;;  %5149 = vpow2.f32 %v4155_v32  ;;  %v4038_v14 = vadd.f32 %v3986_v26, %v3813_v8  ;;  %v3539_v4 = vpop.f32.mrf.mxu2 }
 0x291   : > { %5151 = vrcp.f32 %v4200_v45  ;;  %v3589_v1 = vadd.f32 %v3539_v4, %v3348_v39 }
 0x292   : > { %v4295_v31 = vpack.c.bf16 %v4263_v29, %v4263_v29  ;;  %v4074_v5 = vadd.f32 %v6749_v33, %v4038_v14 }
 0x294   : > { %4328 = vst.msk [vmem:[%s6484_s19 + $0x40] sm:$0xf] %vm4311_vm7, %v4295_v31  ;;  %v4106_v59 = vsub.f32 0.0, %v4074_v5  ;;  %v3989_v25 = vpop.f32.mrf.mxu0 }
 0x295   : > { %v3764_v55 = vpop.f32.mrf.mxu3  ;;  %v3303_v38 = vpop.f32.mrf.mxu1 }
 0x296   : > { %v5150_v44 = vpop.eup %5149  ;;  %v4157_v63 = vmul.f32 1.442695, %v4106_v59  ;;  %v3814_v19 = vadd.f32 %v3764_v55, %v3589_v1  ;;  %v3350_v12 = vadd.f32 %v3303_v38, %v6188_v16 }
 0x297   : > { %v5152_v18 = vpop.eup %5151  ;;  %v4201_v34 = vadd.f32 1.0, %v5150_v44 }
 0x298   : > { %v4264_v43 = vmul.f32 %v5152_v18, %v4072_v49  ;;  %5153 = vpow2.f32 %v4157_v63  ;;  %v4039_v54 = vadd.f32 %v3989_v25, %v3814_v19  ;;  %v3541_v24 = vpop.f32.mrf.mxu2 }
 0x299   : > { %5155 = vrcp.f32 %v4201_v34  ;;  %v3590_v17 = vadd.f32 %v3541_v24, %v3349_v7 }
 0x29a   : > { %v4296_v60 = vpack.c.bf16 %v4264_v43, %v4264_v43  ;;  %v4075_v21 = vadd.f32 %v6749_v33, %v4039_v54 }
 0x29c   : > { %4329 = vst.msk [vmem:[%s6484_s19 + $0x44] sm:$0xf] %vm4311_vm7, %v4296_v60  ;;  %v4107_v56 = vsub.f32 0.0, %v4075_v21  ;;  %v3991_v15 = vpop.f32.mrf.mxu0 }
 0x29d   : > { %v3766_v57 = vpop.f32.mrf.mxu3  ;;  %v3305_v42 = vpop.f32.mrf.mxu1 }
 0x29e   : > { %v5154_v10 = vpop.eup %5153  ;;  %v4159_v27 = vmul.f32 1.442695, %v4107_v56  ;;  %v3815_v49 = vadd.f32 %v3766_v57, %v3590_v17  ;;  %v3351_v26 = vadd.f32 %v3305_v42, %v6212_v41  ;;  %v6859_v17 = vld [vmem:[#allocation4_spill] sm:$0xff] }
 0x29f   : > { %v5156_v37 = vpop.eup %5155  ;;  %v4202_v47 = vadd.f32 1.0, %v5154_v10 }
 0x2a0   : > { %v4265_v62 = vmul.f32 %v5156_v37, %v4073_v46  ;;  %5157 = vpow2.f32 %v4159_v27  ;;  %v4040_v6 = vadd.f32 %v3991_v15, %v3815_v49  ;;  %v3544_v20 = vpop.f32.mrf.mxu2 }
 0x2a1   : > { %5159 = vrcp.f32 %v4202_v47  ;;  %v3591_v53 = vadd.f32 %v3544_v20, %v3350_v12 }
 0x2a2   : > { %v4297_v51 = vpack.c.bf16 %v4265_v62, %v4265_v62  ;;  %v4076_v23 = vadd.f32 %v6749_v33, %v4040_v6 }
 0x2a4   : > { %4330 = vst.msk [vmem:[%s6484_s19 + $0x48] sm:$0xf] %vm4311_vm7, %v4297_v51  ;;  %v4108_v52 = vsub.f32 0.0, %v4076_v23  ;;  %v3994_v50 = vpop.f32.mrf.mxu0 }
 0x2a5   : > { %v3769_v30 = vpop.f32.mrf.mxu3  ;;  %v3308_v48 = vpop.f32.mrf.mxu1 }
 0x2a6   : > { %v5158_v3 = vpop.eup %5157  ;;  %v4161_v22 = vmul.f32 1.442695, %v4108_v52  ;;  %v3816_v11 = vadd.f32 %v3769_v30, %v3591_v53  ;;  %v3352_v59 = vadd.f32 %v3308_v48, %v6231_v9 }
 0x2a7   : > { %v5160_v46 = vpop.eup %5159  ;;  %v4203_v61 = vadd.f32 1.0, %v5158_v3 }
 0x2a8   : > { %v4266_v28 = vmul.f32 %v5160_v46, %v4074_v5  ;;  %5161 = vpow2.f32 %v4161_v22  ;;  %v4041_v16 = vadd.f32 %v3994_v50, %v3816_v11  ;;  %v3546_v2 = vpop.f32.mrf.mxu2 }
 0x2a9   : > { %5163 = vrcp.f32 %v4203_v61  ;;  %v3592_v32 = vadd.f32 %v3546_v2, %v3351_v26 }
 0x2aa   : > { %v4298_v13 = vpack.c.bf16 %v4266_v28, %v4266_v28  ;;  %v4077_v0 = vadd.f32 %v6749_v33, %v4041_v16 }
 0x2ac   : > { %4331 = vst.msk [vmem:[%s6484_s19 + $0x4c] sm:$0xf] %vm4311_vm7, %v4298_v13  ;;  %v4109_v8 = vsub.f32 0.0, %v4077_v0  ;;  %v3996_v40 = vpop.f32.mrf.mxu0 }
 0x2ad   : > { %v3771_v45 = vpop.f32.mrf.mxu3  ;;  %v3310_v29 = vpop.f32.mrf.mxu1 }
 0x2ae   : > { %v5162_v14 = vpop.eup %5161  ;;  %v4163_v39 = vmul.f32 1.442695, %v4109_v8  ;;  %v3817_v4 = vadd.f32 %v3771_v45, %v3592_v32  ;;  %v3353_v56 = vadd.f32 %v3310_v29, %v6859_v17 }
 0x2af   : > { %v5164_v31 = vpop.eup %5163  ;;  %v4204_v5 = vadd.f32 1.0, %v5162_v14 }
 0x2b0   : > { %v4267_v1 = vmul.f32 %v5164_v31, %v4075_v21  ;;  %5165 = vpow2.f32 %v4163_v39  ;;  %v4042_v41 = vadd.f32 %v3996_v40, %v3817_v4  ;;  %v3549_v25 = vpop.f32.mrf.mxu2 }
 0x2b1   : > { %5167 = vrcp.f32 %v4204_v5  ;;  %v3593_v44 = vadd.f32 %v3549_v25, %v3352_v59 }
 0x2b2   : > { %v4299_v55 = vpack.c.bf16 %v4267_v1, %v4267_v1  ;;  %v4078_v38 = vadd.f32 %v6749_v33, %v4042_v41 }
 0x2b4   : > { %4332 = vst.msk [vmem:[%s6484_s19 + $0x50] sm:$0xf] %vm4311_vm7, %v4299_v55  ;;  %v4110_v63 = vsub.f32 0.0, %v4078_v38  ;;  %v3999_v19 = vpop.f32.mrf.mxu0 }
 0x2b5   : > { %v3774_v18 = vpop.f32.mrf.mxu3  ;;  %v3313_v34 = vpop.f32.mrf.mxu1 }
 0x2b6   : > { %v5166_v43 = vpop.eup %5165  ;;  %v4165_v54 = vmul.f32 1.442695, %v4110_v63  ;;  %v3818_v7 = vadd.f32 %v3774_v18, %v3593_v44  ;;  %v3354_v52 = vadd.f32 %v3313_v34, %v6272_v35 }
 0x2b7   : > { %v5168_v24 = vpop.eup %5167  ;;  %v4205_v60 = vadd.f32 1.0, %v5166_v43 }
 0x2b8   : > { %v4268_v21 = vmul.f32 %v5168_v24, %v4076_v23  ;;  %5169 = vpow2.f32 %v4165_v54  ;;  %v4043_v9 = vadd.f32 %v3999_v19, %v3818_v7  ;;  %v3551_v15 = vpop.f32.mrf.mxu2 }
 0x2b9   : > { %5171 = vrcp.f32 %v4205_v60  ;;  %v3594_v10 = vadd.f32 %v3551_v15, %v3353_v56  ;;  %v6860_v56 = vld [vmem:[#allocation5_spill] sm:$0xff] }
 0x2ba   : > { %v4300_v57 = vpack.c.bf16 %v4268_v21, %v4268_v21  ;;  %v4079_v42 = vadd.f32 %v6749_v33, %v4043_v9 }
 0x2bc   : > { %4333 = vst.msk [vmem:[%s6484_s19 + $0x54] sm:$0xf] %vm4311_vm7, %v4300_v57  ;;  %v4111_v27 = vsub.f32 0.0, %v4079_v42  ;;  %v4001_v49 = vpop.f32.mrf.mxu0 }
 0x2bd   : > { %v3776_v37 = vpop.f32.mrf.mxu3  ;;  %v3315_v47 = vpop.f32.mrf.mxu1 }
 0x2be   : > { %v5170_v62 = vpop.eup %5169  ;;  %v4167_v6 = vmul.f32 1.442695, %v4111_v27  ;;  %v3819_v12 = vadd.f32 %v3776_v37, %v3594_v10  ;;  %v3355_v32 = vadd.f32 %v3315_v47, %v6295_v36 }
 0x2bf   : > { %v5172_v20 = vpop.eup %5171  ;;  %v4206_v51 = vadd.f32 1.0, %v5170_v62 }
 0x2c0   : > { %v4269_v23 = vmul.f32 %v5172_v20, %v4077_v0  ;;  %5173 = vpow2.f32 %v4167_v6  ;;  %v4044_v53 = vadd.f32 %v4001_v49, %v3819_v12  ;;  %v3554_v50 = vpop.f32.mrf.mxu2 }
 0x2c1   : > { %5175 = vrcp.f32 %v4206_v51  ;;  %v3595_v3 = vadd.f32 %v3554_v50, %v3354_v52  ;;  %v6861_v50 = vld [vmem:[#allocation6_spill] sm:$0xff] }
 0x2c2   : > { %v4301_v30 = vpack.c.bf16 %v4269_v23, %v4269_v23  ;;  %v4080_v48 = vadd.f32 %v6749_v33, %v4044_v53 }
 0x2c4   : > { %4334 = vst.msk [vmem:[%s6484_s19 + $0x58] sm:$0xf] %vm4311_vm7, %v4301_v30  ;;  %v4112_v22 = vsub.f32 0.0, %v4080_v48  ;;  %v4004_v11 = vpop.f32.mrf.mxu0 }
 0x2c5   : > { %v3779_v46 = vpop.f32.mrf.mxu3  ;;  %v3318_v26 = vpop.f32.mrf.mxu1 }
 0x2c6   : > { %v5174_v61 = vpop.eup %5173  ;;  %v4169_v28 = vmul.f32 1.442695, %v4112_v22  ;;  %v3820_v16 = vadd.f32 %v3779_v46, %v3595_v3  ;;  %v3356_v55 = vadd.f32 %v3318_v26, %v6313_v58 }
 0x2c7   : > { %v5176_v2 = vpop.eup %5175  ;;  %v4207_v13 = vadd.f32 1.0, %v5174_v61 }
 0x2c8   : > { %v4270_v0 = vmul.f32 %v5176_v2, %v4078_v38  ;;  %5177 = vpow2.f32 %v4169_v28  ;;  %v4045_v35 = vadd.f32 %v4004_v11, %v3820_v16  ;;  %v3556_v8 = vpop.f32.mrf.mxu2 }
 0x2c9   : > { %5179 = vrcp.f32 %v4207_v13  ;;  %v3596_v29 = vadd.f32 %v3556_v8, %v3355_v32 }
 0x2ca   : > { %v4302_v40 = vpack.c.bf16 %v4270_v0, %v4270_v0  ;;  %v4081_v45 = vadd.f32 %v6749_v33, %v4045_v35 }
 0x2cc   : > { %4335 = vst.msk [vmem:[%s6484_s19 + $0x5c] sm:$0xf] %vm4311_vm7, %v4302_v40  ;;  %v4113_v14 = vsub.f32 0.0, %v4081_v45  ;;  %v4006_v39 = vpop.f32.mrf.mxu0  ;;  %v6862_v40 = vld [vmem:[#allocation7_spill] sm:$0xff] }
 0x2cd   : > { %v3781_v4 = vpop.f32.mrf.mxu3  ;;  %v3320_v44 = vpop.f32.mrf.mxu1 }
 0x2ce   : > { %v5178_v31 = vpop.eup %5177  ;;  %v4171_v5 = vmul.f32 1.442695, %v4113_v14  ;;  %v3821_v1 = vadd.f32 %v3781_v4, %v3596_v29  ;;  %v3357_v15 = vadd.f32 %v3320_v44, %v6860_v56 }
 0x2cf   : > { %v5180_v41 = vpop.eup %5179  ;;  %v4208_v59 = vadd.f32 1.0, %v5178_v31 }
 0x2d0   : > { %v4271_v25 = vmul.f32 %v5180_v41, %v4079_v42  ;;  %5181 = vpow2.f32 %v4171_v5  ;;  %v4046_v36 = vadd.f32 %v4006_v39, %v3821_v1  ;;  %v3559_v38 = vpop.f32.mrf.mxu2 }
 0x2d1   : > { %5183 = vrcp.f32 %v4208_v59  ;;  %v3597_v18 = vadd.f32 %v3559_v38, %v3356_v55 }
 0x2d2   : > { %v4303_v63 = vpack.c.bf16 %v4271_v25, %v4271_v25  ;;  %v4082_v19 = vadd.f32 %v6749_v33, %v4046_v36 }
 0x2d4   : > { %4336 = vst.msk [vmem:[%s6484_s19 + $0x60] sm:$0xf] %vm4311_vm7, %v4303_v63  ;;  %v4114_v34 = vsub.f32 0.0, %v4082_v19  ;;  %v4009_v43 = vpop.f32.mrf.mxu0 }
 0x2d5   : > { %v3784_v54 = vpop.f32.mrf.mxu3  ;;  %v3323_v49 = vpop.f32.mrf.mxu1 }
 0x2d6   : > { %v5182_v7 = vpop.eup %5181  ;;  %v4173_v24 = vmul.f32 1.442695, %v4114_v34  ;;  %v3822_v60 = vadd.f32 %v3784_v54, %v3597_v18  ;;  %v3358_v30 = vadd.f32 %v3323_v49, %v6861_v50 }
 0x2d7   : > { %v5184_v21 = vpop.eup %5183  ;;  %v4209_v9 = vadd.f32 1.0, %v5182_v7 }
 0x2d8   : > { %v4272_v17 = vmul.f32 %v5184_v21, %v4080_v48  ;;  %5185 = vpow2.f32 %v4173_v24  ;;  %v4047_v58 = vadd.f32 %v4009_v43, %v3822_v60  ;;  %v3561_v57 = vpop.f32.mrf.mxu2 }
 0x2d9   : > { %5187 = vrcp.f32 %v4209_v9  ;;  %v3598_v27 = vadd.f32 %v3561_v57, %v3357_v15 }
 0x2da   : > { %v4304_v42 = vpack.c.bf16 %v4272_v17, %v4272_v17  ;;  %v4083_v10 = vadd.f32 %v6749_v33, %v4047_v58 }
 0x2dc   : > { %4337 = vst.msk [vmem:[%s6484_s19 + $0x64] sm:$0xf] %vm4311_vm7, %v4304_v42  ;;  %v4115_v37 = vsub.f32 0.0, %v4083_v10  ;;  %v4011_v47 = vpop.f32.mrf.mxu0 }
 0x2dd   : > { %v3786_v62 = vpop.f32.mrf.mxu3  ;;  %v3325_v61 = vpop.f32.mrf.mxu1 }
 0x2de   : > { %v5186_v6 = vpop.eup %5185  ;;  %v4175_v12 = vmul.f32 1.442695, %v4115_v37  ;;  %v3823_v20 = vadd.f32 %v3786_v62, %v3598_v27 }
 0x2df   : > { %v5188_v51 = vpop.eup %5187  ;;  %v4210_v23 = vadd.f32 1.0, %v5186_v6 }
 0x2e0   : > { %v4273_v53 = vmul.f32 %v5188_v51, %v4081_v45  ;;  %5189 = vpow2.f32 %v4175_v12  ;;  %v4048_v52 = vadd.f32 %v4011_v47, %v3823_v20  ;;  %v3564_v48 = vpop.f32.mrf.mxu2  ;;  %v3359_v45 = vadd.f32 %v3325_v61, %v6862_v40 }
 0x2e1   : > { %5191 = vrcp.f32 %v4210_v23  ;;  %v3599_v11 = vadd.f32 %v3564_v48, %v3358_v30 }
 0x2e2   : > { %v4305_v3 = vpack.c.bf16 %v4273_v53, %v4273_v53  ;;  %v4084_v22 = vadd.f32 %v6749_v33, %v4048_v52 }
 0x2e4   : > { %4338 = vst.msk [vmem:[%s6484_s19 + $0x68] sm:$0xf] %vm4311_vm7, %v4305_v3  ;;  %v4116_v46 = vsub.f32 0.0, %v4084_v22  ;;  %v4014_v28 = vpop.f32.mrf.mxu0 }
 0x2e5   : > { %v3789_v16 = vpop.f32.mrf.mxu3 }
 0x2e6   : > { %v5190_v26 = vpop.eup %5189  ;;  %v4177_v2 = vmul.f32 1.442695, %v4116_v46  ;;  %v3824_v13 = vadd.f32 %v3789_v16, %v3599_v11 }
 0x2e7   : > { %v5192_v0 = vpop.eup %5191  ;;  %v4211_v35 = vadd.f32 1.0, %v5190_v26 }
 0x2e8   : > { %v4274_v32 = vmul.f32 %v5192_v0, %v4082_v19  ;;  %5193 = vpow2.f32 %v4177_v2  ;;  %v4049_v8 = vadd.f32 %v4014_v28, %v3824_v13  ;;  %v3566_v29 = vpop.f32.mrf.mxu2 }
 0x2e9   : > { %5195 = vrcp.f32 %v4211_v35  ;;  %v3600_v4 = vadd.f32 %v3566_v29, %v3359_v45 }
 0x2ea   : > { %v4306_v14 = vpack.c.bf16 %v4274_v32, %v4274_v32  ;;  %v4085_v39 = vadd.f32 %v6749_v33, %v4049_v8 }
 0x2ec   : > { %4339 = vst.msk [vmem:[%s6484_s19 + $0x6c] sm:$0xf] %vm4311_vm7, %v4306_v14  ;;  %v4117_v31 = vsub.f32 0.0, %v4085_v39  ;;  %v4016_v55 = vpop.f32.mrf.mxu0 }
 0x2ed   : > { %v3791_v5 = vpop.f32.mrf.mxu3 }
 0x2ee   : > { %v5194_v1 = vpop.eup %5193  ;;  %v4179_v41 = vmul.f32 1.442695, %v4117_v31  ;;  %v3825_v59 = vadd.f32 %v3791_v5, %v3600_v4 }
 0x2ef   : > { %v5196_v25 = vpop.eup %5195  ;;  %v4212_v36 = vadd.f32 1.0, %v5194_v1 }
 0x2f0   : > { %v4275_v38 = vmul.f32 %v5196_v25, %v4083_v10  ;;  %5197 = vpow2.f32 %v4179_v41  ;;  %v4050_v44 = vadd.f32 %v4016_v55, %v3825_v59 }
 0x2f1   : > { %5199 = vrcp.f32 %v4212_v36 }
 0x2f2   : > { %v4307_v63 = vpack.c.bf16 %v4275_v38, %v4275_v38  ;;  %v4086_v19 = vadd.f32 %v6749_v33, %v4050_v44 }
 0x2f4   : > { %4340 = vst.msk [vmem:[%s6484_s19 + $0x70] sm:$0xf] %vm4311_vm7, %v4307_v63  ;;  %v4118_v18 = vsub.f32 0.0, %v4086_v19 }
 0x2f6   : > { %v5198_v34 = vpop.eup %5197  ;;  %v4181_v43 = vmul.f32 1.442695, %v4118_v18 }
 0x2f7   : > { %v5200_v54 = vpop.eup %5199  ;;  %v4213_v7 = vadd.f32 1.0, %v5198_v34 }
 0x2f8   : > { %v4276_v24 = vmul.f32 %v5200_v54, %v4084_v22  ;;  %5201 = vpow2.f32 %v4181_v43 }
 0x2f9   : > { %5203 = vrcp.f32 %v4213_v7 }
 0x2fa   : > { %v4308_v60 = vpack.c.bf16 %v4276_v24, %v4276_v24 }
 0x2fc   : > { %4341 = vst.msk [vmem:[%s6484_s19 + $0x74] sm:$0xf] %vm4311_vm7, %v4308_v60 }
 0x2fe   : > { %v5202_v21 = vpop.eup %5201 }
 0x2ff   : > { %v5204_v9 = vpop.eup %5203  ;;  %v4214_v17 = vadd.f32 1.0, %v5202_v21 }
 0x300   : > { %v4277_v58 = vmul.f32 %v5204_v9, %v4085_v39 }
 0x301   : > { %5205 = vrcp.f32 %v4214_v17 }
 0x302   : > { %v4309_v33 = vpack.c.bf16 %v4277_v58, %v4277_v58 }
 0x304   : > { %4342 = vst.msk [vmem:[%s6484_s19 + $0x78] sm:$0xf] %vm4311_vm7, %v4309_v33 }
 0x307   : > { %v5206_v56 = vpop.eup %5205 }
 0x308   : > { %v4278_v15 = vmul.f32 %v5206_v56, %v4086_v19 }
 0x30a   : > { %v4310_v57 = vpack.c.bf16 %v4278_v15, %v4278_v15 }
 0x30c   : > { %4343 = vst.msk [vmem:[%s6484_s19 + $0x7c] sm:$0xf] %vm4311_vm7, %v4310_v57 }
 0x30d PF: > { %s13_s14 = sadd.s32 1, %s5280_s14   ;;  %s6863_s12 = smov %s5276_s13 }
 0x30e   : > { %p10_p5 = scmp.ge.s32.totalorder %s13_s14, 4   ;;  %s6864_s13 = smov %s6866_s15 }
 0x310   :  { %12 = sbr.rel (!%p10_p5) target bundleno = 2 (0x2), region = 64 }

// kernel: c2f_forward.8
= control target key start
LH: loop header
LB: loop body
LE: loop exit
PB: predicated region body
PF: predicated region fallthrough
CT: control target
= control target key end

     0   :  { %s5566_s15 = smov 0   ;;  %s5568_s16 = smov 0   ;;  %s7178_s0 = inlined_call_operand.vmem [shape: bf16[2,1,18,18,16], index: 0, kind: input, shape index: {}]   ;;  %s7179_s1 = inlined_call_operand.vmem [shape: bf16[144,16], index: 1, kind: input, shape index: {}]   ;;  %s7180_s2 = inlined_call_operand.vmem [shape: f32[1,16], index: 2, kind: input, shape index: {}]   ;;  %s7181_s3 = inlined_call_operand.vmem [shape: bf16[2,256,16], index: 3, kind: input, shape index: {}]   ;;  %s7182_s4 = inlined_call_operand.vmem [shape: bf16[2,256,16], index: 4, kind: output, shape index: {}]  }
   0x1   :  { %s5570_s17 = smov 0  }
   0x2 LB: > { %s26_s18 = sadd.s32 1, %s5535_s16  ;;  %p4615_p0 = scmp.ge.s32.totalorder %s5539_s17, 1  ;;  %s5539_s17 = sphi %s5570_s17, %s14_s17   ;;  %s5535_s16 = sphi %s5568_s16, %s7202_s16   ;;  %s5531_s15 = sphi %s5566_s15, %s7201_s15  }
   0x3   : > { %p28_p1 = scmp.ge.s32.totalorder %s26_s18, 2  ;;  %p199_p2 = scmp.lt.s32.totalorder %s5539_s17, 3 }
   0x5   : > { %s7204_s18 = smov (%p28_p1, %s26_s18), 0  ;;  %p200_p3 = pnand %p4615_p0, %p199_p2 }
   0x7   : > { %203 = sbr.rel (%p200_p3) target bundleno = 783 (0x30f), region = 36 }
   0xc   : > { %v5222_v0 = vld [vmem:[%s7179_s1 + $0x8] sm:$0xff]  ;;  %p242_p4 = scmp.lt.s32.totalorder %s5531_s15, 1  ;;  %v5223_v1 = vld [vmem:[%s7179_s1 + $0x10] sm:$0xff]  ;;  %v5224_v2 = vld [vmem:[%s7179_s1 + $0x18] sm:$0xff]  ;;  %vm320_vm0 = vsmask.f32 3328 }
   0xd   : > { %5309 = vmatpush.bf16.msra.mxu1 %v5222_v0  ;;  %5310 = vmatpush.bf16.msra.mxu2 %v5222_v0  ;;  %v5221_v3 = vld [vmem:[%s7179_s1] sm:$0xff]  ;;  %vm321_vm1 = vsmask.f32 7440  ;;  %vm2162_vm3 = vcmask 130048   ;;  %vm771_vm4 = vcmask 1042432   ;;  %vm772_vm5 = vcmask 1046532  }
   0xe   : > { %s7206_s15 = smov (!%p242_p4, %s5531_s15), 1  ;;  %5311 = vmatpush.bf16.msra.mxu3 %v5222_v0  ;;  %2218 = vmatpush.bf16.msra.mxu0 %v5222_v0  ;;  %v5225_v4 = vld [vmem:[%s7179_s1 + $0x20] sm:$0xff]  ;;  %vm5617_vm2 = vmor %vm320_vm0, %vm321_vm1  ;;  %vm4470_vm7 = vcmask 125952  }
   0xf   : > { %s5312_s29 = smul.u32 216, %s7206_s15  ;;  %vm5800_vm6 = vmor %vm771_vm4, %vm772_vm5  ;;  %s5171_s21 = sshll.u32 %s7206_s15, 7  ;;  %v7059_v31 = vld [vmem:[%s7180_s2] ss:$0 sm:$0xff] }
  0x10   : > { %s6707_s24 = scalar_lea.vmem %s7181_s3, %s5171_s21  ;;  %s6778_s27 = scalar_lea.vmem %s7182_s4, %s5171_s21 }
  0x11   : > { %2618 = vmatpush.bf16.msrb.mxu2 %v5223_v1  ;;  %2425 = vmatpush.bf16.msrb.mxu1 %v5221_v3  ;;  %s5605_s6 = scalar_lea.vmem %s7178_s0, %s5312_s29 }
  0x12   : > { %2859 = vmatpush.bf16.msrb.mxu3 %v5224_v2  ;;  %3084 = vmatpush.bf16.msrb.mxu0 %v5225_v4  ;;  %v280_v5 = vld [vmem:[%s5605_s6 + $0x30] sm:$0xf]  ;;  %v281_v6 = vld [vmem:[%s5605_s6 + $0x34] sm:$0xf]  ;;  %v308_v7 = vld [vmem:[%s5605_s6 + $0x38] sm:$0x1] }
  0x13   : > { %v420_v8 = vshrl.u32 %v280_v5, 16  ;;  %v423_v9 = vshll.u32 %v280_v5, 16  ;;  %v429_v10 = vshll.u32 %v281_v6, 16  ;;  %v433_v11 = vshrl.u32 %v281_v6, 16  ;;  %v288_v12 = vld [vmem:[%s5605_s6 + $0x60] sm:$0xf] }
  0x14   : > { %v439_v13 = vshll.u32 %v308_v7, 16  ;;  %v289_v14 = vld [vmem:[%s5605_s6 + $0x64] sm:$0xf]  ;;  %v312_v15 = vld [vmem:[%s5605_s6 + $0x68] sm:$0x1]  ;;  %v516_v16 = vshrl.u32 %v288_v12, 16 }
  0x15   : > { %v422_v17 = vrot.slane %v420_v8, 4  ;;  %v425_v18 = vrot.slane %v423_v9, 5  ;;  %v431_v19 = vrot.slane %v429_v10, 5  ;;  %v435_v20 = vrot.slane %v433_v11, 4  ;;  %v296_v21 = vld [vmem:[%s5605_s6 + $0x90] sm:$0xf] }
  0x16   : > { %v441_v22 = vrot.slane %v439_v13, 5  ;;  %v518_v23 = vrot.slane %v516_v16, 4  ;;  %v519_v24 = vshll.u32 %v288_v12, 16  ;;  %v525_v25 = vshll.u32 %v289_v14, 16  ;;  %v297_v30 = vld [vmem:[%s5605_s6 + $0x94] sm:$0xf] }
  0x17   : > { %v426_v26 = vor.u32 %v425_v18, %v422_v17  ;;  %v436_v27 = vor.u32 %v435_v20, %v431_v19  ;;  %v529_v28 = vshrl.u32 %v289_v14, 16  ;;  %v535_v29 = vshll.u32 %v312_v15, 16  ;;  %v316_v40 = vld [vmem:[%s5605_s6 + $0x98] sm:$0x1]  ;;  %v272_v56 = vld [vmem:[%s5605_s6] sm:$0xf] }
  0x18   : > { %v521_v32 = vrot.slane %v519_v24, 5  ;;  %v527_v33 = vrot.slane %v525_v25, 5  ;;  %v612_v34 = vshrl.u32 %v296_v21, 16  ;;  %v615_v42 = vshll.u32 %v296_v21, 16  ;;  %v5630_v60 = vld [vmem:[%s5605_s6 + $0x4] sm:$0xf] }
  0x19   : > { %v427_v35 = vrot.slane %v426_v26, 4  ;;  %v437_v36 = vrot.slane %v436_v27, 4  ;;  %v531_v37 = vrot.slane %v529_v28, 4  ;;  %v537_v38 = vrot.slane %v535_v29, 5  ;;  %v5633_v61 = vld [vmem:[%s5605_s6 + $0x8] sm:$0x1] }
  0x1a   : > { %v522_v39 = vor.u32 %v521_v32, %v518_v23  ;;  %v614_v41 = vrot.slane %v612_v34, 4  ;;  %v621_v43 = vshll.u32 %v297_v30, 16  ;;  %v625_v47 = vshrl.u32 %v297_v30, 16  ;;  %v282_v14 = vld [vmem:[%s5605_s6 + $0x3c] sm:$0xf] }
  0x1b   : > { %v432_v44 = vsel %vm5617_vm2, %v427_v35, %v431_v19  ;;  %v442_v45 = vsel %vm5617_vm2, %v437_v36, %v441_v22  ;;  %v532_v46 = vor.u32 %v531_v37, %v527_v33  ;;  %v617_v51 = vrot.slane %v615_v42, 5  ;;  %v5645_v15 = vld [vmem:[%s5605_s6 + $0x40] sm:$0xf]  ;;  %v5650_v20 = vld [vmem:[%s5605_s6 + $0x44] sm:$0x1] }
  0x1c   : > { %v2116_v48 = vunpack.c.l.b16 %v432_v44  ;;  %v2117_v49 = vunpack.c.l.b16 %v442_v45  ;;  %v523_v50 = vrot.slane %v522_v39, 4  ;;  %v623_v53 = vrot.slane %v621_v43, 5  ;;  %v290_v28 = vld [vmem:[%s5605_s6 + $0x6c] sm:$0xf]  ;;  %v313_v42 = vld [vmem:[%s5605_s6 + $0x74] sm:$0x1] }
  0x1d   : > { %v533_v52 = vrot.slane %v532_v46, 4  ;;  %v627_v54 = vrot.slane %v625_v47, 4  ;;  %v631_v55 = vshll.u32 %v316_v40, 16  ;;  %v618_v59 = vor.u32 %v617_v51, %v614_v41 }
  0x1e   : > { %v2144_v57 = vpack.c.b16 %v2117_v49, %v2116_v48  ;;  %v528_v58 = vsel %vm5617_vm2, %v523_v50, %v527_v33  ;;  %v324_v4 = vshrl.u32 %v272_v56, 16  ;;  %v327_v5 = vshll.u32 %v272_v56, 16  ;;  %v298_v56 = vld [vmem:[%s5605_s6 + $0x9c] sm:$0xf] }
  0x1f   : > { %v538_v62 = vsel %vm5617_vm2, %v533_v52, %v537_v38  ;;  %v2124_v63 = vunpack.c.l.b16 %v528_v58  ;;  %v628_v0 = vor.u32 %v627_v54, %v623_v53  ;;  %v633_v1 = vrot.slane %v631_v55, 5  ;;  %v291_v38 = vld [vmem:[%s5605_s6 + $0x70] sm:$0xf] }
  0x20   : > { %4805 = vmatmul.msk.bf16.vlgmr.msra.gmra.mxu1 %vm2162_vm3, %v2144_v57  ;;  %v2125_v2 = vunpack.c.l.b16 %v538_v62  ;;  %v619_v3 = vrot.slane %v618_v59, 4  ;;  %v333_v7 = vshll.u32 %v5630_v60, 16  ;;  %v337_v8 = vshrl.u32 %v5630_v60, 16  ;;  %v299_v62 = vld [vmem:[%s5605_s6 + $0xa0] sm:$0xf] }
  0x21   : > { %v629_v6 = vrot.slane %v628_v0, 4  ;;  %v343_v9 = vshll.u32 %v5633_v61, 16  ;;  %v326_v12 = vrot.slane %v324_v4, 4  ;;  %v329_v13 = vrot.slane %v327_v5, 5 }
  0x22   : > { %v2148_v10 = vpack.c.b16 %v2125_v2, %v2124_v63  ;;  %v624_v11 = vsel %vm5617_vm2, %v619_v3, %v623_v53  ;;  %v335_v18 = vrot.slane %v333_v7, 5  ;;  %v339_v19 = vrot.slane %v337_v8, 4  ;;  %v317_v3 = vld [vmem:[%s5605_s6 + $0xa4] sm:$0x1] }
  0x23   : > { %v634_v16 = vsel %vm5617_vm2, %v629_v6, %v633_v1  ;;  %v2132_v17 = vunpack.c.l.b16 %v624_v11  ;;  %v330_v22 = vor.u32 %v329_v13, %v326_v12  ;;  %v345_v23 = vrot.slane %v343_v9, 5 }
  0x24   : > { %4809 = vmatmul.msk.bf16.vlgmr.msra.gmra.mxu2 %vm2162_vm3, %v2148_v10  ;;  %v2133_v21 = vunpack.c.l.b16 %v634_v16  ;;  %v340_v24 = vor.u32 %v339_v19, %v335_v18  ;;  %v444_v25 = vshrl.u32 %v282_v14, 16  ;;  %v447_v26 = vshll.u32 %v282_v14, 16 }
  0x25   : > { %v453_v27 = vshll.u32 %v5645_v15, 16  ;;  %v331_v30 = vrot.slane %v330_v22, 4  ;;  %v457_v32 = vshrl.u32 %v5645_v15, 16  ;;  %v463_v33 = vshll.u32 %v5650_v20, 16 }
  0x26   : > { %v2152_v29 = vpack.c.b16 %v2133_v21, %v2132_v17  ;;  %v341_v34 = vrot.slane %v340_v24, 4  ;;  %v446_v35 = vrot.slane %v444_v25, 4  ;;  %v449_v36 = vrot.slane %v447_v26, 5  ;;  %v274_v17 = vld [vmem:[%s5605_s6 + $0xc] sm:$0xf] }
  0x27   : > { %v455_v37 = vrot.slane %v453_v27, 5  ;;  %v336_v39 = vsel %vm5617_vm2, %v331_v30, %v335_v18  ;;  %v459_v40 = vrot.slane %v457_v32, 4  ;;  %v465_v41 = vrot.slane %v463_v33, 5  ;;  %v5679_v27 = vld [vmem:[%s5605_s6 + $0x14] sm:$0x1] }
  0x28   : > { %4813 = vmatmul.msk.bf16.vlgmr.msra.gmra.mxu3 %vm2162_vm3, %v2152_v29  ;;  %v540_v43 = vshrl.u32 %v290_v28, 16  ;;  %v346_v44 = vsel %vm5617_vm2, %v341_v34, %v345_v23  ;;  %v2108_v45 = vunpack.c.l.b16 %v336_v39  ;;  %v450_v46 = vor.u32 %v449_v36, %v446_v35  ;;  %v5676_v23 = vld [vmem:[%s5605_s6 + $0x10] sm:$0xf] }
  0x29   : > { %v543_v47 = vshll.u32 %v290_v28, 16  ;;  %v2109_v48 = vunpack.c.l.b16 %v346_v44  ;;  %v460_v49 = vor.u32 %v459_v40, %v455_v37  ;;  %v549_v51 = vshll.u32 %v291_v38, 16 }
  0x2a   : > { %v542_v50 = vrot.slane %v540_v43, 4  ;;  %v451_v52 = vrot.slane %v450_v46, 4  ;;  %v553_v54 = vshrl.u32 %v291_v38, 16  ;;  %v559_v55 = vshll.u32 %v313_v42, 16  ;;  %v5689_v42 = vld [vmem:[%s5605_s6 + $0x4c] sm:$0xf] }
  0x2b   : > { %v545_v53 = vrot.slane %v543_v47, 5  ;;  %v2140_v57 = vpack.c.b16 %v2109_v48, %v2108_v45  ;;  %v461_v58 = vrot.slane %v460_v49, 4  ;;  %v551_v59 = vrot.slane %v549_v51, 5  ;;  %v5694_v51 = vld [vmem:[%s5605_s6 + $0x50] sm:$0x1] }
  0x2c   : > { %v456_v63 = vsel %vm5617_vm2, %v451_v52, %v455_v37  ;;  %v555_v1 = vrot.slane %v553_v54, 4  ;;  %v561_v2 = vrot.slane %v559_v55, 5  ;;  %v636_v6 = vshrl.u32 %v298_v56, 16  ;;  %v284_v37 = vld [vmem:[%s5605_s6 + $0x48] sm:$0xf] }
  0x2d   : > { %v546_v0 = vor.u32 %v545_v53, %v542_v50  ;;  %4801 = vmatmul.msk.bf16.vlgmr.msra.gmra.mxu0 %vm2162_vm3, %v2140_v57  ;;  %v466_v4 = vsel %vm5617_vm2, %v461_v58, %v465_v41  ;;  %v2118_v5 = vunpack.c.l.b16 %v456_v63  ;;  %v639_v7 = vshll.u32 %v298_v56, 16 }
  0x2e   : > { %v2119_v8 = vunpack.c.l.b16 %v466_v4  ;;  %v556_v10 = vor.u32 %v555_v1, %v551_v59  ;;  %v645_v11 = vshll.u32 %v299_v62, 16  ;;  %v638_v12 = vrot.slane %v636_v6, 4 }
  0x2f   : > { %v547_v9 = vrot.slane %v546_v0, 4  ;;  %v641_v13 = vrot.slane %v639_v7, 5  ;;  %v649_v14 = vshrl.u32 %v299_v62, 16  ;;  %v655_v16 = vshll.u32 %v317_v3, 16  ;;  %v292_v62 = vld [vmem:[%s5605_s6 + $0x78] sm:$0xf] }
  0x30   : > { %v2145_v18 = vpack.c.b16 %v2119_v8, %v2118_v5  ;;  %v557_v21 = vrot.slane %v556_v10, 4  ;;  %v647_v22 = vrot.slane %v645_v11, 5  ;;  %v348_v30 = vshrl.u32 %v274_v17, 16  ;;  %v293_v3 = vld [vmem:[%s5605_s6 + $0x7c] sm:$0xf] }
  0x31   : > { %v552_v19 = vsel %vm5617_vm2, %v547_v9, %v551_v59  ;;  %v642_v25 = vor.u32 %v641_v13, %v638_v12  ;;  %v651_v26 = vrot.slane %v649_v14, 4  ;;  %v657_v29 = vrot.slane %v655_v16, 5  ;;  %v314_v11 = vld [vmem:[%s5605_s6 + $0x80] sm:$0x1] }
  0x32   : > { %v2126_v24 = vunpack.c.l.b16 %v552_v19  ;;  %4806 = vmatmul.msk.bf16.gmra.mxu1 %vm2162_vm3, %v2145_v18  ;;  %v562_v28 = vsel %vm5617_vm2, %v557_v21, %v561_v2  ;;  %v351_v32 = vshll.u32 %v274_v17, 16  ;;  %v357_v36 = vshll.u32 %v5676_v23, 16 }
  0x33   : > { %v2127_v33 = vunpack.c.l.b16 %v562_v28  ;;  %v643_v34 = vrot.slane %v642_v25, 4  ;;  %v652_v35 = vor.u32 %v651_v26, %v647_v22  ;;  %v350_v38 = vrot.slane %v348_v30, 4 }
  0x34   : > { %v353_v39 = vrot.slane %v351_v32, 5  ;;  %v361_v40 = vshrl.u32 %v5676_v23, 16  ;;  %v367_v41 = vshll.u32 %v5679_v27, 16  ;;  %v359_v46 = vrot.slane %v357_v36, 5 }
  0x35   : > { %v2149_v43 = vpack.c.b16 %v2127_v33, %v2126_v24  ;;  %v648_v44 = vsel %vm5617_vm2, %v643_v34, %v647_v22  ;;  %v653_v45 = vrot.slane %v652_v35, 4  ;;  %v468_v53 = vshrl.u32 %v284_v37, 16  ;;  %v301_v34 = vld [vmem:[%s5605_s6 + $0xac] sm:$0xf]  ;;  %v318_v35 = vld [vmem:[%s5605_s6 + $0xb0] sm:$0x1] }
  0x36   : > { %v2134_v47 = vunpack.c.l.b16 %v648_v44  ;;  %v354_v48 = vor.u32 %v353_v39, %v350_v38  ;;  %v363_v49 = vrot.slane %v361_v40, 4  ;;  %v369_v50 = vrot.slane %v367_v41, 5 }
  0x37   : > { %4810 = vmatmul.msk.bf16.gmra.mxu2 %vm2162_vm3, %v2149_v43  ;;  %v658_v52 = vsel %vm5617_vm2, %v653_v45, %v657_v29  ;;  %v471_v54 = vshll.u32 %v284_v37, 16  ;;  %v477_v55 = vshll.u32 %v5689_v42, 16  ;;  %v481_v59 = vshrl.u32 %v5689_v42, 16  ;;  %v300_v29 = vld [vmem:[%s5605_s6 + $0xa8] sm:$0xf] }
  0x38   : > { %v2135_v56 = vunpack.c.l.b16 %v658_v52  ;;  %v355_v57 = vrot.slane %v354_v48, 4  ;;  %v364_v58 = vor.u32 %v363_v49, %v359_v46  ;;  %v470_v63 = vrot.slane %v468_v53, 4 }
  0x39   : > { %v473_v0 = vrot.slane %v471_v54, 5  ;;  %v479_v1 = vrot.slane %v477_v55, 5  ;;  %v487_v2 = vshll.u32 %v5694_v51, 16  ;;  %v483_v7 = vrot.slane %v481_v59, 4  ;;  %v276_v54 = vld [vmem:[%s5605_s6 + $0x18] sm:$0xf] }
  0x3a   : > { %v2153_v4 = vpack.c.b16 %v2135_v56, %v2134_v47  ;;  %v360_v5 = vsel %vm5617_vm2, %v355_v57, %v359_v46  ;;  %v365_v6 = vrot.slane %v364_v58, 4  ;;  %v564_v12 = vshrl.u32 %v292_v62, 16  ;;  %v5722_v58 = vld [vmem:[%s5605_s6 + $0x1c] sm:$0xf]  ;;  %v5725_v59 = vld [vmem:[%s5605_s6 + $0x20] sm:$0x1] }
  0x3b   : > { %v2110_v8 = vunpack.c.l.b16 %v360_v5  ;;  %v474_v9 = vor.u32 %v473_v0, %v470_v63  ;;  %v489_v10 = vrot.slane %v487_v2, 5  ;;  %v484_v14 = vor.u32 %v483_v7, %v479_v1 }
  0x3c   : > { %4814 = vmatmul.msk.bf16.gmra.mxu3 %vm2162_vm3, %v2153_v4  ;;  %v370_v13 = vsel %vm5617_vm2, %v365_v6, %v369_v50  ;;  %v567_v16 = vshll.u32 %v292_v62, 16  ;;  %v573_v17 = vshll.u32 %v293_v3, 16  ;;  %v566_v21 = vrot.slane %v564_v12, 4 }
  0x3d   : > { %v2111_v18 = vunpack.c.l.b16 %v370_v13  ;;  %v475_v19 = vrot.slane %v474_v9, 4  ;;  %v577_v22 = vshrl.u32 %v293_v3, 16  ;;  %v485_v24 = vrot.slane %v484_v14, 4 }
  0x3e   : > { %v569_v25 = vrot.slane %v567_v16, 5  ;;  %v575_v26 = vrot.slane %v573_v17, 5  ;;  %v583_v28 = vshll.u32 %v314_v11, 16  ;;  %v660_v43 = vshrl.u32 %v300_v29, 16  ;;  %v5735_v16 = vld [vmem:[%s5605_s6 + $0x58] sm:$0xf] }
  0x3f   : > { %v2141_v30 = vpack.c.b16 %v2111_v18, %v2110_v8  ;;  %v480_v32 = vsel %vm5617_vm2, %v475_v19, %v479_v1  ;;  %v579_v33 = vrot.slane %v577_v22, 4  ;;  %v490_v36 = vsel %vm5617_vm2, %v485_v24, %v489_v10  ;;  %v286_v10 = vld [vmem:[%s5605_s6 + $0x54] sm:$0xf]  ;;  %v5740_v22 = vld [vmem:[%s5605_s6 + $0x5c] sm:$0x1] }
  0x40   : > { %v2120_v37 = vunpack.c.l.b16 %v480_v32  ;;  %v570_v38 = vor.u32 %v569_v25, %v566_v21  ;;  %v585_v39 = vrot.slane %v583_v28, 5  ;;  %v2121_v40 = vunpack.c.l.b16 %v490_v36 }
  0x41   : > { %4802 = vmatmul.msk.bf16.gmra.mxu0 %vm2162_vm3, %v2141_v30  ;;  %v580_v41 = vor.u32 %v579_v33, %v575_v26  ;;  %v663_v44 = vshll.u32 %v300_v29, 16  ;;  %v669_v46 = vshll.u32 %v301_v34, 16  ;;  %v673_v47 = vshrl.u32 %v301_v34, 16  ;;  %v294_v34 = vld [vmem:[%s5605_s6 + $0x84] sm:$0xf] }
  0x42   : > { %v571_v45 = vrot.slane %v570_v38, 4  ;;  %v679_v48 = vshll.u32 %v318_v35, 16  ;;  %v2146_v49 = vpack.c.b16 %v2121_v40, %v2120_v37  ;;  %v662_v52 = vrot.slane %v660_v43, 4 }
  0x43   : > { %v581_v50 = vrot.slane %v580_v41, 4  ;;  %v665_v53 = vrot.slane %v663_v44, 5  ;;  %v671_v56 = vrot.slane %v669_v46, 5  ;;  %v675_v57 = vrot.slane %v673_v47, 4  ;;  %v295_v44 = vld [vmem:[%s5605_s6 + $0x88] sm:$0xf] }
  0x44   : > { %v576_v55 = vsel %vm5617_vm2, %v571_v45, %v575_v26  ;;  %4807 = vmatmul.msk.bf16.gmra.mxu1 %vm2162_vm3, %v2146_v49  ;;  %v681_v1 = vrot.slane %v679_v48, 5  ;;  %v372_v4 = vshrl.u32 %v276_v54, 16  ;;  %v375_v5 = vshll.u32 %v276_v54, 16  ;;  %v315_v48 = vld [vmem:[%s5605_s6 + $0x8c] sm:$0x1] }
  0x45   : > { %v586_v62 = vsel %vm5617_vm2, %v581_v50, %v585_v39  ;;  %v2128_v63 = vunpack.c.l.b16 %v576_v55  ;;  %v666_v0 = vor.u32 %v665_v53, %v662_v52  ;;  %v676_v3 = vor.u32 %v675_v57, %v671_v56 }
  0x46   : > { %v2129_v2 = vunpack.c.l.b16 %v586_v62  ;;  %v381_v7 = vshll.u32 %v5722_v58, 16  ;;  %v385_v8 = vshrl.u32 %v5722_v58, 16  ;;  %v391_v9 = vshll.u32 %v5725_v59, 16 }
  0x47   : > { %v667_v6 = vrot.slane %v666_v0, 4  ;;  %v677_v12 = vrot.slane %v676_v3, 4  ;;  %v374_v13 = vrot.slane %v372_v4, 4  ;;  %v377_v14 = vrot.slane %v375_v5, 5  ;;  %v302_v3 = vld [vmem:[%s5605_s6 + $0xb4] sm:$0xf] }
  0x48   : > { %v2150_v11 = vpack.c.b16 %v2129_v2, %v2128_v63  ;;  %v383_v18 = vrot.slane %v381_v7, 5  ;;  %v387_v19 = vrot.slane %v385_v8, 4  ;;  %v393_v21 = vrot.slane %v391_v9, 5  ;;  %v303_v7 = vld [vmem:[%s5605_s6 + $0xb8] sm:$0xf] }
  0x49   : > { %v672_v17 = vsel %vm5617_vm2, %v667_v6, %v671_v56  ;;  %v682_v24 = vsel %vm5617_vm2, %v677_v12, %v681_v1  ;;  %v378_v26 = vor.u32 %v377_v14, %v374_v13  ;;  %v492_v28 = vshrl.u32 %v286_v10, 16  ;;  %v319_v12 = vld [vmem:[%s5605_s6 + $0xbc] sm:$0x1]  ;;  %v5227_v13 = vld [vmem:[%s7179_s1 + $0x30] sm:$0xff] }
  0x4a   : > { %4811 = vmatmul.msk.bf16.gmra.mxu2 %vm2162_vm3, %v2150_v11  ;;  %v2136_v25 = vunpack.c.l.b16 %v672_v17  ;;  %v2137_v29 = vunpack.c.l.b16 %v682_v24  ;;  %v388_v30 = vor.u32 %v387_v19, %v383_v18  ;;  %v495_v32 = vshll.u32 %v286_v10, 16 }
  0x4b   : > { %v501_v33 = vshll.u32 %v5735_v16, 16  ;;  %v379_v35 = vrot.slane %v378_v26, 4  ;;  %v494_v36 = vrot.slane %v492_v28, 4  ;;  %v505_v37 = vshrl.u32 %v5735_v16, 16  ;;  %3550 = vmatpush.bf16.msra.mxu2 %v5227_v13 }
  0x4c   : > { %v511_v38 = vshll.u32 %v5740_v22, 16  ;;  %v2154_v39 = vpack.c.b16 %v2137_v29, %v2136_v25  ;;  %v389_v40 = vrot.slane %v388_v30, 4  ;;  %v497_v41 = vrot.slane %v495_v32, 5 }
  0x4d   : > { %v503_v43 = vrot.slane %v501_v33, 5  ;;  %v384_v45 = vsel %vm5617_vm2, %v379_v35, %v383_v18  ;;  %v507_v46 = vrot.slane %v505_v37, 4  ;;  %v588_v49 = vshrl.u32 %v294_v34, 16  ;;  %v278_v33 = vld [vmem:[%s5605_s6 + $0x24] sm:$0xf] }
  0x4e   : > { %v513_v47 = vrot.slane %v511_v38, 5  ;;  %4815 = vmatmul.msk.bf16.gmra.mxu3 %vm2162_vm3, %v2154_v39  ;;  %v394_v50 = vsel %vm5617_vm2, %v389_v40, %v393_v21  ;;  %v2112_v52 = vunpack.c.l.b16 %v384_v45  ;;  %v498_v53 = vor.u32 %v497_v41, %v494_v36  ;;  %v5771_v38 = vld [vmem:[%s5605_s6 + $0x28] sm:$0xf]  ;;  %v5774_v39 = vld [vmem:[%s5605_s6 + $0x2c] sm:$0x1]  ;;  %v5228_v45 = vld [vmem:[%s7179_s1 + $0x38] sm:$0xff] }
  0x4f   : > { %v591_v54 = vshll.u32 %v294_v34, 16  ;;  %v2113_v55 = vunpack.c.l.b16 %v394_v50  ;;  %v508_v56 = vor.u32 %v507_v46, %v503_v43  ;;  %v590_v57 = vrot.slane %v588_v49, 4  ;;  %v5226_v46 = vld [vmem:[%s7179_s1 + $0x28] sm:$0xff]  ;;  %3775 = vmatpush.bf16.msra.mxu3 %v5228_v45 }
  0x50   : > { %v597_v62 = vshll.u32 %v295_v44, 16  ;;  %v499_v63 = vrot.slane %v498_v53, 4  ;;  %v601_v1 = vshrl.u32 %v295_v44, 16  ;;  %v607_v2 = vshll.u32 %v315_v48, 16  ;;  %3309 = vmatpush.bf16.msra.mxu1 %v5226_v46 }
  0x51   : > { %v593_v0 = vrot.slane %v591_v54, 5  ;;  %v2142_v4 = vpack.c.b16 %v2113_v55, %v2112_v52  ;;  %v509_v5 = vrot.slane %v508_v56, 4  ;;  %v684_v18 = vshrl.u32 %v302_v3, 16 }
  0x52   : > { %v599_v6 = vrot.slane %v597_v62, 5  ;;  %v504_v8 = vsel %vm5617_vm2, %v499_v63, %v503_v43  ;;  %v603_v10 = vrot.slane %v601_v1, 4  ;;  %v609_v11 = vrot.slane %v607_v2, 5  ;;  %v707_v1 = vld [vmem:[%s5605_s6] sm:$0xe] }
  0x53   : > { %v594_v9 = vor.u32 %v593_v0, %v590_v57  ;;  %4803 = vmatmul.msk.bf16.gmra.mxu0 %vm2162_vm3, %v2142_v4  ;;  %v514_v14 = vsel %vm5617_vm2, %v509_v5, %v513_v47  ;;  %v2122_v17 = vunpack.c.l.b16 %v504_v8  ;;  %v687_v19 = vshll.u32 %v302_v3, 16  ;;  %v5229_v47 = vld [vmem:[%s7179_s1 + $0x40] sm:$0xff] }
  0x54   : > { %v2123_v21 = vunpack.c.l.b16 %v514_v14  ;;  %v604_v25 = vor.u32 %v603_v10, %v599_v6  ;;  %v693_v26 = vshll.u32 %v303_v7, 16  ;;  %v686_v28 = vrot.slane %v684_v18, 4  ;;  %4000 = vmatpush.bf16.msra.mxu0 %v5229_v47  ;;  %v4637_v10 = vld [vmem:[%s5605_s6 + $0xc] sm:$0xf] }
  0x55   : > { %v595_v24 = vrot.slane %v594_v9, 4  ;;  %v689_v29 = vrot.slane %v687_v19, 5  ;;  %v697_v30 = vshrl.u32 %v303_v7, 16  ;;  %v703_v32 = vshll.u32 %v319_v12, 16 }
  0x56   : > { %v2147_v34 = vpack.c.b16 %v2123_v21, %v2122_v17  ;;  %v605_v36 = vrot.slane %v604_v25, 4  ;;  %v695_v37 = vrot.slane %v693_v26, 5  ;;  %v779_v40 = vrot.slane %v5633_v61, 5  ;;  %v4639_v61 = vld [vmem:[%s5605_s6 + $0x18] sm:$0xf] }
  0x57   : > { %v600_v35 = vsel %vm5617_vm2, %v595_v24, %v599_v6  ;;  %v690_v43 = vor.u32 %v689_v29, %v686_v28  ;;  %v699_v44 = vrot.slane %v697_v30, 4  ;;  %v705_v49 = vrot.slane %v703_v32, 5 }
  0x58   : > { %v2130_v41 = vunpack.c.l.b16 %v600_v35  ;;  %4808 = vmatmul.msk.bf16.gmra.mxu1 %vm2162_vm3, %v2147_v34  ;;  %v610_v48 = vsel %vm5617_vm2, %v605_v36, %v609_v11  ;;  %v396_v50 = vshrl.u32 %v278_v33, 16  ;;  %v399_v52 = vshll.u32 %v278_v33, 16  ;;  %v4638_v11 = vld [vmem:[%s5605_s6 + $0x10] sm:$0xf] }
  0x59   : > { %v2131_v53 = vunpack.c.l.b16 %v610_v48  ;;  %v691_v54 = vrot.slane %v690_v43, 4  ;;  %v700_v55 = vor.u32 %v699_v44, %v695_v37  ;;  %v405_v56 = vshll.u32 %v5771_v38, 16  ;;  %v5173_v48 = vld [vmem:[%s5605_s6] sm:$0xff] }
  0x5a   : > { %v398_v57 = vrot.slane %v396_v50, 4  ;;  %v401_v62 = vrot.slane %v399_v52, 5  ;;  %v409_v63 = vshrl.u32 %v5771_v38, 16  ;;  %v415_v0 = vshll.u32 %v5774_v39, 16 }
  0x5b   : > { %v2151_v2 = vpack.c.b16 %v2131_v53, %v2130_v41  ;;  %v696_v3 = vsel %vm5617_vm2, %v691_v54, %v695_v37  ;;  %v701_v4 = vrot.slane %v700_v55, 4  ;;  %v407_v5 = vrot.slane %v405_v56, 5  ;;  %v4669_v37 = vld [vmem:[%s5605_s6 + $0x14] sm:$0x1] }
  0x5c   : > { %v2138_v6 = vunpack.c.l.b16 %v696_v3  ;;  %v402_v7 = vor.u32 %v401_v62, %v398_v57  ;;  %v411_v8 = vrot.slane %v409_v63, 4  ;;  %v417_v9 = vrot.slane %v415_v0, 5  ;;  %v4640_v63 = vld [vmem:[%s5605_s6 + $0x1c] sm:$0xf]  ;;  %v708_v0 = vld [vmem:[%s5605_s6 + $0xc] sm:$0xe] }
  0x5d   : > { %4812 = vmatmul.msk.bf16.gmra.mxu2 %vm2162_vm3, %v2151_v2  ;;  %v706_v12 = vsel %vm5617_vm2, %v701_v4, %v705_v49  ;;  %v4621_v13 = vrot.slane %v707_v1, 9  ;;  %v776_v21 = vrot.slane %v5630_v60, 5  ;;  %v936_v24 = vshrl.u32 %v4637_v10, 16 }
  0x5e   : > { %v2139_v14 = vunpack.c.l.b16 %v706_v12  ;;  %v403_v17 = vrot.slane %v402_v7, 4  ;;  %v412_v18 = vor.u32 %v411_v8, %v407_v5  ;;  %v939_v25 = vshll.u32 %v4637_v10, 16  ;;  %v5189_v7 = vld [vmem:[%s5605_s6 + $0xc] sm:$0xff] }
  0x5f   : > { %v945_v26 = vshll.u32 %v4638_v11, 16  ;;  %v949_v28 = vshrl.u32 %v4638_v11, 16  ;;  %v777_v33 = vsel %vm5800_vm6, %v4621_v13, %v776_v21  ;;  %v778_v35 = vrot.slane %v776_v21, 4 }
  0x60   : > { %v2155_v29 = vpack.c.b16 %v2139_v14, %v2138_v6  ;;  %v408_v30 = vsel %vm5617_vm2, %v403_v17, %v407_v5  ;;  %v413_v32 = vrot.slane %v412_v18, 4  ;;  %v2509_v36 = vunpack.c.l.b16 %v777_v33  ;;  %v4670_v18 = vld [vmem:[%s5605_s6 + $0x20] sm:$0x1] }
  0x61   : > { %v2114_v34 = vunpack.c.l.b16 %v408_v30  ;;  %v938_v41 = vrot.slane %v936_v24, 4  ;;  %v941_v43 = vrot.slane %v939_v25, 5  ;;  %v947_v44 = vrot.slane %v945_v26, 5  ;;  %v5174_v26 = vld [vmem:[%s5605_s6 + $0xc] sm:$0xff] }
  0x62   : > { %4816 = vmatmul.msk.bf16.gmra.mxu3 %vm2162_vm3, %v2155_v29  ;;  %v418_v60 = vsel %vm5617_vm2, %v413_v32, %v417_v9  ;;  %v951_v45 = vrot.slane %v949_v28, 4  ;;  %v780_v47 = vsel %vm5800_vm6, %v778_v35, %v779_v40  ;;  %v955_v53 = vshll.u32 %v4669_v37, 16  ;;  %v4642_v37 = vld [vmem:[%s5605_s6 + $0x28] sm:$0xf] }
  0x63   : > { %v2115_v46 = vunpack.c.l.b16 %v418_v60  ;;  %v2510_v49 = vunpack.c.l.b16 %v780_v47  ;;  %v942_v50 = vor.u32 %v941_v43, %v938_v41  ;;  %v783_v40 = vrot.slane %v5676_v23, 5  ;;  %v709_v60 = vld [vmem:[%s5605_s6 + $0x18] sm:$0xe] }
  0x64   : > { %v952_v52 = vor.u32 %v951_v45, %v947_v44  ;;  %v957_v62 = vrot.slane %v955_v53, 5  ;;  %v960_v1 = vshrl.u32 %v4639_v61, 16  ;;  %v963_v2 = vshll.u32 %v4639_v61, 16 }
  0x65   : > { %v2143_v54 = vpack.c.b16 %v2115_v46, %v2114_v34  ;;  %v2541_v55 = vpack.c.b16 %v2510_v49, %v2509_v36  ;;  %v943_v56 = vrot.slane %v942_v50, 4  ;;  %v969_v5 = vshll.u32 %v4640_v63, 16  ;;  %v4641_v34 = vld [vmem:[%s5605_s6 + $0x24] sm:$0xf] }
  0x66   : > { %v953_v57 = vrot.slane %v952_v52, 4  ;;  %v973_v6 = vshrl.u32 %v4640_v63, 16  ;;  %v4622_v8 = vrot.slane %v708_v0, 9  ;;  %v785_v9 = vrot.slane %v783_v40, 4  ;;  %v5190_v52 = vld [vmem:[%s5605_s6 + $0x18] sm:$0xff] }
  0x67   : > { %4804 = vmatmul.msk.bf16.gmra.mxu0 %vm2162_vm3, %v2143_v54  ;;  %v948_v3 = vsel %vm5617_vm2, %v943_v56, %v947_v44  ;;  %v786_v23 = vrot.slane %v5679_v27, 5  ;;  %v962_v12 = vrot.slane %v960_v1, 4  ;;  %v965_v13 = vrot.slane %v963_v2, 5  ;;  %v4671_v63 = vld [vmem:[%s5605_s6 + $0x2c] sm:$0x1] }
  0x68   : > { %4885 = vmatmul.msk.bf16.vlgmr.msrb.gmra.mxu1 %vm2162_vm3, %v5173_v48  ;;  %v958_v4 = vsel %vm5617_vm2, %v953_v57, %v957_v62  ;;  %v2975_v10 = vunpack.c.l.b16 %v948_v3  ;;  %v971_v14 = vrot.slane %v969_v5, 5  ;;  %v975_v17 = vrot.slane %v973_v6, 4 }
  0x69   : > { %v2976_v11 = vunpack.c.l.b16 %v958_v4  ;;  %v784_v21 = vsel %vm5800_vm6, %v4622_v8, %v783_v40  ;;  %v787_v24 = vsel %vm5800_vm6, %v785_v9, %v786_v23  ;;  %v966_v27 = vor.u32 %v965_v13, %v962_v12  ;;  %v5175_v4 = vld [vmem:[%s5605_s6 + $0x18] sm:$0xff] }
  0x6a   : > { %v976_v28 = vor.u32 %v975_v17, %v971_v14  ;;  %v979_v29 = vshll.u32 %v4670_v18, 16  ;;  %v2511_v30 = vunpack.c.l.b16 %v784_v21  ;;  %v2512_v32 = vunpack.c.l.b16 %v787_v24  ;;  %v710_v17 = vld [vmem:[%s5605_s6 + $0x24] sm:$0xe] }
  0x6b   : > { %v3007_v25 = vpack.c.b16 %v2976_v11, %v2975_v10  ;;  %v967_v33 = vrot.slane %v966_v27, 4  ;;  %v790_v43 = vrot.slane %v5722_v58, 5  ;;  %v984_v44 = vshrl.u32 %v4641_v34, 16  ;;  %v4643_v10 = vld [vmem:[%s5605_s6 + $0x30] sm:$0xf]  ;;  %v5191_v27 = vld [vmem:[%s5605_s6 + $0x24] sm:$0xff] }
  0x6c   : > { %v977_v35 = vrot.slane %v976_v28, 4  ;;  %v981_v36 = vrot.slane %v979_v29, 5  ;;  %v2542_v41 = vpack.c.b16 %v2512_v32, %v2511_v30  ;;  %v987_v46 = vshll.u32 %v4641_v34, 16  ;;  %v4644_v11 = vld [vmem:[%s5605_s6 + $0x34] sm:$0xf] }
  0x6d   : > { %4905 = vmatmul.msk.bf16.vlgmr.msrb.gmra.mxu2 %vm2162_vm3, %v2541_v55  ;;  %v972_v45 = vsel %vm5617_vm2, %v967_v33, %v971_v14  ;;  %v993_v47 = vshll.u32 %v4642_v37, 16  ;;  %v997_v48 = vshrl.u32 %v4642_v37, 16  ;;  %v4623_v50 = vrot.slane %v709_v60, 9 }
  0x6e   : > { %v982_v49 = vsel %vm5617_vm2, %v977_v35, %v981_v36  ;;  %v2977_v53 = vunpack.c.l.b16 %v972_v45  ;;  %v792_v54 = vrot.slane %v790_v43, 4  ;;  %v793_v58 = vrot.slane %v5725_v59, 5  ;;  %v4672_v36 = vld [vmem:[%s5605_s6 + $0x38] sm:$0x1] }
  0x6f   : > { %v986_v55 = vrot.slane %v984_v44, 4  ;;  %v2978_v56 = vunpack.c.l.b16 %v982_v49  ;;  %v989_v57 = vrot.slane %v987_v46, 5  ;;  %v995_v62 = vrot.slane %v993_v47, 5  ;;  %v4646_v49 = vld [vmem:[%s5605_s6 + $0x40] sm:$0xf] }
  0x70   : > { %v999_v61 = vrot.slane %v997_v48, 4  ;;  %v791_v40 = vsel %vm5800_vm6, %v4623_v50, %v790_v43  ;;  %v794_v0 = vsel %vm5800_vm6, %v792_v54, %v793_v58  ;;  %v1003_v59 = vshll.u32 %v4671_v63, 16  ;;  %v4645_v48 = vld [vmem:[%s5605_s6 + $0x3c] sm:$0xf]  ;;  %v5466_v58 = vld [vmem:[%s5605_s6 + $0x34] sm:$0xf] }
  0x71   : > { %v3008_v1 = vpack.c.b16 %v2978_v56, %v2977_v53  ;;  %v990_v2 = vor.u32 %v989_v57, %v986_v55  ;;  %v2513_v5 = vunpack.c.l.b16 %v791_v40  ;;  %v2514_v6 = vunpack.c.l.b16 %v794_v0  ;;  %v711_v56 = vld [vmem:[%s5605_s6 + $0x30] sm:$0xe] }
  0x72   : > { %4989 = vmatmul.msk.bf16.vlgmr.msrb.gmra.mxu3 %vm2162_vm3, %v5189_v7  ;;  %v1000_v3 = vor.u32 %v999_v61, %v995_v62  ;;  %v1005_v9 = vrot.slane %v1003_v59, 5  ;;  %v797_v12 = vrot.slane %v5771_v38, 5  ;;  %v1008_v18 = vshrl.u32 %v4643_v10, 16  ;;  %v5467_v59 = vld [vmem:[%s5605_s6 + $0x38] sm:$0x1] }
  0x73   : > { %v991_v7 = vrot.slane %v990_v2, 4  ;;  %v2543_v23 = vpack.c.b16 %v2514_v6, %v2513_v5  ;;  %v1011_v21 = vshll.u32 %v4643_v10, 16  ;;  %v1017_v24 = vshll.u32 %v4644_v11, 16  ;;  %v5192_v5 = vld [vmem:[%s5605_s6 + $0x30] sm:$0xff] }
  0x74   : > { %v1001_v8 = vrot.slane %v1000_v3, 4  ;;  %v799_v28 = vrot.slane %v797_v12, 4  ;;  %v800_v38 = vrot.slane %v5774_v39, 5  ;;  %v1010_v32 = vrot.slane %v1008_v18, 4  ;;  %v5176_v39 = vld [vmem:[%s5605_s6 + $0x24] sm:$0xff] }
  0x75   : > { %v996_v13 = vsel %vm5617_vm2, %v991_v7, %v995_v62  ;;  %v1013_v33 = vrot.slane %v1011_v21, 5  ;;  %v1019_v34 = vrot.slane %v1017_v24, 5  ;;  %v1027_v45 = vshll.u32 %v4672_v36, 16  ;;  %v5177_v24 = vld [vmem:[%s5605_s6 + $0x30] sm:$0xff] }
  0x76   : > { %v1006_v14 = vsel %vm5617_vm2, %v1001_v8, %v1005_v9  ;;  %v2979_v29 = vunpack.c.l.b16 %v996_v13  ;;  %v804_v55 = vrot.slane %v5466_v58, 5  ;;  %v1032_v57 = vshrl.u32 %v4645_v48, 16 }
  0x77   : > { %5009 = vmatmul.msk.bf16.vlgmr.msrb.gmra.mxu0 %vm2162_vm3, %v3007_v25  ;;  %v1021_v25 = vshrl.u32 %v4644_v11, 16  ;;  %v2980_v30 = vunpack.c.l.b16 %v1006_v14  ;;  %v1014_v43 = vor.u32 %v1013_v33, %v1010_v32  ;;  %v1029_v53 = vrot.slane %v1027_v45, 5  ;;  %v4673_v11 = vld [vmem:[%s5605_s6 + $0x44] sm:$0x1]  ;;  %v4647_v32 = vld [vmem:[%s5605_s6 + $0x48] sm:$0xf] }
  0x78   : > { %4886 = vmatmul.msk.bf16.gmra.mxu1 %vm2162_vm3, %v5174_v26  ;;  %v4624_v26 = vrot.slane %v710_v17, 9  ;;  %v1035_v62 = vshll.u32 %v4645_v48, 16  ;;  %v1041_v61 = vshll.u32 %v4646_v49, 16  ;;  %v1045_v63 = vshrl.u32 %v4646_v49, 16  ;;  %v4648_v33 = vld [vmem:[%s5605_s6 + $0x4c] sm:$0xf] }
  0x79   : > { %v1023_v35 = vrot.slane %v1021_v25, 4  ;;  %v3009_v60 = vpack.c.b16 %v2980_v30, %v2979_v29  ;;  %v1015_v50 = vrot.slane %v1014_v43, 4  ;;  %v4625_v2 = vrot.slane %v711_v56, 9  ;;  %v5193_v48 = vld [vmem:[%s5605_s6 + $0x3c] sm:$0xff] }
  0x7a   : > { %v798_v37 = vsel %vm5800_vm6, %v4624_v26, %v797_v12  ;;  %v806_v3 = vrot.slane %v804_v55, 4  ;;  %v1034_v6 = vrot.slane %v1032_v57, 4  ;;  %v1037_v7 = vrot.slane %v1035_v62, 5  ;;  %v4674_v62 = vld [vmem:[%s5605_s6 + $0x50] sm:$0x1] }
  0x7b   : > { %v1024_v44 = vor.u32 %v1023_v35, %v1019_v34  ;;  %v2515_v46 = vunpack.c.l.b16 %v798_v37  ;;  %v1020_v0 = vsel %vm5617_vm2, %v1015_v50, %v1019_v34  ;;  %v1043_v8 = vrot.slane %v1041_v61, 5 }
  0x7c   : > { %v1047_v9 = vrot.slane %v1045_v63, 4  ;;  %v805_v12 = vsel %vm5800_vm6, %v4625_v2, %v804_v55  ;;  %v1038_v14 = vor.u32 %v1037_v7, %v1034_v6  ;;  %v1051_v18 = vshll.u32 %v4673_v11, 16 }
  0x7d   : > { %4906 = vmatmul.msk.bf16.gmra.mxu2 %vm2162_vm3, %v2542_v41  ;;  %v801_v41 = vsel %vm5800_vm6, %v799_v28, %v800_v38  ;;  %v1056_v43 = vshrl.u32 %v4647_v32, 16  ;;  %v1065_v45 = vshll.u32 %v4648_v33, 16 }
  0x7e   : > { %v2516_v47 = vunpack.c.l.b16 %v801_v41  ;;  %v1048_v17 = vor.u32 %v1047_v9, %v1043_v8  ;;  %v1039_v38 = vrot.slane %v1038_v14, 4  ;;  %v1053_v30 = vrot.slane %v1051_v18, 5 }
  0x7f   : > { %v1067_v56 = vrot.slane %v1065_v45, 5  ;;  %v818_v14 = vrot.slane %v5689_v42, 5 }
  0x80   : > { %v2544_v54 = vpack.c.b16 %v2516_v47, %v2515_v46  ;;  %v1049_v29 = vrot.slane %v1048_v17, 4  ;;  %v1044_v36 = vsel %vm5617_vm2, %v1039_v38, %v1043_v8  ;;  %v1069_v46 = vshrl.u32 %v4648_v33, 16 }
  0x81   : > { %v2983_v47 = vunpack.c.l.b16 %v1044_v36  ;;  %v820_v33 = vrot.slane %v818_v14, 4 }
  0x82   : > { %4990 = vmatmul.msk.bf16.gmra.mxu3 %vm2162_vm3, %v5190_v52  ;;  %v1025_v52 = vrot.slane %v1024_v44, 4  ;;  %v1054_v37 = vsel %vm5617_vm2, %v1049_v29, %v1053_v30  ;;  %v1059_v44 = vshll.u32 %v4647_v32, 16  ;;  %v1071_v57 = vrot.slane %v1069_v46, 4  ;;  %v5194_v30 = vld [vmem:[%s5605_s6 + $0x48] sm:$0xff]  ;;  %v4675_v46 = vld [vmem:[%s5605_s6 + $0x5c] sm:$0x1] }
  0x83   : > { %v2984_v49 = vunpack.c.l.b16 %v1054_v37 }
  0x84   : > { %v1061_v55 = vrot.slane %v1059_v44, 5  ;;  %v1072_v2 = vor.u32 %v1071_v57, %v1067_v56 }
  0x86   : > { %v1073_v8 = vrot.slane %v1072_v2, 4 }
  0x87   : > { %5010 = vmatmul.msk.bf16.gmra.mxu0 %vm2162_vm3, %v3008_v1  ;;  %v1030_v1 = vsel %vm5617_vm2, %v1025_v52, %v1029_v53 }
  0x88   : > { %4887 = vmatmul.msk.bf16.gmra.mxu1 %vm2162_vm3, %v5175_v4  ;;  %v807_v4 = vrot.slane %v5467_v59, 5  ;;  %v2982_v10 = vunpack.c.l.b16 %v1030_v1 }
  0x8a   : > { %v808_v13 = vsel %vm5800_vm6, %v806_v3, %v807_v4  ;;  %v1075_v3 = vshll.u32 %v4674_v62, 16  ;;  %v5178_v4 = vld [vmem:[%s5605_s6 + $0x3c] sm:$0xff] }
  0x8b   : > { %v2518_v26 = vunpack.c.l.b16 %v808_v13  ;;  %v4650_v13 = vld [vmem:[%s5605_s6 + $0x58] sm:$0xf]  ;;  %v4651_v62 = vld [vmem:[%s5605_s6 + $0x60] sm:$0xf] }
  0x8c   : > { %v1077_v9 = vrot.slane %v1075_v3, 5  ;;  %v1093_v38 = vshrl.u32 %v4650_v13, 16 }
  0x8d   : > { %4907 = vmatmul.msk.bf16.gmra.mxu2 %vm2162_vm3, %v2543_v23  ;;  %v2981_v23 = vunpack.c.l.b16 %v1020_v0  ;;  %v3011_v0 = vpack.c.b16 %v2984_v49, %v2983_v47 }
  0x8e   : > { %v1078_v18 = vsel %vm5617_vm2, %v1073_v8, %v1077_v9  ;;  %v1095_v44 = vrot.slane %v1093_v38, 4 }
  0x8f   : > { %v3010_v21 = vpack.c.b16 %v2982_v10, %v2981_v23  ;;  %v2986_v37 = vunpack.c.l.b16 %v1078_v18 }
  0x92   : > { %4991 = vmatmul.msk.bf16.gmra.mxu3 %vm2162_vm3, %v5191_v27  ;;  %v2517_v27 = vunpack.c.l.b16 %v805_v12  ;;  %v4649_v12 = vld [vmem:[%s5605_s6 + $0x54] sm:$0xf] }
  0x94   : > { %v2545_v35 = vpack.c.b16 %v2518_v26, %v2517_v27  ;;  %v1083_v27 = vshll.u32 %v4649_v12, 16  ;;  %v1089_v26 = vshll.u32 %v4650_v13, 16 }
  0x97   : > { %5011 = vmatmul.msk.bf16.gmra.mxu0 %vm2162_vm3, %v3009_v60  ;;  %v811_v60 = vrot.slane %v5645_v15, 5  ;;  %v1058_v15 = vrot.slane %v1056_v43, 4  ;;  %v1091_v43 = vrot.slane %v1089_v26, 5  ;;  %v828_v26 = vrot.slane %v5740_v22, 5 }
  0x98   : > { %4888 = vmatmul.msk.bf16.gmra.mxu1 %vm2162_vm3, %v5176_v39  ;;  %v712_v39 = vld [vmem:[%s5605_s6 + $0x3c] sm:$0xe] }
  0x99   : > { %v4626_v52 = vrot.slane %v712_v39, 9  ;;  %v813_v53 = vrot.slane %v811_v60, 4  ;;  %v1085_v39 = vrot.slane %v1083_v27, 5 }
  0x9b   : > { %v812_v61 = vsel %vm5800_vm6, %v4626_v52, %v811_v60  ;;  %v5179_v52 = vld [vmem:[%s5605_s6 + $0x48] sm:$0xff] }
  0x9d   : > { %v5884_v40 = vpop.f32.mrf.mxu1  ;;  %4908 = vmatmul.msk.bf16.gmra.mxu2 %vm2162_vm3, %v2544_v54  ;;  %v814_v54 = vrot.slane %v5650_v20, 5  ;;  %v1062_v20 = vor.u32 %v1061_v55, %v1058_v15  ;;  %v1099_v15 = vshll.u32 %v4675_v46, 16  ;;  %v5180_v46 = vld [vmem:[%s5605_s6 + $0x54] sm:$0xff] }
  0x9f   : > { %v815_v63 = vsel %vm5800_vm6, %v813_v53, %v814_v54  ;;  %v1063_v7 = vrot.slane %v1062_v20, 4  ;;  %v1096_v54 = vor.u32 %v1095_v44, %v1091_v43  ;;  %v1101_v2 = vrot.slane %v1099_v15, 5 }
  0xa0   : > { %v2520_v6 = vunpack.c.l.b16 %v815_v63 }
  0xa1   : > { %v1068_v17 = vsel %vm5617_vm2, %v1063_v7, %v1067_v56  ;;  %v1097_v20 = vrot.slane %v1096_v54, 4  ;;  %v825_v7 = vrot.slane %v5735_v16, 5 }
  0xa2   : > { %4992 = vmatmul.msk.bf16.gmra.mxu3 %vm2162_vm3, %v5192_v5  ;;  %v2519_v5 = vunpack.c.l.b16 %v812_v61  ;;  %v2985_v36 = vunpack.c.l.b16 %v1068_v17  ;;  %v4652_v61 = vld [vmem:[%s5605_s6 + $0x64] sm:$0xf] }
  0xa3   : > { %v1117_v8 = vshrl.u32 %v4652_v61, 16  ;;  %v1102_v13 = vsel %vm5617_vm2, %v1097_v20, %v1101_v2  ;;  %v827_v27 = vrot.slane %v825_v7, 4  ;;  %v5468_v2 = vld [vmem:[%s5605_s6 + $0x64] sm:$0xf] }
  0xa4   : > { %v2546_v10 = vpack.c.b16 %v2520_v6, %v2519_v5  ;;  %v3012_v49 = vpack.c.b16 %v2986_v37, %v2985_v36  ;;  %v1107_v5 = vshll.u32 %v4651_v62, 16  ;;  %v1113_v6 = vshll.u32 %v4652_v61, 16 }
  0xa5   : > { %v5900_v25 = vpop.f32.mrf.mxu1  ;;  %v1119_v38 = vrot.slane %v1117_v8, 4 }
  0xa6   : > { %v1109_v18 = vrot.slane %v1107_v5, 5  ;;  %v715_v5 = vld [vmem:[%s5605_s6 + $0x60] sm:$0xe] }
  0xa7   : > { %v5902_v28 = vpop.f32.mrf.mxu2  ;;  %5012 = vmatmul.msk.bf16.gmra.mxu0 %vm2162_vm3, %v3010_v21  ;;  %v713_v21 = vld [vmem:[%s5605_s6 + $0x48] sm:$0xe] }
  0xa8   : > { %4889 = vmatmul.msk.bf16.gmra.mxu1 %vm2162_vm3, %v5177_v24  ;;  %v1080_v24 = vshrl.u32 %v4649_v12, 16  ;;  %v4627_v42 = vrot.slane %v713_v21, 9  ;;  %v1115_v21 = vrot.slane %v1113_v6, 5 }
  0xaa   : > { %v5908_v34 = vpop.f32.mrf.mxu0  ;;  %v1082_v60 = vrot.slane %v1080_v24, 4  ;;  %v5195_v24 = vld [vmem:[%s5605_s6 + $0x54] sm:$0xff]  ;;  %v1120_v22 = vor.u32 %v1119_v38, %v1115_v21 }
  0xab   : > { %v5914_v41 = vpop.f32.mrf.mxu3 }
  0xac   : > { %v1086_v53 = vor.u32 %v1085_v39, %v1082_v60  ;;  %v829_v39 = vsel %vm5800_vm6, %v827_v27, %v828_v26  ;;  %v1121_v54 = vrot.slane %v1120_v22, 4 }
  0xad   : > { %4909 = vmatmul.msk.bf16.gmra.mxu2 %vm2162_vm3, %v2545_v35  ;;  %v821_v35 = vrot.slane %v5694_v51, 5 }
  0xaf   : > { %v5920_v50 = vpop.f32.mrf.mxu1  ;;  %v5923_v58 = vpop.f32.mrf.mxu2  ;;  %v822_v51 = vsel %vm5800_vm6, %v820_v33, %v821_v35  ;;  %v4676_v33 = vld [vmem:[%s5605_s6 + $0x68] sm:$0x1] }
  0xb0   : > { %v2522_v56 = vunpack.c.l.b16 %v822_v51 }
  0xb2   : > { %4993 = vmatmul.msk.bf16.gmra.mxu3 %vm2162_vm3, %v5193_v48  ;;  %v5931_v1 = vpop.f32.mrf.mxu0  ;;  %v819_v48 = vsel %vm5800_vm6, %v4627_v42, %v818_v14  ;;  %v2988_v42 = vunpack.c.l.b16 %v1102_v13 }
  0xb3   : > { %v5933_v59 = vpop.f32.mrf.mxu3  ;;  %v2521_v55 = vunpack.c.l.b16 %v819_v48 }
  0xb5   : > { %v2547_v3 = vpack.c.b16 %v2522_v56, %v2521_v55  ;;  %v4653_v55 = vld [vmem:[%s5605_s6 + $0x6c] sm:$0xf]  ;;  %v4654_v56 = vld [vmem:[%s5605_s6 + $0x70] sm:$0xf] }
  0xb6   : > { %v1128_v6 = vshrl.u32 %v4653_v55, 16  ;;  %v1137_v8 = vshll.u32 %v4654_v56, 16 }
  0xb7   : > { %5013 = vmatmul.msk.bf16.gmra.mxu0 %vm2162_vm3, %v3011_v0  ;;  %v5937_v23 = vpop.f32.mrf.mxu1  ;;  %v1087_v0 = vrot.slane %v1086_v53, 4 }
  0xb8   : > { %4890 = vmatmul.msk.bf16.gmra.mxu1 %vm2162_vm3, %v5178_v4  ;;  %v1104_v4 = vshrl.u32 %v4651_v62, 16  ;;  %v1130_v26 = vrot.slane %v1128_v6, 4  ;;  %v4656_v6 = vld [vmem:[%s5605_s6 + $0x7c] sm:$0xf] }
  0xb9   : > { %v1092_v12 = vsel %vm5617_vm2, %v1087_v0, %v1091_v43  ;;  %v1123_v43 = vshll.u32 %v4676_v33, 16 }
  0xba   : > { %v5940_v11 = vpop.f32.mrf.mxu2  ;;  %v1106_v17 = vrot.slane %v1104_v4, 4 }
  0xbb   : > { %v1125_v15 = vrot.slane %v1123_v43, 5 }
  0xbc   : > { %v1110_v37 = vor.u32 %v1109_v18, %v1106_v17  ;;  %v5196_v18 = vld [vmem:[%s5605_s6 + $0x60] sm:$0xff] }
  0xbd   : > { %4910 = vmatmul.msk.bf16.gmra.mxu2 %vm2162_vm3, %v2546_v10  ;;  %v714_v10 = vld [vmem:[%s5605_s6 + $0x54] sm:$0xe]  ;;  %v1126_v20 = vsel %vm5617_vm2, %v1121_v54, %v1125_v15 }
  0xbe   : > { %v5950_v29 = vpop.f32.mrf.mxu0  ;;  %v4628_v16 = vrot.slane %v714_v10, 9  ;;  %v1111_v53 = vrot.slane %v1110_v37, 4  ;;  %v1141_v10 = vshrl.u32 %v4654_v56, 16  ;;  %v4677_v37 = vld [vmem:[%s5605_s6 + $0x74] sm:$0x1] }
  0xbf   : > { %v5954_v32 = vpop.f32.mrf.mxu3 }
  0xc0   : > { %v826_v60 = vsel %vm5800_vm6, %v4628_v16, %v825_v7  ;;  %v1116_v0 = vsel %vm5617_vm2, %v1111_v53, %v1115_v21  ;;  %v1131_v7 = vshll.u32 %v4653_v55, 16  ;;  %v4629_v16 = vrot.slane %v715_v5, 9  ;;  %v4655_v5 = vld [vmem:[%s5605_s6 + $0x78] sm:$0xf] }
  0xc1   : > { %v5957_v45 = vpop.f32.mrf.mxu1  ;;  %v2523_v51 = vunpack.c.l.b16 %v826_v60  ;;  %v2989_v21 = vunpack.c.l.b16 %v1116_v0 }
  0xc2   : > { %4994 = vmatmul.msk.bf16.gmra.mxu3 %vm2162_vm3, %v5194_v30  ;;  %v5961_v47 = vpop.f32.mrf.mxu2  ;;  %v2987_v30 = vunpack.c.l.b16 %v1092_v12  ;;  %v5469_v12 = vld [vmem:[%s5605_s6 + $0x68] sm:$0x1]  ;;  %v1133_v38 = vrot.slane %v1131_v7, 5  ;;  %v5470_v7 = vld [vmem:[%s5605_s6 + $0x70] sm:$0xf] }
  0xc3   : > { %v835_v13 = vrot.slane %v5469_v12, 5  ;;  %v716_v12 = vld [vmem:[%s5605_s6 + $0x6c] sm:$0xe] }
  0xc4   : > { %v3013_v44 = vpack.c.b16 %v2988_v42, %v2987_v30  ;;  %v1139_v30 = vrot.slane %v1137_v8, 5  ;;  %v1143_v42 = vrot.slane %v1141_v10, 4  ;;  %v1134_v43 = vor.u32 %v1133_v38, %v1130_v26  ;;  %v5471_v38 = vld [vmem:[%s5605_s6 + $0x74] sm:$0x1] }
  0xc5   : > { %v839_v8 = vrot.slane %v5470_v7, 5 }
  0xc6   : > { %v5968_v57 = vpop.f32.mrf.mxu0 }
  0xc7   : > { %5014 = vmatmul.msk.bf16.gmra.mxu0 %vm2162_vm3, %v3012_v49  ;;  %v5973_v63 = vpop.f32.mrf.mxu3  ;;  %v2524_v49 = vunpack.c.l.b16 %v829_v39 }
  0xc8   : > { %4891 = vmatmul.msk.bf16.gmra.mxu1 %vm2162_vm3, %v5179_v52 }
  0xc9   : > { %v5977_v9 = vpop.f32.mrf.mxu1  ;;  %v2548_v62 = vpack.c.b16 %v2524_v49, %v2523_v51  ;;  %v5181_v49 = vld [vmem:[%s5605_s6 + $0x60] sm:$0xff] }
  0xcd   : > { %v5984_v14 = vpop.f32.mrf.mxu2  ;;  %4911 = vmatmul.msk.bf16.gmra.mxu2 %vm2162_vm3, %v2547_v3  ;;  %v832_v3 = vrot.slane %v5468_v2, 5 }
  0xcf   : > { %v834_v27 = vrot.slane %v832_v3, 4  ;;  %v833_v60 = vsel %vm5800_vm6, %v4629_v16, %v832_v3  ;;  %v1165_v16 = vshrl.u32 %v4656_v6, 16 }
  0xd0   : > { %v5990_v35 = vpop.f32.mrf.mxu0  ;;  %v2525_v15 = vunpack.c.l.b16 %v833_v60  ;;  %v4630_v60 = vrot.slane %v716_v12, 9 }
  0xd1   : > { %v5992_v36 = vpop.f32.mrf.mxu3  ;;  %v836_v39 = vsel %vm5800_vm6, %v834_v27, %v835_v13 }
  0xd2   : > { %4995 = vmatmul.msk.bf16.gmra.mxu3 %vm2162_vm3, %v5195_v24  ;;  %v2990_v24 = vunpack.c.l.b16 %v1126_v20  ;;  %v2526_v55 = vunpack.c.l.b16 %v836_v39  ;;  %v841_v39 = vrot.slane %v839_v8, 4 }
  0xd4   : > { %v3014_v22 = vpack.c.b16 %v2990_v24, %v2989_v21  ;;  %v2549_v3 = vpack.c.b16 %v2526_v55, %v2525_v15  ;;  %v1155_v21 = vshll.u32 %v4655_v5, 16  ;;  %v1161_v24 = vshll.u32 %v4656_v6, 16 }
  0xd5   : > { %v6000_v48 = vpop.f32.mrf.mxu1  ;;  %v6002_v52 = vpop.f32.mrf.mxu2  ;;  %v1167_v15 = vrot.slane %v1165_v16, 4 }
  0xd7   : > { %5015 = vmatmul.msk.bf16.gmra.mxu0 %vm2162_vm3, %v3013_v44  ;;  %v1144_v44 = vor.u32 %v1143_v42, %v1139_v30  ;;  %v842_v42 = vrot.slane %v5471_v38, 5 }
  0xd8   : > { %4892 = vmatmul.msk.bf16.gmra.mxu1 %vm2162_vm3, %v5180_v46  ;;  %v6008_v61 = vpop.f32.mrf.mxu0  ;;  %v1147_v46 = vshll.u32 %v4677_v37, 16  ;;  %v5197_v37 = vld [vmem:[%s5605_s6 + $0x6c] sm:$0xff] }
  0xd9   : > { %v6015_v4 = vpop.f32.mrf.mxu3  ;;  %v1145_v0 = vrot.slane %v1144_v44, 4 }
  0xda   : > { %v1149_v20 = vrot.slane %v1147_v46, 5 }
  0xdd   : > { %4912 = vmatmul.msk.bf16.gmra.mxu2 %vm2162_vm3, %v2548_v62  ;;  %v6020_v17 = vpop.f32.mrf.mxu1  ;;  %v1135_v62 = vrot.slane %v1134_v43, 4 }
  0xdf   : > { %v1140_v10 = vsel %vm5617_vm2, %v1135_v62, %v1139_v30  ;;  %v4678_v62 = vld [vmem:[%s5605_s6 + $0x80] sm:$0x1] }
  0xe0   : > { %v6023_v33 = vpop.f32.mrf.mxu2 }
  0xe2   : > { %4996 = vmatmul.msk.bf16.gmra.mxu3 %vm2162_vm3, %v5196_v18  ;;  %v1152_v18 = vshrl.u32 %v4655_v5, 16  ;;  %v5182_v5 = vld [vmem:[%s5605_s6 + $0x6c] sm:$0xff] }
  0xe4   : > { %v6031_v51 = vpop.f32.mrf.mxu0  ;;  %v1154_v46 = vrot.slane %v1152_v18, 4 }
  0xe5   : > { %v6034_v53 = vpop.f32.mrf.mxu3  ;;  %v2427_v54 = vpop.f32.mrf.mxu1 }
  0xe6   : > { %v2428_v56 = vadd.f32 %v2427_v54, %v5908_v34  ;;  %v1150_v34 = vsel %vm5617_vm2, %v1145_v0, %v1149_v20  ;;  %v1163_v54 = vrot.slane %v1161_v24, 5  ;;  %v840_v0 = vsel %vm5800_vm6, %v4630_v60, %v839_v8 }
  0xe7   : > { %5016 = vmatmul.msk.bf16.gmra.mxu0 %vm2162_vm3, %v3014_v22  ;;  %v2991_v22 = vunpack.c.l.b16 %v1140_v10  ;;  %v2992_v43 = vunpack.c.l.b16 %v1150_v34  ;;  %v1171_v10 = vshll.u32 %v4678_v62, 16 }
  0xe8   : > { %v6038_v2 = vpop.f32.mrf.mxu2  ;;  %4893 = vmatmul.msk.bf16.gmra.mxu1 %vm2162_vm3, %v5181_v49  ;;  %v1157_v49 = vrot.slane %v1155_v21, 5  ;;  %v1168_v7 = vor.u32 %v1167_v15, %v1163_v54 }
  0xe9   : > { %v3015_v20 = vpack.c.b16 %v2992_v43, %v2991_v22  ;;  %v1173_v38 = vrot.slane %v1171_v10, 5  ;;  %v4658_v22 = vld [vmem:[%s5605_s6 + $0x88] sm:$0xf]  ;;  %v5472_v43 = vld [vmem:[%s5605_s6 + $0x7c] sm:$0xf] }
  0xea   : > { %v1158_v6 = vor.u32 %v1157_v49, %v1154_v46  ;;  %v717_v46 = vld [vmem:[%s5605_s6 + $0x78] sm:$0xe] }
  0xec   : > { %v6049_v13 = vpop.f32.mrf.mxu0  ;;  %v1159_v16 = vrot.slane %v1158_v6, 4 }
  0xed   : > { %v6051_v27 = vpop.f32.mrf.mxu3  ;;  %4913 = vmatmul.msk.bf16.gmra.mxu2 %vm2162_vm3, %v2549_v3  ;;  %v2429_v26 = vpop.f32.mrf.mxu1 }
  0xee   : > { %v2430_v30 = vadd.f32 %v2429_v26, %v5931_v1  ;;  %v843_v1 = vsel %vm5800_vm6, %v841_v39, %v842_v42  ;;  %v1169_v26 = vrot.slane %v1168_v7, 4  ;;  %v4657_v42 = vld [vmem:[%s5605_s6 + $0x84] sm:$0xf]  ;;  %v5198_v7 = vld [vmem:[%s5605_s6 + $0x78] sm:$0xff] }
  0xef   : > { %v2528_v18 = vunpack.c.l.b16 %v843_v1  ;;  %v1179_v49 = vshll.u32 %v4657_v42, 16  ;;  %v1189_v1 = vshrl.u32 %v4658_v22, 16 }
  0xf0   : > { %v2620_v44 = vpop.f32.mrf.mxu2  ;;  %v1174_v62 = vsel %vm5617_vm2, %v1169_v26, %v1173_v38 }
  0xf1   : > { %v2700_v55 = vadd.f32 %v2620_v44, %v2428_v56  ;;  %v2527_v56 = vunpack.c.l.b16 %v840_v0  ;;  %v846_v44 = vrot.slane %v5472_v43, 5  ;;  %v1185_v0 = vshll.u32 %v4658_v22, 16 }
  0xf2   : > { %4997 = vmatmul.msk.bf16.gmra.mxu3 %vm2162_vm3, %v5197_v37  ;;  %v1191_v26 = vrot.slane %v1189_v1, 4 }
  0xf3   : > { %v2550_v39 = vpack.c.b16 %v2528_v18, %v2527_v56 }
  0xf4   : > { %v3086_v3 = vpop.f32.mrf.mxu0 }
  0xf5   : > { %v2861_v34 = vpop.f32.mrf.mxu3  ;;  %v2432_v12 = vpop.f32.mrf.mxu1 }
  0xf6   : > { %v2941_v21 = vadd.f32 %v2861_v34, %v2700_v55  ;;  %v2433_v8 = vadd.f32 %v2432_v12, %v5950_v29  ;;  %v1176_v29 = vshrl.u32 %v4657_v42, 16  ;;  %v1164_v55 = vsel %vm5617_vm2, %v1159_v16, %v1163_v54 }
  0xf7   : > { %5017 = vmatmul.msk.bf16.gmra.mxu0 %vm2162_vm3, %v3015_v20  ;;  %v5473_v20 = vld [vmem:[%s5605_s6 + $0x80] sm:$0x1]  ;;  %v4631_v34 = vrot.slane %v717_v46, 9  ;;  %v848_v12 = vrot.slane %v846_v44, 4  ;;  %v2993_v56 = vunpack.c.l.b16 %v1164_v55  ;;  %v2994_v54 = vunpack.c.l.b16 %v1174_v62 }
  0xf8   : > { %v2622_v24 = vpop.f32.mrf.mxu2  ;;  %4894 = vmatmul.msk.bf16.gmra.mxu1 %vm2162_vm3, %v5182_v5  ;;  %v6068_v37 = vadd.f32 %v3086_v3, %v2941_v21  ;;  %v849_v3 = vrot.slane %v5473_v20, 5  ;;  %v1178_v18 = vrot.slane %v1176_v29, 4  ;;  %v1181_v21 = vrot.slane %v1179_v49, 5  ;;  %v5183_v29 = vld [vmem:[%s5605_s6 + $0x78] sm:$0xff] }
  0xf9   : > { %v2701_v60 = vadd.f32 %v2622_v24, %v2430_v30  ;;  %v1187_v16 = vrot.slane %v1185_v0, 5  ;;  %v3016_v22 = vpack.c.b16 %v2994_v54, %v2993_v56  ;;  %v4660_v56 = vld [vmem:[%s5605_s6 + $0x94] sm:$0xf]  ;;  %v5474_v54 = vld [vmem:[%s5605_s6 + $0x88] sm:$0xf] }
  0xfa   : > { %v1182_v43 = vor.u32 %v1181_v21, %v1178_v18  ;;  %v853_v18 = vrot.slane %v5474_v54, 5  ;;  %v718_v21 = vld [vmem:[%s5605_s6 + $0x84] sm:$0xe] }
  0xfb   : > { %v1192_v49 = vor.u32 %v1191_v26, %v1187_v16 }
  0xfc   : > { %v3088_v15 = vpop.f32.mrf.mxu0  ;;  %v1183_v20 = vrot.slane %v1182_v43, 4 }
  0xfd   : > { %v2863_v30 = vpop.f32.mrf.mxu3  ;;  %4914 = vmatmul.msk.bf16.gmra.mxu2 %vm2162_vm3, %v2550_v39  ;;  %v2434_v5 = vpop.f32.mrf.mxu1  ;;  %v4679_v39 = vld [vmem:[%s5605_s6 + $0x8c] sm:$0x1] }
  0xfe   : > { %v2942_v6 = vadd.f32 %v2863_v30, %v2701_v60  ;;  %v2435_v10 = vadd.f32 %v2434_v5, %v5968_v57  ;;  %v847_v60 = vsel %vm5800_vm6, %v4631_v34, %v846_v44  ;;  %v850_v57 = vsel %vm5800_vm6, %v848_v12, %v849_v3 }
  0xff   : > { %v1195_v55 = vshll.u32 %v4679_v39, 16  ;;  %v2530_v0 = vunpack.c.l.b16 %v850_v57  ;;  %v1193_v30 = vrot.slane %v1192_v49, 4  ;;  %v1213_v57 = vshrl.u32 %v4660_v56, 16  ;;  %v5199_v49 = vld [vmem:[%s5605_s6 + $0x84] sm:$0xff] }
 0x100   : > { %v2625_v24 = vpop.f32.mrf.mxu2  ;;  %v6081_v38 = vadd.f32 %v3088_v15, %v2942_v6  ;;  %v4659_v6 = vld [vmem:[%s5605_s6 + $0x90] sm:$0xf] }
 0x101   : > { %v2702_v42 = vadd.f32 %v2625_v24, %v2433_v8  ;;  %v2529_v8 = vunpack.c.l.b16 %v847_v60  ;;  %v1197_v5 = vrot.slane %v1195_v55, 5  ;;  %v1200_v24 = vshrl.u32 %v4659_v6, 16 }
 0x102   : > { %4998 = vmatmul.msk.bf16.gmra.mxu3 %vm2162_vm3, %v5198_v7  ;;  %v1203_v39 = vshll.u32 %v4659_v6, 16  ;;  %v1209_v60 = vshll.u32 %v4660_v56, 16  ;;  %v4632_v55 = vrot.slane %v718_v21, 9 }
 0x103   : > { %v2551_v12 = vpack.c.b16 %v2530_v0, %v2529_v8  ;;  %v1202_v0 = vrot.slane %v1200_v24, 4 }
 0x104   : > { %v3091_v46 = vpop.f32.mrf.mxu0 }
 0x105   : > { %v2866_v62 = vpop.f32.mrf.mxu3  ;;  %v2437_v15 = vpop.f32.mrf.mxu1 }
 0x106   : > { %v2943_v1 = vadd.f32 %v2866_v62, %v2702_v42  ;;  %v2438_v44 = vadd.f32 %v2437_v15, %v5990_v35  ;;  %v1188_v35 = vsel %vm5617_vm2, %v1183_v20, %v1187_v16  ;;  %v1198_v42 = vsel %vm5617_vm2, %v1193_v30, %v1197_v5 }
 0x107   : > { %5018 = vmatmul.msk.bf16.gmra.mxu0 %vm2162_vm3, %v3016_v22  ;;  %v5475_v22 = vld [vmem:[%s5605_s6 + $0x8c] sm:$0x1]  ;;  %v855_v62 = vrot.slane %v853_v18, 4  ;;  %v2995_v15 = vunpack.c.l.b16 %v1188_v35  ;;  %v2996_v8 = vunpack.c.l.b16 %v1198_v42  ;;  %v1205_v20 = vrot.slane %v1203_v39, 5  ;;  %v5184_v35 = vld [vmem:[%s5605_s6 + $0x84] sm:$0xff] }
 0x108   : > { %v2627_v3 = vpop.f32.mrf.mxu2  ;;  %4895 = vmatmul.msk.bf16.gmra.mxu1 %vm2162_vm3, %v5183_v29  ;;  %v6094_v7 = vadd.f32 %v3091_v46, %v2943_v1  ;;  %v856_v43 = vrot.slane %v5475_v22, 5  ;;  %v1215_v30 = vrot.slane %v1213_v57, 4 }
 0x109   : > { %v2703_v34 = vadd.f32 %v2627_v3, %v2435_v10  ;;  %v1211_v3 = vrot.slane %v1209_v60, 5  ;;  %v3017_v56 = vpack.c.b16 %v2996_v8, %v2995_v15  ;;  %v1206_v21 = vor.u32 %v1205_v20, %v1202_v0  ;;  %v4662_v15 = vld [vmem:[%s5605_s6 + $0xa0] sm:$0xf]  ;;  %v719_v20 = vld [vmem:[%s5605_s6 + $0x90] sm:$0xe] }
 0x10b   : > { %v1216_v24 = vor.u32 %v1215_v30, %v1211_v3 }
 0x10c   : > { %v3093_v26 = vpop.f32.mrf.mxu0 }
 0x10d   : > { %v2868_v10 = vpop.f32.mrf.mxu3  ;;  %4915 = vmatmul.msk.bf16.gmra.mxu2 %vm2162_vm3, %v2551_v12  ;;  %v2439_v46 = vpop.f32.mrf.mxu1  ;;  %v4680_v12 = vld [vmem:[%s5605_s6 + $0x98] sm:$0x1] }
 0x10e   : > { %v2944_v29 = vadd.f32 %v2868_v10, %v2703_v34  ;;  %v2440_v16 = vadd.f32 %v2439_v46, %v6008_v61  ;;  %v854_v61 = vsel %vm5800_vm6, %v4632_v55, %v853_v18  ;;  %v857_v34 = vsel %vm5800_vm6, %v855_v62, %v856_v43  ;;  %v4661_v18 = vld [vmem:[%s5605_s6 + $0x9c] sm:$0xf] }
 0x10f   : > { %v1219_v42 = vshll.u32 %v4680_v12, 16  ;;  %v2532_v60 = vunpack.c.l.b16 %v857_v34  ;;  %v1207_v10 = vrot.slane %v1206_v21, 4  ;;  %v1217_v46 = vrot.slane %v1216_v24, 4 }
 0x110   : > { %v2630_v1 = vpop.f32.mrf.mxu2  ;;  %v6107_v5 = vadd.f32 %v3093_v26, %v2944_v29  ;;  %v1224_v8 = vshrl.u32 %v4661_v18, 16  ;;  %v1227_v0 = vshll.u32 %v4661_v18, 16  ;;  %v1237_v34 = vshrl.u32 %v4662_v15, 16 }
 0x111   : > { %v2704_v6 = vadd.f32 %v2630_v1, %v2438_v44  ;;  %v2531_v44 = vunpack.c.l.b16 %v854_v61  ;;  %v1221_v29 = vrot.slane %v1219_v42, 5  ;;  %v5476_v1 = vld [vmem:[%s5605_s6 + $0x94] sm:$0xf]  ;;  %v1233_v61 = vshll.u32 %v4662_v15, 16 }
 0x112   : > { %4999 = vmatmul.msk.bf16.gmra.mxu3 %vm2162_vm3, %v5199_v49  ;;  %v1226_v21 = vrot.slane %v1224_v8, 4  ;;  %v1229_v24 = vrot.slane %v1227_v0, 5 }
 0x113   : > { %v2552_v62 = vpack.c.b16 %v2532_v60, %v2531_v44  ;;  %v1222_v12 = vsel %vm5617_vm2, %v1217_v46, %v1221_v29  ;;  %v4633_v44 = vrot.slane %v719_v20, 9 }
 0x114   : > { %v3096_v54 = vpop.f32.mrf.mxu0  ;;  %v1230_v15 = vor.u32 %v1229_v24, %v1226_v21  ;;  %v4664_v21 = vld [vmem:[%s5605_s6 + $0xac] sm:$0xf] }
 0x115   : > { %v2871_v39 = vpop.f32.mrf.mxu3  ;;  %v2442_v26 = vpop.f32.mrf.mxu1 }
 0x116   : > { %v2945_v57 = vadd.f32 %v2871_v39, %v2704_v6  ;;  %v2443_v22 = vadd.f32 %v2442_v26, %v6031_v51  ;;  %v860_v51 = vrot.slane %v5476_v1, 5  ;;  %v1212_v6 = vsel %vm5617_vm2, %v1207_v10, %v1211_v3  ;;  %v5200_v39 = vld [vmem:[%s5605_s6 + $0x90] sm:$0xff] }
 0x117   : > { %5019 = vmatmul.msk.bf16.gmra.mxu0 %vm2162_vm3, %v3017_v56  ;;  %v5477_v56 = vld [vmem:[%s5605_s6 + $0x98] sm:$0x1]  ;;  %v2997_v60 = vunpack.c.l.b16 %v1212_v6  ;;  %v1239_v10 = vrot.slane %v1237_v34, 4  ;;  %v5185_v1 = vld [vmem:[%s5605_s6 + $0x90] sm:$0xff] }
 0x118   : > { %v2632_v43 = vpop.f32.mrf.mxu2  ;;  %4896 = vmatmul.msk.bf16.gmra.mxu1 %vm2162_vm3, %v5184_v35  ;;  %v6120_v49 = vadd.f32 %v3096_v54, %v2945_v57  ;;  %v863_v54 = vrot.slane %v5477_v56, 5  ;;  %v862_v3 = vrot.slane %v860_v51, 4  ;;  %v2998_v57 = vunpack.c.l.b16 %v1222_v12 }
 0x119   : > { %v2705_v55 = vadd.f32 %v2632_v43, %v2440_v16  ;;  %v1235_v43 = vrot.slane %v1233_v61, 5  ;;  %v1231_v56 = vrot.slane %v1230_v15, 4  ;;  %v5479_v15 = vld [vmem:[%s5605_s6 + $0xa4] sm:$0x1] }
 0x11a   : > { %v3018_v8 = vpack.c.b16 %v2998_v57, %v2997_v60  ;;  %v5478_v60 = vld [vmem:[%s5605_s6 + $0xa0] sm:$0xf] }
 0x11b   : > { %v1240_v20 = vor.u32 %v1239_v10, %v1235_v43  ;;  %v867_v57 = vrot.slane %v5478_v60, 5  ;;  %v720_v10 = vld [vmem:[%s5605_s6 + $0x9c] sm:$0xe] }
 0x11c   : > { %v3098_v30 = vpop.f32.mrf.mxu0 }
 0x11d   : > { %v2873_v16 = vpop.f32.mrf.mxu3  ;;  %4916 = vmatmul.msk.bf16.gmra.mxu2 %vm2162_vm3, %v2552_v62  ;;  %v2444_v35 = vpop.f32.mrf.mxu1  ;;  %v4681_v62 = vld [vmem:[%s5605_s6 + $0xa4] sm:$0x1] }
 0x11e   : > { %v2946_v42 = vadd.f32 %v2873_v16, %v2705_v55  ;;  %v2445_v26 = vadd.f32 %v2444_v35, %v6049_v13  ;;  %v861_v55 = vsel %vm5800_vm6, %v4633_v44, %v860_v51  ;;  %v864_v13 = vsel %vm5800_vm6, %v862_v3, %v863_v54  ;;  %v4663_v16 = vld [vmem:[%s5605_s6 + $0xa8] sm:$0xf] }
 0x11f   : > { %v1243_v6 = vshll.u32 %v4681_v62, 16  ;;  %v2534_v61 = vunpack.c.l.b16 %v864_v13  ;;  %v1241_v54 = vrot.slane %v1240_v20, 4  ;;  %v1248_v44 = vshrl.u32 %v4663_v16, 16 }
 0x120   : > { %v2635_v18 = vpop.f32.mrf.mxu2  ;;  %v6133_v46 = vadd.f32 %v3098_v30, %v2946_v42  ;;  %v1236_v3 = vsel %vm5617_vm2, %v1231_v56, %v1235_v43  ;;  %v1261_v62 = vshrl.u32 %v4664_v21, 16 }
 0x121   : > { %v2706_v29 = vadd.f32 %v2635_v18, %v2443_v22  ;;  %v2533_v22 = vunpack.c.l.b16 %v861_v55  ;;  %v1245_v35 = vrot.slane %v1243_v6, 5  ;;  %v1251_v18 = vshll.u32 %v4663_v16, 16  ;;  %v5201_v6 = vld [vmem:[%s5605_s6 + $0x9c] sm:$0xff] }
 0x122   : > { %5000 = vmatmul.msk.bf16.gmra.mxu3 %vm2162_vm3, %v5200_v39  ;;  %v1250_v43 = vrot.slane %v1248_v44, 4 }
 0x123   : > { %v2553_v39 = vpack.c.b16 %v2534_v61, %v2533_v22  ;;  %v1246_v13 = vsel %vm5617_vm2, %v1241_v54, %v1245_v35  ;;  %v869_v22 = vrot.slane %v867_v57, 4  ;;  %v1253_v61 = vrot.slane %v1251_v18, 5  ;;  %v4682_v35 = vld [vmem:[%s5605_s6 + $0xb0] sm:$0x1] }
 0x124   : > { %v3101_v0 = vpop.f32.mrf.mxu0  ;;  %v3000_v56 = vunpack.c.l.b16 %v1246_v13 }
 0x125   : > { %v2876_v30 = vpop.f32.mrf.mxu3  ;;  %v2447_v12 = vpop.f32.mrf.mxu1  ;;  %v1254_v44 = vor.u32 %v1253_v61, %v1250_v43 }
 0x126   : > { %v2947_v34 = vadd.f32 %v2876_v30, %v2706_v29  ;;  %v1257_v29 = vshll.u32 %v4664_v21, 16  ;;  %v4634_v30 = vrot.slane %v720_v10, 9  ;;  %v5186_v10 = vld [vmem:[%s5605_s6 + $0x9c] sm:$0xff] }
 0x127   : > { %5020 = vmatmul.msk.bf16.gmra.mxu0 %vm2162_vm3, %v3018_v8  ;;  %v870_v8 = vrot.slane %v5479_v15, 5 }
 0x128   : > { %v2637_v51 = vpop.f32.mrf.mxu2  ;;  %4897 = vmatmul.msk.bf16.gmra.mxu1 %vm2162_vm3, %v5185_v1  ;;  %v6146_v24 = vadd.f32 %v3101_v0, %v2947_v34  ;;  %v2999_v0 = vunpack.c.l.b16 %v1236_v3  ;;  %v2448_v34 = vadd.f32 %v2447_v12, %v5884_v40  ;;  %v1259_v16 = vrot.slane %v1257_v29, 5 }
 0x129   : > { %v2707_v42 = vadd.f32 %v2637_v51, %v2445_v26  ;;  %v1263_v51 = vrot.slane %v1261_v62, 4  ;;  %v1267_v3 = vshll.u32 %v4682_v35, 16 }
 0x12a   : > { %v3019_v40 = vpack.c.b16 %v3000_v56, %v2999_v0  ;;  %v4665_v0 = vld [vmem:[%s5605_s6 + $0xb4] sm:$0xf] }
 0x12b   : > { %v1264_v12 = vor.u32 %v1263_v51, %v1259_v16  ;;  %v1269_v43 = vrot.slane %v1267_v3, 5  ;;  %v1275_v35 = vshll.u32 %v4665_v0, 16 }
 0x12c   : > { %v3103_v55 = vpop.f32.mrf.mxu0 }
 0x12d   : > { %v2878_v26 = vpop.f32.mrf.mxu3  ;;  %4917 = vmatmul.msk.bf16.gmra.mxu2 %vm2162_vm3, %v2553_v39  ;;  %v2449_v1 = vpop.f32.mrf.mxu1  ;;  %v871_v39 = vsel %vm5800_vm6, %v869_v22, %v870_v8  ;;  %v1265_v8 = vrot.slane %v1264_v12, 4 }
 0x12e   : > { %v2948_v20 = vadd.f32 %v2878_v26, %v2707_v42  ;;  %v868_v42 = vsel %vm5800_vm6, %v4634_v30, %v867_v57  ;;  %v2536_v13 = vunpack.c.l.b16 %v871_v39  ;;  %v1255_v26 = vrot.slane %v1254_v44, 4  ;;  %v5481_v44 = vld [vmem:[%s5605_s6 + $0xb0] sm:$0x1] }
 0x12f   : > { %v2450_v57 = vadd.f32 %v2449_v1, %v5900_v25  ;;  %v1272_v25 = vshrl.u32 %v4665_v0, 16  ;;  %v1270_v1 = vsel %vm5617_vm2, %v1265_v8, %v1269_v43 }
 0x130   : > { %v2640_v54 = vpop.f32.mrf.mxu2  ;;  %v6159_v21 = vadd.f32 %v3103_v55, %v2948_v20  ;;  %v2535_v55 = vunpack.c.l.b16 %v868_v42  ;;  %v1260_v51 = vsel %vm5617_vm2, %v1255_v26, %v1259_v16 }
 0x131   : > { %v2708_v60 = vadd.f32 %v2640_v54, %v2448_v34  ;;  %v5480_v34 = vld [vmem:[%s5605_s6 + $0xac] sm:$0xf]  ;;  %v721_v54 = vld [vmem:[%s5605_s6 + $0xa8] sm:$0xe] }
 0x132   : > { %5001 = vmatmul.msk.bf16.gmra.mxu3 %vm2162_vm3, %v5201_v6  ;;  %v4666_v6 = vld [vmem:[%s5605_s6 + $0xb8] sm:$0xf]  ;;  %v2554_v61 = vpack.c.b16 %v2536_v13, %v2535_v55  ;;  %v874_v56 = vrot.slane %v5480_v34, 5  ;;  %v3001_v55 = vunpack.c.l.b16 %v1260_v51  ;;  %v3002_v13 = vunpack.c.l.b16 %v1270_v1  ;;  %v4683_v34 = vld [vmem:[%s5605_s6 + $0xbc] sm:$0x1] }
 0x133   : > { %v1285_v42 = vshrl.u32 %v4666_v6, 16 }
 0x134   : > { %v3106_v18 = vpop.f32.mrf.mxu0 }
 0x135   : > { %v2881_v29 = vpop.f32.mrf.mxu3  ;;  %v2452_v62 = vpop.f32.mrf.mxu1  ;;  %v1287_v43 = vrot.slane %v1285_v42, 4 }
 0x136   : > { %v2949_v15 = vadd.f32 %v2881_v29, %v2708_v60  ;;  %v1281_v60 = vshll.u32 %v4666_v6, 16  ;;  %v5202_v29 = vld [vmem:[%s5605_s6 + $0xa8] sm:$0xff]  ;;  %v2453_v26 = vadd.f32 %v2452_v62, %v5920_v50  ;;  %v3020_v50 = vpack.c.b16 %v3002_v13, %v3001_v55 }
 0x137   : > { %5021 = vmatmul.msk.bf16.gmra.mxu0 %vm2162_vm3, %v3019_v40  ;;  %v877_v40 = vrot.slane %v5481_v44, 5 }
 0x138   : > { %v2642_v20 = vpop.f32.mrf.mxu2  ;;  %4898 = vmatmul.msk.bf16.gmra.mxu1 %vm2162_vm3, %v5186_v10  ;;  %v6172_v30 = vadd.f32 %v3106_v18, %v2949_v15  ;;  %v4635_v18 = vrot.slane %v721_v54, 9  ;;  %v876_v10 = vrot.slane %v874_v56, 4  ;;  %v1274_v15 = vrot.slane %v1272_v25, 4  ;;  %v5187_v25 = vld [vmem:[%s5605_s6 + $0xa8] sm:$0xff] }
 0x139   : > { %v2709_v22 = vadd.f32 %v2642_v20, %v2450_v57  ;;  %v1277_v57 = vrot.slane %v1275_v35, 5  ;;  %v6184_v8 = vrot.slane %v1281_v60, 5  ;;  %v1291_v60 = vshll.u32 %v4683_v34, 16 }
 0x13b   : > { %v1278_v62 = vor.u32 %v1277_v57, %v1274_v15  ;;  %v1288_v51 = vor.u32 %v1287_v43, %v6184_v8  ;;  %v1293_v15 = vrot.slane %v1291_v60, 5 }
 0x13c   : > { %v3108_v39 = vpop.f32.mrf.mxu0 }
 0x13d   : > { %v2883_v12 = vpop.f32.mrf.mxu3  ;;  %4918 = vmatmul.msk.bf16.gmra.mxu2 %vm2162_vm3, %v2554_v61  ;;  %v2454_v3 = vpop.f32.mrf.mxu1  ;;  %v875_v61 = vsel %vm5800_vm6, %v4635_v18, %v874_v56  ;;  %v4667_v56 = vld [vmem:[%s5605_s6 + $0xc0] sm:$0xf]  ;;  %v5482_v18 = vld [vmem:[%s5605_s6 + $0x10] sm:$0xf] }
 0x13e   : > { %v2950_v16 = vadd.f32 %v2883_v12, %v2709_v22  ;;  %v878_v22 = vsel %vm5800_vm6, %v876_v10, %v877_v40  ;;  %v2537_v1 = vunpack.c.l.b16 %v875_v61  ;;  %v4668_v12 = vld [vmem:[%s5605_s6 + $0xc4] sm:$0xf]  ;;  %v1385_v40 = vrot.slane %v5482_v18, 5 }
 0x13f   : > { %v2538_v35 = vunpack.c.l.b16 %v878_v22  ;;  %v2455_v10 = vadd.f32 %v2454_v3, %v5937_v23  ;;  %v1299_v57 = vshll.u32 %v4667_v56, 16  ;;  %v5483_v22 = vld [vmem:[%s5605_s6 + $0xb8] sm:$0xf]  ;;  %v722_v3 = vld [vmem:[%s5605_s6 + $0xb4] sm:$0xe] }
 0x140   : > { %v2645_v0 = vpop.f32.mrf.mxu2  ;;  %v6186_v20 = vadd.f32 %v3108_v39, %v2950_v16  ;;  %v1279_v16 = vrot.slane %v1278_v62, 4  ;;  %v881_v34 = vrot.slane %v5483_v22, 5  ;;  %v1387_v62 = vrot.slane %v1385_v40, 4  ;;  %v5203_v22 = vld [vmem:[%s5605_s6 + $0xb4] sm:$0xff] }
 0x141   : > { %v2710_v6 = vadd.f32 %v2645_v0, %v2453_v26  ;;  %v2555_v13 = vpack.c.b16 %v2538_v35, %v2537_v1  ;;  %v1296_v26 = vshrl.u32 %v4667_v56, 16  ;;  %v1305_v0 = vshll.u32 %v4668_v12, 16 }
 0x142   : > { %5002 = vmatmul.msk.bf16.gmra.mxu3 %vm2162_vm3, %v5202_v29  ;;  %v1289_v29 = vrot.slane %v1288_v51, 4  ;;  %v5485_v51 = vld [vmem:[%s5605_s6 + $0x14] sm:$0x1]  ;;  %v1284_v1 = vsel %vm5617_vm2, %v1279_v16, %v6184_v8 }
 0x143   : > { %v1298_v56 = vrot.slane %v1296_v26, 4  ;;  %v3003_v16 = vunpack.c.l.b16 %v1284_v1 }
 0x144   : > { %v3111_v54 = vpop.f32.mrf.mxu0  ;;  %v1294_v35 = vsel %vm5617_vm2, %v1289_v29, %v1293_v15 }
 0x145   : > { %v2886_v42 = vpop.f32.mrf.mxu3  ;;  %v2457_v39 = vpop.f32.mrf.mxu1  ;;  %v3004_v29 = vunpack.c.l.b16 %v1294_v35 }
 0x146   : > { %v2951_v44 = vadd.f32 %v2886_v42, %v2710_v6  ;;  %v1309_v6 = vshrl.u32 %v4668_v12, 16  ;;  %v1388_v42 = vrot.slane %v5485_v51, 5  ;;  %v6214_v12 = vrot.slane %v1305_v0, 5 }
 0x147   : > { %5022 = vmatmul.msk.bf16.gmra.mxu0 %vm2162_vm3, %v3020_v50  ;;  %v5484_v50 = vld [vmem:[%s5605_s6 + $0xbc] sm:$0x1]  ;;  %v883_v51 = vrot.slane %v881_v34, 4  ;;  %v2458_v8 = vadd.f32 %v2457_v39, %v5957_v45 }
 0x148   : > { %v2647_v55 = vpop.f32.mrf.mxu2  ;;  %4899 = vmatmul.msk.bf16.gmra.mxu1 %vm2162_vm3, %v5187_v25  ;;  %v6202_v61 = vadd.f32 %v3111_v54, %v2951_v44  ;;  %v884_v23 = vrot.slane %v5484_v50, 5  ;;  %v1301_v44 = vrot.slane %v1299_v57, 5  ;;  %v1311_v18 = vrot.slane %v1309_v6, 4 }
 0x149   : > { %v2711_v43 = vadd.f32 %v2647_v55, %v2455_v10  ;;  %v4685_v10 = vld [vmem:[%s5605_s6 + $0xc] sm:$0xe]  ;;  %v4636_v50 = vrot.slane %v722_v3, 9  ;;  %v1389_v57 = vsel %vm5800_vm6, %v1387_v62, %v1388_v42  ;;  %v4717_v62 = vld [vmem:[%s5605_s6 + $0x18] sm:$0xf] }
 0x14a   : > { %7187 = vst [vmem:[#allocation2_spill] sm:$0xff] %v6202_v61  ;;  %v4701_v61 = vrot.slane %v4685_v10, 9  ;;  %v1302_v0 = vor.u32 %v1301_v44, %v1298_v56  ;;  %v3201_v3 = vunpack.c.l.b16 %v1389_v57  ;;  %v885_v39 = vsel %vm5800_vm6, %v883_v51, %v884_v23  ;;  %v5188_v56 = vld [vmem:[%s5605_s6 + $0xb4] sm:$0xff]  ;;  %v6237_v44 = vld [vmem:[%s5605_s6 + $0x1c] sm:$0xf] }
 0x14b   : > { %v882_v45 = vsel %vm5800_vm6, %v4636_v50, %v881_v34  ;;  %v1312_v1 = vor.u32 %v1311_v18, %v6214_v12  ;;  %v2540_v34 = vunpack.c.l.b16 %v885_v39  ;;  %v1545_v51 = vshrl.u32 %v4717_v62, 16 }
 0x14c   : > { %v3113_v25 = vpop.f32.mrf.mxu0  ;;  %v1386_v26 = vsel %vm5800_vm6, %v4701_v61, %v1385_v40  ;;  %v3021_v40 = vpack.c.b16 %v3004_v29, %v3003_v16  ;;  %v1303_v50 = vrot.slane %v1302_v0, 4  ;;  %v1548_v18 = vshll.u32 %v4717_v62, 16 }
 0x14d   : > { %v2888_v54 = vpop.f32.mrf.mxu3  ;;  %4919 = vmatmul.msk.bf16.gmra.mxu2 %vm2162_vm3, %v2555_v13  ;;  %v2459_v60 = vpop.f32.mrf.mxu1  ;;  %v4684_v13 = vld [vmem:[%s5605_s6 + $0xc8] sm:$0x1]  ;;  %v3200_v6 = vunpack.c.l.b16 %v1386_v26  ;;  %v1313_v23 = vrot.slane %v1312_v1, 4  ;;  %v1558_v29 = vshrl.u32 %v6237_v44, 16  ;;  %v1547_v0 = vrot.slane %v1545_v51, 4 }
 0x14e   : > { %v2952_v55 = vadd.f32 %v2888_v54, %v2711_v43  ;;  %v1315_v61 = vshll.u32 %v4684_v13, 16  ;;  %v2460_v16 = vadd.f32 %v2459_v60, %v5977_v9  ;;  %v1308_v9 = vsel %vm5617_vm2, %v1303_v50, %v6214_v12  ;;  %v4749_v1 = vld [vmem:[%s5605_s6 + $0x20] sm:$0x1]  ;;  %v4719_v51 = vld [vmem:[%s5605_s6 + $0x24] sm:$0xf] }
 0x14f   : > { %v6230_v35 = vpack.c.b16 %v3201_v3, %v3200_v6  ;;  %v1550_v6 = vrot.slane %v1548_v18, 5  ;;  %v1564_v50 = vshll.u32 %v4749_v1, 16  ;;  %v6257_v18 = vld [vmem:[%s5605_s6 + $0x28] sm:$0xf] }
 0x150   : > { %v2650_v15 = vpop.f32.mrf.mxu2  ;;  %v6233_v42 = vadd.f32 %v3113_v25, %v2952_v55  ;;  %v1317_v25 = vrot.slane %v1315_v61, 5  ;;  %v1554_v55 = vshll.u32 %v6237_v44, 16 }
 0x151   : > { %v2712_v43 = vadd.f32 %v2650_v15, %v2458_v8  ;;  %v2539_v8 = vunpack.c.l.b16 %v882_v45  ;;  %v1560_v45 = vrot.slane %v1558_v29, 4  ;;  %v1566_v29 = vrot.slane %v1564_v50, 5 }
 0x152   : > { %5003 = vmatmul.msk.bf16.gmra.mxu3 %vm2162_vm3, %v5203_v22  ;;  %v1318_v60 = vsel %vm5617_vm2, %v1313_v23, %v1317_v25  ;;  %v1556_v3 = vrot.slane %v1554_v55, 5 }
 0x153   : > { %v2556_v57 = vpack.c.b16 %v2540_v34, %v2539_v8  ;;  %v1551_v8 = vor.u32 %v1550_v6, %v1547_v0  ;;  %v1572_v0 = vshll.u32 %v4719_v51, 16  ;;  %v1578_v6 = vshll.u32 %v6257_v18, 16 }
 0x154   : > { %v3116_v54 = vpop.f32.mrf.mxu0  ;;  %v1561_v34 = vor.u32 %v1560_v45, %v1556_v3 }
 0x155   : > { %v2891_v10 = vpop.f32.mrf.mxu3  ;;  %v2462_v22 = vpop.f32.mrf.mxu1  ;;  %v1552_v25 = vrot.slane %v1551_v8, 4 }
 0x156   : > { %v2953_v15 = vadd.f32 %v2891_v10, %v2712_v43  ;;  %v3006_v10 = vunpack.c.l.b16 %v1318_v60  ;;  %v2463_v12 = vadd.f32 %v2462_v22, %v6000_v48  ;;  %v1562_v55 = vrot.slane %v1561_v34, 4 }
 0x157   : > { %5023 = vmatmul.msk.bf16.gmra.mxu0 %vm2162_vm3, %v3021_v40 }
 0x158   : > { %v2652_v13 = vpop.f32.mrf.mxu2  ;;  %4900 = vmatmul.msk.bf16.gmra.mxu1 %vm2162_vm3, %v5188_v56  ;;  %v6244_v43 = vadd.f32 %v3116_v54, %v2953_v15  ;;  %v5204_v54 = vld [vmem:[%s5605_s6 + $0xc0] sm:$0xff]  ;;  %v3005_v56 = vunpack.c.l.b16 %v1308_v9  ;;  %v1582_v9 = vshrl.u32 %v6257_v18, 16  ;;  %v1567_v34 = vsel %vm5617_vm2, %v1562_v55, %v1566_v29  ;;  %v6283_v29 = vld [vmem:[%s5605_s6 + $0x2c] sm:$0x1] }
 0x159   : > { %v2713_v26 = vadd.f32 %v2652_v13, %v2460_v16  ;;  %v4765_v13 = vld [vmem:[%s5605_s6 + $0x18] sm:$0xe]  ;;  %v3667_v55 = vunpack.c.l.b16 %v1567_v34 }
 0x15a   : > { %v3022_v16 = vpack.c.b16 %v3006_v10, %v3005_v56  ;;  %v5487_v56 = vld [vmem:[%s5605_s6 + $0x20] sm:$0x1] }
 0x15b   : > { %v1395_v10 = vrot.slane %v5487_v56, 5 }
 0x15c   : > { %v3118_v39 = vpop.f32.mrf.mxu0 }
 0x15d   : > { %v2893_v40 = vpop.f32.mrf.mxu3  ;;  %4920 = vmatmul.msk.bf16.gmra.mxu2 %vm2162_vm3, %v2556_v57  ;;  %v2464_v61 = vpop.f32.mrf.mxu1  ;;  %v1569_v57 = vshrl.u32 %v4719_v51, 16 }
 0x15e   : > { %v2954_v62 = vadd.f32 %v2893_v40, %v2713_v26  ;;  %v1994_v26 = vrot.slane %v6237_v44, 5  ;;  %v5486_v40 = vld [vmem:[%s5605_s6 + $0x1c] sm:$0xf]  ;;  %v1557_v44 = vsel %vm5617_vm2, %v1552_v25, %v1556_v3  ;;  %v1584_v3 = vrot.slane %v1582_v9, 4 }
 0x160   : > { %v2655_v15 = vpop.f32.mrf.mxu2  ;;  %v6262_v48 = vadd.f32 %v3118_v39, %v2954_v62  ;;  %v4781_v39 = vrot.slane %v4765_v13, 9  ;;  %v4686_v62 = vld [vmem:[%s5605_s6 + $0x18] sm:$0xe]  ;;  %v1996_v50 = vrot.slane %v1994_v26, 4 }
 0x161   : > { %v2714_v23 = vadd.f32 %v2655_v15, %v2463_v12  ;;  %v2465_v12 = vadd.f32 %v2464_v61, %v6020_v17  ;;  %v1997_v15 = vrot.slane %v4749_v1, 5  ;;  %v5205_v13 = vld [vmem:[%s5605_s6 + $0x18] sm:$0xff]  ;;  %v3666_v61 = vunpack.c.l.b16 %v1557_v44 }
 0x162   : > { %5004 = vmatmul.msk.bf16.gmra.mxu3 %vm2162_vm3, %v5204_v54  ;;  %7188 = vst [vmem:[#allocation3_spill] sm:$0xff] %v6262_v48  ;;  %v1392_v54 = vrot.slane %v5486_v40, 5  ;;  %v6277_v40 = vrot.slane %v1578_v6, 5  ;;  %v1995_v48 = vsel %vm5800_vm6, %v4781_v39, %v1994_v26  ;;  %v1588_v26 = vshll.u32 %v6283_v29, 16 }
 0x163   : > { %v3698_v39 = vpack.c.b16 %v3667_v55, %v3666_v61  ;;  %v5488_v61 = vld [vmem:[%s5605_s6 + $0x28] sm:$0xf] }
 0x164   : > { %v3121_v22 = vpop.f32.mrf.mxu0  ;;  %v1394_v56 = vrot.slane %v1392_v54, 4  ;;  %v1399_v55 = vrot.slane %v5488_v61, 5 }
 0x165   : > { %v2896_v60 = vpop.f32.mrf.mxu3  ;;  %v2467_v45 = vpop.f32.mrf.mxu1 }
 0x166   : > { %v2955_v8 = vadd.f32 %v2896_v60, %v2714_v23  ;;  %v1571_v23 = vrot.slane %v1569_v57, 4  ;;  %v1574_v60 = vrot.slane %v1572_v0, 5  ;;  %v1396_v9 = vsel %vm5800_vm6, %v1394_v56, %v1395_v10  ;;  %v6302_v56 = vld [vmem:[%s5605_s6 + $0x34] sm:$0xf] }
 0x167   : > { %5024 = vmatmul.msk.bf16.gmra.mxu0 %vm2162_vm3, %v3022_v16  ;;  %v4702_v16 = vrot.slane %v4686_v62, 9  ;;  %v2468_v62 = vadd.f32 %v2467_v45, %v5902_v28 }
 0x168   : > { %v2657_v51 = vpop.f32.mrf.mxu2  ;;  %5029 = vmatmul.msk.bf16.vlgmr.msra.gmra.mxu1 %vm2162_vm3, %v6230_v35  ;;  %v6280_v17 = vadd.f32 %v3121_v22, %v2955_v8  ;;  %v1998_v35 = vsel %vm5800_vm6, %v1996_v50, %v1997_v15  ;;  %v1575_v57 = vor.u32 %v1574_v60, %v1571_v23  ;;  %v1585_v8 = vor.u32 %v1584_v3, %v6277_v40  ;;  %v4766_v3 = vld [vmem:[%s5605_s6 + $0x24] sm:$0xe] }
 0x169   : > { %v2715_v25 = vadd.f32 %v2657_v51, %v2465_v12  ;;  %v1393_v22 = vsel %vm5800_vm6, %v4702_v16, %v1392_v54  ;;  %v3891_v12 = vunpack.c.l.b16 %v1995_v48  ;;  %v3892_v34 = vunpack.c.l.b16 %v1998_v35 }
 0x16a   : > { %v3202_v15 = vunpack.c.l.b16 %v1393_v22  ;;  %v3203_v54 = vunpack.c.l.b16 %v1396_v9  ;;  %v1576_v23 = vrot.slane %v1575_v57, 4  ;;  %v1586_v10 = vrot.slane %v1585_v8, 4 }
 0x16b   : > { %v1590_v60 = vrot.slane %v1588_v26, 5  ;;  %v2001_v16 = vrot.slane %v6257_v18, 5  ;;  %v4782_v9 = vrot.slane %v4766_v3, 9  ;;  %v4687_v18 = vld [vmem:[%s5605_s6 + $0x24] sm:$0xe] }
 0x16c   : > { %v3123_v1 = vpop.f32.mrf.mxu0  ;;  %v3233_v45 = vpack.c.b16 %v3203_v54, %v3202_v15 }
 0x16d   : > { %v2898_v0 = vpop.f32.mrf.mxu3  ;;  %5113 = vmatmul.msk.bf16.vlgmr.msra.gmra.mxu2 %vm2162_vm3, %v5205_v13  ;;  %v2469_v6 = vpop.f32.mrf.mxu1  ;;  %v4721_v13 = vld [vmem:[%s5605_s6 + $0x30] sm:$0xf]  ;;  %v1591_v22 = vsel %vm5617_vm2, %v1586_v10, %v1590_v60  ;;  %v5206_v60 = vld [vmem:[%s5605_s6 + $0x24] sm:$0xff] }
 0x16e   : > { %v2956_v44 = vadd.f32 %v2898_v0, %v2715_v25  ;;  %v3923_v25 = vpack.c.b16 %v3892_v34, %v3891_v12  ;;  %v1581_v0 = vsel %vm5617_vm2, %v1576_v23, %v6277_v40  ;;  %v1593_v8 = vshrl.u32 %v4721_v13, 16  ;;  %v5489_v34 = vld [vmem:[%s5605_s6 + $0x2c] sm:$0x1] }
 0x16f   : > { %v2003_v12 = vrot.slane %v2001_v16, 4  ;;  %v2004_v40 = vrot.slane %v6283_v29, 5  ;;  %v3668_v54 = vunpack.c.l.b16 %v1581_v0  ;;  %v1401_v23 = vrot.slane %v1399_v55, 4 }
 0x170   : > { %v2660_v50 = vpop.f32.mrf.mxu2  ;;  %v6304_v28 = vadd.f32 %v3123_v1, %v2956_v44  ;;  %v1596_v1 = vshll.u32 %v4721_v13, 16  ;;  %v1602_v44 = vshll.u32 %v6302_v56, 16  ;;  %v3669_v3 = vunpack.c.l.b16 %v1591_v22 }
 0x171   : > { %v2716_v51 = vadd.f32 %v2660_v50, %v2468_v62  ;;  %v2470_v62 = vadd.f32 %v2469_v6, %v5923_v58  ;;  %v1402_v50 = vrot.slane %v5489_v34, 5  ;;  %v2002_v13 = vsel %vm5800_vm6, %v4782_v9, %v2001_v16 }
 0x172   : > { %5133 = vmatmul.msk.bf16.vlgmr.msra.gmra.mxu3 %vm2162_vm3, %v3698_v39  ;;  %v1606_v39 = vshrl.u32 %v6302_v56, 16  ;;  %v1595_v58 = vrot.slane %v1593_v8, 4  ;;  %v1598_v6 = vrot.slane %v1596_v1, 5  ;;  %v6325_v29 = vrot.slane %v1602_v44, 5 }
 0x173   : > { %v1403_v22 = vsel %vm5800_vm6, %v1401_v23, %v1402_v50  ;;  %v3893_v9 = vunpack.c.l.b16 %v2002_v13  ;;  %v4767_v13 = vld [vmem:[%s5605_s6 + $0x30] sm:$0xe] }
 0x174   : > { %v3126_v48 = vpop.f32.mrf.mxu0  ;;  %v1608_v61 = vrot.slane %v1606_v39, 4  ;;  %v1599_v44 = vor.u32 %v1598_v6, %v1595_v58 }
 0x175   : > { %v2901_v35 = vpop.f32.mrf.mxu3  ;;  %v2472_v57 = vpop.f32.mrf.mxu1 }
 0x176   : > { %v2957_v26 = vadd.f32 %v2901_v35, %v2716_v51  ;;  %v4703_v51 = vrot.slane %v4687_v18, 9  ;;  %v6334_v18 = vld [vmem:[%s5605_s6 + $0x38] sm:$0x1]  ;;  %v1609_v39 = vor.u32 %v1608_v61, %v6325_v29  ;;  %v1600_v23 = vrot.slane %v1599_v44, 4 }
 0x177   : > { %5153 = vmatmul.msk.bf16.vlgmr.msra.gmra.mxu0 %vm2162_vm3, %v3923_v25 }
 0x178   : > { %v2662_v15 = vpop.f32.mrf.mxu2  ;;  %5030 = vmatmul.msk.bf16.gmra.mxu1 %vm2162_vm3, %v3233_v45  ;;  %v6323_v25 = vadd.f32 %v3126_v48, %v2957_v26  ;;  %v2005_v45 = vsel %vm5800_vm6, %v2003_v12, %v2004_v40  ;;  %v1400_v0 = vsel %vm5800_vm6, %v4703_v51, %v1399_v55  ;;  %v3699_v48 = vpack.c.b16 %v3669_v3, %v3668_v54  ;;  %v6342_v51 = vld [vmem:[%s5605_s6 + $0x40] sm:$0xf] }
 0x179   : > { %v2717_v10 = vadd.f32 %v2662_v15, %v2470_v62  ;;  %v3894_v1 = vunpack.c.l.b16 %v2005_v45  ;;  %v2473_v55 = vadd.f32 %v2472_v57, %v5940_v11  ;;  %v3204_v62 = vunpack.c.l.b16 %v1400_v0  ;;  %v4723_v15 = vld [vmem:[%s5605_s6 + $0x3c] sm:$0xf] }
 0x17a   : > { %v3205_v12 = vunpack.c.l.b16 %v1403_v22  ;;  %v1612_v40 = vshll.u32 %v6334_v18, 16  ;;  %v2008_v11 = vrot.slane %v6302_v56, 5  ;;  %v1617_v6 = vshrl.u32 %v4723_v15, 16 }
 0x17b   : > { %v3924_v54 = vpack.c.b16 %v3894_v1, %v3893_v9  ;;  %v1620_v61 = vshll.u32 %v4723_v15, 16  ;;  %v1626_v45 = vshll.u32 %v6342_v51, 16  ;;  %v1630_v0 = vshrl.u32 %v6342_v51, 16  ;;  %v5491_v1 = vld [vmem:[%s5605_s6 + $0x38] sm:$0x1] }
 0x17c   : > { %v3128_v35 = vpop.f32.mrf.mxu0  ;;  %v1614_v3 = vrot.slane %v1612_v40, 5  ;;  %v1409_v44 = vrot.slane %v5491_v1, 5  ;;  %v2011_v56 = vrot.slane %v6334_v18, 5  ;;  %v2010_v40 = vrot.slane %v2008_v11, 4  ;;  %v6369_v1 = vld [vmem:[%s5605_s6 + $0x44] sm:$0x1] }
 0x17d   : > { %v2903_v16 = vpop.f32.mrf.mxu3  ;;  %5114 = vmatmul.msk.bf16.gmra.mxu2 %vm2162_vm3, %v5206_v60  ;;  %v2474_v8 = vpop.f32.mrf.mxu1  ;;  %v3234_v60 = vpack.c.b16 %v3205_v12, %v3204_v62  ;;  %v1605_v62 = vsel %vm5617_vm2, %v1600_v23, %v6325_v29  ;;  %v1622_v15 = vrot.slane %v1620_v61, 5  ;;  %v6363_v18 = vrot.slane %v1626_v45, 5 }
 0x17e   : > { %v2958_v26 = vadd.f32 %v2903_v16, %v2717_v10  ;;  %v1610_v10 = vrot.slane %v1609_v39, 4  ;;  %v3670_v29 = vunpack.c.l.b16 %v1605_v62 }
 0x180   : > { %v2665_v34 = vpop.f32.mrf.mxu2  ;;  %v6347_v57 = vadd.f32 %v3128_v35, %v2958_v26  ;;  %v4688_v35 = vld [vmem:[%s5605_s6 + $0x30] sm:$0xe]  ;;  %v2475_v26 = vadd.f32 %v2474_v8, %v5961_v47  ;;  %v1615_v12 = vsel %vm5617_vm2, %v1610_v10, %v1614_v3 }
 0x181   : > { %v2718_v50 = vadd.f32 %v2665_v34, %v2473_v55  ;;  %v4783_v55 = vrot.slane %v4767_v13, 9  ;;  %v1632_v13 = vrot.slane %v1630_v0, 4  ;;  %v4704_v47 = vrot.slane %v4688_v35, 9 }
 0x182   : > { %5134 = vmatmul.msk.bf16.gmra.mxu3 %vm2162_vm3, %v3699_v48  ;;  %v5490_v48 = vld [vmem:[%s5605_s6 + $0x34] sm:$0xf]  ;;  %v3671_v23 = vunpack.c.l.b16 %v1615_v12 }
 0x183   : > { %v1406_v9 = vrot.slane %v5490_v48, 5  ;;  %v2009_v3 = vsel %vm5800_vm6, %v4783_v55, %v2008_v11  ;;  %v1636_v11 = vshll.u32 %v6369_v1, 16 }
 0x184   : > { %v3131_v58 = vpop.f32.mrf.mxu0  ;;  %v3700_v35 = vpack.c.b16 %v3671_v23, %v3670_v29  ;;  %v5492_v23 = vld [vmem:[%s5605_s6 + $0x40] sm:$0xf] }
 0x185   : > { %v2906_v22 = vpop.f32.mrf.mxu3  ;;  %v2477_v16 = vpop.f32.mrf.mxu1  ;;  %v1408_v8 = vrot.slane %v1406_v9, 4 }
 0x186   : > { %v2959_v39 = vadd.f32 %v2906_v22, %v2718_v50  ;;  %v1619_v50 = vrot.slane %v1617_v6, 4  ;;  %v5207_v22 = vld [vmem:[%s5605_s6 + $0x30] sm:$0xff] }
 0x187   : > { %5154 = vmatmul.msk.bf16.gmra.mxu0 %vm2162_vm3, %v3924_v54  ;;  %v1410_v0 = vsel %vm5800_vm6, %v1408_v8, %v1409_v44  ;;  %v6388_v8 = vld [vmem:[%s5605_s6 + $0x4c] sm:$0xf] }
 0x188   : > { %v2667_v34 = vpop.f32.mrf.mxu2  ;;  %5031 = vmatmul.msk.bf16.gmra.mxu1 %vm2162_vm3, %v3234_v60  ;;  %v6366_v48 = vadd.f32 %v3131_v58, %v2959_v39  ;;  %v2012_v60 = vsel %vm5800_vm6, %v2010_v40, %v2011_v56  ;;  %v1623_v6 = vor.u32 %v1622_v15, %v1619_v50  ;;  %v1407_v58 = vsel %vm5800_vm6, %v4704_v47, %v1406_v9 }
 0x189   : > { %v2719_v54 = vadd.f32 %v2667_v34, %v2475_v26  ;;  %v1633_v39 = vor.u32 %v1632_v13, %v6363_v18  ;;  %v2478_v56 = vadd.f32 %v2477_v16, %v5984_v14  ;;  %v3895_v26 = vunpack.c.l.b16 %v2009_v3  ;;  %v4768_v13 = vld [vmem:[%s5605_s6 + $0x3c] sm:$0xe] }
 0x18a   : > { %v3896_v62 = vunpack.c.l.b16 %v2012_v60  ;;  %v3206_v40 = vunpack.c.l.b16 %v1407_v58  ;;  %v3207_v9 = vunpack.c.l.b16 %v1410_v0  ;;  %v1624_v50 = vrot.slane %v1623_v6, 4 }
 0x18b   : > { %v1634_v44 = vrot.slane %v1633_v39, 4  ;;  %v1638_v15 = vrot.slane %v1636_v11, 5  ;;  %v2015_v47 = vrot.slane %v6342_v51, 5  ;;  %v1413_v3 = vrot.slane %v5492_v23, 5  ;;  %v4689_v51 = vld [vmem:[%s5605_s6 + $0x3c] sm:$0xe] }
 0x18c   : > { %v3133_v10 = vpop.f32.mrf.mxu0  ;;  %v3235_v29 = vpack.c.b16 %v3207_v9, %v3206_v40  ;;  %v4784_v0 = vrot.slane %v4768_v13, 9 }
 0x18d   : > { %v2908_v61 = vpop.f32.mrf.mxu3  ;;  %5115 = vmatmul.msk.bf16.gmra.mxu2 %vm2162_vm3, %v5207_v22  ;;  %v2479_v45 = vpop.f32.mrf.mxu1  ;;  %v4725_v22 = vld [vmem:[%s5605_s6 + $0x48] sm:$0xf]  ;;  %v1639_v58 = vsel %vm5617_vm2, %v1634_v44, %v1638_v15  ;;  %v5208_v15 = vld [vmem:[%s5605_s6 + $0x3c] sm:$0xff] }
 0x18e   : > { %v2960_v55 = vadd.f32 %v2908_v61, %v2719_v54  ;;  %v3925_v54 = vpack.c.b16 %v3896_v62, %v3895_v26  ;;  %v1629_v61 = vsel %vm5617_vm2, %v1624_v50, %v6363_v18  ;;  %v1641_v39 = vshrl.u32 %v4725_v22, 16  ;;  %v5493_v62 = vld [vmem:[%s5605_s6 + $0x44] sm:$0x1] }
 0x18f   : > { %v2017_v26 = vrot.slane %v2015_v47, 4  ;;  %v2018_v18 = vrot.slane %v6369_v1, 5  ;;  %v3672_v9 = vunpack.c.l.b16 %v1629_v61  ;;  %v1415_v50 = vrot.slane %v1413_v3, 4 }
 0x190   : > { %v2670_v12 = vpop.f32.mrf.mxu2  ;;  %v6390_v14 = vadd.f32 %v3133_v10, %v2960_v55  ;;  %v1644_v10 = vshll.u32 %v4725_v22, 16  ;;  %v1650_v55 = vshll.u32 %v6388_v8, 16  ;;  %v3673_v13 = vunpack.c.l.b16 %v1639_v58 }
 0x191   : > { %v2720_v34 = vadd.f32 %v2670_v12, %v2478_v56  ;;  %v2480_v56 = vadd.f32 %v2479_v45, %v6002_v52  ;;  %v1416_v12 = vrot.slane %v5493_v62, 5  ;;  %v2016_v22 = vsel %vm5800_vm6, %v4784_v0, %v2015_v47 }
 0x192   : > { %5135 = vmatmul.msk.bf16.gmra.mxu3 %vm2162_vm3, %v3700_v35  ;;  %v1654_v35 = vshrl.u32 %v6388_v8, 16  ;;  %v1643_v52 = vrot.slane %v1641_v39, 4  ;;  %v1646_v45 = vrot.slane %v1644_v10, 5  ;;  %v6411_v1 = vrot.slane %v1650_v55, 5 }
 0x193   : > { %v1417_v58 = vsel %vm5800_vm6, %v1415_v50, %v1416_v12  ;;  %v3897_v0 = vunpack.c.l.b16 %v2016_v22  ;;  %v4769_v22 = vld [vmem:[%s5605_s6 + $0x48] sm:$0xe] }
 0x194   : > { %v3136_v16 = vpop.f32.mrf.mxu0  ;;  %v1656_v23 = vrot.slane %v1654_v35, 4  ;;  %v1647_v55 = vor.u32 %v1646_v45, %v1643_v52 }
 0x195   : > { %v2911_v60 = vpop.f32.mrf.mxu3  ;;  %v2482_v6 = vpop.f32.mrf.mxu1 }
 0x196   : > { %v2961_v11 = vadd.f32 %v2911_v60, %v2720_v34  ;;  %v4705_v34 = vrot.slane %v4689_v51, 9  ;;  %v6420_v51 = vld [vmem:[%s5605_s6 + $0x50] sm:$0x1]  ;;  %v1657_v35 = vor.u32 %v1656_v23, %v6411_v1  ;;  %v1648_v50 = vrot.slane %v1647_v55, 4 }
 0x197   : > { %5155 = vmatmul.msk.bf16.gmra.mxu0 %vm2162_vm3, %v3925_v54 }
 0x198   : > { %v2672_v40 = vpop.f32.mrf.mxu2  ;;  %5032 = vmatmul.msk.bf16.gmra.mxu1 %vm2162_vm3, %v3235_v29  ;;  %v6409_v54 = vadd.f32 %v3136_v16, %v2961_v11  ;;  %v2019_v29 = vsel %vm5800_vm6, %v2017_v26, %v2018_v18  ;;  %v1414_v61 = vsel %vm5800_vm6, %v4705_v34, %v1413_v3  ;;  %v3701_v16 = vpack.c.b16 %v3673_v13, %v3672_v9  ;;  %v6428_v34 = vld [vmem:[%s5605_s6 + $0x58] sm:$0xf] }
 0x199   : > { %v2721_v44 = vadd.f32 %v2672_v40, %v2480_v56  ;;  %v3898_v10 = vunpack.c.l.b16 %v2019_v29  ;;  %v2483_v3 = vadd.f32 %v2482_v6, %v6023_v33  ;;  %v3208_v56 = vunpack.c.l.b16 %v1414_v61  ;;  %v4727_v40 = vld [vmem:[%s5605_s6 + $0x54] sm:$0xf] }
 0x19a   : > { %v3209_v26 = vunpack.c.l.b16 %v1417_v58  ;;  %v1660_v18 = vshll.u32 %v6420_v51, 16  ;;  %v2022_v33 = vrot.slane %v6388_v8, 5  ;;  %v1665_v45 = vshrl.u32 %v4727_v40, 16 }
 0x19b   : > { %v3926_v9 = vpack.c.b16 %v3898_v10, %v3897_v0  ;;  %v1668_v23 = vshll.u32 %v4727_v40, 16  ;;  %v1674_v29 = vshll.u32 %v6428_v34, 16  ;;  %v1678_v61 = vshrl.u32 %v6428_v34, 16  ;;  %v5495_v10 = vld [vmem:[%s5605_s6 + $0x50] sm:$0x1] }
 0x19c   : > { %v3138_v60 = vpop.f32.mrf.mxu0  ;;  %v1662_v13 = vrot.slane %v1660_v18, 5  ;;  %v1423_v55 = vrot.slane %v5495_v10, 5  ;;  %v2025_v8 = vrot.slane %v6420_v51, 5  ;;  %v2024_v18 = vrot.slane %v2022_v33, 4  ;;  %v6455_v10 = vld [vmem:[%s5605_s6 + $0x5c] sm:$0x1] }
 0x19d   : > { %v2913_v47 = vpop.f32.mrf.mxu3  ;;  %5116 = vmatmul.msk.bf16.gmra.mxu2 %vm2162_vm3, %v5208_v15  ;;  %v2484_v39 = vpop.f32.mrf.mxu1  ;;  %v3236_v15 = vpack.c.b16 %v3209_v26, %v3208_v56  ;;  %v1653_v56 = vsel %vm5617_vm2, %v1648_v50, %v6411_v1  ;;  %v1670_v40 = vrot.slane %v1668_v23, 5  ;;  %v6449_v51 = vrot.slane %v1674_v29, 5 }
 0x19e   : > { %v2962_v11 = vadd.f32 %v2913_v47, %v2721_v44  ;;  %v1658_v44 = vrot.slane %v1657_v35, 4  ;;  %v3674_v1 = vunpack.c.l.b16 %v1653_v56 }
 0x1a0   : > { %v2675_v62 = vpop.f32.mrf.mxu2  ;;  %v6433_v6 = vadd.f32 %v3138_v60, %v2962_v11  ;;  %v4690_v60 = vld [vmem:[%s5605_s6 + $0x48] sm:$0xe]  ;;  %v2485_v11 = vadd.f32 %v2484_v39, %v6038_v2  ;;  %v1663_v26 = vsel %vm5617_vm2, %v1658_v44, %v1662_v13 }
 0x1a1   : > { %v2722_v12 = vadd.f32 %v2675_v62, %v2483_v3  ;;  %v4785_v3 = vrot.slane %v4769_v22, 9  ;;  %v1680_v22 = vrot.slane %v1678_v61, 4  ;;  %v4706_v2 = vrot.slane %v4690_v60, 9 }
 0x1a2   : > { %5136 = vmatmul.msk.bf16.gmra.mxu3 %vm2162_vm3, %v3701_v16  ;;  %v5494_v16 = vld [vmem:[%s5605_s6 + $0x4c] sm:$0xf]  ;;  %v3675_v50 = vunpack.c.l.b16 %v1663_v26 }
 0x1a3   : > { %v1420_v0 = vrot.slane %v5494_v16, 5  ;;  %v2023_v13 = vsel %vm5800_vm6, %v4785_v3, %v2022_v33  ;;  %v1684_v33 = vshll.u32 %v6455_v10, 16 }
 0x1a4   : > { %v3141_v52 = vpop.f32.mrf.mxu0  ;;  %v3702_v60 = vpack.c.b16 %v3675_v50, %v3674_v1  ;;  %v5496_v50 = vld [vmem:[%s5605_s6 + $0x58] sm:$0xf] }
 0x1a5   : > { %v2916_v58 = vpop.f32.mrf.mxu3  ;;  %v2487_v47 = vpop.f32.mrf.mxu1  ;;  %v1422_v39 = vrot.slane %v1420_v0, 4 }
 0x1a6   : > { %v2963_v35 = vadd.f32 %v2916_v58, %v2722_v12  ;;  %v1667_v12 = vrot.slane %v1665_v45, 4  ;;  %v5209_v58 = vld [vmem:[%s5605_s6 + $0x48] sm:$0xff] }
 0x1a7   : > { %5156 = vmatmul.msk.bf16.gmra.mxu0 %vm2162_vm3, %v3926_v9  ;;  %v1424_v61 = vsel %vm5800_vm6, %v1422_v39, %v1423_v55  ;;  %v6474_v39 = vld [vmem:[%s5605_s6 + $0x64] sm:$0xf] }
 0x1a8   : > { %v2677_v62 = vpop.f32.mrf.mxu2  ;;  %5033 = vmatmul.msk.bf16.gmra.mxu1 %vm2162_vm3, %v3236_v15  ;;  %v6452_v16 = vadd.f32 %v3141_v52, %v2963_v35  ;;  %v2026_v15 = vsel %vm5800_vm6, %v2024_v18, %v2025_v8  ;;  %v1671_v45 = vor.u32 %v1670_v40, %v1667_v12  ;;  %v1421_v52 = vsel %vm5800_vm6, %v4706_v2, %v1420_v0 }
 0x1a9   : > { %v2723_v9 = vadd.f32 %v2677_v62, %v2485_v11  ;;  %v1681_v35 = vor.u32 %v1680_v22, %v6449_v51  ;;  %v2488_v8 = vadd.f32 %v2487_v47, %v5914_v41  ;;  %v3899_v11 = vunpack.c.l.b16 %v2023_v13  ;;  %v4770_v22 = vld [vmem:[%s5605_s6 + $0x54] sm:$0xe] }
 0x1aa   : > { %v3900_v56 = vunpack.c.l.b16 %v2026_v15  ;;  %v3210_v18 = vunpack.c.l.b16 %v1421_v52  ;;  %v3211_v0 = vunpack.c.l.b16 %v1424_v61  ;;  %v1672_v12 = vrot.slane %v1671_v45, 4 }
 0x1ab   : > { %v1682_v55 = vrot.slane %v1681_v35, 4  ;;  %v1686_v40 = vrot.slane %v1684_v33, 5  ;;  %v2029_v2 = vrot.slane %v6428_v34, 5  ;;  %v1427_v13 = vrot.slane %v5496_v50, 5  ;;  %v4691_v34 = vld [vmem:[%s5605_s6 + $0x54] sm:$0xe] }
 0x1ac   : > { %v3143_v44 = vpop.f32.mrf.mxu0  ;;  %v3237_v1 = vpack.c.b16 %v3211_v0, %v3210_v18  ;;  %v4786_v61 = vrot.slane %v4770_v22, 9 }
 0x1ad   : > { %v2918_v23 = vpop.f32.mrf.mxu3  ;;  %5117 = vmatmul.msk.bf16.gmra.mxu2 %vm2162_vm3, %v5209_v58  ;;  %v2489_v29 = vpop.f32.mrf.mxu1  ;;  %v4729_v58 = vld [vmem:[%s5605_s6 + $0x60] sm:$0xf]  ;;  %v1687_v52 = vsel %vm5617_vm2, %v1682_v55, %v1686_v40  ;;  %v5210_v40 = vld [vmem:[%s5605_s6 + $0x54] sm:$0xff] }
 0x1ae   : > { %v2964_v3 = vadd.f32 %v2918_v23, %v2723_v9  ;;  %v3927_v9 = vpack.c.b16 %v3900_v56, %v3899_v11  ;;  %v1677_v23 = vsel %vm5617_vm2, %v1672_v12, %v6449_v51  ;;  %v1689_v35 = vshrl.u32 %v4729_v58, 16  ;;  %v5497_v56 = vld [vmem:[%s5605_s6 + $0x5c] sm:$0x1] }
 0x1af   : > { %v2031_v11 = vrot.slane %v2029_v2, 4  ;;  %v2032_v51 = vrot.slane %v6455_v10, 5  ;;  %v3676_v0 = vunpack.c.l.b16 %v1677_v23  ;;  %v1429_v12 = vrot.slane %v1427_v13, 4 }
 0x1b0   : > { %v2680_v26 = vpop.f32.mrf.mxu2  ;;  %v6476_v41 = vadd.f32 %v3143_v44, %v2964_v3  ;;  %v1692_v44 = vshll.u32 %v4729_v58, 16  ;;  %v1698_v3 = vshll.u32 %v6474_v39, 16  ;;  %v3677_v22 = vunpack.c.l.b16 %v1687_v52 }
 0x1b1   : > { %v2724_v62 = vadd.f32 %v2680_v26, %v2488_v8  ;;  %v2490_v8 = vadd.f32 %v2489_v29, %v5933_v59  ;;  %v1430_v26 = vrot.slane %v5497_v56, 5  ;;  %v2030_v58 = vsel %vm5800_vm6, %v4786_v61, %v2029_v2 }
 0x1b2   : > { %5137 = vmatmul.msk.bf16.gmra.mxu3 %vm2162_vm3, %v3702_v60  ;;  %v1702_v60 = vshrl.u32 %v6474_v39, 16  ;;  %v1691_v59 = vrot.slane %v1689_v35, 4  ;;  %v1694_v29 = vrot.slane %v1692_v44, 5  ;;  %v6497_v10 = vrot.slane %v1698_v3, 5 }
 0x1b3   : > { %v1431_v52 = vsel %vm5800_vm6, %v1429_v12, %v1430_v26  ;;  %v3901_v61 = vunpack.c.l.b16 %v2030_v58  ;;  %v4771_v58 = vld [vmem:[%s5605_s6 + $0x60] sm:$0xe] }
 0x1b4   : > { %v3146_v47 = vpop.f32.mrf.mxu0  ;;  %v1704_v50 = vrot.slane %v1702_v60, 4  ;;  %v1695_v3 = vor.u32 %v1694_v29, %v1691_v59 }
 0x1b5   : > { %v2921_v15 = vpop.f32.mrf.mxu3  ;;  %v2492_v45 = vpop.f32.mrf.mxu1 }
 0x1b6   : > { %v2965_v33 = vadd.f32 %v2921_v15, %v2724_v62  ;;  %v4707_v62 = vrot.slane %v4691_v34, 9  ;;  %v6506_v34 = vld [vmem:[%s5605_s6 + $0x68] sm:$0x1]  ;;  %v1705_v60 = vor.u32 %v1704_v50, %v6497_v10  ;;  %v1696_v12 = vrot.slane %v1695_v3, 4 }
 0x1b7   : > { %5157 = vmatmul.msk.bf16.gmra.mxu0 %vm2162_vm3, %v3927_v9 }
 0x1b8   : > { %v2682_v18 = vpop.f32.mrf.mxu2  ;;  %5034 = vmatmul.msk.bf16.gmra.mxu1 %vm2162_vm3, %v3237_v1  ;;  %v6495_v9 = vadd.f32 %v3146_v47, %v2965_v33  ;;  %v2033_v1 = vsel %vm5800_vm6, %v2031_v11, %v2032_v51  ;;  %v1428_v23 = vsel %vm5800_vm6, %v4707_v62, %v1427_v13  ;;  %v3703_v47 = vpack.c.b16 %v3677_v22, %v3676_v0  ;;  %v6514_v62 = vld [vmem:[%s5605_s6 + $0x70] sm:$0xf] }
 0x1b9   : > { %v2725_v55 = vadd.f32 %v2682_v18, %v2490_v8  ;;  %v3902_v44 = vunpack.c.l.b16 %v2033_v1  ;;  %v2493_v13 = vadd.f32 %v2492_v45, %v5954_v32  ;;  %v3212_v8 = vunpack.c.l.b16 %v1428_v23  ;;  %v4731_v18 = vld [vmem:[%s5605_s6 + $0x6c] sm:$0xf] }
 0x1ba   : > { %v3213_v11 = vunpack.c.l.b16 %v1431_v52  ;;  %v1708_v51 = vshll.u32 %v6506_v34, 16  ;;  %v2036_v32 = vrot.slane %v6474_v39, 5  ;;  %v1713_v29 = vshrl.u32 %v4731_v18, 16 }
 0x1bb   : > { %v3928_v0 = vpack.c.b16 %v3902_v44, %v3901_v61  ;;  %v1716_v50 = vshll.u32 %v4731_v18, 16  ;;  %v1722_v1 = vshll.u32 %v6514_v62, 16  ;;  %v1726_v23 = vshrl.u32 %v6514_v62, 16  ;;  %v5499_v44 = vld [vmem:[%s5605_s6 + $0x68] sm:$0x1] }
 0x1bc   : > { %v3148_v15 = vpop.f32.mrf.mxu0  ;;  %v1710_v22 = vrot.slane %v1708_v51, 5  ;;  %v1437_v3 = vrot.slane %v5499_v44, 5  ;;  %v2039_v39 = vrot.slane %v6506_v34, 5  ;;  %v2038_v51 = vrot.slane %v2036_v32, 4 }
 0x1bd   : > { %v2923_v2 = vpop.f32.mrf.mxu3  ;;  %5118 = vmatmul.msk.bf16.gmra.mxu2 %vm2162_vm3, %v5210_v40  ;;  %v2494_v35 = vpop.f32.mrf.mxu1  ;;  %v3238_v40 = vpack.c.b16 %v3213_v11, %v3212_v8  ;;  %v1701_v8 = vsel %vm5617_vm2, %v1696_v12, %v6497_v10  ;;  %v1718_v18 = vrot.slane %v1716_v50, 5  ;;  %v1724_v34 = vrot.slane %v1722_v1, 5  ;;  %v4756_v12 = vld [vmem:[%s5605_s6 + $0x74] sm:$0x1] }
 0x1be   : > { %v2966_v33 = vadd.f32 %v2923_v2, %v2725_v55  ;;  %v1706_v55 = vrot.slane %v1705_v60, 4  ;;  %v3678_v44 = vunpack.c.l.b16 %v1701_v8 }
 0x1c0   : > { %v2685_v56 = vpop.f32.mrf.mxu2  ;;  %v6519_v45 = vadd.f32 %v3148_v15, %v2966_v33  ;;  %v4692_v15 = vld [vmem:[%s5605_s6 + $0x60] sm:$0xe]  ;;  %v2495_v33 = vadd.f32 %v2494_v35, %v5973_v63  ;;  %v1711_v11 = vsel %vm5617_vm2, %v1706_v55, %v1710_v22 }
 0x1c1   : > { %v2726_v26 = vadd.f32 %v2685_v56, %v2493_v13  ;;  %v4787_v13 = vrot.slane %v4771_v58, 9  ;;  %v1728_v58 = vrot.slane %v1726_v23, 4  ;;  %v3679_v10 = vunpack.c.l.b16 %v1711_v11 }
 0x1c2   : > { %5138 = vmatmul.msk.bf16.gmra.mxu3 %vm2162_vm3, %v3703_v47  ;;  %7189 = vst [vmem:[#allocation4_spill] sm:$0xff] %v6519_v45  ;;  %v5498_v47 = vld [vmem:[%s5605_s6 + $0x64] sm:$0xf] }
 0x1c3   : > { %v1434_v61 = vrot.slane %v5498_v47, 5  ;;  %v4708_v47 = vrot.slane %v4692_v15, 9  ;;  %v2037_v55 = vsel %vm5800_vm6, %v4787_v13, %v2036_v32  ;;  %v1729_v23 = vor.u32 %v1728_v58, %v1724_v34  ;;  %v4733_v58 = vld [vmem:[%s5605_s6 + $0x78] sm:$0xf] }
 0x1c4   : > { %v3151_v59 = vpop.f32.mrf.mxu0  ;;  %v3704_v32 = vpack.c.b16 %v3679_v10, %v3678_v44 }
 0x1c5   : > { %v2926_v52 = vpop.f32.mrf.mxu3  ;;  %v2497_v2 = vpop.f32.mrf.mxu1  ;;  %v1436_v63 = vrot.slane %v1434_v61, 4 }
 0x1c6   : > { %v2967_v60 = vadd.f32 %v2926_v52, %v2726_v26  ;;  %v1715_v26 = vrot.slane %v1713_v29, 4  ;;  %v2498_v13 = vadd.f32 %v2497_v2, %v5992_v36  ;;  %v6554_v2 = vld [vmem:[%s5605_s6 + $0x7c] sm:$0xf] }
 0x1c7   : > { %5158 = vmatmul.msk.bf16.gmra.mxu0 %vm2162_vm3, %v3928_v0  ;;  %v5211_v0 = vld [vmem:[%s5605_s6 + $0x60] sm:$0xff]  ;;  %v1438_v1 = vsel %vm5800_vm6, %v1436_v63, %v1437_v3 }
 0x1c8   : > { %v2687_v56 = vpop.f32.mrf.mxu2  ;;  %5035 = vmatmul.msk.bf16.gmra.mxu1 %vm2162_vm3, %v3238_v40  ;;  %v6536_v35 = vadd.f32 %v3151_v59, %v2967_v60  ;;  %v2040_v40 = vsel %vm5800_vm6, %v2038_v51, %v2039_v39  ;;  %v1719_v22 = vor.u32 %v1718_v18, %v1715_v26  ;;  %v1435_v59 = vsel %vm5800_vm6, %v4708_v47, %v1434_v61  ;;  %v4772_v26 = vld [vmem:[%s5605_s6 + $0x6c] sm:$0xe] }
 0x1c9   : > { %v2727_v52 = vadd.f32 %v2687_v56, %v2495_v33  ;;  %v1732_v60 = vshll.u32 %v4756_v12, 16  ;;  %v3903_v39 = vunpack.c.l.b16 %v2037_v55  ;;  %v3904_v33 = vunpack.c.l.b16 %v2040_v40 }
 0x1ca   : > { %v3214_v11 = vunpack.c.l.b16 %v1435_v59  ;;  %v3215_v51 = vunpack.c.l.b16 %v1438_v1  ;;  %v1720_v56 = vrot.slane %v1719_v22, 4  ;;  %v2043_v61 = vrot.slane %v6514_v62, 5  ;;  %v4693_v59 = vld [vmem:[%s5605_s6 + $0x6c] sm:$0xe]  ;;  %v5500_v1 = vld [vmem:[%s5605_s6 + $0x70] sm:$0xf] }
 0x1cb   : > { %v1734_v3 = vrot.slane %v1732_v60, 5  ;;  %v4788_v36 = vrot.slane %v4772_v26, 9  ;;  %v2046_v55 = vrot.slane %v4756_v12, 5  ;;  %v1737_v60 = vshrl.u32 %v4733_v58, 16  ;;  %v5212_v26 = vld [vmem:[%s5605_s6 + $0x6c] sm:$0xff] }
 0x1cc   : > { %v3153_v45 = vpop.f32.mrf.mxu0  ;;  %v3239_v44 = vpack.c.b16 %v3215_v51, %v3214_v11  ;;  %v1725_v10 = vsel %vm5617_vm2, %v1720_v56, %v1724_v34  ;;  %v2045_v62 = vrot.slane %v2043_v61, 4  ;;  %v4709_v51 = vrot.slane %v4693_v59, 9 }
 0x1cd   : > { %v2928_v29 = vpop.f32.mrf.mxu3  ;;  %5119 = vmatmul.msk.bf16.gmra.mxu2 %vm2162_vm3, %v5211_v0  ;;  %v2499_v50 = vpop.f32.mrf.mxu1  ;;  %v1730_v0 = vrot.slane %v1729_v23, 4  ;;  %v1441_v23 = vrot.slane %v5500_v1, 5  ;;  %v3680_v12 = vunpack.c.l.b16 %v1725_v10  ;;  %v6580_v10 = vld [vmem:[%s5605_s6 + $0x80] sm:$0x1] }
 0x1ce   : > { %v2968_v15 = vadd.f32 %v2928_v29, %v2727_v52  ;;  %v3929_v52 = vpack.c.b16 %v3904_v33, %v3903_v39  ;;  %v2500_v34 = vadd.f32 %v2499_v50, %v6015_v4  ;;  %v2047_v11 = vsel %vm5800_vm6, %v2045_v62, %v2046_v55 }
 0x1cf   : > { %v1735_v29 = vsel %vm5617_vm2, %v1730_v0, %v1734_v3  ;;  %v5501_v0 = vld [vmem:[%s5605_s6 + $0x74] sm:$0x1]  ;;  %v1739_v4 = vrot.slane %v1737_v60, 4  ;;  %v3906_v55 = vunpack.c.l.b16 %v2047_v11 }
 0x1d0   : > { %v2690_v8 = vpop.f32.mrf.mxu2  ;;  %v6556_v47 = vadd.f32 %v3153_v45, %v2968_v15  ;;  %v1740_v45 = vshll.u32 %v4733_v58, 16  ;;  %v1746_v15 = vshll.u32 %v6554_v2, 16  ;;  %v3681_v33 = vunpack.c.l.b16 %v1735_v29 }
 0x1d1   : > { %v2728_v18 = vadd.f32 %v2690_v8, %v2498_v13  ;;  %v1750_v13 = vshrl.u32 %v6554_v2, 16  ;;  %v2044_v8 = vsel %vm5800_vm6, %v4788_v36, %v2043_v61  ;;  %v1444_v3 = vrot.slane %v5501_v0, 5 }
 0x1d2   : > { %5139 = vmatmul.msk.bf16.gmra.mxu3 %vm2162_vm3, %v3704_v32  ;;  %v1742_v50 = vrot.slane %v1740_v45, 5  ;;  %v3905_v36 = vunpack.c.l.b16 %v2044_v8  ;;  %v3705_v62 = vpack.c.b16 %v3681_v33, %v3680_v12  ;;  %v1756_v45 = vshll.u32 %v6580_v10, 16  ;;  %v6592_v33 = vld [vmem:[%s5605_s6 + $0x88] sm:$0xf] }
 0x1d4   : > { %v3156_v63 = vpop.f32.mrf.mxu0  ;;  %v1743_v60 = vor.u32 %v1742_v50, %v1739_v4  ;;  %v3930_v8 = vpack.c.b16 %v3906_v55, %v3905_v36  ;;  %v2050_v50 = vrot.slane %v6554_v2, 5  ;;  %v5502_v55 = vld [vmem:[%s5605_s6 + $0x7c] sm:$0xf] }
 0x1d5   : > { %v2931_v40 = vpop.f32.mrf.mxu3  ;;  %v2502_v22 = vpop.f32.mrf.mxu1 }
 0x1d6   : > { %v2969_v32 = vadd.f32 %v2931_v40, %v2728_v18  ;;  %v1443_v18 = vrot.slane %v1441_v23, 4  ;;  %v1744_v11 = vrot.slane %v1743_v60, 4 }
 0x1d7   : > { %5159 = vmatmul.msk.bf16.gmra.mxu0 %vm2162_vm3, %v3929_v52  ;;  %v6577_v52 = vrot.slane %v1746_v15, 5  ;;  %v2503_v15 = vadd.f32 %v2502_v22, %v6034_v53  ;;  %v1770_v53 = vshll.u32 %v6592_v33, 16  ;;  %v1774_v22 = vshrl.u32 %v6592_v33, 16 }
 0x1d8   : > { %v2692_v39 = vpop.f32.mrf.mxu2  ;;  %5036 = vmatmul.msk.bf16.gmra.mxu1 %vm2162_vm3, %v3239_v44  ;;  %v6575_v58 = vadd.f32 %v3156_v63, %v2969_v32  ;;  %v1752_v44 = vrot.slane %v1750_v13, 4  ;;  %v1442_v63 = vsel %vm5800_vm6, %v4709_v51, %v1441_v23  ;;  %v1445_v59 = vsel %vm5800_vm6, %v1443_v18, %v1444_v3  ;;  %v4735_v13 = vld [vmem:[%s5605_s6 + $0x84] sm:$0xf] }
 0x1d9   : > { %v2729_v56 = vadd.f32 %v2692_v39, %v2500_v34  ;;  %v3216_v39 = vunpack.c.l.b16 %v1442_v63  ;;  %v3217_v12 = vunpack.c.l.b16 %v1445_v59  ;;  %v1764_v18 = vshll.u32 %v4735_v13, 16 }
 0x1da   : > { %7190 = vst [vmem:[#allocation5_spill] sm:$0xff] %v6575_v58  ;;  %v1753_v32 = vor.u32 %v1752_v44, %v6577_v52  ;;  %v1448_v63 = vrot.slane %v5502_v55, 5  ;;  %v1749_v60 = vsel %vm5617_vm2, %v1744_v11, %v6577_v52  ;;  %v2053_v52 = vrot.slane %v6580_v10, 5  ;;  %v5213_v11 = vld [vmem:[%s5605_s6 + $0x78] sm:$0xff] }
 0x1db   : > { %v3240_v4 = vpack.c.b16 %v3217_v12, %v3216_v39  ;;  %v2052_v39 = vrot.slane %v2050_v50, 4 }
 0x1dc   : > { %v3158_v61 = vpop.f32.mrf.mxu0  ;;  %v1754_v51 = vrot.slane %v1753_v32, 4  ;;  %v1766_v32 = vrot.slane %v1764_v18, 5 }
 0x1dd   : > { %v2933_v40 = vpop.f32.mrf.mxu3  ;;  %5120 = vmatmul.msk.bf16.gmra.mxu2 %vm2162_vm3, %v5212_v26  ;;  %v2504_v29 = vpop.f32.mrf.mxu1  ;;  %v1761_v26 = vshrl.u32 %v4735_v13, 16 }
 0x1de   : > { %v2970_v1 = vadd.f32 %v2933_v40, %v2729_v56  ;;  %v1758_v56 = vrot.slane %v1756_v45, 5  ;;  %v4773_v40 = vld [vmem:[%s5605_s6 + $0x78] sm:$0xe]  ;;  %v2505_v2 = vadd.f32 %v2504_v29, %v6051_v27  ;;  %v6610_v45 = vrot.slane %v1770_v53, 5 }
 0x1df   : > { %v3682_v29 = vunpack.c.l.b16 %v1749_v60 }
 0x1e0   : > { %v2695_v34 = vpop.f32.mrf.mxu2  ;;  %v6597_v0 = vadd.f32 %v3158_v61, %v2970_v1  ;;  %v1759_v61 = vsel %vm5617_vm2, %v1754_v51, %v1758_v56  ;;  %v1763_v1 = vrot.slane %v1761_v26, 4  ;;  %v1450_v51 = vrot.slane %v1448_v63, 4  ;;  %v5503_v56 = vld [vmem:[%s5605_s6 + $0x80] sm:$0x1]  ;;  %v6617_v26 = vld [vmem:[%s5605_s6 + $0x8c] sm:$0x1] }
 0x1e1   : > { %v2730_v23 = vadd.f32 %v2695_v34, %v2503_v15  ;;  %v1776_v15 = vrot.slane %v1774_v22, 4  ;;  %v4789_v34 = vrot.slane %v4773_v40, 9  ;;  %v3683_v18 = vunpack.c.l.b16 %v1759_v61 }
 0x1e2   : > { %5140 = vmatmul.msk.bf16.gmra.mxu3 %vm2162_vm3, %v3705_v62  ;;  %7191 = vst [vmem:[#allocation6_spill] sm:$0xff] %v6597_v0  ;;  %v4694_v62 = vld [vmem:[%s5605_s6 + $0x78] sm:$0xe]  ;;  %v1767_v53 = vor.u32 %v1766_v32, %v1763_v1  ;;  %v1780_v40 = vshll.u32 %v6617_v26, 16 }
 0x1e3   : > { %v4710_v12 = vrot.slane %v4694_v62, 9  ;;  %v1777_v22 = vor.u32 %v1776_v15, %v6610_v45  ;;  %v2051_v10 = vsel %vm5800_vm6, %v4789_v34, %v2050_v50  ;;  %v3706_v61 = vpack.c.b16 %v3683_v18, %v3682_v29  ;;  %v4737_v50 = vld [vmem:[%s5605_s6 + $0x90] sm:$0xf] }
 0x1e4   : > { %v3161_v3 = vpop.f32.mrf.mxu0  ;;  %v3907_v1 = vunpack.c.l.b16 %v2051_v10  ;;  %v1768_v32 = vrot.slane %v1767_v53, 4 }
 0x1e5   : > { %v2936_v44 = vpop.f32.mrf.mxu3  ;;  %v3311_v36 = vpop.f32.mrf.mxu1  ;;  %v1449_v55 = vsel %vm5800_vm6, %v4710_v12, %v1448_v63  ;;  %v1778_v15 = vrot.slane %v1777_v22, 4  ;;  %v1785_v63 = vshrl.u32 %v4737_v50, 16  ;;  %v1788_v12 = vshll.u32 %v4737_v50, 16 }
 0x1e6   : > { %v2971_v59 = vadd.f32 %v2936_v44, %v2730_v23  ;;  %v2054_v44 = vsel %vm5800_vm6, %v2052_v39, %v2053_v52  ;;  %v3218_v39 = vunpack.c.l.b16 %v1449_v55  ;;  %v5504_v55 = vld [vmem:[%s5605_s6 + $0x88] sm:$0xf] }
 0x1e7   : > { %5160 = vmatmul.msk.bf16.gmra.mxu0 %vm2162_vm3, %v3930_v8  ;;  %v1451_v8 = vrot.slane %v5503_v56, 5  ;;  %v4774_v56 = vld [vmem:[%s5605_s6 + $0x84] sm:$0xe]  ;;  %v1790_v50 = vrot.slane %v1788_v12, 5 }
 0x1e8   : > { %v2697_v13 = vpop.f32.mrf.mxu2  ;;  %5037 = vmatmul.msk.bf16.gmra.mxu1 %vm2162_vm3, %v3240_v4  ;;  %v6619_v27 = vadd.f32 %v3161_v3, %v2971_v59 }
 0x1e9   : > { %v2731_v23 = vadd.f32 %v2697_v13, %v2505_v2  ;;  %v1452_v59 = vsel %vm5800_vm6, %v1450_v51, %v1451_v8  ;;  %v3908_v2 = vunpack.c.l.b16 %v2054_v44  ;;  %v3391_v13 = vadd.f32 %v3311_v36, %v6068_v37 }
 0x1ea   : > { %7192 = vst [vmem:[#allocation7_spill] sm:$0xff] %v6619_v27  ;;  %v3219_v52 = vunpack.c.l.b16 %v1452_v59  ;;  %v6636_v27 = vld [vmem:[%s5605_s6 + $0x94] sm:$0xf]  ;;  %v1773_v8 = vsel %vm5617_vm2, %v1768_v32, %v6610_v45  ;;  %v4790_v37 = vrot.slane %v4774_v56, 9  ;;  %v2057_v36 = vrot.slane %v6592_v33, 5 }
 0x1eb   : > { %v3931_v51 = vpack.c.b16 %v3908_v2, %v3907_v1  ;;  %v1794_v22 = vshll.u32 %v6636_v27, 16  ;;  %v1455_v59 = vrot.slane %v5504_v55, 5  ;;  %v1798_v45 = vshrl.u32 %v6636_v27, 16  ;;  %v6654_v1 = vld [vmem:[%s7180_s2] ss:$0 sm:$0xff] }
 0x1ec   : > { %v3163_v4 = vpop.f32.mrf.mxu0  ;;  %v3241_v18 = vpack.c.b16 %v3219_v52, %v3218_v39  ;;  %v2058_v32 = vsel %vm5800_vm6, %v4790_v37, %v2057_v36 }
 0x1ed   : > { %v2938_v62 = vpop.f32.mrf.mxu3  ;;  %5121 = vmatmul.msk.bf16.gmra.mxu2 %vm2162_vm3, %v5213_v11  ;;  %v3313_v3 = vpop.f32.mrf.mxu1  ;;  %v1782_v11 = vrot.slane %v1780_v40, 5  ;;  %v1457_v56 = vrot.slane %v1455_v59, 4 }
 0x1ee   : > { %v2972_v60 = vadd.f32 %v2938_v62, %v2731_v23  ;;  %v4695_v62 = vld [vmem:[%s5605_s6 + $0x84] sm:$0xe] }
 0x1ef   : > { %v1783_v53 = vsel %vm5617_vm2, %v1778_v15, %v1782_v11  ;;  %v2059_v15 = vrot.slane %v2057_v36, 4  ;;  %v4711_v52 = vrot.slane %v4695_v62, 9  ;;  %v6662_v11 = vrot.slane %v1794_v22, 5  ;;  %v6670_v36 = vld [vmem:[%s5605_s6 + $0x98] sm:$0x1] }
 0x1f0   : > { %v3552_v34 = vpop.f32.mrf.mxu2  ;;  %v6646_v10 = vadd.f32 %v3163_v4, %v2972_v60  ;;  %v2060_v4 = vrot.slane %v6617_v26, 5  ;;  %v3684_v60 = vunpack.c.l.b16 %v1773_v8  ;;  %v3685_v2 = vunpack.c.l.b16 %v1783_v53  ;;  %v5214_v26 = vld [vmem:[%s5605_s6 + $0x84] sm:$0xff]  ;;  %v6679_v62 = vld [vmem:[%s5605_s6 + $0xa0] sm:$0xf] }
 0x1f1   : > { %v3632_v23 = vadd.f32 %v3552_v34, %v3391_v13  ;;  %v3392_v34 = vadd.f32 %v3313_v3, %v6081_v38  ;;  %v3909_v38 = vunpack.c.l.b16 %v2058_v32  ;;  %v4739_v3 = vld [vmem:[%s5605_s6 + $0x9c] sm:$0xf] }
 0x1f2   : > { %5141 = vmatmul.msk.bf16.gmra.mxu3 %vm2162_vm3, %v3706_v61  ;;  %7193 = vst [vmem:[#allocation8_spill] sm:$0xff] %v6646_v10  ;;  %v1787_v61 = vrot.slane %v1785_v63, 4  ;;  %v5505_v63 = vld [vmem:[%s5605_s6 + $0x8c] sm:$0x1]  ;;  %v3707_v53 = vpack.c.b16 %v3685_v2, %v3684_v60  ;;  %v2061_v22 = vsel %vm5800_vm6, %v2059_v15, %v2060_v4  ;;  %v1804_v60 = vshll.u32 %v6670_v36, 16 }
 0x1f3   : > { %v1458_v12 = vrot.slane %v5505_v63, 5  ;;  %v1809_v32 = vshrl.u32 %v4739_v3, 16  ;;  %v3910_v15 = vunpack.c.l.b16 %v2061_v22  ;;  %v5507_v10 = vld [vmem:[%s5605_s6 + $0x98] sm:$0x1] }
 0x1f4   : > { %v4002_v29 = vpop.f32.mrf.mxu0 }
 0x1f5   : > { %v3777_v44 = vpop.f32.mrf.mxu3  ;;  %v3316_v40 = vpop.f32.mrf.mxu1 }
 0x1f6   : > { %v3857_v33 = vadd.f32 %v3777_v44, %v3632_v23  ;;  %v1791_v23 = vor.u32 %v1790_v50, %v1787_v61  ;;  %v1456_v44 = vsel %vm5800_vm6, %v4711_v52, %v1455_v59  ;;  %v1459_v50 = vsel %vm5800_vm6, %v1457_v56, %v1458_v12 }
 0x1f7   : > { %5161 = vmatmul.msk.bf16.gmra.mxu0 %vm2162_vm3, %v3931_v51  ;;  %v1800_v51 = vrot.slane %v1798_v45, 4  ;;  %v1812_v59 = vshll.u32 %v4739_v3, 16  ;;  %v3221_v63 = vunpack.c.l.b16 %v1459_v50  ;;  %v2064_v3 = vrot.slane %v6636_v27, 5 }
 0x1f8   : > { %v4082_v13 = vadd.f32 %v4002_v29, %v3857_v33  ;;  %v3554_v39 = vpop.f32.mrf.mxu2  ;;  %5038 = vmatmul.msk.bf16.gmra.mxu1 %vm2162_vm3, %v3241_v18  ;;  %v1792_v45 = vrot.slane %v1791_v23, 4 }
 0x1f9   : > { %v3633_v37 = vadd.f32 %v3554_v39, %v3392_v34  ;;  %v1801_v33 = vor.u32 %v1800_v51, %v6662_v11  ;;  %v1818_v34 = vshll.u32 %v6679_v62, 16  ;;  %v1822_v39 = vshrl.u32 %v6679_v62, 16 }
 0x1fa   : > { %v6667_v8 = vadd.f32 %v6654_v1, %v4082_v13  ;;  %v3220_v13 = vunpack.c.l.b16 %v1456_v44  ;;  %v1797_v12 = vsel %vm5617_vm2, %v1792_v45, %v6662_v11  ;;  %v1806_v51 = vrot.slane %v1804_v60, 5  ;;  %v4696_v44 = vld [vmem:[%s5605_s6 + $0x90] sm:$0xe] }
 0x1fb   : > { %v1802_v23 = vrot.slane %v1801_v33, 4  ;;  %v1814_v22 = vrot.slane %v1812_v59, 5  ;;  %v3932_v11 = vpack.c.b16 %v3910_v15, %v3909_v38  ;;  %v6711_v50 = vrot.slane %v1818_v34, 5 }
 0x1fc   : > { %v4150_v29 = vsub.f32 0.0, %v6667_v8  ;;  %v4004_v18 = vpop.f32.mrf.mxu0  ;;  %v1824_v45 = vrot.slane %v1822_v39, 4  ;;  %v3242_v60 = vpack.c.b16 %v3221_v63, %v3220_v13  ;;  %v6719_v15 = vunpack.c.l.b16 %v1797_v12 }
 0x1fd   : > { %v3779_v55 = vpop.f32.mrf.mxu3  ;;  %5122 = vmatmul.msk.bf16.gmra.mxu2 %vm2162_vm3, %v5214_v26  ;;  %v3318_v61 = vpop.f32.mrf.mxu1  ;;  %v3393_v26 = vadd.f32 %v3316_v40, %v6094_v7  ;;  %v6700_v7 = vld [vmem:[%s5605_s6 + $0xa4] sm:$0x1]  ;;  %v1811_v40 = vrot.slane %v1809_v32, 4  ;;  %v1807_v38 = vsel %vm5617_vm2, %v1802_v23, %v1806_v51  ;;  %v4712_v63 = vrot.slane %v4696_v44, 9 }
 0x1fe   : > { %v4182_v2 = vmul.f32 1.442695, %v4150_v29  ;;  %v3858_v4 = vadd.f32 %v3779_v55, %v3633_v37  ;;  %v4775_v37 = vld [vmem:[%s5605_s6 + $0x90] sm:$0xe]  ;;  %v5506_v55 = vld [vmem:[%s5605_s6 + $0x94] sm:$0xf]  ;;  %v1825_v12 = vor.u32 %v1824_v45, %v6711_v50  ;;  %v3394_v0 = vadd.f32 %v3318_v61, %v6107_v5 }
 0x1ff   : > { %v1462_v27 = vrot.slane %v5506_v55, 5  ;;  %v1828_v34 = vshll.u32 %v6700_v7, 16  ;;  %v1465_v23 = vrot.slane %v5507_v10, 5 }
 0x200   : > { %5338 = vpow2.f32 %v4182_v2  ;;  %v4083_v52 = vadd.f32 %v4004_v18, %v3858_v4  ;;  %v3557_v56 = vpop.f32.mrf.mxu2  ;;  %v4791_v2 = vrot.slane %v4775_v37, 9  ;;  %v2067_v4 = vrot.slane %v6670_v36, 5 }
 0x201   : > { %v3634_v18 = vadd.f32 %v3557_v56, %v3393_v26  ;;  %v6723_v26 = vld [vmem:[%s6707_s24] sm:$0xff]   ;;  %v1815_v36 = vor.u32 %v1814_v22, %v1811_v40  ;;  %v1464_v55 = vrot.slane %v1462_v27, 4  ;;  %v5215_v22 = vld [vmem:[%s5605_s6 + $0x90] sm:$0xff]  ;;  %v1463_v5 = vsel %vm5800_vm6, %v4712_v63, %v1462_v27 }
 0x202   : > { %v6696_v29 = vadd.f32 %v6654_v1, %v4083_v52  ;;  %5142 = vmatmul.msk.bf16.gmra.mxu3 %vm2162_vm3, %v3707_v53  ;;  %v2066_v52 = vrot.slane %v2064_v3, 4  ;;  %v5232_v40 = vunpack.c.l.bf16 %v6723_v26 }
 0x203   : > { %v1816_v61 = vrot.slane %v1815_v36, 4 }
 0x204   : > { %v4151_v53 = vsub.f32 0.0, %v6696_v29  ;;  %v4007_v33 = vpop.f32.mrf.mxu0  ;;  %v2068_v10 = vsel %vm5800_vm6, %v2066_v52, %v2067_v4 }
 0x205   : > { %v3782_v32 = vpop.f32.mrf.mxu3  ;;  %v6715_v59 = vpop.f32.mrf.mxu1  ;;  %v3912_v27 = vunpack.c.l.b16 %v2068_v10 }
 0x206   : > { %v5339_v39 = vpop.eup %5338  ;;  %v4184_v56 = vmul.f32 1.442695, %v4151_v53  ;;  %v3859_v13 = vadd.f32 %v3782_v32, %v3634_v18  ;;  %v3687_v53 = vunpack.c.l.b16 %v1807_v38  ;;  %v4776_v18 = vld [vmem:[%s5605_s6 + $0x9c] sm:$0xe]  ;;  %v1830_v32 = vrot.slane %v1828_v34, 5 }
 0x207   : > { %v4246_v37 = vadd.f32 1.0, %v5339_v39  ;;  %5162 = vmatmul.msk.bf16.gmra.mxu0 %vm2162_vm3, %v3932_v11  ;;  %v2065_v11 = vsel %vm5800_vm6, %v4791_v2, %v2064_v3  ;;  %v4792_v38 = vrot.slane %v4776_v18, 9  ;;  %v2071_v34 = vrot.slane %v6679_v62, 5  ;;  %v6763_v18 = vld [vmem:[%s5605_s6 + $0xac] sm:$0xf] }
 0x208   : > { %5340 = vpow2.f32 %v4184_v56  ;;  %v4084_v51 = vadd.f32 %v4007_v33, %v3859_v13  ;;  %v3559_v58 = vpop.f32.mrf.mxu2  ;;  %5039 = vmatmul.msk.bf16.gmra.mxu1 %vm2162_vm3, %v3242_v60  ;;  %v1466_v33 = vsel %vm5800_vm6, %v1464_v55, %v1465_v23  ;;  %v1826_v60 = vrot.slane %v1825_v12, 4  ;;  %v4741_v55 = vld [vmem:[%s5605_s6 + $0xa8] sm:$0xf] }
 0x209   : > { %5342 = vrcp.f32 %v4246_v37  ;;  %v3635_v45 = vadd.f32 %v3559_v58, %v3394_v0  ;;  %v3708_v4 = vpack.c.b16 %v3687_v53, %v6719_v15  ;;  %v3911_v52 = vunpack.c.l.b16 %v2065_v11 }
 0x20a   : > { %v6738_v44 = vadd.f32 %v6654_v1, %v4084_v51  ;;  %v5233_v58 = vunpack.c.h.bf16 %v6723_v26  ;;  %v3222_v56 = vunpack.c.l.b16 %v1463_v5  ;;  %v3223_v37 = vunpack.c.l.b16 %v1466_v33 }
 0x20b   : > { %v1821_v15 = vsel %vm5617_vm2, %v1816_v61, %v6711_v50  ;;  %v1831_v51 = vsel %vm5617_vm2, %v1826_v60, %v1830_v32  ;;  %v6759_v53 = vsel %vm5800_vm6, %v4792_v38, %v2071_v34  ;;  %v2074_v62 = vrot.slane %v6700_v7, 5  ;;  %v4697_v32 = vld [vmem:[%s5605_s6 + $0x9c] sm:$0xe] }
 0x20c   : > { %v4152_v3 = vsub.f32 0.0, %v6738_v44  ;;  %v4009_v2 = vpop.f32.mrf.mxu0  ;;  %v3395_v11 = vadd.f32 %v6715_v59, %v6120_v49  ;;  %v1833_v5 = vshrl.u32 %v4741_v55, 16  ;;  %v1836_v61 = vshll.u32 %v4741_v55, 16 }
 0x20d   : > { %v3784_v0 = vpop.f32.mrf.mxu3  ;;  %5123 = vmatmul.msk.bf16.gmra.mxu2 %vm2162_vm3, %v5215_v22  ;;  %v6748_v39 = vpop.f32.mrf.mxu1  ;;  %v3933_v49 = vpack.c.b16 %v3912_v27, %v3911_v52  ;;  %v6780_v59 = vunpack.c.l.b16 %v1821_v15  ;;  %v3913_v27 = vunpack.c.l.b16 %v6759_v53  ;;  %v6794_v15 = vld [vmem:[%s5605_s6 + $0xb0] sm:$0x1]  ;;  %v5509_v53 = vld [vmem:[%s5605_s6 + $0xa4] sm:$0x1] }
 0x20e   : > { %v5341_v13 = vpop.eup %5340  ;;  %v4186_v63 = vmul.f32 1.442695, %v4152_v3  ;;  %v3860_v36 = vadd.f32 %v3784_v0, %v3635_v45  ;;  %v2073_v45 = vrot.slane %v2071_v34, 4  ;;  %v1846_v3 = vshrl.u32 %v6763_v18, 16 }
 0x20f   : > { %v5343_v23 = vpop.eup %5342  ;;  %v4247_v12 = vadd.f32 1.0, %v5341_v13  ;;  %v3243_v34 = vpack.c.b16 %v3223_v37, %v3222_v56  ;;  %v6786_v13 = vunpack.c.l.b16 %v1831_v51  ;;  %v1835_v55 = vrot.slane %v1833_v5, 4 }
 0x210   : > { %v4310_v22 = vmul.f32 %v5343_v23, %v6667_v8  ;;  %5344 = vpow2.f32 %v4186_v63  ;;  %v4085_v50 = vadd.f32 %v4009_v2, %v3860_v36  ;;  %v3562_v10 = vpop.f32.mrf.mxu2  ;;  %v1842_v8 = vshll.u32 %v6763_v18, 16 }
 0x211   : > { %5346 = vrcp.f32 %v4247_v12  ;;  %v3636_v60 = vadd.f32 %v3562_v10, %v3395_v11  ;;  %v2075_v52 = vsel %vm5800_vm6, %v2073_v45, %v2074_v62  ;;  %v1838_v23 = vrot.slane %v1836_v61, 5 }
 0x212   : > { %v4406_v33 = vadd.f32 %v5232_v40, %v4310_v22  ;;  %v6769_v7 = vadd.f32 %v6654_v1, %v4085_v50  ;;  %5143 = vmatmul.msk.bf16.gmra.mxu3 %vm2162_vm3, %v3708_v4  ;;  %v5508_v40 = vld [vmem:[%s5605_s6 + $0xa0] sm:$0xf]  ;;  %v4713_v37 = vrot.slane %v4697_v32, 9  ;;  %v6798_v51 = vrot.slane %v1842_v8, 5  ;;  %v6807_v8 = vld [vmem:[%s6707_s24 + $0x8] sm:$0xff]  }
 0x213   : > { %v1469_v38 = vrot.slane %v5508_v40, 5  ;;  %v1472_v10 = vrot.slane %v5509_v53, 5  ;;  %v1848_v45 = vrot.slane %v1846_v3, 4  ;;  %v5216_v32 = vld [vmem:[%s5605_s6 + $0x9c] sm:$0xff]  ;;  %v1839_v40 = vor.u32 %v1838_v23, %v1835_v55  ;;  %v4743_v55 = vld [vmem:[%s5605_s6 + $0xb4] sm:$0xf] }
 0x214   : > { %v4438_v2 = vpack.c.bf16 %v4406_v33, %v4406_v33  ;;  %v4153_v4 = vsub.f32 0.0, %v6769_v7  ;;  %v4012_v0 = vpop.f32.mrf.mxu0  ;;  %v3396_v33 = vadd.f32 %v6748_v39, %v6133_v46  ;;  %v5237_v23 = vunpack.c.h.bf16 %v6807_v8 }
 0x215   : > { %v3787_v63 = vpop.f32.mrf.mxu3  ;;  %v6788_v36 = vpop.f32.mrf.mxu1  ;;  %v1471_v62 = vrot.slane %v1469_v38, 4  ;;  %v1470_v46 = vsel %vm5800_vm6, %v4713_v37, %v1469_v38  ;;  %v1840_v37 = vrot.slane %v1839_v40, 4 }
 0x216   : > { %v5345_v12 = vpop.eup %5344  ;;  %4471 = vst.msk [vmem:[%s6778_s27] sm:$0xf] %vm4470_vm7, %v4438_v2  ;;  %v4188_v22 = vmul.f32 1.442695, %v4153_v4  ;;  %v3861_v56 = vadd.f32 %v3787_v63, %v3636_v60  ;;  %v1852_v2 = vshll.u32 %v6794_v15, 16  ;;  %v5236_v63 = vunpack.c.l.bf16 %v6807_v8 }
 0x217   : > { %v5347_v50 = vpop.eup %5346  ;;  %v4248_v11 = vadd.f32 1.0, %v5345_v12  ;;  %5163 = vmatmul.msk.bf16.gmra.mxu0 %vm2162_vm3, %v3933_v49  ;;  %v3914_v49 = vunpack.c.l.b16 %v2075_v52  ;;  %v1473_v39 = vsel %vm5800_vm6, %v1471_v62, %v1472_v10  ;;  %v3709_v52 = vpack.c.b16 %v6786_v13, %v6780_v59 }
 0x218   : > { %v4311_v5 = vmul.f32 %v5347_v50, %v6696_v29  ;;  %5348 = vpow2.f32 %v4188_v22  ;;  %v4086_v61 = vadd.f32 %v4012_v0, %v3861_v56  ;;  %v3564_v60 = vpop.f32.mrf.mxu2  ;;  %5040 = vmatmul.msk.bf16.gmra.mxu1 %vm2162_vm3, %v3243_v34  ;;  %v1849_v0 = vor.u32 %v1848_v45, %v6798_v51  ;;  %v4777_v50 = vld [vmem:[%s5605_s6 + $0xa8] sm:$0xe] }
 0x219   : > { %5350 = vrcp.f32 %v4248_v11  ;;  %v3637_v4 = vadd.f32 %v3564_v60, %v3396_v33  ;;  %v3934_v12 = vpack.c.b16 %v3914_v49, %v3913_v27  ;;  %v3224_v56 = vunpack.c.l.b16 %v1470_v46 }
 0x21a   : > { %v4407_v29 = vadd.f32 %v5233_v58, %v4311_v5  ;;  %v6814_v3 = vadd.f32 %v6654_v1, %v4086_v61  ;;  %v3225_v10 = vunpack.c.l.b16 %v1473_v39  ;;  %v1854_v45 = vrot.slane %v1852_v2, 5 }
 0x21b   : > { %v1850_v5 = vrot.slane %v1849_v0, 4  ;;  %v1857_v61 = vshrl.u32 %v4743_v55, 16  ;;  %v1860_v33 = vshll.u32 %v4743_v55, 16  ;;  %v1845_v40 = vsel %vm5617_vm2, %v1840_v37, %v6798_v51  ;;  %v6845_v0 = vld [vmem:[%s5605_s6 + $0xb8] sm:$0xf] }
 0x21c   : > { %v4439_v34 = vpack.c.bf16 %v4407_v29, %v4407_v29  ;;  %v4154_v26 = vsub.f32 0.0, %v6814_v3  ;;  %v4014_v58 = vpop.f32.mrf.mxu0  ;;  %v4793_v2 = vrot.slane %v4777_v50, 9  ;;  %v2078_v29 = vrot.slane %v6763_v18, 5 }
 0x21d   : > { %v3789_v38 = vpop.f32.mrf.mxu3  ;;  %5124 = vmatmul.msk.bf16.gmra.mxu2 %vm2162_vm3, %v5216_v32  ;;  %v6828_v22 = vpop.f32.mrf.mxu1  ;;  %v3397_v32 = vadd.f32 %v6788_v36, %v6146_v24  ;;  %v3244_v39 = vpack.c.b16 %v3225_v10, %v3224_v56  ;;  %v1855_v24 = vsel %vm5617_vm2, %v1850_v5, %v1854_v45  ;;  %v4698_v36 = vld [vmem:[%s5605_s6 + $0xa8] sm:$0xe] }
 0x21e   : > { %v5349_v11 = vpop.eup %5348  ;;  %4472 = vst.msk [vmem:[%s6778_s27 + $0x4] sm:$0xf] %vm4470_vm7, %v4439_v34  ;;  %v4190_v62 = vmul.f32 1.442695, %v4154_v26  ;;  %v3862_v53 = vadd.f32 %v3789_v38, %v3637_v4  ;;  %v5510_v34 = vld [vmem:[%s5605_s6 + $0xac] sm:$0xf]  ;;  %v6852_v38 = vunpack.c.l.b16 %v1845_v40  ;;  %v6859_v50 = vsel %vm5800_vm6, %v4793_v2, %v2078_v29 }
 0x21f   : > { %v5351_v59 = vpop.eup %5350  ;;  %v4249_v13 = vadd.f32 1.0, %v5349_v11  ;;  %v1476_v51 = vrot.slane %v5510_v34, 5  ;;  %v1859_v26 = vrot.slane %v1857_v61, 4  ;;  %v2080_v11 = vrot.slane %v2078_v29, 4 }
 0x220   : > { %v4312_v27 = vmul.f32 %v5351_v59, %v6738_v44  ;;  %5352 = vpow2.f32 %v4190_v62  ;;  %v4087_v60 = vadd.f32 %v4014_v58, %v3862_v53  ;;  %v3567_v49 = vpop.f32.mrf.mxu2  ;;  %v1862_v58 = vrot.slane %v1860_v33, 5  ;;  %v6868_v33 = vld [vmem:[%s6707_s24 + $0x10] sm:$0xff]  }
 0x221   : > { %5354 = vrcp.f32 %v4249_v13  ;;  %v3638_v44 = vadd.f32 %v3567_v49, %v3397_v32  ;;  %v1866_v62 = vshll.u32 %v6845_v0, 16  ;;  %v1870_v53 = vshrl.u32 %v6845_v0, 16 }
 0x222   : > { %v4408_v4 = vadd.f32 %v5236_v63, %v4312_v27  ;;  %v6841_v46 = vadd.f32 %v6654_v1, %v4087_v60  ;;  %5144 = vmatmul.msk.bf16.gmra.mxu3 %vm2162_vm3, %v3709_v52  ;;  %v2081_v52 = vrot.slane %v6794_v15, 5  ;;  %v6865_v13 = vunpack.c.l.b16 %v1855_v24  ;;  %v5511_v60 = vld [vmem:[%s5605_s6 + $0xb0] sm:$0x1]  ;;  %v5217_v24 = vld [vmem:[%s5605_s6 + $0xa8] sm:$0xff] }
 0x223   : > { %v4714_v15 = vrot.slane %v4698_v36, 9  ;;  %v1478_v27 = vrot.slane %v1476_v51, 4  ;;  %v1479_v32 = vrot.slane %v5511_v60, 5  ;;  %v1863_v49 = vor.u32 %v1862_v58, %v1859_v26 }
 0x224   : > { %v4440_v18 = vpack.c.bf16 %v4408_v4, %v4408_v4  ;;  %v4155_v63 = vsub.f32 0.0, %v6841_v46  ;;  %v4017_v55 = vpop.f32.mrf.mxu0  ;;  %v3398_v29 = vadd.f32 %v6828_v22, %v6159_v21  ;;  %v1868_v36 = vrot.slane %v1866_v62, 5  ;;  %v4778_v22 = vld [vmem:[%s5605_s6 + $0xb4] sm:$0xe] }
 0x225   : > { %v3792_v56 = vpop.f32.mrf.mxu3  ;;  %v6855_v37 = vpop.f32.mrf.mxu1  ;;  %v1872_v34 = vrot.slane %v1870_v53, 4  ;;  %v5240_v26 = vunpack.c.l.bf16 %v6868_v33 }
 0x226   : > { %v5353_v10 = vpop.eup %5352  ;;  %4473 = vst.msk [vmem:[%s6778_s27 + $0x8] sm:$0xf] %vm4470_vm7, %v4440_v18  ;;  %v4192_v45 = vmul.f32 1.442695, %v4155_v63  ;;  %v3863_v59 = vadd.f32 %v3792_v56, %v3638_v44  ;;  %v6877_v44 = vld [vmem:[%s5605_s6 + $0xbc] sm:$0x1]  ;;  %v1480_v18 = vsel %vm5800_vm6, %v1478_v27, %v1479_v32  ;;  %v3915_v56 = vunpack.c.l.b16 %v6859_v50 }
 0x227   : > { %v5355_v5 = vpop.eup %5354  ;;  %v4250_v61 = vadd.f32 1.0, %v5353_v10  ;;  %5164 = vmatmul.msk.bf16.gmra.mxu0 %vm2162_vm3, %v3934_v12  ;;  %v2082_v12 = vsel %vm5800_vm6, %v2080_v11, %v2081_v52  ;;  %v1864_v63 = vrot.slane %v1863_v49, 4  ;;  %v1873_v10 = vor.u32 %v1872_v34, %v1868_v36  ;;  %v4745_v50 = vld [vmem:[%s5605_s6 + $0xc0] sm:$0xf] }
 0x228   : > { %v4313_v40 = vmul.f32 %v5355_v5, %v6769_v7  ;;  %5356 = vpow2.f32 %v4192_v45  ;;  %v4088_v2 = vadd.f32 %v4017_v55, %v3863_v59  ;;  %v3569_v4 = vpop.f32.mrf.mxu2  ;;  %5041 = vmatmul.msk.bf16.gmra.mxu1 %vm2162_vm3, %v3244_v39  ;;  %v1477_v39 = vsel %vm5800_vm6, %v4714_v15, %v1476_v51 }
 0x229   : > { %5358 = vrcp.f32 %v4250_v61  ;;  %v3639_v21 = vadd.f32 %v3569_v4, %v3398_v29  ;;  %v1876_v55 = vshll.u32 %v6877_v44, 16  ;;  %v3916_v11 = vunpack.c.l.b16 %v2082_v12 }
 0x22a   : > { %v4409_v7 = vadd.f32 %v5237_v23, %v4313_v40  ;;  %v6886_v58 = vadd.f32 %v6654_v1, %v4088_v2  ;;  %v3710_v51 = vpack.c.b16 %v6865_v13, %v6852_v38  ;;  %v4794_v45 = vrot.slane %v4778_v22, 9 }
 0x22b   : > { %v2085_v59 = vrot.slane %v6845_v0, 5  ;;  %v3226_v27 = vunpack.c.l.b16 %v1477_v39  ;;  %v3227_v60 = vunpack.c.l.b16 %v1480_v18  ;;  %v1869_v40 = vsel %vm5617_vm2, %v1864_v63, %v1868_v36 }
 0x22c   : > { %v4441_v52 = vpack.c.bf16 %v4409_v7, %v4409_v7  ;;  %v4156_v8 = vsub.f32 0.0, %v6886_v58  ;;  %v4019_v23 = vpop.f32.mrf.mxu0  ;;  %v1878_v2 = vrot.slane %v1876_v55, 5  ;;  %v2088_v38 = vrot.slane %v6877_v44, 5 }
 0x22d   : > { %v3794_v62 = vpop.f32.mrf.mxu3  ;;  %5125 = vmatmul.msk.bf16.gmra.mxu2 %vm2162_vm3, %v5217_v24  ;;  %v3333_v53 = vpop.f32.mrf.mxu1  ;;  %v3399_v29 = vadd.f32 %v6855_v37, %v6172_v30  ;;  %v1874_v24 = vrot.slane %v1873_v10, 4  ;;  %v1881_v12 = vshrl.u32 %v4745_v50, 16  ;;  %v1884_v34 = vshll.u32 %v4745_v50, 16  ;;  %v5512_v37 = vld [vmem:[%s5605_s6 + $0xb8] sm:$0xf] }
 0x22e   : > { %v5357_v15 = vpop.eup %5356  ;;  %4474 = vst.msk [vmem:[%s6778_s27 + $0xc] sm:$0xf] %vm4470_vm7, %v4441_v52  ;;  %v4194_v5 = vmul.f32 1.442695, %v4156_v8  ;;  %v3864_v61 = vadd.f32 %v3794_v62, %v3639_v21  ;;  %v6914_v21 = vld [vmem:[%s5605_s6 + $0xc4] sm:$0xf]  ;;  %v5241_v22 = vunpack.c.h.bf16 %v6868_v33  ;;  %v3935_v39 = vpack.c.b16 %v3916_v11, %v3915_v56 }
 0x22f   : > { %v5359_v32 = vpop.eup %5358  ;;  %v4251_v49 = vadd.f32 1.0, %v5357_v15  ;;  %v3245_v30 = vpack.c.b16 %v3227_v60, %v3226_v27  ;;  %v1483_v18 = vrot.slane %v5512_v37, 5  ;;  %v6919_v52 = vunpack.c.l.b16 %v1869_v40 }
 0x230   : > { %v4314_v13 = vmul.f32 %v5359_v32, %v6814_v3  ;;  %5360 = vpow2.f32 %v4194_v5  ;;  %v4089_v0 = vadd.f32 %v4019_v23, %v3864_v61  ;;  %v3572_v4 = vpop.f32.mrf.mxu2  ;;  %v2087_v3 = vrot.slane %v2085_v59, 4  ;;  %v4699_v23 = vld [vmem:[%s5605_s6 + $0xb4] sm:$0xe] }
 0x231   : > { %5362 = vrcp.f32 %v4251_v49  ;;  %v3640_v44 = vadd.f32 %v3572_v4, %v3399_v29  ;;  %v6923_v8 = vsel %vm5800_vm6, %v4794_v45, %v2085_v59  ;;  %v1883_v33 = vrot.slane %v1881_v12, 4  ;;  %v5218_v4 = vld [vmem:[%s5605_s6 + $0xb4] sm:$0xff] }
 0x232   : > { %v4410_v7 = vadd.f32 %v5240_v26, %v4314_v13  ;;  %v6910_v36 = vadd.f32 %v6654_v1, %v4089_v0  ;;  %5145 = vmatmul.msk.bf16.gmra.mxu3 %vm2162_vm3, %v3710_v51  ;;  %v1886_v56 = vrot.slane %v1884_v34, 5  ;;  %v1890_v11 = vshll.u32 %v6914_v21, 16  ;;  %v6942_v13 = vld [vmem:[%s6707_s24 + $0x18] sm:$0xff]  }
 0x233   : > { %v1894_v10 = vshrl.u32 %v6914_v21, 16  ;;  %v1879_v45 = vsel %vm5617_vm2, %v1874_v24, %v1878_v2  ;;  %v6936_v59 = vsel %vm5800_vm6, %v2087_v3, %v2088_v38  ;;  %v3400_v50 = vadd.f32 %v3333_v53, %v6186_v20  ;;  %v5513_v38 = vld [vmem:[%s5605_s6 + $0xbc] sm:$0x1] }
 0x234   : > { %v4442_v63 = vpack.c.bf16 %v4410_v7, %v4410_v7  ;;  %v4157_v26 = vsub.f32 0.0, %v6910_v36  ;;  %v4022_v55 = vpop.f32.mrf.mxu0  ;;  %v4715_v32 = vrot.slane %v4699_v23, 9  ;;  %v1485_v49 = vrot.slane %v1483_v18, 4 }
 0x235   : > { %v3797_v62 = vpop.f32.mrf.mxu3  ;;  %v6926_v51 = vpop.f32.mrf.mxu1  ;;  %v1486_v29 = vrot.slane %v5513_v38, 5  ;;  %v1887_v24 = vor.u32 %v1886_v56, %v1883_v33  ;;  %v1892_v12 = vrot.slane %v1890_v11, 5  ;;  %v1896_v20 = vrot.slane %v1894_v10, 4 }
 0x236   : > { %v5361_v15 = vpop.eup %5360  ;;  %4475 = vst.msk [vmem:[%s6778_s27 + $0x10] sm:$0xf] %vm4470_vm7, %v4442_v63  ;;  %v4196_v5 = vmul.f32 1.442695, %v4157_v26  ;;  %v3865_v61 = vadd.f32 %v3797_v62, %v3640_v44  ;;  %v3693_v7 = vunpack.c.l.b16 %v1879_v45  ;;  %v6951_v44 = vld [vmem:[%s5605_s6 + $0xc8] sm:$0x1]  ;;  %v5244_v3 = vunpack.c.l.bf16 %v6942_v13 }
 0x237   : > { %v5363_v27 = vpop.eup %5362  ;;  %v4252_v60 = vadd.f32 1.0, %v5361_v15  ;;  %5165 = vmatmul.msk.bf16.gmra.mxu0 %vm2162_vm3, %v3935_v39  ;;  %v1484_v39 = vsel %vm5800_vm6, %v4715_v32, %v1483_v18  ;;  %v3917_v26 = vunpack.c.l.b16 %v6923_v8  ;;  %v3918_v62 = vunpack.c.l.b16 %v6936_v59 }
 0x238   : > { %v4315_v40 = vmul.f32 %v5363_v27, %v6841_v46  ;;  %5364 = vpow2.f32 %v4196_v5  ;;  %v4090_v2 = vadd.f32 %v4022_v55, %v3865_v61  ;;  %v3574_v0 = vpop.f32.mrf.mxu2  ;;  %5042 = vmatmul.msk.bf16.gmra.mxu1 %vm2162_vm3, %v3245_v30  ;;  %v4779_v55 = vld [vmem:[%s5605_s6 + $0xc0] sm:$0xe]  ;;  %v1888_v56 = vrot.slane %v1887_v24, 4 }
 0x239   : > { %5366 = vrcp.f32 %v4252_v60  ;;  %v3641_v46 = vadd.f32 %v3574_v0, %v3400_v50  ;;  %v1897_v11 = vor.u32 %v1896_v20, %v1892_v12  ;;  %v1900_v18 = vshll.u32 %v6951_v44, 16  ;;  %v4747_v20 = vld [vmem:[%s5605_s6 + $0xcc] sm:$0xf] }
 0x23a   : > { %v4411_v53 = vadd.f32 %v5241_v22, %v4315_v40  ;;  %v6948_v34 = vadd.f32 %v6654_v1, %v4090_v2  ;;  %v1487_v22 = vsel %vm5800_vm6, %v1485_v49, %v1486_v29  ;;  %v3711_v8 = vpack.c.b16 %v3693_v7, %v6919_v52  ;;  %v7194_v40 = vld [vmem:[#allocation2_spill] sm:$0xff] }
 0x23b   : > { %v3228_v61 = vunpack.c.l.b16 %v1484_v39  ;;  %v3229_v60 = vunpack.c.l.b16 %v1487_v22  ;;  %v4795_v50 = vrot.slane %v4779_v55, 9  ;;  %v2092_v59 = vrot.slane %v6914_v21, 5  ;;  %v5514_v7 = vld [vmem:[%s5605_s6 + $0xc4] sm:$0xf]  ;;  %v6982_v39 = vld [vmem:[%s5605_s6 + $0xd0] sm:$0xf] }
 0x23c   : > { %v4443_v30 = vpack.c.bf16 %v4411_v53, %v4411_v53  ;;  %v4158_v37 = vsub.f32 0.0, %v6948_v34  ;;  %v4024_v63 = vpop.f32.mrf.mxu0  ;;  %v3401_v2 = vadd.f32 %v6926_v51, %v7194_v40  ;;  %v1893_v52 = vsel %vm5617_vm2, %v1888_v56, %v1892_v12  ;;  %v4700_v22 = vld [vmem:[%s5605_s6 + $0xc0] sm:$0xe] }
 0x23d   : > { %v3799_v23 = vpop.f32.mrf.mxu3  ;;  %5126 = vmatmul.msk.bf16.gmra.mxu2 %vm2162_vm3, %v5218_v4  ;;  %v3338_v33 = vpop.f32.mrf.mxu1  ;;  %v1898_v38 = vrot.slane %v1897_v11, 4  ;;  %v1902_v29 = vrot.slane %v1900_v18, 5  ;;  %v5245_v24 = vunpack.c.h.bf16 %v6942_v13  ;;  %v3936_v51 = vpack.c.b16 %v3918_v62, %v3917_v26 }
 0x23e   : > { %v5365_v10 = vpop.eup %5364  ;;  %4476 = vst.msk [vmem:[%s6778_s27 + $0x14] sm:$0xf] %vm4470_vm7, %v4443_v30  ;;  %v4198_v15 = vmul.f32 1.442695, %v4158_v37  ;;  %v3866_v5 = vadd.f32 %v3799_v23, %v3641_v46  ;;  %v3246_v53 = vpack.c.b16 %v3229_v60, %v3228_v61  ;;  %v2095_v46 = vrot.slane %v6951_v44, 5 }
 0x23f   : > { %v5367_v45 = vpop.eup %5366  ;;  %v4253_v27 = vadd.f32 1.0, %v5365_v10  ;;  %v1490_v12 = vrot.slane %v5514_v7, 5  ;;  %v6985_v37 = vunpack.c.l.b16 %v1893_v52  ;;  %v1903_v44 = vsel %vm5617_vm2, %v1898_v38, %v1902_v29  ;;  %v7009_v38 = vld [vmem:[%s6707_s24 + $0x20] sm:$0xff]  }
 0x240   : > { %v4316_v32 = vmul.f32 %v5367_v45, %v6886_v58  ;;  %5368 = vpow2.f32 %v4198_v15  ;;  %v4091_v49 = vadd.f32 %v4024_v63, %v3866_v5  ;;  %v3577_v0 = vpop.f32.mrf.mxu2  ;;  %v6989_v63 = vsel %vm5800_vm6, %v4795_v50, %v2092_v59 }
 0x241   : > { %5370 = vrcp.f32 %v4253_v27  ;;  %v3642_v21 = vadd.f32 %v3577_v0, %v3401_v2  ;;  %v2094_v23 = vrot.slane %v2092_v59, 4  ;;  %v1905_v62 = vshrl.u32 %v4747_v20, 16 }
 0x242   : > { %v4412_v4 = vadd.f32 %v5244_v3, %v4316_v32  ;;  %v6975_v58 = vadd.f32 %v6654_v1, %v4091_v49  ;;  %5146 = vmatmul.msk.bf16.gmra.mxu3 %vm2162_vm3, %v3711_v8  ;;  %v1908_v56 = vshll.u32 %v4747_v20, 16  ;;  %v3402_v15 = vadd.f32 %v3338_v33, %v6233_v42  ;;  %v5515_v42 = vld [vmem:[%s5605_s6 + $0xc8] sm:$0x1]  ;;  %v5219_v49 = vld [vmem:[%s5605_s6 + $0xc0] sm:$0xff] }
 0x243   : > { %v1914_v5 = vshll.u32 %v6982_v39, 16  ;;  %v4716_v45 = vrot.slane %v4700_v22, 9  ;;  %v1492_v27 = vrot.slane %v1490_v12, 4  ;;  %v1918_v60 = vshrl.u32 %v6982_v39, 16 }
 0x244   : > { %v4444_v3 = vpack.c.bf16 %v4412_v4, %v4412_v4  ;;  %v4159_v13 = vsub.f32 0.0, %v6975_v58  ;;  %v4027_v30 = vpop.f32.mrf.mxu0  ;;  %v1493_v33 = vrot.slane %v5515_v42, 5  ;;  %v3695_v40 = vunpack.c.l.b16 %v1903_v44 }
 0x245   : > { %v3802_v26 = vpop.f32.mrf.mxu3  ;;  %v6992_v55 = vpop.f32.mrf.mxu1  ;;  %v2096_v2 = vsel %vm5800_vm6, %v2094_v23, %v2095_v46  ;;  %v1907_v0 = vrot.slane %v1905_v62, 4  ;;  %v1910_v4 = vrot.slane %v1908_v56, 5  ;;  %v7016_v20 = vrot.slane %v1914_v5, 5 }
 0x246   : > { %v5369_v11 = vpop.eup %5368  ;;  %4477 = vst.msk [vmem:[%s6778_s27 + $0x18] sm:$0xf] %vm4470_vm7, %v4444_v3  ;;  %v4200_v18 = vmul.f32 1.442695, %v4159_v13  ;;  %v3867_v10 = vadd.f32 %v3802_v26, %v3642_v21  ;;  %v1491_v21 = vsel %vm5800_vm6, %v4716_v45, %v1490_v12  ;;  %v7022_v3 = vld [vmem:[%s5605_s6 + $0xd4] sm:$0x1]  ;;  %v5248_v13 = vunpack.c.l.bf16 %v7009_v38 }
 0x247   : > { %v5371_v8 = vpop.eup %5370  ;;  %v4254_v61 = vadd.f32 1.0, %v5369_v11  ;;  %5166 = vmatmul.msk.bf16.gmra.mxu0 %vm2162_vm3, %v3936_v51  ;;  %v1920_v51 = vrot.slane %v1918_v60, 4  ;;  %v3712_v12 = vpack.c.b16 %v3695_v40, %v6985_v37  ;;  %v3919_v22 = vunpack.c.l.b16 %v6989_v63 }
 0x248   : > { %v4317_v50 = vmul.f32 %v5371_v8, %v6910_v36  ;;  %5372 = vpow2.f32 %v4200_v18  ;;  %v4092_v59 = vadd.f32 %v4027_v30, %v3867_v10  ;;  %v3579_v32 = vpop.f32.mrf.mxu2  ;;  %5043 = vmatmul.msk.bf16.gmra.mxu1 %vm2162_vm3, %v3246_v53  ;;  %v3920_v26 = vunpack.c.l.b16 %v2096_v2 }
 0x249   : > { %5374 = vrcp.f32 %v4254_v61  ;;  %v3643_v29 = vadd.f32 %v3579_v32, %v3402_v15  ;;  %v3230_v11 = vunpack.c.l.b16 %v1491_v21  ;;  %v1911_v18 = vor.u32 %v1910_v4, %v1907_v0 }
 0x24a   : > { %v4413_v52 = vadd.f32 %v5245_v24, %v4317_v50  ;;  %v7012_v36 = vadd.f32 %v6654_v1, %v4092_v59  ;;  %v1494_v24 = vsel %vm5800_vm6, %v1492_v27, %v1493_v33  ;;  %v1921_v8 = vor.u32 %v1920_v51, %v7016_v20 }
 0x24b   : > { %v3231_v5 = vunpack.c.l.b16 %v1494_v24  ;;  %v1924_v61 = vshll.u32 %v7022_v3, 16  ;;  %v3403_v45 = vadd.f32 %v6992_v55, %v6244_v43  ;;  %v1912_v32 = vrot.slane %v1911_v18, 4  ;;  %v5298_v18 = vld [vmem:[%s6707_s24 + $0x28] sm:$0xff]  }
 0x24c   : > { %v4445_v53 = vpack.c.bf16 %v4413_v52, %v4413_v52  ;;  %v4160_v7 = vsub.f32 0.0, %v7012_v36  ;;  %v4029_v46 = vpop.f32.mrf.mxu0  ;;  %v3937_v42 = vpack.c.b16 %v3920_v26, %v3919_v22  ;;  %v1922_v33 = vrot.slane %v1921_v8, 4  ;;  %v7195_v22 = vld [vmem:[#allocation3_spill] sm:$0xff] }
 0x24d   : > { %v3804_v30 = vpop.f32.mrf.mxu3  ;;  %5127 = vmatmul.msk.bf16.gmra.mxu2 %vm2162_vm3, %v5219_v49  ;;  %v3343_v44 = vpop.f32.mrf.mxu1  ;;  %v1926_v49 = vrot.slane %v1924_v61, 5  ;;  %v2099_v40 = vrot.slane %v6982_v39, 5  ;;  %v3247_v0 = vpack.c.b16 %v3231_v5, %v3230_v11  ;;  %v5249_v52 = vunpack.c.h.bf16 %v7009_v38 }
 0x24e   : > { %v5373_v23 = vpop.eup %5372  ;;  %4478 = vst.msk [vmem:[%s6778_s27 + $0x1c] sm:$0xf] %vm4470_vm7, %v4445_v53  ;;  %v4202_v62 = vmul.f32 1.442695, %v4160_v7  ;;  %v3868_v56 = vadd.f32 %v3804_v30, %v3643_v29  ;;  %v1917_v53 = vsel %vm5617_vm2, %v1912_v32, %v7016_v20  ;;  %v3404_v26 = vadd.f32 %v3343_v44, %v7195_v22  ;;  %v5220_v20 = vld [vmem:[%s5605_s6 + $0xcc] sm:$0xff] }
 0x24f   : > { %v5375_v10 = vpop.eup %5374  ;;  %v4255_v15 = vadd.f32 1.0, %v5373_v23  ;;  %v1927_v38 = vsel %vm5617_vm2, %v1922_v33, %v1926_v49  ;;  %v2101_v24 = vrot.slane %v2099_v40, 4 }
 0x250   : > { %v4318_v37 = vmul.f32 %v5375_v10, %v6948_v34  ;;  %5376 = vpow2.f32 %v4202_v62  ;;  %v4093_v63 = vadd.f32 %v4029_v46, %v3868_v56  ;;  %v3582_v27 = vpop.f32.mrf.mxu2  ;;  %v4780_v34 = vld [vmem:[%s5605_s6 + $0xcc] sm:$0xe]  ;;  %v3696_v62 = vunpack.c.l.b16 %v1917_v53 }
 0x251   : > { %5378 = vrcp.f32 %v4255_v15  ;;  %v3644_v59 = vadd.f32 %v3582_v27, %v3403_v45  ;;  %v4796_v39 = vrot.slane %v4780_v34, 9  ;;  %v3697_v11 = vunpack.c.l.b16 %v1927_v38 }
 0x252   : > { %v4414_v60 = vadd.f32 %v5248_v13, %v4318_v37  ;;  %v7036_v50 = vadd.f32 %v6654_v1, %v4093_v63  ;;  %5147 = vmatmul.msk.bf16.gmra.mxu3 %vm2162_vm3, %v3712_v12  ;;  %v2102_v13 = vrot.slane %v7022_v3, 5  ;;  %v5252_v45 = vunpack.c.l.bf16 %v5298_v18 }
 0x253   : > { %v2100_v5 = vsel %vm5800_vm6, %v4796_v39, %v2099_v40  ;;  %v5253_v39 = vunpack.c.h.bf16 %v5298_v18 }
 0x254   : > { %v4446_v2 = vpack.c.bf16 %v4414_v60, %v4414_v60  ;;  %v4161_v43 = vsub.f32 0.0, %v7036_v50  ;;  %v4032_v55 = vpop.f32.mrf.mxu0  ;;  %v2103_v8 = vsel %vm5800_vm6, %v2101_v24, %v2102_v13  ;;  %v3921_v33 = vunpack.c.l.b16 %v2100_v5 }
 0x255   : > { %v3807_v1 = vpop.f32.mrf.mxu3  ;;  %v3346_v29 = vpop.f32.mrf.mxu1  ;;  %v3922_v49 = vunpack.c.l.b16 %v2103_v8 }
 0x256   : > { %v5377_v4 = vpop.eup %5376  ;;  %4479 = vst.msk [vmem:[%s6778_s27 + $0x20] sm:$0xf] %vm4470_vm7, %v4446_v2  ;;  %v4204_v21 = vmul.f32 1.442695, %v4161_v43  ;;  %v3869_v51 = vadd.f32 %v3807_v1, %v3644_v59  ;;  %v3713_v59 = vpack.c.b16 %v3697_v11, %v3696_v62  ;;  %v3405_v40 = vadd.f32 %v3346_v29, %v6280_v17 }
 0x257   : > { %v5379_v7 = vpop.eup %5378  ;;  %v4256_v46 = vadd.f32 1.0, %v5377_v4  ;;  %5167 = vmatmul.msk.bf16.gmra.mxu0 %vm2162_vm3, %v3937_v42 }
 0x258   : > { %v4319_v30 = vmul.f32 %v5379_v7, %v6975_v58  ;;  %5380 = vpow2.f32 %v4204_v21  ;;  %v4094_v12 = vadd.f32 %v4032_v55, %v3869_v51  ;;  %v3584_v23 = vpop.f32.mrf.mxu2  ;;  %5044 = vmatmul.msk.bf16.gmra.mxu1 %vm2162_vm3, %v3247_v0 }
 0x259   : > { %5382 = vrcp.f32 %v4256_v46  ;;  %v3645_v58 = vadd.f32 %v3584_v23, %v3404_v26  ;;  %v5299_v23 = vld [vmem:[%s6707_s24 + $0x30] sm:$0xff]  }
 0x25a   : > { %v4415_v56 = vadd.f32 %v5249_v52, %v4319_v30  ;;  %v7062_v3 = vadd.f32 %v7059_v31, %v4094_v12  ;;  %v3938_v52 = vpack.c.b16 %v3922_v49, %v3921_v33 }
 0x25c   : > { %v4447_v44 = vpack.c.bf16 %v4415_v56, %v4415_v56  ;;  %v4162_v10 = vsub.f32 0.0, %v7062_v3  ;;  %v4034_v15 = vpop.f32.mrf.mxu0 }
 0x25d   : > { %v3809_v61 = vpop.f32.mrf.mxu3  ;;  %5128 = vmatmul.msk.bf16.gmra.mxu2 %vm2162_vm3, %v5220_v20  ;;  %v3348_v37 = vpop.f32.mrf.mxu1 }
 0x25e   : > { %v5381_v63 = vpop.eup %5380  ;;  %4480 = vst.msk [vmem:[%s6778_s27 + $0x24] sm:$0xf] %vm4470_vm7, %v4447_v44  ;;  %v4206_v27 = vmul.f32 1.442695, %v4162_v10  ;;  %v3870_v60 = vadd.f32 %v3809_v61, %v3645_v58  ;;  %v3406_v13 = vadd.f32 %v3348_v37, %v6304_v28 }
 0x25f   : > { %v5383_v32 = vpop.eup %5382  ;;  %v4257_v42 = vadd.f32 1.0, %v5381_v63 }
 0x260   : > { %v4320_v34 = vmul.f32 %v5383_v32, %v7012_v36  ;;  %5384 = vpow2.f32 %v4206_v27  ;;  %v4095_v19 = vadd.f32 %v4034_v15, %v3870_v60  ;;  %v3587_v2 = vpop.f32.mrf.mxu2 }
 0x261   : > { %5386 = vrcp.f32 %v4257_v42  ;;  %v3646_v0 = vadd.f32 %v3587_v2, %v3405_v40 }
 0x262   : > { %v4416_v43 = vadd.f32 %v5252_v45, %v4320_v34  ;;  %v4131_v55 = vadd.f32 %v7059_v31, %v4095_v19  ;;  %5148 = vmatmul.msk.bf16.gmra.mxu3 %vm2162_vm3, %v3713_v59 }
 0x264   : > { %v4448_v1 = vpack.c.bf16 %v4416_v43, %v4416_v43  ;;  %v4163_v4 = vsub.f32 0.0, %v4131_v55  ;;  %v4037_v21 = vpop.f32.mrf.mxu0 }
 0x265   : > { %v3812_v51 = vpop.f32.mrf.mxu3  ;;  %v3351_v53 = vpop.f32.mrf.mxu1 }
 0x266   : > { %v5385_v36 = vpop.eup %5384  ;;  %4481 = vst.msk [vmem:[%s6778_s27 + $0x28] sm:$0xf] %vm4470_vm7, %v4448_v1  ;;  %v4208_v17 = vmul.f32 1.442695, %v4163_v4  ;;  %v3871_v29 = vadd.f32 %v3812_v51, %v3646_v0  ;;  %v3407_v61 = vadd.f32 %v3351_v53, %v6323_v25  ;;  %v5300_v51 = vld [vmem:[%s6707_s24 + $0x38] sm:$0xff]  }
 0x267   : > { %v5387_v7 = vpop.eup %5386  ;;  %v4258_v46 = vadd.f32 1.0, %v5385_v36  ;;  %5168 = vmatmul.msk.bf16.gmra.mxu0 %vm2162_vm3, %v3938_v52 }
 0x268   : > { %v4321_v38 = vmul.f32 %v5387_v7, %v7036_v50  ;;  %5388 = vpow2.f32 %v4208_v17  ;;  %v4096_v24 = vadd.f32 %v4037_v21, %v3871_v29  ;;  %v3589_v30 = vpop.f32.mrf.mxu2  ;;  %v5256_v50 = vunpack.c.l.bf16 %v5299_v23 }
 0x269   : > { %5390 = vrcp.f32 %v4258_v46  ;;  %v3647_v26 = vadd.f32 %v3589_v30, %v3406_v13 }
 0x26a   : > { %v4417_v12 = vadd.f32 %v5253_v39, %v4321_v38  ;;  %v4132_v22 = vadd.f32 %v7059_v31, %v4096_v24 }
 0x26c   : > { %v4449_v20 = vpack.c.bf16 %v4417_v12, %v4417_v12  ;;  %v4164_v62 = vsub.f32 0.0, %v4132_v22  ;;  %v4039_v56 = vpop.f32.mrf.mxu0 }
 0x26d   : > { %v3814_v58 = vpop.f32.mrf.mxu3  ;;  %v3353_v11 = vpop.f32.mrf.mxu1 }
 0x26e   : > { %v5389_v18 = vpop.eup %5388  ;;  %4482 = vst.msk [vmem:[%s6778_s27 + $0x2c] sm:$0xf] %vm4470_vm7, %v4449_v20  ;;  %v4210_v44 = vmul.f32 1.442695, %v4164_v62  ;;  %v3872_v10 = vadd.f32 %v3814_v58, %v3647_v26  ;;  %v3408_v0 = vadd.f32 %v3353_v11, %v6347_v57 }
 0x26f   : > { %v5391_v15 = vpop.eup %5390  ;;  %v4259_v28 = vadd.f32 1.0, %v5389_v18 }
 0x270   : > { %v4322_v5 = vmul.f32 %v5391_v15, %v7062_v3  ;;  %5392 = vpow2.f32 %v4210_v44  ;;  %v4097_v8 = vadd.f32 %v4039_v56, %v3872_v10  ;;  %v3592_v37 = vpop.f32.mrf.mxu2  ;;  %v5257_v3 = vunpack.c.h.bf16 %v5299_v23 }
 0x271   : > { %5394 = vrcp.f32 %v4259_v28  ;;  %v3648_v27 = vadd.f32 %v3592_v37, %v3407_v61 }
 0x272   : > { %v4418_v63 = vadd.f32 %v5256_v50, %v4322_v5  ;;  %v4133_v45 = vadd.f32 %v7059_v31, %v4097_v8 }
 0x274   : > { %v4450_v60 = vpack.c.bf16 %v4418_v63, %v4418_v63  ;;  %v4165_v59 = vsub.f32 0.0, %v4133_v45  ;;  %v4042_v32 = vpop.f32.mrf.mxu0 }
 0x275   : > { %v3817_v42 = vpop.f32.mrf.mxu3  ;;  %v3356_v33 = vpop.f32.mrf.mxu1 }
 0x276   : > { %v5393_v49 = vpop.eup %5392  ;;  %4483 = vst.msk [vmem:[%s6778_s27 + $0x30] sm:$0xf] %vm4470_vm7, %v4450_v60  ;;  %v4212_v34 = vmul.f32 1.442695, %v4165_v59  ;;  %v3873_v19 = vadd.f32 %v3817_v42, %v3648_v27  ;;  %v3409_v12 = vadd.f32 %v3356_v33, %v6366_v48  ;;  %v5301_v59 = vld [vmem:[%s6707_s24 + $0x40] sm:$0xff]  }
 0x277   : > { %v5395_v40 = vpop.eup %5394  ;;  %v4260_v25 = vadd.f32 1.0, %v5393_v49 }
 0x278   : > { %v4323_v2 = vmul.f32 %v5395_v40, %v4131_v55  ;;  %5396 = vpow2.f32 %v4212_v34  ;;  %v4098_v43 = vadd.f32 %v4042_v32, %v3873_v19  ;;  %v3594_v52 = vpop.f32.mrf.mxu2  ;;  %v5260_v55 = vunpack.c.l.bf16 %v5300_v51 }
 0x279   : > { %5398 = vrcp.f32 %v4260_v25  ;;  %v3649_v21 = vadd.f32 %v3594_v52, %v3408_v0 }
 0x27a   : > { %v4419_v1 = vadd.f32 %v5257_v3, %v4323_v2  ;;  %v4134_v4 = vadd.f32 %v7059_v31, %v4098_v43 }
 0x27c   : > { %v4451_v53 = vpack.c.bf16 %v4419_v1, %v4419_v1  ;;  %v4166_v36 = vsub.f32 0.0, %v4134_v4  ;;  %v4044_v39 = vpop.f32.mrf.mxu0 }
 0x27d   : > { %v3819_v17 = vpop.f32.mrf.mxu3  ;;  %v3358_v29 = vpop.f32.mrf.mxu1 }
 0x27e   : > { %v5397_v7 = vpop.eup %5396  ;;  %4484 = vst.msk [vmem:[%s6778_s27 + $0x34] sm:$0xf] %vm4470_vm7, %v4451_v53  ;;  %v4214_v46 = vmul.f32 1.442695, %v4166_v36  ;;  %v3874_v38 = vadd.f32 %v3819_v17, %v3649_v21  ;;  %v3410_v61 = vadd.f32 %v3358_v29, %v6390_v14 }
 0x27f   : > { %v5399_v24 = vpop.eup %5398  ;;  %v4261_v57 = vadd.f32 1.0, %v5397_v7 }
 0x280   : > { %v4324_v13 = vmul.f32 %v5399_v24, %v4132_v22  ;;  %5400 = vpow2.f32 %v4214_v46  ;;  %v4099_v30 = vadd.f32 %v4044_v39, %v3874_v38  ;;  %v3597_v26 = vpop.f32.mrf.mxu2  ;;  %v5261_v22 = vunpack.c.h.bf16 %v5300_v51 }
 0x281   : > { %5402 = vrcp.f32 %v4261_v57  ;;  %v3650_v62 = vadd.f32 %v3597_v26, %v3409_v12 }
 0x282   : > { %v4420_v23 = vadd.f32 %v5260_v55, %v4324_v13  ;;  %v4135_v20 = vadd.f32 %v7059_v31, %v4099_v30 }
 0x284   : > { %v4452_v56 = vpack.c.bf16 %v4420_v23, %v4420_v23  ;;  %v4167_v58 = vsub.f32 0.0, %v4135_v20  ;;  %v4047_v11 = vpop.f32.mrf.mxu0 }
 0x285   : > { %v3822_v18 = vpop.f32.mrf.mxu3  ;;  %v3361_v50 = vpop.f32.mrf.mxu1 }
 0x286   : > { %v5401_v44 = vpop.eup %5400  ;;  %4485 = vst.msk [vmem:[%s6778_s27 + $0x38] sm:$0xf] %vm4470_vm7, %v4452_v56  ;;  %v4216_v10 = vmul.f32 1.442695, %v4167_v58  ;;  %v3875_v15 = vadd.f32 %v3822_v18, %v3650_v62  ;;  %v3411_v0 = vadd.f32 %v3361_v50, %v6409_v54  ;;  %v5302_v62 = vld [vmem:[%s6707_s24 + $0x48] sm:$0xff]  }
 0x287   : > { %v5403_v28 = vpop.eup %5402  ;;  %v4262_v48 = vadd.f32 1.0, %v5401_v44 }
 0x288   : > { %v4325_v5 = vmul.f32 %v5403_v28, %v4133_v45  ;;  %5404 = vpow2.f32 %v4216_v10  ;;  %v4100_v8 = vadd.f32 %v4047_v11, %v3875_v15  ;;  %v3599_v37 = vpop.f32.mrf.mxu2  ;;  %v5264_v45 = vunpack.c.l.bf16 %v5301_v59 }
 0x289   : > { %5406 = vrcp.f32 %v4262_v48  ;;  %v3651_v60 = vadd.f32 %v3599_v37, %v3410_v61 }
 0x28a   : > { %v4421_v63 = vadd.f32 %v5261_v22, %v4325_v5  ;;  %v4136_v27 = vadd.f32 %v7059_v31, %v4100_v8 }
 0x28c   : > { %v4453_v32 = vpack.c.bf16 %v4421_v63, %v4421_v63  ;;  %v4168_v42 = vsub.f32 0.0, %v4136_v27  ;;  %v4049_v33 = vpop.f32.mrf.mxu0 }
 0x28d   : > { %v3824_v49 = vpop.f32.mrf.mxu3  ;;  %v3363_v3 = vpop.f32.mrf.mxu1 }
 0x28e   : > { %v5405_v34 = vpop.eup %5404  ;;  %4486 = vst.msk [vmem:[%s6778_s27 + $0x3c] sm:$0xf] %vm4470_vm7, %v4453_v32  ;;  %v4218_v19 = vmul.f32 1.442695, %v4168_v42  ;;  %v3876_v40 = vadd.f32 %v3824_v49, %v3651_v60  ;;  %v3412_v13 = vadd.f32 %v3363_v3, %v6433_v6 }
 0x28f   : > { %v5407_v25 = vpop.eup %5406  ;;  %v4263_v14 = vadd.f32 1.0, %v5405_v34 }
 0x290   : > { %v4326_v2 = vmul.f32 %v5407_v25, %v4134_v4  ;;  %5408 = vpow2.f32 %v4218_v19  ;;  %v4101_v43 = vadd.f32 %v4049_v33, %v3876_v40  ;;  %v3602_v52 = vpop.f32.mrf.mxu2  ;;  %v5265_v4 = vunpack.c.h.bf16 %v5301_v59 }
 0x291   : > { %5410 = vrcp.f32 %v4263_v14  ;;  %v3652_v51 = vadd.f32 %v3602_v52, %v3411_v0  ;;  %v5303_v52 = vld [vmem:[%s6707_s24 + $0x50] sm:$0xff]  }
 0x292   : > { %v4422_v1 = vadd.f32 %v5264_v45, %v4326_v2  ;;  %v4137_v21 = vadd.f32 %v7059_v31, %v4101_v43 }
 0x294   : > { %v4454_v53 = vpack.c.bf16 %v4422_v1, %v4422_v1  ;;  %v4169_v36 = vsub.f32 0.0, %v4137_v21  ;;  %v4052_v39 = vpop.f32.mrf.mxu0 }
 0x295   : > { %v3827_v17 = vpop.f32.mrf.mxu3  ;;  %v3366_v29 = vpop.f32.mrf.mxu1 }
 0x296   : > { %v5409_v7 = vpop.eup %5408  ;;  %4487 = vst.msk [vmem:[%s6778_s27 + $0x40] sm:$0xf] %vm4470_vm7, %v4454_v53  ;;  %v4220_v55 = vmul.f32 1.442695, %v4169_v36  ;;  %v3877_v46 = vadd.f32 %v3827_v17, %v3652_v51  ;;  %v3413_v5 = vadd.f32 %v3366_v29, %v6452_v16 }
 0x297   : > { %v5411_v38 = vpop.eup %5410  ;;  %v4264_v54 = vadd.f32 1.0, %v5409_v7 }
 0x298   : > { %v4327_v24 = vmul.f32 %v5411_v38, %v4135_v20  ;;  %5412 = vpow2.f32 %v4220_v55  ;;  %v4102_v57 = vadd.f32 %v4052_v39, %v3877_v46  ;;  %v3604_v30 = vpop.f32.mrf.mxu2  ;;  %v5268_v20 = vunpack.c.l.bf16 %v5302_v62 }
 0x299   : > { %5414 = vrcp.f32 %v4264_v54  ;;  %v3653_v23 = vadd.f32 %v3604_v30, %v3412_v13 }
 0x29a   : > { %v4423_v12 = vadd.f32 %v5265_v4, %v4327_v24  ;;  %v4138_v26 = vadd.f32 %v7059_v31, %v4102_v57 }
 0x29c   : > { %v4455_v56 = vpack.c.bf16 %v4423_v12, %v4423_v12  ;;  %v4170_v58 = vsub.f32 0.0, %v4138_v26  ;;  %v4054_v11 = vpop.f32.mrf.mxu0 }
 0x29d   : > { %v3829_v18 = vpop.f32.mrf.mxu3  ;;  %v3368_v50 = vpop.f32.mrf.mxu1 }
 0x29e   : > { %v5413_v44 = vpop.eup %5412  ;;  %4488 = vst.msk [vmem:[%s6778_s27 + $0x44] sm:$0xf] %vm4470_vm7, %v4455_v56  ;;  %v4222_v22 = vmul.f32 1.442695, %v4170_v58  ;;  %v3878_v10 = vadd.f32 %v3829_v18, %v3653_v23  ;;  %v3414_v25 = vadd.f32 %v3368_v50, %v6476_v41 }
 0x29f   : > { %v5415_v15 = vpop.eup %5414  ;;  %v4265_v6 = vadd.f32 1.0, %v5413_v44 }
 0x2a0   : > { %v4328_v28 = vmul.f32 %v5415_v15, %v4136_v27  ;;  %5416 = vpow2.f32 %v4222_v22  ;;  %v4103_v48 = vadd.f32 %v4054_v11, %v3878_v10  ;;  %v3607_v8 = vpop.f32.mrf.mxu2  ;;  %v5269_v27 = vunpack.c.h.bf16 %v5302_v62  ;;  %v7196_v22 = vld [vmem:[#allocation4_spill] sm:$0xff] }
 0x2a1   : > { %5418 = vrcp.f32 %v4265_v6  ;;  %v3654_v63 = vadd.f32 %v3607_v8, %v3413_v5  ;;  %v5304_v5 = vld [vmem:[%s6707_s24 + $0x58] sm:$0xff]  }
 0x2a2   : > { %v4424_v61 = vadd.f32 %v5268_v20, %v4328_v28  ;;  %v4139_v37 = vadd.f32 %v7059_v31, %v4103_v48 }
 0x2a4   : > { %v4456_v60 = vpack.c.bf16 %v4424_v61, %v4424_v61  ;;  %v4171_v59 = vsub.f32 0.0, %v4139_v37  ;;  %v4057_v32 = vpop.f32.mrf.mxu0 }
 0x2a5   : > { %v3832_v42 = vpop.f32.mrf.mxu3  ;;  %v3371_v33 = vpop.f32.mrf.mxu1 }
 0x2a6   : > { %v5417_v49 = vpop.eup %5416  ;;  %4489 = vst.msk [vmem:[%s6778_s27 + $0x48] sm:$0xf] %vm4470_vm7, %v4456_v60  ;;  %v4224_v3 = vmul.f32 1.442695, %v4171_v59  ;;  %v3879_v34 = vadd.f32 %v3832_v42, %v3654_v63  ;;  %v3415_v38 = vadd.f32 %v3371_v33, %v6495_v9 }
 0x2a7   : > { %v5419_v45 = vpop.eup %5418  ;;  %v4266_v16 = vadd.f32 1.0, %v5417_v49 }
 0x2a8   : > { %v4329_v19 = vmul.f32 %v5419_v45, %v4137_v21  ;;  %5420 = vpow2.f32 %v4224_v3  ;;  %v4104_v40 = vadd.f32 %v4057_v32, %v3879_v34  ;;  %v3609_v14 = vpop.f32.mrf.mxu2  ;;  %v5272_v21 = vunpack.c.l.bf16 %v5303_v52 }
 0x2a9   : > { %5422 = vrcp.f32 %v4266_v16  ;;  %v3655_v0 = vadd.f32 %v3609_v14, %v3414_v25 }
 0x2aa   : > { %v4425_v2 = vadd.f32 %v5269_v27, %v4329_v19  ;;  %v4140_v43 = vadd.f32 %v7059_v31, %v4104_v40 }
 0x2ac   : > { %v4457_v1 = vpack.c.bf16 %v4425_v2, %v4425_v2  ;;  %v4172_v51 = vsub.f32 0.0, %v4140_v43  ;;  %v4059_v53 = vpop.f32.mrf.mxu0 }
 0x2ad   : > { %v3834_v36 = vpop.f32.mrf.mxu3  ;;  %v3373_v39 = vpop.f32.mrf.mxu1 }
 0x2ae   : > { %v5421_v17 = vpop.eup %5420  ;;  %4490 = vst.msk [vmem:[%s6778_s27 + $0x4c] sm:$0xf] %vm4470_vm7, %v4457_v1  ;;  %v4226_v29 = vmul.f32 1.442695, %v4172_v51  ;;  %v3880_v7 = vadd.f32 %v3834_v36, %v3655_v0  ;;  %v3416_v10 = vadd.f32 %v3373_v39, %v7196_v22  ;;  %v5277_v51 = vunpack.c.h.bf16 %v5304_v5 }
 0x2af   : > { %v5423_v4 = vpop.eup %5422  ;;  %v4267_v41 = vadd.f32 1.0, %v5421_v17 }
 0x2b0   : > { %v4330_v55 = vmul.f32 %v5423_v4, %v4138_v26  ;;  %5424 = vpow2.f32 %v4226_v29  ;;  %v4105_v46 = vadd.f32 %v4059_v53, %v3880_v7  ;;  %v3612_v54 = vpop.f32.mrf.mxu2  ;;  %v5273_v26 = vunpack.c.h.bf16 %v5303_v52 }
 0x2b1   : > { %5426 = vrcp.f32 %v4267_v41  ;;  %v3656_v13 = vadd.f32 %v3612_v54, %v3415_v38 }
 0x2b2   : > { %v4426_v24 = vadd.f32 %v5272_v21, %v4330_v55  ;;  %v4141_v57 = vadd.f32 %v7059_v31, %v4105_v46  ;;  %v5305_v46 = vld [vmem:[%s6707_s24 + $0x60] sm:$0xff]  }
 0x2b4   : > { %v4458_v30 = vpack.c.bf16 %v4426_v24, %v4426_v24  ;;  %v4173_v12 = vsub.f32 0.0, %v4141_v57  ;;  %v4062_v23 = vpop.f32.mrf.mxu0 }
 0x2b5   : > { %v3837_v62 = vpop.f32.mrf.mxu3  ;;  %v3376_v56 = vpop.f32.mrf.mxu1 }
 0x2b6   : > { %v5425_v58 = vpop.eup %5424  ;;  %4491 = vst.msk [vmem:[%s6778_s27 + $0x50] sm:$0xf] %vm4470_vm7, %v4458_v30  ;;  %v4228_v11 = vmul.f32 1.442695, %v4173_v12  ;;  %v3881_v18 = vadd.f32 %v3837_v62, %v3656_v13  ;;  %v3417_v45 = vadd.f32 %v3376_v56, %v6536_v35  ;;  %v5280_v12 = vunpack.c.l.bf16 %v5305_v46 }
 0x2b7   : > { %v5427_v50 = vpop.eup %5426  ;;  %v4268_v9 = vadd.f32 1.0, %v5425_v58 }
 0x2b8   : > { %v4331_v44 = vmul.f32 %v5427_v50, %v4139_v37  ;;  %5428 = vpow2.f32 %v4228_v11  ;;  %v4106_v20 = vadd.f32 %v4062_v23, %v3881_v18  ;;  %v3614_v15 = vpop.f32.mrf.mxu2  ;;  %v5276_v37 = vunpack.c.l.bf16 %v5304_v5 }
 0x2b9   : > { %5430 = vrcp.f32 %v4268_v9  ;;  %v3657_v48 = vadd.f32 %v3614_v15, %v3416_v10 }
 0x2ba   : > { %v4427_v6 = vadd.f32 %v5273_v26, %v4331_v44  ;;  %v4142_v28 = vadd.f32 %v7059_v31, %v4106_v20  ;;  %v7197_v26 = vld [vmem:[#allocation5_spill] sm:$0xff] }
 0x2bc   : > { %v4459_v8 = vpack.c.bf16 %v4427_v6, %v4427_v6  ;;  %v4174_v61 = vsub.f32 0.0, %v4142_v28  ;;  %v4064_v63 = vpop.f32.mrf.mxu0 }
 0x2bd   : > { %v3839_v60 = vpop.f32.mrf.mxu3  ;;  %v3378_v59 = vpop.f32.mrf.mxu1 }
 0x2be   : > { %v5429_v32 = vpop.eup %5428  ;;  %4492 = vst.msk [vmem:[%s6778_s27 + $0x54] sm:$0xf] %vm4470_vm7, %v4459_v8  ;;  %v4230_v42 = vmul.f32 1.442695, %v4174_v61  ;;  %v3882_v33 = vadd.f32 %v3839_v60, %v3657_v48  ;;  %v3418_v29 = vadd.f32 %v3378_v59, %v6556_v47 }
 0x2bf   : > { %v5431_v49 = vpop.eup %5430  ;;  %v4269_v27 = vadd.f32 1.0, %v5429_v32  ;;  %v7198_v32 = vld [vmem:[#allocation6_spill] sm:$0xff] }
 0x2c0   : > { %v4332_v3 = vmul.f32 %v5431_v49, %v4140_v43  ;;  %5432 = vpow2.f32 %v4230_v42  ;;  %v4107_v34 = vadd.f32 %v4064_v63, %v3882_v33  ;;  %v3617_v16 = vpop.f32.mrf.mxu2 }
 0x2c1   : > { %5434 = vrcp.f32 %v4269_v27  ;;  %v3658_v25 = vadd.f32 %v3617_v16, %v3417_v45 }
 0x2c2   : > { %v4428_v19 = vadd.f32 %v5276_v37, %v4332_v3  ;;  %v4143_v40 = vadd.f32 %v7059_v31, %v4107_v34  ;;  %v5306_v34 = vld [vmem:[%s6707_s24 + $0x68] sm:$0xff]  }
 0x2c4   : > { %v4460_v14 = vpack.c.bf16 %v4428_v19, %v4428_v19  ;;  %v4175_v2 = vsub.f32 0.0, %v4143_v40  ;;  %v4067_v0 = vpop.f32.mrf.mxu0 }
 0x2c5   : > { %v3842_v52 = vpop.f32.mrf.mxu3  ;;  %v3381_v36 = vpop.f32.mrf.mxu1 }
 0x2c6   : > { %v5433_v1 = vpop.eup %5432  ;;  %4493 = vst.msk [vmem:[%s6778_s27 + $0x58] sm:$0xf] %vm4470_vm7, %v4460_v14  ;;  %v4232_v43 = vmul.f32 1.442695, %v4175_v2  ;;  %v3883_v53 = vadd.f32 %v3842_v52, %v3658_v25  ;;  %v3419_v11 = vadd.f32 %v3381_v36, %v7197_v26 }
 0x2c7   : > { %v5435_v39 = vpop.eup %5434  ;;  %v4270_v35 = vadd.f32 1.0, %v5433_v1 }
 0x2c8   : > { %v4333_v17 = vmul.f32 %v5435_v39, %v4141_v57  ;;  %5436 = vpow2.f32 %v4232_v43  ;;  %v4108_v21 = vadd.f32 %v4067_v0, %v3883_v53  ;;  %v3619_v7 = vpop.f32.mrf.mxu2  ;;  %v7199_v53 = vld [vmem:[#allocation7_spill] sm:$0xff] }
 0x2c9   : > { %5438 = vrcp.f32 %v4270_v35  ;;  %v3659_v55 = vadd.f32 %v3619_v7, %v3418_v29 }
 0x2ca   : > { %v4429_v4 = vadd.f32 %v5277_v51, %v4333_v17  ;;  %v4144_v41 = vadd.f32 %v7059_v31, %v4108_v21 }
 0x2cc   : > { %v4461_v38 = vpack.c.bf16 %v4429_v4, %v4429_v4  ;;  %v4176_v54 = vsub.f32 0.0, %v4144_v41  ;;  %v4069_v24 = vpop.f32.mrf.mxu0 }
 0x2cd   : > { %v3844_v13 = vpop.f32.mrf.mxu3  ;;  %v3383_v50 = vpop.f32.mrf.mxu1 }
 0x2ce   : > { %v5437_v30 = vpop.eup %5436  ;;  %4494 = vst.msk [vmem:[%s6778_s27 + $0x5c] sm:$0xf] %vm4470_vm7, %v4461_v38  ;;  %v4234_v57 = vmul.f32 1.442695, %v4176_v54  ;;  %v3884_v23 = vadd.f32 %v3844_v13, %v3659_v55  ;;  %v3420_v37 = vadd.f32 %v3383_v50, %v7198_v32 }
 0x2cf   : > { %v5439_v62 = vpop.eup %5438  ;;  %v4271_v56 = vadd.f32 1.0, %v5437_v30 }
 0x2d0   : > { %v4334_v47 = vmul.f32 %v5439_v62, %v4142_v28  ;;  %5440 = vpow2.f32 %v4234_v57  ;;  %v4109_v58 = vadd.f32 %v4069_v24, %v3884_v23  ;;  %v3622_v18 = vpop.f32.mrf.mxu2  ;;  %v5281_v28 = vunpack.c.h.bf16 %v5305_v46  ;;  %v7200_v23 = vld [vmem:[#allocation8_spill] sm:$0xff] }
 0x2d1   : > { %5442 = vrcp.f32 %v4271_v56  ;;  %v3660_v20 = vadd.f32 %v3622_v18, %v3419_v11  ;;  %v5307_v11 = vld [vmem:[%s6707_s24 + $0x70] sm:$0xff]  }
 0x2d2   : > { %v4430_v9 = vadd.f32 %v5280_v12, %v4334_v47  ;;  %v4145_v44 = vadd.f32 %v7059_v31, %v4109_v58  ;;  %v5289_v32 = vunpack.c.h.bf16 %v5307_v11 }
 0x2d4   : > { %v4462_v22 = vpack.c.bf16 %v4430_v9, %v4430_v9  ;;  %v4177_v10 = vsub.f32 0.0, %v4145_v44  ;;  %v4072_v15 = vpop.f32.mrf.mxu0 }
 0x2d5   : > { %v3847_v6 = vpop.f32.mrf.mxu3  ;;  %v3386_v3 = vpop.f32.mrf.mxu1 }
 0x2d6   : > { %v5441_v48 = vpop.eup %5440  ;;  %4495 = vst.msk [vmem:[%s6778_s27 + $0x60] sm:$0xf] %vm4470_vm7, %v4462_v22  ;;  %v4236_v5 = vmul.f32 1.442695, %v4177_v10  ;;  %v3885_v8 = vadd.f32 %v3847_v6, %v3660_v20  ;;  %v3421_v36 = vadd.f32 %v3386_v3, %v7199_v53  ;;  %v5288_v22 = vunpack.c.l.bf16 %v5307_v11  ;;  %v5308_v3 = vld [vmem:[%s6707_s24 + $0x78] sm:$0xff]  }
 0x2d7   : > { %v5443_v61 = vpop.eup %5442  ;;  %v4272_v63 = vadd.f32 1.0, %v5441_v48 }
 0x2d8   : > { %v4335_v60 = vmul.f32 %v5443_v61, %v4143_v40  ;;  %5444 = vpow2.f32 %v4236_v5  ;;  %v4110_v59 = vadd.f32 %v4072_v15, %v3885_v8  ;;  %v3624_v42 = vpop.f32.mrf.mxu2  ;;  %v5284_v40 = vunpack.c.l.bf16 %v5306_v34 }
 0x2d9   : > { %5446 = vrcp.f32 %v4272_v63  ;;  %v3661_v27 = vadd.f32 %v3624_v42, %v3420_v37 }
 0x2da   : > { %v4431_v33 = vadd.f32 %v5281_v28, %v4335_v60  ;;  %v4146_v49 = vadd.f32 %v7059_v31, %v4110_v59 }
 0x2dc   : > { %v4463_v45 = vpack.c.bf16 %v4431_v33, %v4431_v33  ;;  %v4178_v16 = vsub.f32 0.0, %v4146_v49  ;;  %v4074_v19 = vpop.f32.mrf.mxu0 }
 0x2dd   : > { %v3849_v25 = vpop.f32.mrf.mxu3  ;;  %v3388_v4 = vpop.f32.mrf.mxu1 }
 0x2de   : > { %v5445_v14 = vpop.eup %5444  ;;  %4496 = vst.msk [vmem:[%s6778_s27 + $0x64] sm:$0xf] %vm4470_vm7, %v4463_v45  ;;  %v4238_v2 = vmul.f32 1.442695, %v4178_v16  ;;  %v3886_v0 = vadd.f32 %v3849_v25, %v3661_v27  ;;  %v3422_v62 = vadd.f32 %v3388_v4, %v7200_v23 }
 0x2df   : > { %v5447_v52 = vpop.eup %5446  ;;  %v4273_v1 = vadd.f32 1.0, %v5445_v14 }
 0x2e0   : > { %v4336_v51 = vmul.f32 %v5447_v52, %v4144_v41  ;;  %5448 = vpow2.f32 %v4238_v2  ;;  %v4111_v43 = vadd.f32 %v4074_v19, %v3886_v0  ;;  %v3627_v39 = vpop.f32.mrf.mxu2  ;;  %v5285_v41 = vunpack.c.h.bf16 %v5306_v34 }
 0x2e1   : > { %5450 = vrcp.f32 %v4273_v1  ;;  %v3662_v21 = vadd.f32 %v3627_v39, %v3421_v36  ;;  %v5293_v2 = vunpack.c.h.bf16 %v5308_v3 }
 0x2e2   : > { %v4432_v35 = vadd.f32 %v5284_v40, %v4336_v51  ;;  %v4147_v17 = vadd.f32 %v7059_v31, %v4111_v43 }
 0x2e4   : > { %v4464_v29 = vpack.c.bf16 %v4432_v35, %v4432_v35  ;;  %v4179_v7 = vsub.f32 0.0, %v4147_v17  ;;  %v4077_v55 = vpop.f32.mrf.mxu0 }
 0x2e5   : > { %v3852_v46 = vpop.f32.mrf.mxu3 }
 0x2e6   : > { %v5449_v38 = vpop.eup %5448  ;;  %4497 = vst.msk [vmem:[%s6778_s27 + $0x68] sm:$0xf] %vm4470_vm7, %v4464_v29  ;;  %v4240_v54 = vmul.f32 1.442695, %v4179_v7  ;;  %v3887_v24 = vadd.f32 %v3852_v46, %v3662_v21 }
 0x2e7   : > { %v5451_v13 = vpop.eup %5450  ;;  %v4274_v30 = vadd.f32 1.0, %v5449_v38 }
 0x2e8   : > { %v4337_v12 = vmul.f32 %v5451_v13, %v4145_v44  ;;  %5452 = vpow2.f32 %v4240_v54  ;;  %v4112_v57 = vadd.f32 %v4077_v55, %v3887_v24  ;;  %v3629_v56 = vpop.f32.mrf.mxu2 }
 0x2e9   : > { %5454 = vrcp.f32 %v4274_v30  ;;  %v3663_v26 = vadd.f32 %v3629_v56, %v3422_v62 }
 0x2ea   : > { %v4433_v47 = vadd.f32 %v5285_v41, %v4337_v12  ;;  %v4148_v58 = vadd.f32 %v7059_v31, %v4112_v57 }
 0x2ec   : > { %v4465_v18 = vpack.c.bf16 %v4433_v47, %v4433_v47  ;;  %v4180_v50 = vsub.f32 0.0, %v4148_v58  ;;  %v4079_v48 = vpop.f32.mrf.mxu0 }
 0x2ed   : > { %v3854_v9 = vpop.f32.mrf.mxu3 }
 0x2ee   : > { %v5453_v20 = vpop.eup %5452  ;;  %4498 = vst.msk [vmem:[%s6778_s27 + $0x6c] sm:$0xf] %vm4470_vm7, %v4465_v18  ;;  %v4242_v44 = vmul.f32 1.442695, %v4180_v50  ;;  %v3888_v10 = vadd.f32 %v3854_v9, %v3663_v26 }
 0x2ef   : > { %v5455_v15 = vpop.eup %5454  ;;  %v4275_v6 = vadd.f32 1.0, %v5453_v20 }
 0x2f0   : > { %v4338_v28 = vmul.f32 %v5455_v15, %v4146_v49  ;;  %5456 = vpow2.f32 %v4242_v44  ;;  %v4113_v5 = vadd.f32 %v4079_v48, %v3888_v10 }
 0x2f1   : > { %5458 = vrcp.f32 %v4275_v6 }
 0x2f2   : > { %v4434_v8 = vadd.f32 %v5288_v22, %v4338_v28  ;;  %v4149_v61 = vadd.f32 %v7059_v31, %v4113_v5  ;;  %v5292_v31 = vunpack.c.l.bf16 %v5308_v3 }
 0x2f4   : > { %v4466_v63 = vpack.c.bf16 %v4434_v8, %v4434_v8  ;;  %v4181_v60 = vsub.f32 0.0, %v4149_v61 }
 0x2f6   : > { %v5457_v59 = vpop.eup %5456  ;;  %4499 = vst.msk [vmem:[%s6778_s27 + $0x70] sm:$0xf] %vm4470_vm7, %v4466_v63  ;;  %v4244_v37 = vmul.f32 1.442695, %v4181_v60 }
 0x2f7   : > { %v5459_v42 = vpop.eup %5458  ;;  %v4276_v33 = vadd.f32 1.0, %v5457_v59 }
 0x2f8   : > { %v4339_v27 = vmul.f32 %v5459_v42, %v4147_v17  ;;  %5460 = vpow2.f32 %v4244_v37 }
 0x2f9   : > { %5462 = vrcp.f32 %v4276_v33 }
 0x2fa   : > { %v4435_v49 = vadd.f32 %v5289_v32, %v4339_v27 }
 0x2fc   : > { %v4467_v34 = vpack.c.bf16 %v4435_v49, %v4435_v49 }
 0x2fe   : > { %v5461_v45 = vpop.eup %5460  ;;  %4500 = vst.msk [vmem:[%s6778_s27 + $0x74] sm:$0xf] %vm4470_vm7, %v4467_v34 }
 0x2ff   : > { %v5463_v16 = vpop.eup %5462  ;;  %v4277_v19 = vadd.f32 1.0, %v5461_v45 }
 0x300   : > { %v4340_v25 = vmul.f32 %v5463_v16, %v4148_v58 }
 0x301   : > { %5464 = vrcp.f32 %v4277_v19 }
 0x302   : > { %v4436_v14 = vadd.f32 %v5292_v31, %v4340_v25 }
 0x304   : > { %v4468_v40 = vpack.c.bf16 %v4436_v14, %v4436_v14 }
 0x306   : > { %4501 = vst.msk [vmem:[%s6778_s27 + $0x78] sm:$0xf] %vm4470_vm7, %v4468_v40 }
 0x307   : > { %v5465_v0 = vpop.eup %5464 }
 0x308   : > { %v4341_v52 = vmul.f32 %v5465_v0, %v4149_v61 }
 0x30a   : > { %v4437_v1 = vadd.f32 %v5293_v2, %v4341_v52 }
 0x30c   : > { %v4469_v51 = vpack.c.bf16 %v4437_v1, %v4437_v1 }
 0x30e   : > { %4502 = vst.msk [vmem:[%s6778_s27 + $0x7c] sm:$0xf] %vm4470_vm7, %v4469_v51 }
 0x30f PF: > { %s14_s17 = sadd.s32 1, %s5539_s17   ;;  %s7201_s15 = smov %s5535_s16 }
 0x310   : > { %p11_p5 = scmp.ge.s32.totalorder %s14_s17, 4   ;;  %s7202_s16 = smov %s7204_s18 }
 0x312   :  { %13 = sbr.rel (!%p11_p5) target bundleno = 2 (0x2), region = 71 }

</bundles_post_ra>
